<compile_context>
chip_gen: v6e
topology: v6e:2x2x1
jax: 0.10.0
libtpu: 0.0.40
codegen_flags: <defaults>
</compile_context>

<pallas_src>
import functools

import jax
import jax.numpy as jnp
import numpy as np
from jax.experimental import pallas as pl
from jax.experimental.pallas import tpu as pltpu

NEG_SLOPE = 0.1       # relu=0.1 -> LeakyReLU(0.1)
BN_EPS = 1e-5
FRAMES = 19           # fixed by the architecture (Linear(1024) = 256*4*1)
_T2, _T3 = 9, 4       # frame counts after the stride-2 convs: 19 -> 9 -> 4
_CI2, _CO2 = 64, 128  # encoder Conv_2 channels
_CI3, _CO3 = 128, 256 # encoder Conv_3 channels

# Static per-band input-column offsets (fixed by the architecture, not weights).
_ENC2_STARTS = tuple(2 * t * _CI2 for t in range(_T2))                           # width 192
_ENC3_STARTS = tuple(2 * t * _CI3 for t in range(_T3))                           # width 384
_DEC3_STARTS = tuple(max(0, min(t // 2, _T3 - 1) - 1) * 256 for t in range(_T2)) # width 512
_DEC2_PAIRS = (FRAMES + 1) // 2                                                  # 10 (last pair padded)
_DEC2_STARTS = tuple(min(max(m - 1, 0), _T2 - 2) * 128 for m in range(_DEC2_PAIRS))  # width 256


def _round_up(x, m):
    return (x + m - 1) // m * m


# --------------------------------------------------------------------------
# Pallas kernel: whole VAE forward for one batch tile (banded matmul chain)
# --------------------------------------------------------------------------
def _vae_kernel(x_ref,
                w1, b1, w2b, b2, w3b, b3, wfc, bfc, wml,
                wdfc, bdfc, wd3b, bd3, wd2b, bd2, wd1, bd1,
                out_ref, mulv_ref, *, neg_slope):
    def act(y):
        # f32 epilogue (safe on v5e which has no bf16 VALU).
        return jnp.where(y >= 0, y, neg_slope * y)

    def dense(h, w_ref, b_ref):
        acc = jnp.dot(h.astype(jnp.bfloat16), w_ref[...],
                      preferred_element_type=jnp.float32)
        return act(acc + b_ref[...])                 # folded-BN shift + LeakyReLU

    def banded(h, bands_ref, b_ref, starts):
        # Statically unrolled per-output-frame band matmuls: contiguous,
        # 128-aligned lane slices of the activation, no zero-padded MACs.
        h16 = h.astype(jnp.bfloat16)
        shared = len(bands_ref.shape) == 2           # same band for all frames
        width = bands_ref.shape[0] if shared else bands_ref.shape[1]
        w_shared = bands_ref[...] if shared else None
        pieces = []
        for i, s in enumerate(starts):
            w = w_shared if shared else bands_ref[i]
            pieces.append(jnp.dot(h16[:, s:s + width], w,
                                  preferred_element_type=jnp.float32))
        return act(jnp.concatenate(pieces, axis=1) + b_ref[...])

    # ---- Encoder ----
    h = dense(x_ref[...], w1, b1)                    # Conv_1 (1,F)         -> (TB, 19*64)
    h = banded(h, w2b, b2, _ENC2_STARTS)             # Conv_2 (3,1) s(2,1)  -> (TB,  9*128)
    h = banded(h, w3b, b3, _ENC3_STARTS)             # Conv_3 (3,1) s(2,1)  -> (TB,  4*256)
    h = dense(h, wfc, bfc)                           # Fc1                  -> (TB, 512)
    ml = jnp.dot(h.astype(jnp.bfloat16), wml[...],
                 preferred_element_type=jnp.float32) # [mu | log_var | pad] -> (TB, z2p)
    mulv_ref[...] = ml

    # ---- Decoder (eval: z = mu; wdfc's log_var / pad rows are zero) ----
    h = dense(ml, wdfc, bdfc)                        # Gauss o Fc1          -> (TB, 4*256)
    h = banded(h, wd3b, bd3, _DEC3_STARTS)           # ConvT_3 (3,1) s(2,1) -> (TB, 9*128)
    h = banded(h, wd2b, bd2, _DEC2_STARTS)           # ConvT_2 (3,1) s(2,1) -> (TB, 20*64 incl. pad frame)
    h = dense(h, wd1, bd1)                           # ConvT_1 (1,F) + BN(1)-> (TB, d_out_p)
    out_ref[...] = h.astype(out_ref.dtype)


_WEIGHT_ORDER = ("w1", "b1", "w2b", "b2", "w3b", "b3", "wfc", "bfc", "wml",
                 "wdfc", "bdfc", "wd3b", "bd3", "wd2b", "bd2", "wd1", "bd1")


def _const_index_map(ndim):
    return lambda i: (0,) * ndim


def vae_forward(prepared, x, *, z_dim, tile_b=256):
    """x: (B, 19, F) float.  Returns (out, mu, log_var, z) like VAE.forward (eval)."""
    B, T, F = x.shape
    assert T == FRAMES, (T, FRAMES)
    d_in = prepared["w1"].shape[0]
    assert d_in == T * F, (d_in, T, F)
    z2p = prepared["wml"].shape[1]          # padded [mu|log_var] lane width (>=128)
    d_out_p = prepared["wd1"].shape[1]      # padded output lane width (multiple of 128)
    d_out = FRAMES * F

    x2 = x.reshape(B, d_in).astype(jnp.bfloat16)
    # >=2 batch tiles whenever possible so ("parallel",) shards across v7x's
    # two TensorCores; 16-row alignment for bf16 sublane packing.
    # On v5e/v6e (128 MiB VMEM) tile_b=512 is a reasonable override.
    tb = max(16, min(tile_b, _round_up((B + 1) // 2, 16)))
    bp = _round_up(B, tb)
    if bp != B:
        x2 = jnp.pad(x2, ((0, bp - B), (0, 0)))

    w_args = [prepared[k] for k in _WEIGHT_ORDER]
    # Grid-invariant weights/biases: single-buffer them (constant index map,
    # the default double-buffering would only burn VMEM).
    w_specs = [pl.BlockSpec(a.shape, _const_index_map(a.ndim),
                            pipeline_mode=pl.Buffered(1)) for a in w_args]

    # Static cost / VMEM accounting from the prepared shapes.
    weight_bytes = sum(int(a.size) * a.dtype.itemsize for a in w_args)
    band_mults = {"w2b": len(_ENC2_STARTS), "w3b": len(_ENC3_STARTS)}
    macs_per_row = sum(band_mults.get(k, 1) * int(np.prod(prepared[k].shape))
                       for k in _WEIGHT_ORDER if k.startswith("w"))
    tile_io_bytes = 2 * (tb * d_in * 2 + tb * d_out_p * 4 + tb * z2p * 4)
    act_scratch_bytes = 8 * tb * 1280 * 4        # rough bound on live f32 intermediates
    vmem_need = weight_bytes + tile_io_bytes + act_scratch_bytes
    # Leave headroom below v7x's 64 MiB/TC; never request less than 32 MiB.
    vmem_limit = int(min(56 * 1024 * 1024, max(32 * 1024 * 1024, vmem_need)))

    out2, mulv = pl.pallas_call(
        functools.partial(_vae_kernel, neg_slope=NEG_SLOPE),
        out_shape=(jax.ShapeDtypeStruct((bp, d_out_p), jnp.float32),
                   jax.ShapeDtypeStruct((bp, z2p), jnp.float32)),
        grid=(bp // tb,),
        in_specs=[pl.BlockSpec((tb, d_in), lambda i: (i, 0))] + w_specs,
        out_specs=(pl.BlockSpec((tb, d_out_p), lambda i: (i, 0)),
                   pl.BlockSpec((tb, z2p), lambda i: (i, 0))),
        compiler_params=pltpu.CompilerParams(
            dimension_semantics=("parallel",),
            vmem_limit_bytes=vmem_limit),
        cost_estimate=pl.CostEstimate(
            flops=2 * bp * macs_per_row,
            transcendentals=0,
            bytes_accessed=int(x2.size) * 2 + bp * (d_out_p + z2p) * 4 + weight_bytes),
    )(x2, *w_args)

    out = out2[:B, :d_out].reshape(B, FRAMES, F)
    mu = mulv[:B, :z_dim]
    log_var = mulv[:B, z_dim:2 * z_dim]
    z = mu                                   # reparameterize() in eval mode
    return out, mu, log_var, z


# --------------------------------------------------------------------------
# One-time weight preparation (outside jit): fold BN / flatten orders / pads
# into bf16 band & dense matrices plus (1, N) f32 shift rows.
# --------------------------------------------------------------------------
def _bn_fold(bn):
    gamma = np.asarray(bn["gamma"], np.float32)
    beta = np.asarray(bn["beta"], np.float32)
    mean = np.asarray(bn["mean"], np.float32)
    var = np.asarray(bn["var"], np.float32)
    scale = gamma / np.sqrt(var + BN_EPS)
    return scale, beta - mean * scale


def _conv_band(w):
    """Conv2d(Ci,Co,(3,1),stride=(2,1)) -> one (3*Ci, Co) band (same for every
    output frame; the input window is frames [2t, 2t+2])."""
    co, ci, k, _ = w.shape
    band = np.zeros((k * ci, co), np.float32)
    for j in range(k):
        band[j * ci:(j + 1) * ci, :] = w[:, :, j, 0].T
    return band


def _convT_bands(w, t_in, col_starts):
    """ConvTranspose2d(Ci,Co,(3,1),stride=(2,1)) -> (n_bands, 2*Ci, Co); band
    `to` reads the two input frames starting at col_starts[to]."""
    ci, co, k, _ = w.shape
    bands = np.zeros((len(col_starts), 2 * ci, co), np.float32)
    for to, cs in enumerate(col_starts):
        f_lo = cs // ci
        for j in range(k):
            if (to - j) % 2 == 0:
                ti = (to - j) // 2
                if 0 <= ti < t_in:
                    assert f_lo <= ti <= f_lo + 1, (to, j, ti, f_lo)
                    bands[to, (ti - f_lo) * ci:(ti - f_lo + 1) * ci, :] = w[:, :, j, 0]
    return bands


def _convT_pair_bands(w, t_in, t_out, col_starts):
    """Same as _convT_bands but output frames grouped in pairs so each output
    chunk is 2*Co = 128 lanes wide; the final half-pair's second slot is a
    zero pad frame (its columns are ignored downstream)."""
    ci, co, k, _ = w.shape
    bands = np.zeros((len(col_starts), 2 * ci, 2 * co), np.float32)
    for m, cs in enumerate(col_starts):
        f_lo = cs // ci
        for q in range(2):
            to = 2 * m + q
            if to >= t_out:
                continue
            for j in range(k):
                if (to - j) % 2 == 0:
                    ti = (to - j) // 2
                    if 0 <= ti < t_in:
                        assert f_lo <= ti <= f_lo + 1, (m, q, j, ti, f_lo)
                        bands[m, (ti - f_lo) * ci:(ti - f_lo + 1) * ci,
                              q * co:(q + 1) * co] = w[:, :, j, 0]
    return bands


def prepare_params(params, z_dim, n_filters):
    p = jax.tree_util.tree_map(lambda a: np.asarray(a, np.float32), params)
    F = n_filters
    out = {}

    def wput(name, mat):
        out[name] = jnp.asarray(np.asarray(mat, np.float32), jnp.bfloat16)

    def bput(name, shift):
        out[name] = jnp.asarray(np.asarray(shift, np.float32)[None, :])

    # ---- Encoder ----
    # Conv_1: (1,F) kernel == per-frame (F,64) matmul -> block-diagonal.
    # TODO(synk): at large F this block-diagonal matrix is mostly zeros; it
    # could be banded in 8-frame (128-lane-aligned) groups like the stride-2
    # convs if the (1,F) layers ever dominate the MXU count.
    s, sh = _bn_fold(p["e_bn1"])
    w1 = p["e_conv1_w"][:, 0, 0, :].T                              # (F, 64)
    m1 = np.kron(np.eye(FRAMES, dtype=np.float32), w1)
    wput("w1", m1 * np.tile(s, FRAMES)[None, :])
    bput("b1", np.tile(sh, FRAMES))

    # Conv_2 / Conv_3: per-output-frame bands (no zero-padded MACs).
    s, sh = _bn_fold(p["e_bn2"])
    wput("w2b", _conv_band(p["e_conv2_w"]) * s[None, :])           # (192, 128)
    bput("b2", np.tile(sh, _T2))

    s, sh = _bn_fold(p["e_bn3"])
    wput("w3b", _conv_band(p["e_conv3_w"]) * s[None, :])           # (384, 256)
    bput("b3", np.tile(sh, _T3))

    # Fc1: fold PyTorch's channel-major NCHW flatten (index c*4+t) into rows.
    s, sh = _bn_fold(p["e_bnfc1"])
    wfc = p["e_fc1_w"].reshape(512, 256, _T3).transpose(2, 1, 0).reshape(256 * _T3, 512)
    wput("wfc", wfc * s[None, :])
    bput("bfc", sh)

    # mu / log_var -> one (512, z2p) matmul, lane-padded to a multiple of 128.
    z2p = _round_up(2 * z_dim, 128)
    wml = np.zeros((512, z2p), np.float32)
    wml[:, :z_dim] = p["e_mu_w"].T
    wml[:, z_dim:2 * z_dim] = p["e_logvar_w"].T
    wput("wml", wml)

    # ---- Decoder ----
    # Gauss(z->512) o Fc1(512->1024) premultiplied (no nonlinearity between),
    # BN(1024) folded, view(-1,256,4,1) channel-major order folded; rows padded
    # to z2p (log_var / lane-pad rows are zero because z = mu in eval mode).
    s, sh = _bn_fold(p["d_bnfc1"])
    wcomb = (p["d_gauss_w"].T @ p["d_fc1_w"].T) * s[None, :]       # (z, 1024)
    wcomb = wcomb.reshape(z_dim, 256, _T3).transpose(0, 2, 1).reshape(z_dim, 256 * _T3)
    wdfc = np.zeros((z2p, 256 * _T3), np.float32)
    wdfc[:z_dim] = wcomb
    wput("wdfc", wdfc)
    bput("bdfc", sh.reshape(256, _T3).T.reshape(-1))

    # ConvT_3 / ConvT_2: banded (ConvT_2 output frames paired -> 128-lane chunks).
    s, sh = _bn_fold(p["d_bn3"])
    wput("wd3b", _convT_bands(p["d_conv3_w"], _T3, _DEC3_STARTS) * s[None, None, :])
    bput("bd3", np.tile(sh, _T2))

    s, sh = _bn_fold(p["d_bn2"])
    wput("wd2b", _convT_pair_bands(p["d_conv2_w"], _T2, FRAMES, _DEC2_STARTS)
         * np.tile(s, 2)[None, None, :])
    bput("bd2", np.tile(sh, 2 * _DEC2_PAIRS))

    # ConvT_1: (1,F) kernel (64 -> F per frame); BN over its single channel.
    # Rows padded for ConvT_2's pad frame; columns zero-padded to a multiple of
    # 128 so the final store is lane-dense.
    s, sh = _bn_fold(p["d_bn1"])
    wd1_blk = p["d_conv1_w"][:, 0, 0, :]                           # (64, F)
    md1 = np.kron(np.eye(FRAMES, dtype=np.float32), wd1_blk) * s[0]
    d_out = FRAMES * F
    d_out_p = _round_up(d_out, 128)
    md1p = np.zeros((2 * _DEC2_PAIRS * 64, d_out_p), np.float32)
    md1p[:FRAMES * 64, :d_out] = md1
    wput("wd1", md1p)
    bd1 = np.zeros((d_out_p,), np.float32)
    bd1[:d_out] = sh[0]
    bput("bd1", bd1)

    return out


# --------------------------------------------------------------------------
# Deterministic parameter init (PyTorch layouts/shapes, all layers bias=False;
# BN running stats are non-trivial so the folding path is actually exercised).
# --------------------------------------------------------------------------
def init_params(key, z_dim, n_filters):
    ks = jax.random.split(key, 19)

    def w(k, shape, fan_in):
        return jax.random.normal(k, shape, jnp.float32) / jnp.sqrt(float(fan_in))

    def bn(k, c):
        k1, k2, k3, k4 = jax.random.split(k, 4)
        return dict(gamma=1.0 + 0.1 * jax.random.normal(k1, (c,), jnp.float32),
                    beta=0.1 * jax.random.normal(k2, (c,), jnp.float32),
                    mean=0.1 * jax.random.normal(k3, (c,), jnp.float32),
                    var=1.0 + 0.1 * jax.random.uniform(k4, (c,), jnp.float32))

    F = n_filters
    p = {}
    # Encoder
    p["e_conv1_w"] = w(ks[0], (64, 1, 1, F), F)            # Conv2d(1, 64, (1,F))
    p["e_bn1"] = bn(ks[11], 64)
    p["e_conv2_w"] = w(ks[1], (128, 64, 3, 1), 64 * 3)     # Conv2d(64,128,(3,1),s(2,1))
    p["e_bn2"] = bn(ks[12], 128)
    p["e_conv3_w"] = w(ks[2], (256, 128, 3, 1), 128 * 3)   # Conv2d(128,256,(3,1),s(2,1))
    p["e_bn3"] = bn(ks[13], 256)
    p["e_fc1_w"] = w(ks[3], (512, 1024), 1024)             # Linear(1024, 512)
    p["e_bnfc1"] = bn(ks[14], 512)
    p["e_mu_w"] = w(ks[4], (z_dim, 512), 512)              # Linear(512, z)
    p["e_logvar_w"] = w(ks[5], (z_dim, 512), 512)          # Linear(512, z)
    # Decoder
    p["d_gauss_w"] = w(ks[6], (512, z_dim), z_dim)         # Linear(z, 512)
    p["d_fc1_w"] = w(ks[7], (1024, 512), 512)              # Linear(512, 1024)
    p["d_bnfc1"] = bn(ks[15], 1024)
    p["d_conv3_w"] = w(ks[8], (256, 128, 3, 1), 256)       # ConvT(256,128,(3,1),s(2,1))
    p["d_bn3"] = bn(ks[16], 128)
    p["d_conv2_w"] = w(ks[9], (128, 64, 3, 1), 128)        # ConvT(128,64,(3,1),s(2,1))
    p["d_bn2"] = bn(ks[17], 64)
    p["d_conv1_w"] = w(ks[10], (64, 1, 1, F), 64)          # ConvT(64,1,(1,F))
    p["d_bn1"] = bn(ks[18], 1)
    return p


# --------------------------------------------------------------------------
# f32 NumPy mirror of the ORIGINAL (unfused, unfolded) PyTorch eval-mode math.
# --------------------------------------------------------------------------
def _torch_reference(params, x):
    g = lambda a: np.asarray(a, np.float32)
    x = g(x)
    B = x.shape[0]

    def act(y):
        return np.where(y >= 0, y, NEG_SLOPE * y)

    def bn(h, bnp):                        # channel axis = 1 (BN1d / BN2d, eval)
        s, sh = _bn_fold(bnp)
        shape = (1, -1) + (1,) * (h.ndim - 2)
        return h * s.reshape(shape) + sh.reshape(shape)

    def conv_s2(h, w):                     # h (B,Ci,T,1), w (Co,Ci,3,1), stride (2,1)
        t_out = (h.shape[2] - 3) // 2 + 1
        cols = [sum(h[:, :, 2 * t + j, 0] @ w[:, :, j, 0].T for j in range(3))
                for t in range(t_out)]
        return np.stack(cols, axis=2)[..., None]

    def convT_s2(h, w):                    # h (B,Ci,T,1), w (Ci,Co,3,1), stride (2,1)
        t_out = (h.shape[2] - 1) * 2 + 3
        y = np.zeros((B, w.shape[1], t_out, 1), np.float32)
        for ti in range(h.shape[2]):
            for j in range(3):
                y[:, :, 2 * ti + j, 0] += h[:, :, ti, 0] @ w[:, :, j, 0]
        return y

    # Encoder
    h = np.einsum('btf,cf->bct', x, g(params["e_conv1_w"])[:, 0, 0, :])[..., None]
    h = act(bn(h, params["e_bn1"]))
    h = act(bn(conv_s2(h, g(params["e_conv2_w"])), params["e_bn2"]))
    h = act(bn(conv_s2(h, g(params["e_conv3_w"])), params["e_bn3"]))
    h = h.reshape(B, 1024)                                    # NCHW flatten (c*4+t)
    h = act(bn(h @ g(params["e_fc1_w"]).T, params["e_bnfc1"]))
    mu = h @ g(params["e_mu_w"]).T
    log_var = h @ g(params["e_logvar_w"]).T
    z = mu                                                    # eval-mode reparameterize
    # Decoder
    h = z @ g(params["d_gauss_w"]).T
    h = act(bn(h @ g(params["d_fc1_w"]).T, params["d_bnfc1"]))
    h = h.reshape(B, 256, _T3, 1)
    h = act(bn(convT_s2(h, g(params["d_conv3_w"])), params["d_bn3"]))
    h = act(bn(convT_s2(h, g(params["d_conv2_w"])), params["d_bn2"]))
    h = np.einsum('bct,cf->btf', h[:, :, :, 0], g(params["d_conv1_w"])[:, 0, 0, :])
    h = act(bn(h[:, None], params["d_bn1"]))[:, 0]            # BN2d(1) + activation
    return h, mu, log_var, z


if __name__ == "__main__":
    Z_DIM = 32
    N_FILTERS = 16      # "F" (n_filters); small for a quick test
    BATCH = 4

    key = jax.random.PRNGKey(0)
    k_param, k_x = jax.random.split(key)
    params = init_params(k_param, Z_DIM, N_FILTERS)
    prepared = prepare_params(params, Z_DIM, N_FILTERS)   # one-time, outside jit

    x = jax.random.normal(k_x, (BATCH, FRAMES, N_FILTERS), jnp.float32)

    fwd = jax.jit(functools.partial(vae_forward, z_dim=Z_DIM))
    out, mu, log_var, z = fwd(prepared, x)
    jax.block_until_ready((out, mu, log_var, z))

    assert out.shape == (BATCH, FRAMES, N_FILTERS)
    assert mu.shape == (BATCH, Z_DIM)
    assert log_var.shape == (BATCH, Z_DIM)
    assert z.shape == (BATCH, Z_DIM)
    assert bool(jnp.all(jnp.isfinite(out)))

    # Parity vs an f32 mirror of the original PyTorch eval-mode forward.
    ref_out, ref_mu, ref_lv, ref_z = _torch_reference(params, x)
    np.testing.assert_allclose(np.asarray(out), ref_out, rtol=5e-2, atol=5e-2)
    np.testing.assert_allclose(np.asarray(mu), ref_mu, rtol=5e-2, atol=5e-2)
    np.testing.assert_allclose(np.asarray(log_var), ref_lv, rtol=5e-2, atol=5e-2)
    np.testing.assert_allclose(np.asarray(z), ref_z, rtol=5e-2, atol=5e-2)

    print("KERNEL_OK")
</pallas_src>

<mosaic_0001>
module attributes {stable_mosaic.version = 11 : i64} {
  func.func @_vae_kernel(%arg0: i32, %arg1: memref<16x304xbf16, #tpu.memory_space<vmem>>, %arg2: memref<304x1216xbf16, #tpu.memory_space<vmem>>, %arg3: memref<1x1216xf32, #tpu.memory_space<vmem>>, %arg4: memref<192x128xbf16, #tpu.memory_space<vmem>>, %arg5: memref<1x1152xf32, #tpu.memory_space<vmem>>, %arg6: memref<384x256xbf16, #tpu.memory_space<vmem>>, %arg7: memref<1x1024xf32, #tpu.memory_space<vmem>>, %arg8: memref<1024x512xbf16, #tpu.memory_space<vmem>>, %arg9: memref<1x512xf32, #tpu.memory_space<vmem>>, %arg10: memref<512x128xbf16, #tpu.memory_space<vmem>>, %arg11: memref<128x1024xbf16, #tpu.memory_space<vmem>>, %arg12: memref<1x1024xf32, #tpu.memory_space<vmem>>, %arg13: memref<9x512x128xbf16, #tpu.memory_space<vmem>>, %arg14: memref<1x1152xf32, #tpu.memory_space<vmem>>, %arg15: memref<10x256x128xbf16, #tpu.memory_space<vmem>>, %arg16: memref<1x1280xf32, #tpu.memory_space<vmem>>, %arg17: memref<1280x384xbf16, #tpu.memory_space<vmem>>, %arg18: memref<1x384xf32, #tpu.memory_space<vmem>>, %arg19: memref<16x384xf32, #tpu.memory_space<vmem>>, %arg20: memref<16x128xf32, #tpu.memory_space<vmem>>) attributes {dimension_semantics = [#tpu.dimension_semantics<parallel>], iteration_bounds = array<i64: 1>, scalar_prefetch = 0 : i64, scratch_operands = 0 : i64, tpu.core_type = #tpu.core_type<tc>, window_params = [{transform_indices = @transform_0, window_bounds = array<i64: 16, 304>}, {pipeline_mode = #tpu.pipeline_mode<synchronous>, transform_indices = @transform_1, window_bounds = array<i64: 304, 1216>}, {pipeline_mode = #tpu.pipeline_mode<synchronous>, transform_indices = @transform_2, window_bounds = array<i64: 1, 1216>}, {pipeline_mode = #tpu.pipeline_mode<synchronous>, transform_indices = @transform_3, window_bounds = array<i64: 192, 128>}, {pipeline_mode = #tpu.pipeline_mode<synchronous>, transform_indices = @transform_4, window_bounds = array<i64: 1, 1152>}, {pipeline_mode = #tpu.pipeline_mode<synchronous>, transform_indices = @transform_5, window_bounds = array<i64: 384, 256>}, {pipeline_mode = #tpu.pipeline_mode<synchronous>, transform_indices = @transform_6, window_bounds = array<i64: 1, 1024>}, {pipeline_mode = #tpu.pipeline_mode<synchronous>, transform_indices = @transform_7, window_bounds = array<i64: 1024, 512>}, {pipeline_mode = #tpu.pipeline_mode<synchronous>, transform_indices = @transform_8, window_bounds = array<i64: 1, 512>}, {pipeline_mode = #tpu.pipeline_mode<synchronous>, transform_indices = @transform_9, window_bounds = array<i64: 512, 128>}, {pipeline_mode = #tpu.pipeline_mode<synchronous>, transform_indices = @transform_10, window_bounds = array<i64: 128, 1024>}, {pipeline_mode = #tpu.pipeline_mode<synchronous>, transform_indices = @transform_11, window_bounds = array<i64: 1, 1024>}, {pipeline_mode = #tpu.pipeline_mode<synchronous>, transform_indices = @transform_12, window_bounds = array<i64: 9, 512, 128>}, {pipeline_mode = #tpu.pipeline_mode<synchronous>, transform_indices = @transform_13, window_bounds = array<i64: 1, 1152>}, {pipeline_mode = #tpu.pipeline_mode<synchronous>, transform_indices = @transform_14, window_bounds = array<i64: 10, 256, 128>}, {pipeline_mode = #tpu.pipeline_mode<synchronous>, transform_indices = @transform_15, window_bounds = array<i64: 1, 1280>}, {pipeline_mode = #tpu.pipeline_mode<synchronous>, transform_indices = @transform_16, window_bounds = array<i64: 1280, 384>}, {pipeline_mode = #tpu.pipeline_mode<synchronous>, transform_indices = @transform_17, window_bounds = array<i64: 1, 384>}, {transform_indices = @transform_18, window_bounds = array<i64: 16, 384>}, {transform_indices = @transform_19, window_bounds = array<i64: 16, 128>}]} {
    %c0 = arith.constant 0 : index
    %c0_0 = arith.constant 0 : index
    %0 = vector.load %arg1[%c0, %c0_0] : memref<16x304xbf16, #tpu.memory_space<vmem>>, vector<16x304xbf16>
    %c0_1 = arith.constant 0 : index
    %c0_2 = arith.constant 0 : index
    %1 = vector.load %arg2[%c0_1, %c0_2] : memref<304x1216xbf16, #tpu.memory_space<vmem>>, vector<304x1216xbf16>
    %cst = arith.constant dense<0.000000e+00> : vector<16x1216xf32>
    %2 = tpu.matmul %0, %1, %cst {dimension_numbers = #tpu.dot_dimension_numbers<[1], [0], [0], [1], [0, 0, 1, 1], [], []>} : vector<16x304xbf16>, vector<304x1216xbf16>, vector<16x1216xf32> -> vector<16x1216xf32>
    %c0_3 = arith.constant 0 : index
    %c0_4 = arith.constant 0 : index
    %3 = vector.load %arg3[%c0_3, %c0_4] : memref<1x1216xf32, #tpu.memory_space<vmem>>, vector<1x1216xf32>
    %4 = vector.broadcast %3 : vector<1x1216xf32> to vector<16x1216xf32>
    %5 = arith.addf %2, %4 : vector<16x1216xf32>
    %cst_5 = arith.constant 0.000000e+00 : f32
    %6 = vector.broadcast %cst_5 : f32 to vector<16x1216xf32>
    %7 = arith.cmpf oge, %5, %6 : vector<16x1216xf32>
    %cst_6 = arith.constant 1.000000e-01 : f32
    %8 = vector.broadcast %cst_6 : f32 to vector<16x1216xf32>
    %9 = arith.mulf %8, %5 : vector<16x1216xf32>
    %10 = arith.select %7, %5, %9 : vector<16x1216xi1>, vector<16x1216xf32>
    %11 = arith.truncf %10 : vector<16x1216xf32> to vector<16x1216xbf16>
    %c0_7 = arith.constant 0 : index
    %c0_8 = arith.constant 0 : index
    %12 = vector.load %arg4[%c0_7, %c0_8] : memref<192x128xbf16, #tpu.memory_space<vmem>>, vector<192x128xbf16>
    %13 = vector.extract_strided_slice %11 {offsets = [0, 0], sizes = [16, 192], strides = [1, 1]} : vector<16x1216xbf16> to vector<16x192xbf16>
    %cst_9 = arith.constant dense<0.000000e+00> : vector<16x128xf32>
    %14 = tpu.matmul %13, %12, %cst_9 {dimension_numbers = #tpu.dot_dimension_numbers<[1], [0], [0], [1], [0, 0, 1, 1], [], []>} : vector<16x192xbf16>, vector<192x128xbf16>, vector<16x128xf32> -> vector<16x128xf32>
    %15 = vector.extract_strided_slice %11 {offsets = [0, 128], sizes = [16, 192], strides = [1, 1]} : vector<16x1216xbf16> to vector<16x192xbf16>
    %cst_10 = arith.constant dense<0.000000e+00> : vector<16x128xf32>
    %16 = tpu.matmul %15, %12, %cst_10 {dimension_numbers = #tpu.dot_dimension_numbers<[1], [0], [0], [1], [0, 0, 1, 1], [], []>} : vector<16x192xbf16>, vector<192x128xbf16>, vector<16x128xf32> -> vector<16x128xf32>
    %17 = vector.extract_strided_slice %11 {offsets = [0, 256], sizes = [16, 192], strides = [1, 1]} : vector<16x1216xbf16> to vector<16x192xbf16>
    %cst_11 = arith.constant dense<0.000000e+00> : vector<16x128xf32>
    %18 = tpu.matmul %17, %12, %cst_11 {dimension_numbers = #tpu.dot_dimension_numbers<[1], [0], [0], [1], [0, 0, 1, 1], [], []>} : vector<16x192xbf16>, vector<192x128xbf16>, vector<16x128xf32> -> vector<16x128xf32>
    %19 = vector.extract_strided_slice %11 {offsets = [0, 384], sizes = [16, 192], strides = [1, 1]} : vector<16x1216xbf16> to vector<16x192xbf16>
    %cst_12 = arith.constant dense<0.000000e+00> : vector<16x128xf32>
    %20 = tpu.matmul %19, %12, %cst_12 {dimension_numbers = #tpu.dot_dimension_numbers<[1], [0], [0], [1], [0, 0, 1, 1], [], []>} : vector<16x192xbf16>, vector<192x128xbf16>, vector<16x128xf32> -> vector<16x128xf32>
    %21 = vector.extract_strided_slice %11 {offsets = [0, 512], sizes = [16, 192], strides = [1, 1]} : vector<16x1216xbf16> to vector<16x192xbf16>
    %cst_13 = arith.constant dense<0.000000e+00> : vector<16x128xf32>
    %22 = tpu.matmul %21, %12, %cst_13 {dimension_numbers = #tpu.dot_dimension_numbers<[1], [0], [0], [1], [0, 0, 1, 1], [], []>} : vector<16x192xbf16>, vector<192x128xbf16>, vector<16x128xf32> -> vector<16x128xf32>
    %23 = vector.extract_strided_slice %11 {offsets = [0, 640], sizes = [16, 192], strides = [1, 1]} : vector<16x1216xbf16> to vector<16x192xbf16>
    %cst_14 = arith.constant dense<0.000000e+00> : vector<16x128xf32>
    %24 = tpu.matmul %23, %12, %cst_14 {dimension_numbers = #tpu.dot_dimension_numbers<[1], [0], [0], [1], [0, 0, 1, 1], [], []>} : vector<16x192xbf16>, vector<192x128xbf16>, vector<16x128xf32> -> vector<16x128xf32>
    %25 = vector.extract_strided_slice %11 {offsets = [0, 768], sizes = [16, 192], strides = [1, 1]} : vector<16x1216xbf16> to vector<16x192xbf16>
    %cst_15 = arith.constant dense<0.000000e+00> : vector<16x128xf32>
    %26 = tpu.matmul %25, %12, %cst_15 {dimension_numbers = #tpu.dot_dimension_numbers<[1], [0], [0], [1], [0, 0, 1, 1], [], []>} : vector<16x192xbf16>, vector<192x128xbf16>, vector<16x128xf32> -> vector<16x128xf32>
    %27 = vector.extract_strided_slice %11 {offsets = [0, 896], sizes = [16, 192], strides = [1, 1]} : vector<16x1216xbf16> to vector<16x192xbf16>
    %cst_16 = arith.constant dense<0.000000e+00> : vector<16x128xf32>
    %28 = tpu.matmul %27, %12, %cst_16 {dimension_numbers = #tpu.dot_dimension_numbers<[1], [0], [0], [1], [0, 0, 1, 1], [], []>} : vector<16x192xbf16>, vector<192x128xbf16>, vector<16x128xf32> -> vector<16x128xf32>
    %29 = vector.extract_strided_slice %11 {offsets = [0, 1024], sizes = [16, 192], strides = [1, 1]} : vector<16x1216xbf16> to vector<16x192xbf16>
    %cst_17 = arith.constant dense<0.000000e+00> : vector<16x128xf32>
    %30 = tpu.matmul %29, %12, %cst_17 {dimension_numbers = #tpu.dot_dimension_numbers<[1], [0], [0], [1], [0, 0, 1, 1], [], []>} : vector<16x192xbf16>, vector<192x128xbf16>, vector<16x128xf32> -> vector<16x128xf32>
    %31 = tpu.concatenate %14, %16, %18, %20, %22, %24, %26, %28, %30 in 1 : vector<16x128xf32>, vector<16x128xf32>, vector<16x128xf32>, vector<16x128xf32>, vector<16x128xf32>, vector<16x128xf32>, vector<16x128xf32>, vector<16x128xf32>, vector<16x128xf32> -> vector<16x1152xf32>
    %c0_18 = arith.constant 0 : index
    %c0_19 = arith.constant 0 : index
    %32 = vector.load %arg5[%c0_18, %c0_19] : memref<1x1152xf32, #tpu.memory_space<vmem>>, vector<1x1152xf32>
    %33 = vector.broadcast %32 : vector<1x1152xf32> to vector<16x1152xf32>
    %34 = arith.addf %31, %33 : vector<16x1152xf32>
    %cst_20 = arith.constant 0.000000e+00 : f32
    %35 = vector.broadcast %cst_20 : f32 to vector<16x1152xf32>
    %36 = arith.cmpf oge, %34, %35 : vector<16x1152xf32>
    %cst_21 = arith.constant 1.000000e-01 : f32
    %37 = vector.broadcast %cst_21 : f32 to vector<16x1152xf32>
    %38 = arith.mulf %37, %34 : vector<16x1152xf32>
    %39 = arith.select %36, %34, %38 : vector<16x1152xi1>, vector<16x1152xf32>
    %40 = arith.truncf %39 : vector<16x1152xf32> to vector<16x1152xbf16>
    %c0_22 = arith.constant 0 : index
    %c0_23 = arith.constant 0 : index
    %41 = vector.load %arg6[%c0_22, %c0_23] : memref<384x256xbf16, #tpu.memory_space<vmem>>, vector<384x256xbf16>
    %42 = vector.extract_strided_slice %40 {offsets = [0, 0], sizes = [16, 384], strides = [1, 1]} : vector<16x1152xbf16> to vector<16x384xbf16>
    %cst_24 = arith.constant dense<0.000000e+00> : vector<16x256xf32>
    %43 = tpu.matmul %42, %41, %cst_24 {dimension_numbers = #tpu.dot_dimension_numbers<[1], [0], [0], [1], [0, 0, 1, 1], [], []>} : vector<16x384xbf16>, vector<384x256xbf16>, vector<16x256xf32> -> vector<16x256xf32>
    %44 = vector.extract_strided_slice %40 {offsets = [0, 256], sizes = [16, 384], strides = [1, 1]} : vector<16x1152xbf16> to vector<16x384xbf16>
    %cst_25 = arith.constant dense<0.000000e+00> : vector<16x256xf32>
    %45 = tpu.matmul %44, %41, %cst_25 {dimension_numbers = #tpu.dot_dimension_numbers<[1], [0], [0], [1], [0, 0, 1, 1], [], []>} : vector<16x384xbf16>, vector<384x256xbf16>, vector<16x256xf32> -> vector<16x256xf32>
    %46 = vector.extract_strided_slice %40 {offsets = [0, 512], sizes = [16, 384], strides = [1, 1]} : vector<16x1152xbf16> to vector<16x384xbf16>
    %cst_26 = arith.constant dense<0.000000e+00> : vector<16x256xf32>
    %47 = tpu.matmul %46, %41, %cst_26 {dimension_numbers = #tpu.dot_dimension_numbers<[1], [0], [0], [1], [0, 0, 1, 1], [], []>} : vector<16x384xbf16>, vector<384x256xbf16>, vector<16x256xf32> -> vector<16x256xf32>
    %48 = vector.extract_strided_slice %40 {offsets = [0, 768], sizes = [16, 384], strides = [1, 1]} : vector<16x1152xbf16> to vector<16x384xbf16>
    %cst_27 = arith.constant dense<0.000000e+00> : vector<16x256xf32>
    %49 = tpu.matmul %48, %41, %cst_27 {dimension_numbers = #tpu.dot_dimension_numbers<[1], [0], [0], [1], [0, 0, 1, 1], [], []>} : vector<16x384xbf16>, vector<384x256xbf16>, vector<16x256xf32> -> vector<16x256xf32>
    %50 = tpu.concatenate %43, %45, %47, %49 in 1 : vector<16x256xf32>, vector<16x256xf32>, vector<16x256xf32>, vector<16x256xf32> -> vector<16x1024xf32>
    %c0_28 = arith.constant 0 : index
    %c0_29 = arith.constant 0 : index
    %51 = vector.load %arg7[%c0_28, %c0_29] : memref<1x1024xf32, #tpu.memory_space<vmem>>, vector<1x1024xf32>
    %52 = vector.broadcast %51 : vector<1x1024xf32> to vector<16x1024xf32>
    %53 = arith.addf %50, %52 : vector<16x1024xf32>
    %cst_30 = arith.constant 0.000000e+00 : f32
    %54 = vector.broadcast %cst_30 : f32 to vector<16x1024xf32>
    %55 = arith.cmpf oge, %53, %54 : vector<16x1024xf32>
    %cst_31 = arith.constant 1.000000e-01 : f32
    %56 = vector.broadcast %cst_31 : f32 to vector<16x1024xf32>
    %57 = arith.mulf %56, %53 : vector<16x1024xf32>
    %58 = arith.select %55, %53, %57 : vector<16x1024xi1>, vector<16x1024xf32>
    %59 = arith.truncf %58 : vector<16x1024xf32> to vector<16x1024xbf16>
    %c0_32 = arith.constant 0 : index
    %c0_33 = arith.constant 0 : index
    %60 = vector.load %arg8[%c0_32, %c0_33] : memref<1024x512xbf16, #tpu.memory_space<vmem>>, vector<1024x512xbf16>
    %cst_34 = arith.constant dense<0.000000e+00> : vector<16x512xf32>
    %61 = tpu.matmul %59, %60, %cst_34 {dimension_numbers = #tpu.dot_dimension_numbers<[1], [0], [0], [1], [0, 0, 1, 1], [], []>} : vector<16x1024xbf16>, vector<1024x512xbf16>, vector<16x512xf32> -> vector<16x512xf32>
    %c0_35 = arith.constant 0 : index
    %c0_36 = arith.constant 0 : index
    %62 = vector.load %arg9[%c0_35, %c0_36] : memref<1x512xf32, #tpu.memory_space<vmem>>, vector<1x512xf32>
    %63 = vector.broadcast %62 : vector<1x512xf32> to vector<16x512xf32>
    %64 = arith.addf %61, %63 : vector<16x512xf32>
    %cst_37 = arith.constant 0.000000e+00 : f32
    %65 = vector.broadcast %cst_37 : f32 to vector<16x512xf32>
    %66 = arith.cmpf oge, %64, %65 : vector<16x512xf32>
    %cst_38 = arith.constant 1.000000e-01 : f32
    %67 = vector.broadcast %cst_38 : f32 to vector<16x512xf32>
    %68 = arith.mulf %67, %64 : vector<16x512xf32>
    %69 = arith.select %66, %64, %68 : vector<16x512xi1>, vector<16x512xf32>
    %70 = arith.truncf %69 : vector<16x512xf32> to vector<16x512xbf16>
    %c0_39 = arith.constant 0 : index
    %c0_40 = arith.constant 0 : index
    %71 = vector.load %arg10[%c0_39, %c0_40] : memref<512x128xbf16, #tpu.memory_space<vmem>>, vector<512x128xbf16>
    %cst_41 = arith.constant dense<0.000000e+00> : vector<16x128xf32>
    %72 = tpu.matmul %70, %71, %cst_41 {dimension_numbers = #tpu.dot_dimension_numbers<[1], [0], [0], [1], [0, 0, 1, 1], [], []>} : vector<16x512xbf16>, vector<512x128xbf16>, vector<16x128xf32> -> vector<16x128xf32>
    %c0_42 = arith.constant 0 : index
    %c0_43 = arith.constant 0 : index
    %73 = vector.load %arg20[%c0_42, %c0_43] : memref<16x128xf32, #tpu.memory_space<vmem>>, vector<16x128xf32>
    tpu.vector_store %arg20[%c0_42, %c0_43], %72 {strides = array<i32>} : memref<16x128xf32, #tpu.memory_space<vmem>>, vector<16x128xf32>,
    %74 = arith.truncf %72 : vector<16x128xf32> to vector<16x128xbf16>
    %c0_44 = arith.constant 0 : index
    %c0_45 = arith.constant 0 : index
    %75 = vector.load %arg11[%c0_44, %c0_45] : memref<128x1024xbf16, #tpu.memory_space<vmem>>, vector<128x1024xbf16>
    %cst_46 = arith.constant dense<0.000000e+00> : vector<16x1024xf32>
    %76 = tpu.matmul %74, %75, %cst_46 {dimension_numbers = #tpu.dot_dimension_numbers<[1], [0], [0], [1], [0, 0, 1, 1], [], []>} : vector<16x128xbf16>, vector<128x1024xbf16>, vector<16x1024xf32> -> vector<16x1024xf32>
    %c0_47 = arith.constant 0 : index
    %c0_48 = arith.constant 0 : index
    %77 = vector.load %arg12[%c0_47, %c0_48] : memref<1x1024xf32, #tpu.memory_space<vmem>>, vector<1x1024xf32>
    %78 = vector.broadcast %77 : vector<1x1024xf32> to vector<16x1024xf32>
    %79 = arith.addf %76, %78 : vector<16x1024xf32>
    %cst_49 = arith.constant 0.000000e+00 : f32
    %80 = vector.broadcast %cst_49 : f32 to vector<16x1024xf32>
    %81 = arith.cmpf oge, %79, %80 : vector<16x1024xf32>
    %cst_50 = arith.constant 1.000000e-01 : f32
    %82 = vector.broadcast %cst_50 : f32 to vector<16x1024xf32>
    %83 = arith.mulf %82, %79 : vector<16x1024xf32>
    %84 = arith.select %81, %79, %83 : vector<16x1024xi1>, vector<16x1024xf32>
    %85 = arith.truncf %84 : vector<16x1024xf32> to vector<16x1024xbf16>
    %c0_51 = arith.constant 0 : index
    %c0_52 = arith.constant 0 : index
    %c0_53 = arith.constant 0 : index
    %86 = vector.load %arg13[%c0_51, %c0_52, %c0_53] : memref<9x512x128xbf16, #tpu.memory_space<vmem>>, vector<1x512x128xbf16>
    %87 = vector.shape_cast %86 : vector<1x512x128xbf16> to vector<512x128xbf16>
    %88 = vector.extract_strided_slice %85 {offsets = [0, 0], sizes = [16, 512], strides = [1, 1]} : vector<16x1024xbf16> to vector<16x512xbf16>
    %cst_54 = arith.constant dense<0.000000e+00> : vector<16x128xf32>
    %89 = tpu.matmul %88, %87, %cst_54 {dimension_numbers = #tpu.dot_dimension_numbers<[1], [0], [0], [1], [0, 0, 1, 1], [], []>} : vector<16x512xbf16>, vector<512x128xbf16>, vector<16x128xf32> -> vector<16x128xf32>
    %c1 = arith.constant 1 : index
    %c0_55 = arith.constant 0 : index
    %c0_56 = arith.constant 0 : index
    %90 = vector.load %arg13[%c1, %c0_55, %c0_56] : memref<9x512x128xbf16, #tpu.memory_space<vmem>>, vector<1x512x128xbf16>
    %91 = vector.shape_cast %90 : vector<1x512x128xbf16> to vector<512x128xbf16>
    %92 = vector.extract_strided_slice %85 {offsets = [0, 0], sizes = [16, 512], strides = [1, 1]} : vector<16x1024xbf16> to vector<16x512xbf16>
    %cst_57 = arith.constant dense<0.000000e+00> : vector<16x128xf32>
    %93 = tpu.matmul %92, %91, %cst_57 {dimension_numbers = #tpu.dot_dimension_numbers<[1], [0], [0], [1], [0, 0, 1, 1], [], []>} : vector<16x512xbf16>, vector<512x128xbf16>, vector<16x128xf32> -> vector<16x128xf32>
    %c2 = arith.constant 2 : index
    %c0_58 = arith.constant 0 : index
    %c0_59 = arith.constant 0 : index
    %94 = vector.load %arg13[%c2, %c0_58, %c0_59] : memref<9x512x128xbf16, #tpu.memory_space<vmem>>, vector<1x512x128xbf16>
    %95 = vector.shape_cast %94 : vector<1x512x128xbf16> to vector<512x128xbf16>
    %96 = vector.extract_strided_slice %85 {offsets = [0, 0], sizes = [16, 512], strides = [1, 1]} : vector<16x1024xbf16> to vector<16x512xbf16>
    %cst_60 = arith.constant dense<0.000000e+00> : vector<16x128xf32>
    %97 = tpu.matmul %96, %95, %cst_60 {dimension_numbers = #tpu.dot_dimension_numbers<[1], [0], [0], [1], [0, 0, 1, 1], [], []>} : vector<16x512xbf16>, vector<512x128xbf16>, vector<16x128xf32> -> vector<16x128xf32>
    %c3 = arith.constant 3 : index
    %c0_61 = arith.constant 0 : index
    %c0_62 = arith.constant 0 : index
    %98 = vector.load %arg13[%c3, %c0_61, %c0_62] : memref<9x512x128xbf16, #tpu.memory_space<vmem>>, vector<1x512x128xbf16>
    %99 = vector.shape_cast %98 : vector<1x512x128xbf16> to vector<512x128xbf16>
    %100 = vector.extract_strided_slice %85 {offsets = [0, 0], sizes = [16, 512], strides = [1, 1]} : vector<16x1024xbf16> to vector<16x512xbf16>
    %cst_63 = arith.constant dense<0.000000e+00> : vector<16x128xf32>
    %101 = tpu.matmul %100, %99, %cst_63 {dimension_numbers = #tpu.dot_dimension_numbers<[1], [0], [0], [1], [0, 0, 1, 1], [], []>} : vector<16x512xbf16>, vector<512x128xbf16>, vector<16x128xf32> -> vector<16x128xf32>
    %c4 = arith.constant 4 : index
    %c0_64 = arith.constant 0 : index
    %c0_65 = arith.constant 0 : index
    %102 = vector.load %arg13[%c4, %c0_64, %c0_65] : memref<9x512x128xbf16, #tpu.memory_space<vmem>>, vector<1x512x128xbf16>
    %103 = vector.shape_cast %102 : vector<1x512x128xbf16> to vector<512x128xbf16>
    %104 = vector.extract_strided_slice %85 {offsets = [0, 256], sizes = [16, 512], strides = [1, 1]} : vector<16x1024xbf16> to vector<16x512xbf16>
    %cst_66 = arith.constant dense<0.000000e+00> : vector<16x128xf32>
    %105 = tpu.matmul %104, %103, %cst_66 {dimension_numbers = #tpu.dot_dimension_numbers<[1], [0], [0], [1], [0, 0, 1, 1], [], []>} : vector<16x512xbf16>, vector<512x128xbf16>, vector<16x128xf32> -> vector<16x128xf32>
    %c5 = arith.constant 5 : index
    %c0_67 = arith.constant 0 : index
    %c0_68 = arith.constant 0 : index
    %106 = vector.load %arg13[%c5, %c0_67, %c0_68] : memref<9x512x128xbf16, #tpu.memory_space<vmem>>, vector<1x512x128xbf16>
    %107 = vector.shape_cast %106 : vector<1x512x128xbf16> to vector<512x128xbf16>
    %108 = vector.extract_strided_slice %85 {offsets = [0, 256], sizes = [16, 512], strides = [1, 1]} : vector<16x1024xbf16> to vector<16x512xbf16>
    %cst_69 = arith.constant dense<0.000000e+00> : vector<16x128xf32>
    %109 = tpu.matmul %108, %107, %cst_69 {dimension_numbers = #tpu.dot_dimension_numbers<[1], [0], [0], [1], [0, 0, 1, 1], [], []>} : vector<16x512xbf16>, vector<512x128xbf16>, vector<16x128xf32> -> vector<16x128xf32>
    %c6 = arith.constant 6 : index
    %c0_70 = arith.constant 0 : index
    %c0_71 = arith.constant 0 : index
    %110 = vector.load %arg13[%c6, %c0_70, %c0_71] : memref<9x512x128xbf16, #tpu.memory_space<vmem>>, vector<1x512x128xbf16>
    %111 = vector.shape_cast %110 : vector<1x512x128xbf16> to vector<512x128xbf16>
    %112 = vector.extract_strided_slice %85 {offsets = [0, 512], sizes = [16, 512], strides = [1, 1]} : vector<16x1024xbf16> to vector<16x512xbf16>
    %cst_72 = arith.constant dense<0.000000e+00> : vector<16x128xf32>
    %113 = tpu.matmul %112, %111, %cst_72 {dimension_numbers = #tpu.dot_dimension_numbers<[1], [0], [0], [1], [0, 0, 1, 1], [], []>} : vector<16x512xbf16>, vector<512x128xbf16>, vector<16x128xf32> -> vector<16x128xf32>
    %c7 = arith.constant 7 : index
    %c0_73 = arith.constant 0 : index
    %c0_74 = arith.constant 0 : index
    %114 = vector.load %arg13[%c7, %c0_73, %c0_74] : memref<9x512x128xbf16, #tpu.memory_space<vmem>>, vector<1x512x128xbf16>
    %115 = vector.shape_cast %114 : vector<1x512x128xbf16> to vector<512x128xbf16>
    %116 = vector.extract_strided_slice %85 {offsets = [0, 512], sizes = [16, 512], strides = [1, 1]} : vector<16x1024xbf16> to vector<16x512xbf16>
    %cst_75 = arith.constant dense<0.000000e+00> : vector<16x128xf32>
    %117 = tpu.matmul %116, %115, %cst_75 {dimension_numbers = #tpu.dot_dimension_numbers<[1], [0], [0], [1], [0, 0, 1, 1], [], []>} : vector<16x512xbf16>, vector<512x128xbf16>, vector<16x128xf32> -> vector<16x128xf32>
    %c8 = arith.constant 8 : index
    %c0_76 = arith.constant 0 : index
    %c0_77 = arith.constant 0 : index
    %118 = vector.load %arg13[%c8, %c0_76, %c0_77] : memref<9x512x128xbf16, #tpu.memory_space<vmem>>, vector<1x512x128xbf16>
    %119 = vector.shape_cast %118 : vector<1x512x128xbf16> to vector<512x128xbf16>
    %120 = vector.extract_strided_slice %85 {offsets = [0, 512], sizes = [16, 512], strides = [1, 1]} : vector<16x1024xbf16> to vector<16x512xbf16>
    %cst_78 = arith.constant dense<0.000000e+00> : vector<16x128xf32>
    %121 = tpu.matmul %120, %119, %cst_78 {dimension_numbers = #tpu.dot_dimension_numbers<[1], [0], [0], [1], [0, 0, 1, 1], [], []>} : vector<16x512xbf16>, vector<512x128xbf16>, vector<16x128xf32> -> vector<16x128xf32>
    %122 = tpu.concatenate %89, %93, %97, %101, %105, %109, %113, %117, %121 in 1 : vector<16x128xf32>, vector<16x128xf32>, vector<16x128xf32>, vector<16x128xf32>, vector<16x128xf32>, vector<16x128xf32>, vector<16x128xf32>, vector<16x128xf32>, vector<16x128xf32> -> vector<16x1152xf32>
    %c0_79 = arith.constant 0 : index
    %c0_80 = arith.constant 0 : index
    %123 = vector.load %arg14[%c0_79, %c0_80] : memref<1x1152xf32, #tpu.memory_space<vmem>>, vector<1x1152xf32>
    %124 = vector.broadcast %123 : vector<1x1152xf32> to vector<16x1152xf32>
    %125 = arith.addf %122, %124 : vector<16x1152xf32>
    %cst_81 = arith.constant 0.000000e+00 : f32
    %126 = vector.broadcast %cst_81 : f32 to vector<16x1152xf32>
    %127 = arith.cmpf oge, %125, %126 : vector<16x1152xf32>
    %cst_82 = arith.constant 1.000000e-01 : f32
    %128 = vector.broadcast %cst_82 : f32 to vector<16x1152xf32>
    %129 = arith.mulf %128, %125 : vector<16x1152xf32>
    %130 = arith.select %127, %125, %129 : vector<16x1152xi1>, vector<16x1152xf32>
    %131 = arith.truncf %130 : vector<16x1152xf32> to vector<16x1152xbf16>
    %c0_83 = arith.constant 0 : index
    %c0_84 = arith.constant 0 : index
    %c0_85 = arith.constant 0 : index
    %132 = vector.load %arg15[%c0_83, %c0_84, %c0_85] : memref<10x256x128xbf16, #tpu.memory_space<vmem>>, vector<1x256x128xbf16>
    %133 = vector.shape_cast %132 : vector<1x256x128xbf16> to vector<256x128xbf16>
    %134 = vector.extract_strided_slice %131 {offsets = [0, 0], sizes = [16, 256], strides = [1, 1]} : vector<16x1152xbf16> to vector<16x256xbf16>
    %cst_86 = arith.constant dense<0.000000e+00> : vector<16x128xf32>
    %135 = tpu.matmul %134, %133, %cst_86 {dimension_numbers = #tpu.dot_dimension_numbers<[1], [0], [0], [1], [0, 0, 1, 1], [], []>} : vector<16x256xbf16>, vector<256x128xbf16>, vector<16x128xf32> -> vector<16x128xf32>
    %c1_87 = arith.constant 1 : index
    %c0_88 = arith.constant 0 : index
    %c0_89 = arith.constant 0 : index
    %136 = vector.load %arg15[%c1_87, %c0_88, %c0_89] : memref<10x256x128xbf16, #tpu.memory_space<vmem>>, vector<1x256x128xbf16>
    %137 = vector.shape_cast %136 : vector<1x256x128xbf16> to vector<256x128xbf16>
    %138 = vector.extract_strided_slice %131 {offsets = [0, 0], sizes = [16, 256], strides = [1, 1]} : vector<16x1152xbf16> to vector<16x256xbf16>
    %cst_90 = arith.constant dense<0.000000e+00> : vector<16x128xf32>
    %139 = tpu.matmul %138, %137, %cst_90 {dimension_numbers = #tpu.dot_dimension_numbers<[1], [0], [0], [1], [0, 0, 1, 1], [], []>} : vector<16x256xbf16>, vector<256x128xbf16>, vector<16x128xf32> -> vector<16x128xf32>
    %c2_91 = arith.constant 2 : index
    %c0_92 = arith.constant 0 : index
    %c0_93 = arith.constant 0 : index
    %140 = vector.load %arg15[%c2_91, %c0_92, %c0_93] : memref<10x256x128xbf16, #tpu.memory_space<vmem>>, vector<1x256x128xbf16>
    %141 = vector.shape_cast %140 : vector<1x256x128xbf16> to vector<256x128xbf16>
    %142 = vector.extract_strided_slice %131 {offsets = [0, 128], sizes = [16, 256], strides = [1, 1]} : vector<16x1152xbf16> to vector<16x256xbf16>
    %cst_94 = arith.constant dense<0.000000e+00> : vector<16x128xf32>
    %143 = tpu.matmul %142, %141, %cst_94 {dimension_numbers = #tpu.dot_dimension_numbers<[1], [0], [0], [1], [0, 0, 1, 1], [], []>} : vector<16x256xbf16>, vector<256x128xbf16>, vector<16x128xf32> -> vector<16x128xf32>
    %c3_95 = arith.constant 3 : index
    %c0_96 = arith.constant 0 : index
    %c0_97 = arith.constant 0 : index
    %144 = vector.load %arg15[%c3_95, %c0_96, %c0_97] : memref<10x256x128xbf16, #tpu.memory_space<vmem>>, vector<1x256x128xbf16>
    %145 = vector.shape_cast %144 : vector<1x256x128xbf16> to vector<256x128xbf16>
    %146 = vector.extract_strided_slice %131 {offsets = [0, 256], sizes = [16, 256], strides = [1, 1]} : vector<16x1152xbf16> to vector<16x256xbf16>
    %cst_98 = arith.constant dense<0.000000e+00> : vector<16x128xf32>
    %147 = tpu.matmul %146, %145, %cst_98 {dimension_numbers = #tpu.dot_dimension_numbers<[1], [0], [0], [1], [0, 0, 1, 1], [], []>} : vector<16x256xbf16>, vector<256x128xbf16>, vector<16x128xf32> -> vector<16x128xf32>
    %c4_99 = arith.constant 4 : index
    %c0_100 = arith.constant 0 : index
    %c0_101 = arith.constant 0 : index
    %148 = vector.load %arg15[%c4_99, %c0_100, %c0_101] : memref<10x256x128xbf16, #tpu.memory_space<vmem>>, vector<1x256x128xbf16>
    %149 = vector.shape_cast %148 : vector<1x256x128xbf16> to vector<256x128xbf16>
    %150 = vector.extract_strided_slice %131 {offsets = [0, 384], sizes = [16, 256], strides = [1, 1]} : vector<16x1152xbf16> to vector<16x256xbf16>
    %cst_102 = arith.constant dense<0.000000e+00> : vector<16x128xf32>
    %151 = tpu.matmul %150, %149, %cst_102 {dimension_numbers = #tpu.dot_dimension_numbers<[1], [0], [0], [1], [0, 0, 1, 1], [], []>} : vector<16x256xbf16>, vector<256x128xbf16>, vector<16x128xf32> -> vector<16x128xf32>
    %c5_103 = arith.constant 5 : index
    %c0_104 = arith.constant 0 : index
    %c0_105 = arith.constant 0 : index
    %152 = vector.load %arg15[%c5_103, %c0_104, %c0_105] : memref<10x256x128xbf16, #tpu.memory_space<vmem>>, vector<1x256x128xbf16>
    %153 = vector.shape_cast %152 : vector<1x256x128xbf16> to vector<256x128xbf16>
    %154 = vector.extract_strided_slice %131 {offsets = [0, 512], sizes = [16, 256], strides = [1, 1]} : vector<16x1152xbf16> to vector<16x256xbf16>
    %cst_106 = arith.constant dense<0.000000e+00> : vector<16x128xf32>
    %155 = tpu.matmul %154, %153, %cst_106 {dimension_numbers = #tpu.dot_dimension_numbers<[1], [0], [0], [1], [0, 0, 1, 1], [], []>} : vector<16x256xbf16>, vector<256x128xbf16>, vector<16x128xf32> -> vector<16x128xf32>
    %c6_107 = arith.constant 6 : index
    %c0_108 = arith.constant 0 : index
    %c0_109 = arith.constant 0 : index
    %156 = vector.load %arg15[%c6_107, %c0_108, %c0_109] : memref<10x256x128xbf16, #tpu.memory_space<vmem>>, vector<1x256x128xbf16>
    %157 = vector.shape_cast %156 : vector<1x256x128xbf16> to vector<256x128xbf16>
    %158 = vector.extract_strided_slice %131 {offsets = [0, 640], sizes = [16, 256], strides = [1, 1]} : vector<16x1152xbf16> to vector<16x256xbf16>
    %cst_110 = arith.constant dense<0.000000e+00> : vector<16x128xf32>
    %159 = tpu.matmul %158, %157, %cst_110 {dimension_numbers = #tpu.dot_dimension_numbers<[1], [0], [0], [1], [0, 0, 1, 1], [], []>} : vector<16x256xbf16>, vector<256x128xbf16>, vector<16x128xf32> -> vector<16x128xf32>
    %c7_111 = arith.constant 7 : index
    %c0_112 = arith.constant 0 : index
    %c0_113 = arith.constant 0 : index
    %160 = vector.load %arg15[%c7_111, %c0_112, %c0_113] : memref<10x256x128xbf16, #tpu.memory_space<vmem>>, vector<1x256x128xbf16>
    %161 = vector.shape_cast %160 : vector<1x256x128xbf16> to vector<256x128xbf16>
    %162 = vector.extract_strided_slice %131 {offsets = [0, 768], sizes = [16, 256], strides = [1, 1]} : vector<16x1152xbf16> to vector<16x256xbf16>
    %cst_114 = arith.constant dense<0.000000e+00> : vector<16x128xf32>
    %163 = tpu.matmul %162, %161, %cst_114 {dimension_numbers = #tpu.dot_dimension_numbers<[1], [0], [0], [1], [0, 0, 1, 1], [], []>} : vector<16x256xbf16>, vector<256x128xbf16>, vector<16x128xf32> -> vector<16x128xf32>
    %c8_115 = arith.constant 8 : index
    %c0_116 = arith.constant 0 : index
    %c0_117 = arith.constant 0 : index
    %164 = vector.load %arg15[%c8_115, %c0_116, %c0_117] : memref<10x256x128xbf16, #tpu.memory_space<vmem>>, vector<1x256x128xbf16>
    %165 = vector.shape_cast %164 : vector<1x256x128xbf16> to vector<256x128xbf16>
    %166 = vector.extract_strided_slice %131 {offsets = [0, 896], sizes = [16, 256], strides = [1, 1]} : vector<16x1152xbf16> to vector<16x256xbf16>
    %cst_118 = arith.constant dense<0.000000e+00> : vector<16x128xf32>
    %167 = tpu.matmul %166, %165, %cst_118 {dimension_numbers = #tpu.dot_dimension_numbers<[1], [0], [0], [1], [0, 0, 1, 1], [], []>} : vector<16x256xbf16>, vector<256x128xbf16>, vector<16x128xf32> -> vector<16x128xf32>
    %c9 = arith.constant 9 : index
    %c0_119 = arith.constant 0 : index
    %c0_120 = arith.constant 0 : index
    %168 = vector.load %arg15[%c9, %c0_119, %c0_120] : memref<10x256x128xbf16, #tpu.memory_space<vmem>>, vector<1x256x128xbf16>
    %169 = vector.shape_cast %168 : vector<1x256x128xbf16> to vector<256x128xbf16>
    %170 = vector.extract_strided_slice %131 {offsets = [0, 896], sizes = [16, 256], strides = [1, 1]} : vector<16x1152xbf16> to vector<16x256xbf16>
    %cst_121 = arith.constant dense<0.000000e+00> : vector<16x128xf32>
    %171 = tpu.matmul %170, %169, %cst_121 {dimension_numbers = #tpu.dot_dimension_numbers<[1], [0], [0], [1], [0, 0, 1, 1], [], []>} : vector<16x256xbf16>, vector<256x128xbf16>, vector<16x128xf32> -> vector<16x128xf32>
    %172 = tpu.concatenate %135, %139, %143, %147, %151, %155, %159, %163, %167, %171 in 1 : vector<16x128xf32>, vector<16x128xf32>, vector<16x128xf32>, vector<16x128xf32>, vector<16x128xf32>, vector<16x128xf32>, vector<16x128xf32>, vector<16x128xf32>, vector<16x128xf32>, vector<16x128xf32> -> vector<16x1280xf32>
    %c0_122 = arith.constant 0 : index
    %c0_123 = arith.constant 0 : index
    %173 = vector.load %arg16[%c0_122, %c0_123] : memref<1x1280xf32, #tpu.memory_space<vmem>>, vector<1x1280xf32>
    %174 = vector.broadcast %173 : vector<1x1280xf32> to vector<16x1280xf32>
    %175 = arith.addf %172, %174 : vector<16x1280xf32>
    %cst_124 = arith.constant 0.000000e+00 : f32
    %176 = vector.broadcast %cst_124 : f32 to vector<16x1280xf32>
    %177 = arith.cmpf oge, %175, %176 : vector<16x1280xf32>
    %cst_125 = arith.constant 1.000000e-01 : f32
    %178 = vector.broadcast %cst_125 : f32 to vector<16x1280xf32>
    %179 = arith.mulf %178, %175 : vector<16x1280xf32>
    %180 = arith.select %177, %175, %179 : vector<16x1280xi1>, vector<16x1280xf32>
    %181 = arith.truncf %180 : vector<16x1280xf32> to vector<16x1280xbf16>
    %c0_126 = arith.constant 0 : index
    %c0_127 = arith.constant 0 : index
    %182 = vector.load %arg17[%c0_126, %c0_127] : memref<1280x384xbf16, #tpu.memory_space<vmem>>, vector<1280x384xbf16>
    %cst_128 = arith.constant dense<0.000000e+00> : vector<16x384xf32>
    %183 = tpu.matmul %181, %182, %cst_128 {dimension_numbers = #tpu.dot_dimension_numbers<[1], [0], [0], [1], [0, 0, 1, 1], [], []>} : vector<16x1280xbf16>, vector<1280x384xbf16>, vector<16x384xf32> -> vector<16x384xf32>
    %c0_129 = arith.constant 0 : index
    %c0_130 = arith.constant 0 : index
    %184 = vector.load %arg18[%c0_129, %c0_130] : memref<1x384xf32, #tpu.memory_space<vmem>>, vector<1x384xf32>
    %185 = vector.broadcast %184 : vector<1x384xf32> to vector<16x384xf32>
    %186 = arith.addf %183, %185 : vector<16x384xf32>
    %cst_131 = arith.constant 0.000000e+00 : f32
    %187 = vector.broadcast %cst_131 : f32 to vector<16x384xf32>
    %188 = arith.cmpf oge, %186, %187 : vector<16x384xf32>
    %cst_132 = arith.constant 1.000000e-01 : f32
    %189 = vector.broadcast %cst_132 : f32 to vector<16x384xf32>
    %190 = arith.mulf %189, %186 : vector<16x384xf32>
    %191 = arith.select %188, %186, %190 : vector<16x384xi1>, vector<16x384xf32>
    %c0_133 = arith.constant 0 : index
    %c0_134 = arith.constant 0 : index
    %192 = vector.load %arg19[%c0_133, %c0_134] : memref<16x384xf32, #tpu.memory_space<vmem>>, vector<16x384xf32>
    tpu.vector_store %arg19[%c0_133, %c0_134], %191 {strides = array<i32>} : memref<16x384xf32, #tpu.memory_space<vmem>>, vector<16x384xf32>,
    return
  }
  func.func @transform_0(%arg0: i32) -> (i32, i32) {
    %c0_i32 = arith.constant 0 : i32
    %c0_i32_0 = arith.constant 0 : i32
    return %arg0, %c0_i32 : i32, i32
  }
  func.func @transform_1(%arg0: i32) -> (i32, i32) {
    %c0_i32 = arith.constant 0 : i32
    %c0_i32_0 = arith.constant 0 : i32
    %c0_i32_1 = arith.constant 0 : i32
    return %c0_i32, %c0_i32_0 : i32, i32
  }
  func.func @transform_2(%arg0: i32) -> (i32, i32) {
    %c0_i32 = arith.constant 0 : i32
    %c0_i32_0 = arith.constant 0 : i32
    %c0_i32_1 = arith.constant 0 : i32
    return %c0_i32, %c0_i32_0 : i32, i32
  }
  func.func @transform_3(%arg0: i32) -> (i32, i32) {
    %c0_i32 = arith.constant 0 : i32
    %c0_i32_0 = arith.constant 0 : i32
    %c0_i32_1 = arith.constant 0 : i32
    return %c0_i32, %c0_i32_0 : i32, i32
  }
  func.func @transform_4(%arg0: i32) -> (i32, i32) {
    %c0_i32 = arith.constant 0 : i32
    %c0_i32_0 = arith.constant 0 : i32
    %c0_i32_1 = arith.constant 0 : i32
    return %c0_i32, %c0_i32_0 : i32, i32
  }
  func.func @transform_5(%arg0: i32) -> (i32, i32) {
    %c0_i32 = arith.constant 0 : i32
    %c0_i32_0 = arith.constant 0 : i32
    %c0_i32_1 = arith.constant 0 : i32
    return %c0_i32, %c0_i32_0 : i32, i32
  }
  func.func @transform_6(%arg0: i32) -> (i32, i32) {
    %c0_i32 = arith.constant 0 : i32
    %c0_i32_0 = arith.constant 0 : i32
    %c0_i32_1 = arith.constant 0 : i32
    return %c0_i32, %c0_i32_0 : i32, i32
  }
  func.func @transform_7(%arg0: i32) -> (i32, i32) {
    %c0_i32 = arith.constant 0 : i32
    %c0_i32_0 = arith.constant 0 : i32
    %c0_i32_1 = arith.constant 0 : i32
    return %c0_i32, %c0_i32_0 : i32, i32
  }
  func.func @transform_8(%arg0: i32) -> (i32, i32) {
    %c0_i32 = arith.constant 0 : i32
    %c0_i32_0 = arith.constant 0 : i32
    %c0_i32_1 = arith.constant 0 : i32
    return %c0_i32, %c0_i32_0 : i32, i32
  }
  func.func @transform_9(%arg0: i32) -> (i32, i32) {
    %c0_i32 = arith.constant 0 : i32
    %c0_i32_0 = arith.constant 0 : i32
    %c0_i32_1 = arith.constant 0 : i32
    return %c0_i32, %c0_i32_0 : i32, i32
  }
  func.func @transform_10(%arg0: i32) -> (i32, i32) {
    %c0_i32 = arith.constant 0 : i32
    %c0_i32_0 = arith.constant 0 : i32
    %c0_i32_1 = arith.constant 0 : i32
    return %c0_i32, %c0_i32_0 : i32, i32
  }
  func.func @transform_11(%arg0: i32) -> (i32, i32) {
    %c0_i32 = arith.constant 0 : i32
    %c0_i32_0 = arith.constant 0 : i32
    %c0_i32_1 = arith.constant 0 : i32
    return %c0_i32, %c0_i32_0 : i32, i32
  }
  func.func @transform_12(%arg0: i32) -> (i32, i32, i32) {
    %c0_i32 = arith.constant 0 : i32
    %c0_i32_0 = arith.constant 0 : i32
    %c0_i32_1 = arith.constant 0 : i32
    %c0_i32_2 = arith.constant 0 : i32
    return %c0_i32, %c0_i32_0, %c0_i32_1 : i32, i32, i32
  }
  func.func @transform_13(%arg0: i32) -> (i32, i32) {
    %c0_i32 = arith.constant 0 : i32
    %c0_i32_0 = arith.constant 0 : i32
    %c0_i32_1 = arith.constant 0 : i32
    return %c0_i32, %c0_i32_0 : i32, i32
  }
  func.func @transform_14(%arg0: i32) -> (i32, i32, i32) {
    %c0_i32 = arith.constant 0 : i32
    %c0_i32_0 = arith.constant 0 : i32
    %c0_i32_1 = arith.constant 0 : i32
    %c0_i32_2 = arith.constant 0 : i32
    return %c0_i32, %c0_i32_0, %c0_i32_1 : i32, i32, i32
  }
  func.func @transform_15(%arg0: i32) -> (i32, i32) {
    %c0_i32 = arith.constant 0 : i32
    %c0_i32_0 = arith.constant 0 : i32
    %c0_i32_1 = arith.constant 0 : i32
    return %c0_i32, %c0_i32_0 : i32, i32
  }
  func.func @transform_16(%arg0: i32) -> (i32, i32) {
    %c0_i32 = arith.constant 0 : i32
    %c0_i32_0 = arith.constant 0 : i32
    %c0_i32_1 = arith.constant 0 : i32
    return %c0_i32, %c0_i32_0 : i32, i32
  }
  func.func @transform_17(%arg0: i32) -> (i32, i32) {
    %c0_i32 = arith.constant 0 : i32
    %c0_i32_0 = arith.constant 0 : i32
    %c0_i32_1 = arith.constant 0 : i32
    return %c0_i32, %c0_i32_0 : i32, i32
  }
  func.func @transform_18(%arg0: i32) -> (i32, i32) {
    %c0_i32 = arith.constant 0 : i32
    %c0_i32_0 = arith.constant 0 : i32
    return %arg0, %c0_i32 : i32, i32
  }
  func.func @transform_19(%arg0: i32) -> (i32, i32) {
    %c0_i32 = arith.constant 0 : i32
    %c0_i32_0 = arith.constant 0 : i32
    return %arg0, %c0_i32 : i32, i32
  }
}

</mosaic_0001>

<bundles_post_ra>
// kernel: vae_forward.1
= control target key start
LH: loop header
LB: loop body
LE: loop exit
PB: predicated region body
PF: predicated region fallthrough
CT: control target
= control target key end

     0   :  { %s18705_s0 = inlined_call_operand.vmem [shape: bf16[16,304], index: 0, kind: input, shape index: {}]   ;;  %s18706_s1 = inlined_call_operand.hbm [shape: bf16[304,1216], index: 1, kind: input, shape index: {}]   ;;  %s18707_s2 = inlined_call_operand.hbm [shape: f32[1,1216], index: 2, kind: input, shape index: {}]   ;;  %s18708_s3 = inlined_call_operand.hbm [shape: bf16[192,128], index: 3, kind: input, shape index: {}]   ;;  %s18709_s4 = inlined_call_operand.hbm [shape: f32[1,1152], index: 4, kind: input, shape index: {}]   ;;  %s18710_s5 = inlined_call_operand.hbm [shape: bf16[384,256], index: 5, kind: input, shape index: {}]   ;;  %s18711_s6 = inlined_call_operand.hbm [shape: f32[1,1024], index: 6, kind: input, shape index: {}]   ;;  %s18712_s7 = inlined_call_operand.hbm [shape: bf16[1024,512], index: 7, kind: input, shape index: {}]   ;;  %s18713_s8 = inlined_call_operand.hbm [shape: f32[1,512], index: 8, kind: input, shape index: {}]   ;;  %s18714_s9 = inlined_call_operand.hbm [shape: bf16[512,128], index: 9, kind: input, shape index: {}]   ;;  %s18715_s10 = inlined_call_operand.hbm [shape: bf16[128,1024], index: 10, kind: input, shape index: {}]   ;;  %s18716_s11 = inlined_call_operand.hbm [shape: f32[1,1024], index: 11, kind: input, shape index: {}]   ;;  %s18717_s12 = inlined_call_operand.hbm [shape: bf16[9,512,128], index: 12, kind: input, shape index: {}]   ;;  %s18718_s13 = inlined_call_operand.hbm [shape: f32[1,1152], index: 13, kind: input, shape index: {}]   ;;  %s18719_s14 = inlined_call_operand.hbm [shape: bf16[10,256,128], index: 14, kind: input, shape index: {}]   ;;  %s18720_s15 = inlined_call_operand.hbm [shape: f32[1,1280], index: 15, kind: input, shape index: {}]   ;;  %s18721_s16 = inlined_call_operand.hbm [shape: bf16[1280,384], index: 16, kind: input, shape index: {}]   ;;  %s18722_s17 = inlined_call_operand.hbm [shape: f32[1,384], index: 17, kind: input, shape index: {}]   ;;  %s18723_s18 = inlined_call_operand.vmem [shape: f32[16,384], index: 18, kind: output, shape index: {0}]   ;;  %s18724_s19 = inlined_call_operand.vmem [shape: f32[16,128], index: 19, kind: output, shape index: {1}]  }
   0x1   :  { %18741 = sst [smem:[#allocation44_spill]] %s18705_s0 }
   0x2   :  { %18742 = sst [smem:[#allocation45_spill]] %s18706_s1 }
   0x3   :  { %18743 = sst [smem:[#allocation46_spill]] %s18707_s2 }
   0x4   :  { %18744 = sst [smem:[#allocation47_spill]] %s18708_s3 }
   0x5   :  { %25 = vsyncpa [#allocation3], 0 }
   0x6   :  { %26 = vsyncpa [#allocation5], 0 }
   0x7   :  { %27 = vsyncpa [#allocation8], 0 }
   0x8   :  { %28 = vsyncpa [#allocation11], 0 }
   0x9   :  { %29 = vsyncpa [#allocation14], 0 }
   0xa   :  { %30 = vsyncpa [#allocation17], 0 }
   0xb   :  { %31 = vsyncpa [#allocation20], 0 }
   0xc   :  { %32 = vsyncpa [#allocation23], 0 }
   0xd   :  { %33 = vsyncpa [#allocation26], 0  ;;  %s17487_s0 = smov [#allocation4]   ;;  %s17488_s20 = smov [#allocation7]  }
   0xe   :  { %s54_s30 = sshll.u32 %s17487_s0, 4  ;;  %s76_s21 = sshll.u32 %s17488_s20, 4  ;;  %s55_s30 = int_to_ptr.vmem [resolvable:$true] %s54_s30  ;;  %s77_s21 = int_to_ptr.vmem [resolvable:$true] %s76_s21 }
   0xf   :  { %s17137_s1 = scalar_lea.vmem %s55_s30, 160  ;;  %p17142_p1 = scmp.lt.s32.totalorder %s55_s30, %s55_s30 }
  0x10   :  { %p17138_p0 = scmp.ne.s32.totalorder %s55_s30, %s17137_s1  ;;  %p17143_p2 = scmp.lt.s32.totalorder %s17137_s1, %s17137_s1 }
  0x12   :  { %p17144_p3 = por %p17143_p2, %p17142_p1 }
  0x14   :  { %p17145_p4 = pnand %p17144_p3, %p17138_p0 }
  0x16   :  { %17148 = shalt.err (!%p17145_p4)
}
  0x17   :  { %s18745_s23 = sld [smem:[#allocation46_spill]]  ;;  %s17157_s24 = scalar_lea.vmem %s77_s21, 144 }
  0x18   :  { %p17158_p5 = scmp.ne.s32.totalorder %s77_s21, %s17157_s24  ;;  %s17161_s25 = scalar_lea.vmem %s77_s21, 160 }
  0x19   :  { %p17162_p6 = scmp.lt.s32.totalorder %s77_s21, %s77_s21  ;;  %p17163_p7 = scmp.lt.s32.totalorder %s17161_s25, %s17157_s24 }
  0x1b   :  { %p17164_p8 = por %p17163_p7, %p17162_p6 }
  0x1d   :  { %57 = dma.hbm_to_vmem [thread:$0]  %s18745_s23, 160, %s55_s30, [#allocation5]  }
  0x1e   :  { %p17165_p9 = pnand %p17164_p8, %p17158_p5 }
  0x20   :  { %17168 = shalt.err (!%p17165_p9)
}
  0x21   :  { %79 = dma.hbm_to_vmem [thread:$0]  %s18709_s4, 144, %s77_s21, [#allocation8]  }
  0x22   :  { %s17489_s27 = smov [#allocation10]   ;;  %s17490_s29 = smov [#allocation13]  }
  0x23   :  { %s98_s28 = sshll.u32 %s17489_s27, 4  ;;  %s120_s0 = sshll.u32 %s17490_s29, 4  ;;  %s99_s28 = int_to_ptr.vmem [resolvable:$true] %s98_s28  ;;  %s121_s0 = int_to_ptr.vmem [resolvable:$true] %s120_s0 }
  0x24   :  { %s17177_s20 = scalar_lea.vmem %s99_s28, 128  ;;  %p17182_p11 = scmp.lt.s32.totalorder %s99_s28, %s99_s28 }
  0x25   :  { %p17178_p10 = scmp.ne.s32.totalorder %s99_s28, %s17177_s20  ;;  %p17183_p12 = scmp.lt.s32.totalorder %s17177_s20, %s17177_s20 }
  0x27   :  { %p17184_p13 = por %p17183_p12, %p17182_p11 }
  0x29   :  { %p17185_p0 = pnand %p17184_p13, %p17178_p10 }
  0x2b   :  { %17188 = shalt.err (!%p17185_p0)
}
  0x2c   :  { %101 = dma.hbm_to_vmem [thread:$0]  %s18711_s6, 128, %s99_s28, [#allocation11]  }
  0x2d   :  { %s17197_s22 = scalar_lea.vmem %s121_s0, 64  ;;  %p17202_p2 = scmp.lt.s32.totalorder %s121_s0, %s121_s0 }
  0x2e   :  { %p17198_p1 = scmp.ne.s32.totalorder %s121_s0, %s17197_s22  ;;  %p17203_p3 = scmp.lt.s32.totalorder %s17197_s22, %s17197_s22 }
  0x30   :  { %p17204_p4 = por %p17203_p3, %p17202_p2 }
  0x32   :  { %p17205_p5 = pnand %p17204_p4, %p17198_p1 }
  0x34   :  { %17208 = shalt.err (!%p17205_p5)
}
  0x35   :  { %123 = dma.hbm_to_vmem [thread:$0]  %s18713_s8, 64, %s121_s0, [#allocation14]  }
  0x36   :  { %s17491_s2 = smov [#allocation16]  }
  0x37   :  { %s141_s23 = sshll.u32 %s17491_s2, 4  ;;  %s142_s23 = int_to_ptr.vmem [resolvable:$true] %s141_s23 }
  0x38   :  { %s17217_s24 = scalar_lea.vmem %s142_s23, 8192  ;;  %p17222_p7 = scmp.lt.s32.totalorder %s142_s23, %s142_s23 }
  0x39   :  { %p17218_p6 = scmp.ne.s32.totalorder %s142_s23, %s17217_s24  ;;  %p17223_p8 = scmp.lt.s32.totalorder %s17217_s24, %s17217_s24 }
  0x3b   :  { %p17224_p9 = por %p17223_p8, %p17222_p7 }
  0x3d   :  { %p17225_p10 = pnand %p17224_p9, %p17218_p6 }
  0x3f   :  { %17228 = shalt.err (!%p17225_p10)
}
  0x40   :  { %s17492_s6 = smov 512   ;;  %s17493_s25 = smov 32  }
  0x41   :  { %147 = dma.hbm_to_vmem [thread:$0]  %s18715_s10, 8192, %s142_s23, [#allocation17], %s17492_s6, %s17492_s6, %s17493_s25  }
  0x42   :  { %s17494_s27 = smov [#allocation19]   ;;  %s17495_s8 = smov [#allocation22]  }
  0x43   :  { %s163_s28 = sshll.u32 %s17494_s27, 4  ;;  %s185_s29 = sshll.u32 %s17495_s8, 4  ;;  %s164_s28 = int_to_ptr.vmem [resolvable:$true] %s163_s28  ;;  %s186_s29 = int_to_ptr.vmem [resolvable:$true] %s185_s29 }
  0x44   :  { %s17237_s0 = scalar_lea.vmem %s164_s28, 36864  ;;  %p17242_p12 = scmp.lt.s32.totalorder %s164_s28, %s164_s28 }
  0x45   :  { %p17238_p11 = scmp.ne.s32.totalorder %s164_s28, %s17237_s0  ;;  %p17243_p13 = scmp.lt.s32.totalorder %s17237_s0, %s17237_s0 }
  0x47   :  { %p17244_p0 = por %p17243_p13, %p17242_p12 }
  0x49   :  { %p17245_p1 = pnand %p17244_p0, %p17238_p11 }
  0x4b   :  { %17248 = shalt.err (!%p17245_p1)
}
  0x4c   :  { %s17496_s20 = smov 64   ;;  %s17497_s30 = smov 4  }
  0x4d   :  { %169 = dma.hbm_to_vmem [thread:$0]  %s18717_s12, 36864, %s164_s28, [#allocation20], %s17496_s20, %s17496_s20, %s17497_s30  }
  0x4e   :  { %s17257_s10 = scalar_lea.vmem %s186_s29, 20480  ;;  %p17262_p3 = scmp.lt.s32.totalorder %s186_s29, %s186_s29 }
  0x4f   :  { %p17258_p2 = scmp.ne.s32.totalorder %s186_s29, %s17257_s10  ;;  %p17263_p4 = scmp.lt.s32.totalorder %s17257_s10, %s17257_s10 }
  0x51   :  { %p17264_p5 = por %p17263_p4, %p17262_p3 }
  0x53   :  { %p17265_p6 = pnand %p17264_p5, %p17258_p2 }
  0x55   :  { %17268 = shalt.err (!%p17265_p6)
}
  0x56   :  { %191 = dma.hbm_to_vmem [thread:$0]  %s18719_s14, 20480, %s186_s29, [#allocation23], %s17496_s20, %s17496_s20, %s17497_s30  }
  0x57   :  { %s17498_s2 = smov [#allocation25]  }
  0x58   :  { %s207_s23 = sshll.u32 %s17498_s2, 4  ;;  %s208_s23 = int_to_ptr.vmem [resolvable:$true] %s207_s23 }
  0x59   :  { %s17277_s24 = scalar_lea.vmem %s208_s23, 30720  ;;  %p17282_p8 = scmp.lt.s32.totalorder %s208_s23, %s208_s23 }
  0x5a   :  { %p17278_p7 = scmp.ne.s32.totalorder %s208_s23, %s17277_s24  ;;  %p17283_p9 = scmp.lt.s32.totalorder %s17277_s24, %s17277_s24 }
  0x5c   :  { %p17284_p10 = por %p17283_p9, %p17282_p8 }
  0x5e   :  { %p17285_p11 = pnand %p17284_p10, %p17278_p7 }
  0x60   :  { %17288 = shalt.err (!%p17285_p11)
}
  0x61   :  { %s17499_s12 = smov 192   ;;  %s17500_s6 = smov 12  }
  0x62   :  { %213 = dma.hbm_to_vmem [thread:$0]  %s18721_s16, 30720, %s208_s23, [#allocation26], %s17499_s12, %s17499_s12, %s17500_s6  }
  0x63   :  { %s17501_s26 = smov [#allocation2]  }
  0x64   :  { %s41_s27 = sshll.u32 %s17501_s26, 4  ;;  %s42_s27 = int_to_ptr.vmem [resolvable:$true] %s41_s27 }
  0x65   :  { %s17297_s14 = scalar_lea.vmem %s42_s27, 24320  ;;  %p17302_p13 = scmp.lt.s32.totalorder %s42_s27, %s42_s27 }
  0x66   :  { %p17298_p12 = scmp.ne.s32.totalorder %s42_s27, %s17297_s14  ;;  %p17303_p0 = scmp.lt.s32.totalorder %s17297_s14, %s17297_s14 }
  0x68   :  { %p17304_p1 = por %p17303_p0, %p17302_p13 }
  0x6a   :  { %p17305_p2 = pnand %p17304_p1, %p17298_p12 }
  0x6c   :  { %17308 = shalt.err (!%p17305_p2)
}
  0x6d   :  { %s17502_s28 = smov 640   ;;  %s17503_s8 = smov 40  }
  0x6e   :  { %s18746_s1 = sld [smem:[#allocation45_spill]]  ;;  %s17504_s22 = smov [#allocation6]  }
  0x6f   :  { %s63_s10 = sshll.u32 %s17504_s22, 4  ;;  %s17505_s16 = smov [#allocation9]   ;;  %s64_s10 = int_to_ptr.vmem [resolvable:$true] %s63_s10 }
  0x70   :  { %s85_s4 = sshll.u32 %s17505_s16, 4  ;;  %s17317_s21 = scalar_lea.vmem %s64_s10, 1536  ;;  %s86_s4 = int_to_ptr.vmem [resolvable:$true] %s85_s4 }
  0x71   :  { %p17318_p3 = scmp.ne.s32.totalorder %s64_s10, %s17317_s21  ;;  %p17322_p4 = scmp.lt.s32.totalorder %s64_s10, %s64_s10 }
  0x72   :  { %p17323_p5 = scmp.lt.s32.totalorder %s17317_s21, %s17317_s21 }
  0x74   :  { %47 = dma.hbm_to_vmem [thread:$0]  %s18746_s1, 24320, %s42_s27, [#allocation3], %s17502_s28, %s17502_s28, %s17503_s8  }
  0x75   :  { %p17324_p6 = por %p17323_p5, %p17322_p4 }
  0x77   :  { %p17325_p7 = pnand %p17324_p6, %p17318_p3 }
  0x79   :  { %17328 = shalt.err (!%p17325_p7)
}
  0x7a   :  { %s18747_s24 = sld [smem:[#allocation47_spill]]  ;;  %s17337_s12 = scalar_lea.vmem %s86_s4, 6144 }
  0x7b   :  { %p17338_p8 = scmp.ne.s32.totalorder %s86_s4, %s17337_s12  ;;  %p17342_p9 = scmp.lt.s32.totalorder %s86_s4, %s86_s4 }
  0x7c   :  { %p17343_p10 = scmp.lt.s32.totalorder %s17337_s12, %s17337_s12 }
  0x7e   :  { %p17344_p11 = por %p17343_p10, %p17342_p9 }
  0x80   :  { %69 = dma.hbm_to_vmem [thread:$0]  %s18747_s24, 1536, %s64_s10, [#allocation5], %s17496_s20, %s17496_s20, %s17497_s30  }
  0x81   :  { %p17345_p12 = pnand %p17344_p11, %p17338_p8 }
  0x83   :  { %17348 = shalt.err (!%p17345_p12)
}
  0x84   :  { %s17506_s6 = smov 128   ;;  %s17507_s25 = smov 8  }
  0x85   :  { %91 = dma.hbm_to_vmem [thread:$0]  %s18710_s5, 6144, %s86_s4, [#allocation8], %s17506_s6, %s17506_s6, %s17507_s25  }
  0x86   :  { %s17508_s27 = smov [#allocation12]  }
  0x87   :  { %s107_s14 = sshll.u32 %s17508_s27, 4  ;;  %s108_s14 = int_to_ptr.vmem [resolvable:$true] %s107_s14 }
  0x88   :  { %s17357_s28 = scalar_lea.vmem %s108_s14, 32768  ;;  %p17362_p0 = scmp.lt.s32.totalorder %s108_s14, %s108_s14 }
  0x89   :  { %p17358_p13 = scmp.ne.s32.totalorder %s108_s14, %s17357_s28  ;;  %p17363_p1 = scmp.lt.s32.totalorder %s17357_s28, %s17357_s28 }
  0x8b   :  { %p17364_p2 = por %p17363_p1, %p17362_p0 }
  0x8d   :  { %p17365_p3 = pnand %p17364_p2, %p17358_p13 }
  0x8f   :  { %17368 = shalt.err (!%p17365_p3)
}
  0x90   :  { %s17509_s8 = smov 256   ;;  %s17510_s29 = smov 16  }
  0x91   :  { %113 = dma.hbm_to_vmem [thread:$0]  %s18712_s7, 32768, %s108_s14, [#allocation11], %s17509_s8, %s17509_s8, %s17510_s29  }
  0x92   :  { %s17511_s22 = smov [#allocation15]   ;;  %s17512_s16 = smov [#allocation18]  }
  0x93   :  { %s129_s10 = sshll.u32 %s17511_s22, 4  ;;  %s154_s5 = sshll.u32 %s17512_s16, 4  ;;  %s130_s10 = int_to_ptr.vmem [resolvable:$true] %s129_s10  ;;  %s155_s5 = int_to_ptr.vmem [resolvable:$true] %s154_s5 }
  0x94   :  { %s17377_s4 = scalar_lea.vmem %s130_s10, 4096  ;;  %p17382_p5 = scmp.lt.s32.totalorder %s130_s10, %s130_s10 }
  0x95   :  { %p17378_p4 = scmp.ne.s32.totalorder %s130_s10, %s17377_s4  ;;  %p17383_p6 = scmp.lt.s32.totalorder %s17377_s4, %s17377_s4 }
  0x97   :  { %p17384_p7 = por %p17383_p6, %p17382_p5 }
  0x99   :  { %p17385_p8 = pnand %p17384_p7, %p17378_p4 }
  0x9b   :  { %17388 = shalt.err (!%p17385_p8)
}
  0x9c   :  { %135 = dma.hbm_to_vmem [thread:$0]  %s18714_s9, 4096, %s130_s10, [#allocation14], %s17496_s20, %s17496_s20, %s17497_s30  }
  0x9d   :  { %s17397_s7 = scalar_lea.vmem %s155_s5, 128  ;;  %p17402_p10 = scmp.lt.s32.totalorder %s155_s5, %s155_s5 }
  0x9e   :  { %p17398_p9 = scmp.ne.s32.totalorder %s155_s5, %s17397_s7  ;;  %p17403_p11 = scmp.lt.s32.totalorder %s17397_s7, %s17397_s7 }
  0xa0   :  { %p17404_p12 = por %p17403_p11, %p17402_p10 }
  0xa2   :  { %p17405_p13 = pnand %p17404_p12, %p17398_p9 }
  0xa4   :  { %17408 = shalt.err (!%p17405_p13)
}
  0xa5   :  { %157 = dma.hbm_to_vmem [thread:$0]  %s18716_s11, 128, %s155_s5, [#allocation17]  }
  0xa6   :  { %s17513_s12 = smov [#allocation21]   ;;  %s17514_s25 = smov [#allocation24]  }
  0xa7   :  { %s176_s6 = sshll.u32 %s17513_s12, 4  ;;  %s198_s3 = sshll.u32 %s17514_s25, 4  ;;  %s177_s6 = int_to_ptr.vmem [resolvable:$true] %s176_s6  ;;  %s199_s3 = int_to_ptr.vmem [resolvable:$true] %s198_s3 }
  0xa8   :  { %s17417_s26 = scalar_lea.vmem %s177_s6, 144  ;;  %s17421_s9 = scalar_lea.vmem %s177_s6, 160 }
  0xa9   :  { %p17418_p0 = scmp.ne.s32.totalorder %s177_s6, %s17417_s26  ;;  %p17422_p1 = scmp.lt.s32.totalorder %s177_s6, %s177_s6 }
  0xaa   :  { %p17423_p2 = scmp.lt.s32.totalorder %s17421_s9, %s17417_s26 }
  0xac   :  { %p17424_p3 = por %p17423_p2, %p17422_p1 }
  0xae   :  { %p17425_p4 = pnand %p17424_p3, %p17418_p0 }
  0xb0   :  { %17428 = shalt.err (!%p17425_p4)
}
  0xb1   :  { %179 = dma.hbm_to_vmem [thread:$0]  %s18718_s13, 144, %s177_s6, [#allocation20]  }
  0xb2   :  { %s17437_s27 = scalar_lea.vmem %s199_s3, 160  ;;  %p17442_p6 = scmp.lt.s32.totalorder %s199_s3, %s199_s3 }
  0xb3   :  { %p17438_p5 = scmp.ne.s32.totalorder %s199_s3, %s17437_s27  ;;  %p17443_p7 = scmp.lt.s32.totalorder %s17437_s27, %s17437_s27 }
  0xb5   :  { %p17444_p8 = por %p17443_p7, %p17442_p6 }
  0xb7   :  { %p17445_p9 = pnand %p17444_p8, %p17438_p5 }
  0xb9   :  { %17448 = shalt.err (!%p17445_p9)
}
  0xba   :  { %201 = dma.hbm_to_vmem [thread:$0]  %s18720_s15, 160, %s199_s3, [#allocation23]  }
  0xbb   :  { %s17515_s28 = smov [#allocation27]  }
  0xbc   :  { %s220_s8 = sshll.u32 %s17515_s28, 4  ;;  %s221_s8 = int_to_ptr.vmem [resolvable:$true] %s220_s8 }
  0xbd   :  { %s17457_s29 = scalar_lea.vmem %s221_s8, 48  ;;  %s17461_s0 = scalar_lea.vmem %s221_s8, 64 }
  0xbe   :  { %p17458_p10 = scmp.ne.s32.totalorder %s221_s8, %s17457_s29  ;;  %p17462_p11 = scmp.lt.s32.totalorder %s221_s8, %s221_s8 }
  0xbf   :  { %p17463_p12 = scmp.lt.s32.totalorder %s17461_s0, %s17457_s29 }
  0xc1   :  { %p17464_p13 = por %p17463_p12, %p17462_p11 }
  0xc3   :  { %p17465_p0 = pnand %p17464_p13, %p17458_p10 }
  0xc5   :  { %17468 = shalt.err (!%p17465_p0)
}
  0xc6   :  { %223 = dma.hbm_to_vmem [thread:$0]  %s18722_s17, 48, %s221_s8, [#allocation26]  }
  0xc7   :  { %17469 = dma.done.wait [#allocation3], 24320  }
  0xc8   :  { %17470 = vsyncadd [#allocation3], 4294942976 }
  0xc9   :  { %17471 = dma.done.wait [#allocation5], 1696  }
  0xca   :  { %17472 = vsyncadd [#allocation5], 4294965600 }
  0xcb   :  { %17473 = dma.done.wait [#allocation8], 6288  }
  0xcc   :  { %17474 = vsyncadd [#allocation8], 4294961008 }
  0xcd   :  { %17475 = dma.done.wait [#allocation11], 32896  }
  0xce   :  { %17476 = vsyncadd [#allocation11], 4294934400 }
  0xcf   :  { %17477 = dma.done.wait [#allocation14], 4160  }
  0xd0   :  { %17478 = vsyncadd [#allocation14], 4294963136 }
  0xd1   :  { %17479 = dma.done.wait [#allocation17], 8320  }
  0xd2   :  { %17480 = vsyncadd [#allocation17], 4294958976 }
  0xd3   :  { %17481 = dma.done.wait [#allocation20], 37008  }
  0xd4   :  { %17482 = vsyncadd [#allocation20], 4294930288 }
  0xd5   :  { %17483 = dma.done.wait [#allocation23], 20640  }
  0xd6   :  { %17484 = vsyncadd [#allocation23], 4294946656 }
  0xd7   :  { %17485 = dma.done.wait [#allocation26], 30768  }
  0xd8   :  { %17486 = vsyncadd [#allocation26], 4294936528  ;;  %v15497_v0 = vld [vmem:[#allocation2 + $0x234] ss:$40 sps:$4 sm:$0xff]   ;;  %v15499_v1 = vld [vmem:[#allocation2 + $0x230] ss:$40 sps:$4 sm:$0xff]  }
  0xd9   :  { %1493 = vmatprep.subr.bf16.mxu0 %v15497_v0  ;;  %v15500_v2 = vld [vmem:[#allocation2 + $0x1e4] ss:$40 sps:$4 sm:$0xff]   ;;  %v15502_v3 = vld [vmem:[#allocation2 + $0x1e0] ss:$40 sps:$4 sm:$0xff]   ;;  %v15503_v4 = vld [vmem:[#allocation2 + $0x194] ss:$40 sps:$4 sm:$0xff]  }
  0xda   :  { %1494 = vmatpush1.bf16.msra.mxu0 %v15499_v1  ;;  %v15505_v5 = vld [vmem:[#allocation2 + $0x190] ss:$40 sps:$4 sm:$0xff]   ;;  %v15506_v6 = vld [vmem:[#allocation2 + $0x144] ss:$40 sps:$4 sm:$0xff]   ;;  %v15508_v9 = vld [vmem:[#allocation2 + $0x140] ss:$40 sps:$4 sm:$0xff]  }
  0xdb   :  { %1495 = vmatprep.subr.bf16.mxu0 %v15500_v2  ;;  %v15515_v7 = vld [vmem:[#allocation2 + $0x23c] ss:$40 sps:$4 sm:$0xff]   ;;  %v15517_v8 = vld [vmem:[#allocation2 + $0x238] ss:$40 sps:$4 sm:$0xff]   ;;  %v15521_v10 = vld [vmem:[#allocation2 + $0x1ec] ss:$40 sps:$4 sm:$0xff]  }
  0xdc   :  { %1579 = vmatprep.subr.bf16.mxu1 %v15515_v7  ;;  %v15523_v11 = vld [vmem:[#allocation2 + $0x1e8] ss:$40 sps:$4 sm:$0xff]   ;;  %v15509_v12 = vld [vmem:[#allocation2 + $0xf4] ss:$40 sps:$4 sm:$0xff]   ;;  %v15512_v15 = vld [vmem:[#allocation2 + $0xa4] ss:$40 sps:$4 sm:$0xff]  }
  0xdd   :  { %1580 = vmatpush1.bf16.msra.mxu1 %v15517_v8  ;;  %v15511_v13 = vld [vmem:[#allocation2 + $0xf0] ss:$40 sps:$4 sm:$0xff]   ;;  %v15527_v14 = vld [vmem:[#allocation2 + $0x19c] ss:$40 sps:$4 sm:$0xff]   ;;  %v15533_v17 = vld [vmem:[#allocation2 + $0x14c] ss:$40 sps:$4 sm:$0xff]  }
  0xde   :  { %1496 = vmatpush1.bf16.msra.mxu0 %v15502_v3  ;;  %1581 = vmatprep.subr.bf16.mxu1 %v15521_v10  ;;  %v15529_v16 = vld [vmem:[#allocation2 + $0x198] ss:$40 sps:$4 sm:$0xff]   ;;  %v15518_v19 = vld [vmem:[#allocation2 + $0x54] ss:$40 sps:$4 sm:$0xff]   ;;  %v15535_v20 = vld [vmem:[#allocation2 + $0x148] ss:$40 sps:$4 sm:$0xff]  }
  0xdf   :  { %1497 = vmatprep.subr.bf16.mxu0 %v15503_v4  ;;  %v15514_v18 = vld [vmem:[#allocation2 + $0xa0] ss:$40 sps:$4 sm:$0xff]   ;;  %v15539_v21 = vld [vmem:[#allocation2 + $0xfc] ss:$40 sps:$4 sm:$0xff]   ;;  %v15520_v22 = vld [vmem:[#allocation2 + $0x50] ss:$40 sps:$4 sm:$0xff]  }
  0xe0   :  { %v15524_v23 = vld [vmem:[#allocation2 + $0x4] ss:$40 sps:$4 sm:$0xff]   ;;  %v15541_v24 = vld [vmem:[#allocation2 + $0xf8] ss:$40 sps:$4 sm:$0xff]   ;;  %v15530_v27 = vld [vmem:[#allocation2 + $0x4b4] ss:$40 sps:$4 sm:$0xff]  }
  0xe1   :  { %1582 = vmatpush1.bf16.msra.mxu1 %v15523_v11  ;;  %v15545_v25 = vld [vmem:[#allocation2 + $0xac] ss:$40 sps:$4 sm:$0xff]   ;;  %v15526_v26 = vld [vmem:[#allocation2] ss:$40 sps:$4 sm:$0xff]   ;;  %v15551_v29 = vld [vmem:[#allocation2 + $0x5c] ss:$40 sps:$4 sm:$0xff]  }
  0xe2   :  { %1498 = vmatpush1.bf16.msra.mxu0 %v15505_v5  ;;  %1583 = vmatprep.subr.bf16.mxu1 %v15527_v14  ;;  %v15547_v28 = vld [vmem:[#allocation2 + $0xa8] ss:$40 sps:$4 sm:$0xff]   ;;  %v15536_v31 = vld [vmem:[#allocation2 + $0x464] ss:$40 sps:$4 sm:$0xff]   ;;  %v15553_v32 = vld [vmem:[#allocation2 + $0x58] ss:$40 sps:$4 sm:$0xff]  }
  0xe3   :  { %1499 = vmatprep.subr.bf16.mxu0 %v15506_v6  ;;  %v15532_v30 = vld [vmem:[#allocation2 + $0x4b0] ss:$40 sps:$4 sm:$0xff]   ;;  %v15557_v33 = vld [vmem:[#allocation2 + $0xc] ss:$40 sps:$4 sm:$0xff]   ;;  %v15538_v34 = vld [vmem:[#allocation2 + $0x460] ss:$40 sps:$4 sm:$0xff]  }
  0xe4   :  { %v15542_v35 = vld [vmem:[#allocation2 + $0x414] ss:$40 sps:$4 sm:$0xff]   ;;  %v15559_v36 = vld [vmem:[#allocation2 + $0x8] ss:$40 sps:$4 sm:$0xff]   ;;  %s18748_s22 = sld [smem:[#allocation44_spill]]  ;;  %v18726_v5 = vmov 0  }
  0xe5   :  { %1584 = vmatpush1.bf16.msra.mxu1 %v15529_v16  ;;  %v15563_v37 = vld [vmem:[#allocation2 + $0x4bc] ss:$40 sps:$4 sm:$0xff]   ;;  %v15544_v39 = vld [vmem:[#allocation2 + $0x410] ss:$40 sps:$4 sm:$0xff]   ;;  %v15569_v42 = vld [vmem:[#allocation2 + $0x46c] ss:$40 sps:$4 sm:$0xff]  }
  0xe6   :  { %1500 = vmatpush1.bf16.msra.mxu0 %v15508_v9  ;;  %1585 = vmatprep.subr.bf16.mxu1 %v15533_v17  ;;  %v15548_v40 = vld [vmem:[#allocation2 + $0x3c4] ss:$40 sps:$4 sm:$0xff]   ;;  %v15565_v41 = vld [vmem:[#allocation2 + $0x4b8] ss:$40 sps:$4 sm:$0xff]   ;;  %v15554_v44 = vld [vmem:[#allocation2 + $0x374] ss:$40 sps:$4 sm:$0xff]  }
  0xe7   :  { %1501 = vmatprep.subr.bf16.mxu0 %v15509_v12  ;;  %v15550_v43 = vld [vmem:[#allocation2 + $0x3c0] ss:$40 sps:$4 sm:$0xff]   ;;  %v15575_v46 = vld [vmem:[#allocation2 + $0x41c] ss:$40 sps:$4 sm:$0xff]   ;;  %v15556_v47 = vld [vmem:[#allocation2 + $0x370] ss:$40 sps:$4 sm:$0xff]  }
  0xe8   :  { %v15571_v45 = vld [vmem:[#allocation2 + $0x468] ss:$40 sps:$4 sm:$0xff]   ;;  %v15579_v48 = vld [vmem:[#allocation2 + $0x418] ss:$40 sps:$4 sm:$0xff]   ;;  %v15560_v49 = vld [vmem:[#allocation2 + $0x324] ss:$40 sps:$4 sm:$0xff]  }
  0xe9   :  { %1586 = vmatpush1.bf16.msra.mxu1 %v15535_v20  ;;  %v15584_v50 = vld [vmem:[#allocation2 + $0x3cc] ss:$40 sps:$4 sm:$0xff]   ;;  %v15562_v51 = vld [vmem:[#allocation2 + $0x320] ss:$40 sps:$4 sm:$0xff]   ;;  %v15590_v54 = vld [vmem:[#allocation2 + $0x37c] ss:$40 sps:$4 sm:$0xff]  }
  0xea   :  { %1502 = vmatpush1.bf16.msra.mxu0 %v15511_v13  ;;  %1587 = vmatprep.subr.bf16.mxu1 %v15539_v21  ;;  %v17683_v38 = vld [vmem:[%s18748_s22 + $0x4] ss:$12 sps:$4 sm:$0xff]   ;;  %v15566_v53 = vld [vmem:[#allocation2 + $0x2d4] ss:$40 sps:$4 sm:$0xff]   ;;  %v15592_v56 = vld [vmem:[#allocation2 + $0x378] ss:$40 sps:$4 sm:$0xff]  }
  0xeb   :  { %1503 = vmatprep.subr.bf16.mxu0 %v15512_v15  ;;  %1525 = vmatprep.mubr.bf16.mxu0 %v17683_v38  ;;  %v15586_v52 = vld [vmem:[#allocation2 + $0x3c8] ss:$40 sps:$4 sm:$0xff]   ;;  %v15572_v57 = vld [vmem:[#allocation2 + $0x284] ss:$40 sps:$4 sm:$0xff]   ;;  %v15589_v1 = vld [vmem:[#allocation2 + $0x554] ss:$40 sps:$4 sm:$0xff]  }
  0xec   :  { %1611 = vmatprep.mubr.bf16.mxu1 %v17683_v38  ;;  %v15568_v55 = vld [vmem:[#allocation2 + $0x2d0] ss:$40 sps:$4 sm:$0xff]   ;;  %v15596_v58 = vld [vmem:[#allocation2 + $0x32c] ss:$40 sps:$4 sm:$0xff]   ;;  %v15574_v59 = vld [vmem:[#allocation2 + $0x280] ss:$40 sps:$4 sm:$0xff]  }
  0xed   :  { %1588 = vmatpush1.bf16.msra.mxu1 %v15541_v24  ;;  %v15598_v60 = vld [vmem:[#allocation2 + $0x328] ss:$40 sps:$4 sm:$0xff]   ;;  %v15583_v61 = vld [vmem:[#allocation2 + $0x5a4] ss:$40 sps:$4 sm:$0xff]   ;;  %v15605_v2 = vld [vmem:[#allocation2 + $0x2d8] ss:$40 sps:$4 sm:$0xff]  }
  0xee   :  { %1504 = vmatpush1.bf16.msra.mxu0 %v15514_v18  ;;  %1589 = vmatprep.subr.bf16.mxu1 %v15545_v25  ;;  %v15603_v62 = vld [vmem:[#allocation2 + $0x2dc] ss:$40 sps:$4 sm:$0xff]   ;;  %v17690_v63 = vld [vmem:[%s18748_s22] ss:$12 sps:$4 sm:$0xff]   ;;  %v15587_v4 = vld [vmem:[#allocation2 + $0x550] ss:$40 sps:$4 sm:$0xff]  }
  0xef   :  { %1505 = vmatprep.subr.bf16.mxu0 %v15518_v19  ;;  %v15581_v0 = vld [vmem:[#allocation2 + $0x5a0] ss:$40 sps:$4 sm:$0xff]   ;;  %v15609_v3 = vld [vmem:[#allocation2 + $0x28c] ss:$40 sps:$4 sm:$0xff]   ;;  %v15639_v11 = vld [vmem:[#allocation2 + $0x5b0] ss:$40 sps:$4 sm:$0xff]  }
  0xf0   :  { %v15595_v6 = vld [vmem:[#allocation2 + $0x504] ss:$40 sps:$4 sm:$0xff]   ;;  %v15611_v7 = vld [vmem:[#allocation2 + $0x288] ss:$40 sps:$4 sm:$0xff]   ;;  %v15641_v8 = vld [vmem:[#allocation2 + $0x5b4] ss:$40 sps:$4 sm:$0xff]  }
  0xf1   :  { %1590 = vmatpush1.bf16.msra.mxu1 %v15547_v28  ;;  %v15593_v9 = vld [vmem:[#allocation2 + $0x500] ss:$40 sps:$4 sm:$0xff]   ;;  %v15602_v10 = vld [vmem:[#allocation2 + $0x5ac] ss:$40 sps:$4 sm:$0xff]   ;;  %vm1489_vm0 = vcmask 392192   ;;  %vm2089_vm2 = vcmask 523264  }
  0xf2   :  { %1506 = vmatpush1.bf16.msra.mxu0 %v15520_v22  ;;  %1591 = vmatprep.subr.bf16.mxu1 %v15551_v29  ;;  %v15647_v12 = vld [vmem:[#allocation2 + $0x564] ss:$40 sps:$4 sm:$0xff]   ;;  %v17697_v13 = vld [vmem:[%s18748_s22 + $0x8] ss:$12 sps:$4 sm:$0xff]   ;;  %v15606_v18 = vld [vmem:[#allocation2 + $0x558] ss:$40 sps:$4 sm:$0xff]  }
  0xf3   :  { %1507 = vmatprep.subr.bf16.mxu0 %v15524_v23  ;;  %v15600_v14 = vld [vmem:[#allocation2 + $0x5a8] ss:$40 sps:$4 sm:$0xff]   ;;  %v15608_v15 = vld [vmem:[#allocation2 + $0x55c] ss:$40 sps:$4 sm:$0xff]   ;;  %v15614_v19 = vld [vmem:[#allocation2 + $0x50c] ss:$40 sps:$4 sm:$0xff]  }
  0xf4   :  { %v15645_v16 = vld [vmem:[#allocation2 + $0x560] ss:$40 sps:$4 sm:$0xff]   ;;  %v15653_v17 = vld [vmem:[#allocation2 + $0x514] ss:$40 sps:$4 sm:$0xff]   ;;  %v15651_v20 = vld [vmem:[#allocation2 + $0x510] ss:$40 sps:$4 sm:$0xff]  }
  0xf5   :  { %1592 = vmatpush1.bf16.msra.mxu1 %v15553_v32  ;;  %v15659_v21 = vld [vmem:[#allocation2 + $0x24c] ss:$40 sps:$4 sm:$0xff]   ;;  %v15612_v22 = vld [vmem:[#allocation2 + $0x508] ss:$40 sps:$4 sm:$0xff]   ;;  %v15665_v25 = vld [vmem:[#allocation2 + $0x1fc] ss:$40 sps:$4 sm:$0xff]  }
  0xf6   :  { %1508 = vmatpush1.bf16.msra.mxu0 %v15526_v26  ;;  %1593 = vmatprep.subr.bf16.mxu1 %v15557_v33  ;;  %v15617_v23 = vld [vmem:[#allocation2 + $0x244] ss:$40 sps:$4 sm:$0xff]   ;;  %v15657_v24 = vld [vmem:[#allocation2 + $0x248] ss:$40 sps:$4 sm:$0xff]   ;;  %v15663_v28 = vld [vmem:[#allocation2 + $0x1f8] ss:$40 sps:$4 sm:$0xff]  }
  0xf7   :  { %1509 = vmatprep.subr.bf16.mxu0 %v15530_v27  ;;  %v15615_v26 = vld [vmem:[#allocation2 + $0x240] ss:$40 sps:$4 sm:$0xff]   ;;  %v15620_v27 = vld [vmem:[#allocation2 + $0x1f4] ss:$40 sps:$4 sm:$0xff]  }
  0xf8   :  { %v15671_v29 = vld [vmem:[#allocation2 + $0x1ac] ss:$40 sps:$4 sm:$0xff]   ;;  %v15669_v32 = vld [vmem:[#allocation2 + $0x1a8] ss:$40 sps:$4 sm:$0xff]   ;;  %v15677_v33 = vld [vmem:[#allocation2 + $0x15c] ss:$40 sps:$4 sm:$0xff]  }
  0xf9   :  { %1594 = vmatpush1.bf16.msra.mxu1 %v15559_v36  ;;  %v15675_v36 = vld [vmem:[#allocation2 + $0x158] ss:$40 sps:$4 sm:$0xff]  }
  0xfa   :  { %1510 = vmatpush2.bf16.msra.mxu0 %v15532_v30  ;;  %1595 = vmatprep.subr.bf16.mxu1 %v15563_v37  ;;  %v15618_v30 = vld [vmem:[#allocation2 + $0x1f0] ss:$40 sps:$4 sm:$0xff]   ;;  %v15683_v37 = vld [vmem:[#allocation2 + $0x10c] ss:$40 sps:$4 sm:$0xff]  }
  0xfb   :  { %1511 = vmatprep.subr.bf16.mxu0 %v15536_v31  ;;  %v15623_v31 = vld [vmem:[#allocation2 + $0x1a4] ss:$40 sps:$4 sm:$0xff]  }
  0xfd   :  { %1596 = vmatpush2.bf16.msra.mxu1 %v15565_v41  ;;  %v15689_v41 = vld [vmem:[#allocation2 + $0xbc] ss:$40 sps:$4 sm:$0xff]  }
  0xfe   :  { %1512 = vmatpush2.bf16.msra.mxu0 %v15538_v34  ;;  %1597 = vmatprep.subr.bf16.mxu1 %v15569_v42  ;;  %v15621_v34 = vld [vmem:[#allocation2 + $0x1a0] ss:$40 sps:$4 sm:$0xff]  }
  0xff   :  { %1513 = vmatprep.subr.bf16.mxu0 %v15542_v35  ;;  %v15626_v35 = vld [vmem:[#allocation2 + $0x154] ss:$40 sps:$4 sm:$0xff]   ;;  %v15627_v42 = vld [vmem:[#allocation2 + $0x100] ss:$40 sps:$4 sm:$0xff]  }
 0x101   :  { %1598 = vmatpush2.bf16.msra.mxu1 %v15571_v45  ;;  %v15695_v45 = vld [vmem:[#allocation2 + $0x6c] ss:$40 sps:$4 sm:$0xff]  }
 0x102   :  { %1514 = vmatpush2.bf16.msra.mxu0 %v15544_v39  ;;  %1599 = vmatprep.subr.bf16.mxu1 %v15575_v46  ;;  %v15624_v39 = vld [vmem:[#allocation2 + $0x150] ss:$40 sps:$4 sm:$0xff]  }
 0x103   :  { %1515 = vmatprep.subr.bf16.mxu0 %v15548_v40  ;;  %v15629_v40 = vld [vmem:[#allocation2 + $0x104] ss:$40 sps:$4 sm:$0xff]   ;;  %v15630_v46 = vld [vmem:[#allocation2 + $0xb0] ss:$40 sps:$4 sm:$0xff]  }
 0x105   :  { %1600 = vmatpush2.bf16.msra.mxu1 %v15579_v48  ;;  %v15693_v48 = vld [vmem:[#allocation2 + $0x68] ss:$40 sps:$4 sm:$0xff]  }
 0x106   :  { %1516 = vmatpush2.bf16.msra.mxu0 %v15550_v43  ;;  %1601 = vmatprep.subr.bf16.mxu1 %v15584_v50  ;;  %v15632_v43 = vld [vmem:[#allocation2 + $0xb4] ss:$40 sps:$4 sm:$0xff]   ;;  %v15633_v50 = vld [vmem:[#allocation2 + $0x60] ss:$40 sps:$4 sm:$0xff]  }
 0x107   :  { %1517 = vmatprep.subr.bf16.mxu0 %v15554_v44  ;;  %v15687_v44 = vld [vmem:[#allocation2 + $0xb8] ss:$40 sps:$4 sm:$0xff]  }
 0x109   :  { %1602 = vmatpush2.bf16.msra.mxu1 %v15586_v52  ;;  %v15699_v52 = vld [vmem:[#allocation2 + $0x18] ss:$40 sps:$4 sm:$0xff]  }
 0x10a   :  { %1518 = vmatpush2.bf16.msra.mxu0 %v15556_v47  ;;  %1603 = vmatprep.subr.bf16.mxu1 %v15590_v54  ;;  %v15635_v47 = vld [vmem:[#allocation2 + $0x64] ss:$40 sps:$4 sm:$0xff]   ;;  %v15636_v54 = vld [vmem:[#allocation2 + $0x10] ss:$40 sps:$4 sm:$0xff]  }
 0x10b   :  { %1519 = vmatprep.subr.bf16.mxu0 %v15560_v49  ;;  %v15701_v49 = vld [vmem:[#allocation2 + $0x1c] ss:$40 sps:$4 sm:$0xff]  }
 0x10d   :  { %1604 = vmatpush2.bf16.msra.mxu1 %v15592_v56  ;;  %v15705_v56 = vld [vmem:[#allocation2 + $0x4c8] ss:$40 sps:$4 sm:$0xff]  }
 0x10e   :  { %1520 = vmatpush2.bf16.msra.mxu0 %v15562_v51  ;;  %1605 = vmatprep.subr.bf16.mxu1 %v15596_v58  ;;  %v15638_v51 = vld [vmem:[#allocation2 + $0x14] ss:$40 sps:$4 sm:$0xff]   ;;  %v15642_v58 = vld [vmem:[#allocation2 + $0x4c0] ss:$40 sps:$4 sm:$0xff]  }
 0x10f   :  { %1521 = vmatprep.subr.bf16.mxu0 %v15566_v53  ;;  %v15707_v53 = vld [vmem:[#allocation2 + $0x4cc] ss:$40 sps:$4 sm:$0xff]  }
 0x111   :  { %1606 = vmatpush2.bf16.msra.mxu1 %v15598_v60  ;;  %v15711_v60 = vld [vmem:[#allocation2 + $0x478] ss:$40 sps:$4 sm:$0xff]  }
 0x112   :  { %1522 = vmatpush2.bf16.msra.mxu0 %v15568_v55  ;;  %1607 = vmatprep.subr.bf16.mxu1 %v15603_v62  ;;  %v15644_v55 = vld [vmem:[#allocation2 + $0x4c4] ss:$40 sps:$4 sm:$0xff]   ;;  %v15648_v62 = vld [vmem:[#allocation2 + $0x470] ss:$40 sps:$4 sm:$0xff]  }
 0x113   :  { %1523 = vmatprep.subr.bf16.mxu0 %v15572_v57  ;;  %v15713_v57 = vld [vmem:[#allocation2 + $0x47c] ss:$40 sps:$4 sm:$0xff]  }
 0x115   :  { %1608 = vmatpush2.bf16.msra.mxu1 %v15605_v2  ;;  %v15725_v2 = vld [vmem:[#allocation2 + $0x3dc] ss:$40 sps:$4 sm:$0xff]  }
 0x116   :  { %1524 = vmatpush2.bf16.msra.mxu0 %v15574_v59  ;;  %1609 = vmatprep.subr.bf16.mxu1 %v15609_v3  ;;  %v15650_v59 = vld [vmem:[#allocation2 + $0x474] ss:$40 sps:$4 sm:$0xff]   ;;  %v15654_v3 = vld [vmem:[#allocation2 + $0x420] ss:$40 sps:$4 sm:$0xff]  }
 0x117   :  { %1546 = vmatprep.subr.bf16.mxu0 %v15583_v61  ;;  %v15719_v61 = vld [vmem:[#allocation2 + $0x42c] ss:$40 sps:$4 sm:$0xff]  }
 0x119   :  { %1526 = vmatmul.mubr.bf16.vlgmr.msra.gmra.mxu0 %v17690_v63  ;;  %1610 = vmatpush2.bf16.msra.mxu1 %v15611_v7  ;;  %v15731_v7 = vld [vmem:[#allocation2 + $0x38c] ss:$40 sps:$4 sm:$0xff]  }
 0x11a   :  { %1547 = vmatpush1.bf16.msra.mxu0 %v15581_v0  ;;  %1568 = vmatprep.mubr.bf16.mxu0 %v18726_v5  ;;  %v15656_v0 = vld [vmem:[#allocation2 + $0x424] ss:$40 sps:$4 sm:$0xff]  }
 0x11b   :  { %1548 = vmatprep.subr.bf16.mxu0 %v15589_v1  ;;  %1718 = vmatprep.subr.bf16.mxu1 %v15641_v8  ;;  %v15717_v1 = vld [vmem:[#allocation2 + $0x428] ss:$40 sps:$4 sm:$0xff]  }
 0x11c   :  { %1612 = vmatmul.mubr.bf16.vlgmr.msra.gmra.mxu1 %v17690_v63  ;;  %v15660_v8 = vld [vmem:[#allocation2 + $0x3d0] ss:$40 sps:$4 sm:$0xff]  }
 0x11d   :  { %1719 = vmatpush1.bf16.msra.mxu1 %v15639_v11  ;;  %1740 = vmatprep.mubr.bf16.mxu1 %v18726_v5  ;;  %v15737_v11 = vld [vmem:[#allocation2 + $0x33c] ss:$40 sps:$4 sm:$0xff]  }
 0x11e   :  { %1549 = vmatpush1.bf16.msra.mxu0 %v15587_v4  ;;  %1720 = vmatprep.subr.bf16.mxu1 %v15647_v12  ;;  %v15662_v4 = vld [vmem:[#allocation2 + $0x3d4] ss:$40 sps:$4 sm:$0xff]   ;;  %v15666_v12 = vld [vmem:[#allocation2 + $0x380] ss:$40 sps:$4 sm:$0xff]  }
 0x11f   :  { %1550 = vmatprep.subr.bf16.mxu0 %v15595_v6  ;;  %v15723_v6 = vld [vmem:[#allocation2 + $0x3d8] ss:$40 sps:$4 sm:$0xff]  }
 0x121   :  { %1721 = vmatpush1.bf16.msra.mxu1 %v15645_v16  ;;  %v15672_v16 = vld [vmem:[#allocation2 + $0x330] ss:$40 sps:$4 sm:$0xff]  }
 0x122   :  { %1551 = vmatpush1.bf16.msra.mxu0 %v15593_v9  ;;  %1722 = vmatprep.subr.bf16.mxu1 %v15653_v17  ;;  %v15668_v9 = vld [vmem:[#allocation2 + $0x384] ss:$40 sps:$4 sm:$0xff]  }
 0x123   :  { %1632 = vmatprep.subr.bf16.mxu0 %v15602_v10  ;;  %v15729_v10 = vld [vmem:[#allocation2 + $0x388] ss:$40 sps:$4 sm:$0xff]   ;;  %v15743_v17 = vld [vmem:[#allocation2 + $0x2ec] ss:$40 sps:$4 sm:$0xff]  }
 0x125   :  { %13581 = vmatmul.mubr.msk.bf16.vlgmr.msra.gmra.mxu0 %vm1489_vm0, %v17697_v13  ;;  %1723 = vmatpush1.bf16.msra.mxu1 %v15651_v20  ;;  %v15749_v20 = vld [vmem:[#allocation2 + $0x29c] ss:$40 sps:$4 sm:$0xff]  }
 0x126   :  { %1633 = vmatpush1.bf16.msra.mxu0 %v15600_v14  ;;  %1654 = vmatprep.mubr.bf16.mxu0 %v18726_v5  ;;  %v15674_v14 = vld [vmem:[#allocation2 + $0x334] ss:$40 sps:$4 sm:$0xff]  }
 0x127   :  { %1634 = vmatprep.subr.bf16.mxu0 %v15608_v15  ;;  %1751 = vmatprep.subr.bf16.mxu1 %v15659_v21  ;;  %v15735_v15 = vld [vmem:[#allocation2 + $0x338] ss:$40 sps:$4 sm:$0xff]  }
 0x128   :  { %13583 = vmatmul.mubr.msk.bf16.vlgmr.msra.gmra.mxu1 %vm1489_vm0, %v17697_v13  ;;  %v15678_v21 = vld [vmem:[#allocation2 + $0x2e0] ss:$40 sps:$4 sm:$0xff]  }
 0x129   :  { %1752 = vmatpush1.bf16.msra.mxu1 %v15657_v24  ;;  %1783 = vmatprep.mubr.bf16.mxu1 %v17683_v38  ;;  %v15773_v24 = vld [vmem:[#allocation2 + $0x5c4] ss:$40 sps:$4 sm:$0xff]  }
 0x12a   :  { %1635 = vmatpush1.bf16.msra.mxu0 %v15606_v18  ;;  %1753 = vmatprep.subr.bf16.mxu1 %v15665_v25  ;;  %v15680_v18 = vld [vmem:[#allocation2 + $0x2e4] ss:$40 sps:$4 sm:$0xff]   ;;  %v15684_v25 = vld [vmem:[#allocation2 + $0x290] ss:$40 sps:$4 sm:$0xff]  }
 0x12b   :  { %1636 = vmatprep.subr.bf16.mxu0 %v15614_v19  ;;  %v15741_v19 = vld [vmem:[#allocation2 + $0x2e8] ss:$40 sps:$4 sm:$0xff]  }
 0x12d   :  { %1754 = vmatpush1.bf16.msra.mxu1 %v15663_v28  ;;  %v15779_v28 = vld [vmem:[#allocation2 + $0x574] ss:$40 sps:$4 sm:$0xff]  }
 0x12e   :  { %1637 = vmatpush1.bf16.msra.mxu0 %v15612_v22  ;;  %1755 = vmatprep.subr.bf16.mxu1 %v15671_v29  ;;  %v15686_v22 = vld [vmem:[#allocation2 + $0x294] ss:$40 sps:$4 sm:$0xff]   ;;  %v15690_v29 = vld [vmem:[#allocation2 + $0x5b8] ss:$40 sps:$4 sm:$0xff]  }
 0x12f   :  { %1665 = vmatprep.subr.bf16.mxu0 %v15617_v23  ;;  %v15747_v23 = vld [vmem:[#allocation2 + $0x298] ss:$40 sps:$4 sm:$0xff]  }
 0x131   :  { %13582 = vmatmul.mubr.msk.bf16.vlgmr.msra.gmra.mxu0 %vm1489_vm0, %v17697_v13  ;;  %1756 = vmatpush1.bf16.msra.mxu1 %v15669_v32  ;;  %v15785_v32 = vld [vmem:[#allocation2 + $0x524] ss:$40 sps:$4 sm:$0xff]  }
 0x132   :  { %1666 = vmatpush1.bf16.msra.mxu0 %v15615_v26  ;;  %1697 = vmatprep.mubr.bf16.mxu0 %v17683_v38  ;;  %v15681_v38 = vld [vmem:[#allocation2 + $0x108] ss:$40 sps:$4 sm:$0xff]   ;;  %v15692_v26 = vld [vmem:[#allocation2 + $0x5bc] ss:$40 sps:$4 sm:$0xff]  }
 0x133   :  { %1667 = vmatprep.subr.bf16.mxu0 %v15620_v27  ;;  %1757 = vmatprep.subr.bf16.mxu1 %v15677_v33  ;;  %v15771_v27 = vld [vmem:[#allocation2 + $0x5c0] ss:$40 sps:$4 sm:$0xff]  }
 0x134   :  { %v15696_v33 = vld [vmem:[#allocation2 + $0x568] ss:$40 sps:$4 sm:$0xff]  }
 0x135   :  { %1758 = vmatpush1.bf16.msra.mxu1 %v15675_v36  ;;  %v15702_v36 = vld [vmem:[#allocation2 + $0x518] ss:$40 sps:$4 sm:$0xff]  }
 0x136   :  { %1668 = vmatpush1.bf16.msra.mxu0 %v15618_v30  ;;  %1759 = vmatprep.subr.bf16.mxu1 %v15683_v37  ;;  %v15698_v30 = vld [vmem:[#allocation2 + $0x56c] ss:$40 sps:$4 sm:$0xff]  }
 0x137   :  { %1669 = vmatprep.subr.bf16.mxu0 %v15623_v31  ;;  %v15777_v31 = vld [vmem:[#allocation2 + $0x570] ss:$40 sps:$4 sm:$0xff]   ;;  %v15710_v37 = vld [vmem:[#allocation2 + $0x254] ss:$40 sps:$4 sm:$0xff]  }
 0x139   :  { %1760 = vmatpush1.bf16.msra.mxu1 %v15681_v38  ;;  %v15716_v38 = vld [vmem:[#allocation2 + $0x204] ss:$40 sps:$4 sm:$0xff]  }
 0x13a   :  { %1670 = vmatpush1.bf16.msra.mxu0 %v15621_v34  ;;  %1761 = vmatprep.subr.bf16.mxu1 %v15689_v41  ;;  %v15704_v34 = vld [vmem:[#allocation2 + $0x51c] ss:$40 sps:$4 sm:$0xff]   ;;  %v15714_v41 = vld [vmem:[#allocation2 + $0x200] ss:$40 sps:$4 sm:$0xff]  }
 0x13b   :  { %1671 = vmatprep.subr.bf16.mxu0 %v15626_v35  ;;  %v15783_v35 = vld [vmem:[#allocation2 + $0x520] ss:$40 sps:$4 sm:$0xff]  }
 0x13d   :  { %1762 = vmatpush1.bf16.msra.mxu1 %v15687_v44  ;;  %v17054_v44 = vld [vmem:[%s18748_s22 + $0x4] ss:$12 sps:$4 sm:$0xff]  }
 0x13e   :  { %1672 = vmatpush1.bf16.msra.mxu0 %v15624_v39  ;;  %1763 = vmatprep.subr.bf16.mxu1 %v15695_v45  ;;  %v17714_v39 = vld [vmem:[#allocation6 + $0x38] sm:$0xff]  }
 0x13f   :  { %1673 = vmatprep.subr.bf16.mxu0 %v15629_v40  ;;  %v15708_v40 = vld [vmem:[#allocation2 + $0x250] ss:$40 sps:$4 sm:$0xff]  }
 0x140   :  { %v15720_v45 = vld [vmem:[#allocation2 + $0x1b0] ss:$40 sps:$4 sm:$0xff]  }
 0x141   :  { %1764 = vmatpush1.bf16.msra.mxu1 %v15693_v48  ;;  %v15734_v48 = vld [vmem:[#allocation2 + $0x114] ss:$40 sps:$4 sm:$0xff]  }
 0x142   :  { %1674 = vmatpush1.bf16.msra.mxu0 %v15627_v42  ;;  %1765 = vmatprep.subr.bf16.mxu1 %v15701_v49  ;;  %v15722_v42 = vld [vmem:[#allocation2 + $0x1b4] ss:$40 sps:$4 sm:$0xff]  }
 0x143   :  { %1675 = vmatprep.subr.bf16.mxu0 %v15632_v43  ;;  %v17725_v43 = vld [vmem:[#allocation6 + $0x28] sm:$0xff]   ;;  %v17736_v49 = vld [vmem:[#allocation6 + $0x18] sm:$0xff]  }
 0x145   :  { %1766 = vmatpush1.bf16.msra.mxu1 %v15699_v52  ;;  %v17740_v52 = vld [vmem:[#allocation6 + $0x10] sm:$0xff]  }
 0x146   :  { %1676 = vmatpush1.bf16.msra.mxu0 %v15630_v46  ;;  %1767 = vmatprep.subr.bf16.mxu1 %v15707_v53  ;;  %v15728_v46 = vld [vmem:[#allocation2 + $0x164] ss:$40 sps:$4 sm:$0xff]   ;;  %v15738_v53 = vld [vmem:[#allocation2 + $0xc0] ss:$40 sps:$4 sm:$0xff]  }
 0x147   :  { %1677 = vmatprep.subr.bf16.mxu0 %v15635_v47  ;;  %v17732_v47 = vld [vmem:[#allocation6 + $0x20] sm:$0xff]  }
 0x149   :  { %1768 = vmatpush2.bf16.msra.mxu1 %v15705_v56  ;;  %v15744_v56 = vld [vmem:[#allocation2 + $0x70] ss:$40 sps:$4 sm:$0xff]  }
 0x14a   :  { %1678 = vmatpush1.bf16.msra.mxu0 %v15633_v50  ;;  %1769 = vmatprep.subr.bf16.mxu1 %v15713_v57  ;;  %v15732_v50 = vld [vmem:[#allocation2 + $0x110] ss:$40 sps:$4 sm:$0xff]   ;;  %v15752_v57 = vld [vmem:[#allocation2 + $0x24] ss:$40 sps:$4 sm:$0xff]  }
 0x14b   :  { %1679 = vmatprep.subr.bf16.mxu0 %v15638_v51  ;;  %v15740_v51 = vld [vmem:[#allocation2 + $0xc4] ss:$40 sps:$4 sm:$0xff]  }
 0x14d   :  { %1770 = vmatpush2.bf16.msra.mxu1 %v15711_v60  ;;  %v15755_v60 = vld [vmem:[#allocation2 + $0x4d4] ss:$40 sps:$4 sm:$0xff]  }
 0x14e   :  { %1680 = vmatpush1.bf16.msra.mxu0 %v15636_v54  ;;  %1771 = vmatprep.subr.bf16.mxu1 %v15719_v61  ;;  %v15746_v54 = vld [vmem:[#allocation2 + $0x74] ss:$40 sps:$4 sm:$0xff]  }
 0x14f   :  { %1681 = vmatprep.subr.bf16.mxu0 %v15644_v55  ;;  %v17744_v55 = vld [vmem:[#allocation6 + $0x8] sm:$0xff]   ;;  %v17752_v61 = vld [vmem:[#allocation6 + $0x58] sm:$0xff]  }
 0x151   :  { %1772 = vmatpush2.bf16.msra.mxu1 %v15717_v1  ;;  %v17756_v1 = vld [vmem:[#allocation6 + $0x50] sm:$0xff]  }
 0x152   :  { %1682 = vmatpush2.bf16.msra.mxu0 %v15642_v58  ;;  %1773 = vmatprep.subr.bf16.mxu1 %v15725_v2  ;;  %v17748_v58 = vld [vmem:[#allocation6] sm:$0xff]  }
 0x153   :  { %1683 = vmatprep.subr.bf16.mxu0 %v15650_v59  ;;  %v15750_v59 = vld [vmem:[#allocation2 + $0x20] ss:$40 sps:$4 sm:$0xff]  }
 0x154   :  { %v15756_v2 = vld [vmem:[#allocation2 + $0x480] ss:$40 sps:$4 sm:$0xff]  }
 0x155   :  { %1774 = vmatpush2.bf16.msra.mxu1 %v15723_v6  ;;  %v15759_v6 = vld [vmem:[#allocation2 + $0x430] ss:$40 sps:$4 sm:$0xff]  }
 0x156   :  { %1684 = vmatpush2.bf16.msra.mxu0 %v15648_v62  ;;  %1775 = vmatprep.subr.bf16.mxu1 %v15731_v7  ;;  %v15753_v62 = vld [vmem:[#allocation2 + $0x4d0] ss:$40 sps:$4 sm:$0xff]   ;;  %v15764_v7 = vld [vmem:[#allocation2 + $0x3e4] ss:$40 sps:$4 sm:$0xff]  }
 0x157   :  { %1685 = vmatprep.subr.bf16.mxu0 %v15656_v0  ;;  %v15758_v0 = vld [vmem:[#allocation2 + $0x484] ss:$40 sps:$4 sm:$0xff]  }
 0x159   :  { %1776 = vmatpush2.bf16.msra.mxu1 %v15729_v10  ;;  %v15767_v10 = vld [vmem:[#allocation2 + $0x394] ss:$40 sps:$4 sm:$0xff]  }
 0x15a   :  { %1686 = vmatpush2.bf16.msra.mxu0 %v15654_v3  ;;  %1777 = vmatprep.subr.bf16.mxu1 %v15737_v11  ;;  %v15761_v3 = vld [vmem:[#allocation2 + $0x434] ss:$40 sps:$4 sm:$0xff]   ;;  %v15765_v11 = vld [vmem:[#allocation2 + $0x390] ss:$40 sps:$4 sm:$0xff]  }
 0x15b   :  { %1687 = vmatprep.subr.bf16.mxu0 %v15662_v4  ;;  %v17760_v4 = vld [vmem:[#allocation6 + $0x48] sm:$0xff]  }
 0x15d   :  { %1778 = vmatpush2.bf16.msra.mxu1 %v15735_v15  ;;  %v15776_v15 = vld [vmem:[#allocation2 + $0x2f4] ss:$40 sps:$4 sm:$0xff]  }
 0x15e   :  { %1688 = vmatpush2.bf16.msra.mxu0 %v15660_v8  ;;  %1779 = vmatprep.subr.bf16.mxu1 %v15743_v17  ;;  %v17764_v8 = vld [vmem:[#allocation6 + $0x40] sm:$0xff]   ;;  %v15782_v17 = vld [vmem:[#allocation2 + $0x2a4] ss:$40 sps:$4 sm:$0xff]  }
 0x15f   :  { %1689 = vmatprep.subr.bf16.mxu0 %v15668_v9  ;;  %v15762_v9 = vld [vmem:[#allocation2 + $0x3e0] ss:$40 sps:$4 sm:$0xff]  }
 0x161   :  { %1780 = vmatpush2.bf16.msra.mxu1 %v15741_v19  ;;  %v17055_v19 = vld [vmem:[%s18748_s22] ss:$12 sps:$4 sm:$0xff]  }
 0x162   :  { %1690 = vmatpush2.bf16.msra.mxu0 %v15666_v12  ;;  %1781 = vmatprep.subr.bf16.mxu1 %v15749_v20  ;;  %v15770_v12 = vld [vmem:[#allocation2 + $0x344] ss:$40 sps:$4 sm:$0xff]   ;;  %v474_v20 = vlaneseq }
 0x163   :  { %1691 = vmatprep.subr.bf16.mxu0 %v15674_v14  ;;  %v15768_v14 = vld [vmem:[#allocation2 + $0x340] ss:$40 sps:$4 sm:$0xff]  }
 0x165   :  { %1782 = vmatpush2.bf16.msra.mxu1 %v15747_v23 }
 0x166   :  { %1692 = vmatpush2.bf16.msra.mxu0 %v15672_v16  ;;  %1890 = vmatprep.subr.bf16.mxu1 %v15773_v24  ;;  %v15774_v16 = vld [vmem:[#allocation2 + $0x2f0] ss:$40 sps:$4 sm:$0xff]  }
 0x167   :  { %1693 = vmatprep.subr.bf16.mxu0 %v15680_v18  ;;  %v15780_v18 = vld [vmem:[#allocation2 + $0x2a0] ss:$40 sps:$4 sm:$0xff]  }
 0x168   :  { %1784 = vmatmul.mubr.bf16.vlgmr.msra.gmra.mxu1 %v17690_v63 }
 0x169   :  { %1891 = vmatpush1.bf16.msra.mxu1 %v15771_v27  ;;  %1912 = vmatprep.mubr.bf16.mxu1 %v18726_v5 }
 0x16a   :  { %1694 = vmatpush2.bf16.msra.mxu0 %v15678_v21  ;;  %1892 = vmatprep.subr.bf16.mxu1 %v15779_v28  ;;  %v17778_v21 = vshrl.u32 %v474_v20, 7 }
 0x16b   :  { %1695 = vmatprep.subr.bf16.mxu0 %v15686_v22 }
 0x16c   :  { %v17783_v22 = vsub.s32 0, %v17778_v21  ;;  %v17786_v23 = vsub.s32 1, %v17778_v21  ;;  %v17804_v28 = vsub.s32 3, %v17778_v21 }
 0x16d   :  { %1893 = vmatpush1.bf16.msra.mxu1 %v15777_v31 }
 0x16e   :  { %1696 = vmatpush2.bf16.msra.mxu0 %v15684_v25  ;;  %1894 = vmatprep.subr.bf16.mxu1 %v15785_v32  ;;  %18749 = vst [vmem:[#allocation37_spill] sm:$0xff] %v17783_v22  ;;  %18750 = vst [vmem:[#allocation38_spill] sm:$0xff] %v17786_v23  ;;  %v17797_v25 = vsub.s32 2, %v17778_v21 }
 0x16f   :  { %1804 = vmatprep.subr.bf16.mxu0 %v15692_v26  ;;  %v17800_v26 = vld [vmem:[#allocation4] sm:$0xff] }
 0x170   :  { %18751 = vst [vmem:[#allocation39_spill] sm:$0xff] %v17797_v25  ;;  %v481_v31 = vrot.slane %v17800_v26, %v17786_v23 }
 0x171   :  { %1698 = vmatmul.mubr.bf16.vlgmr.msra.gmra.mxu0 %v17690_v63  ;;  %1895 = vmatpush1.bf16.msra.mxu1 %v15783_v35  ;;  %v17717_v63 = vld [vmem:[#allocation6 + $0x30] sm:$0xff]  }
 0x172   :  { %1805 = vmatpush1.bf16.msra.mxu0 %v15690_v29  ;;  %1826 = vmatprep.mubr.bf16.mxu0 %v18726_v5 }
 0x173   :  { %1806 = vmatprep.subr.bf16.mxu0 %v15698_v30  ;;  %2093 = vmatprep.subr.bf16.mxu1 %v18726_v5  ;;  %v477_v30 = vrot.slane %v17800_v26, %v17783_v22 }
 0x174   :  { %13585 = vmatmul.mubr.msk.bf16.vlgmr.msra.gmra.mxu1 %vm1489_vm0, %v17697_v13 }
 0x175   :  { %2094 = vmatpush1.bf16.msra.mxu1 %v17714_v39 }
 0x176   :  { %1807 = vmatpush1.bf16.msra.mxu0 %v15696_v33  ;;  %2095 = vmatprep.subr.bf16.mxu1 %v18726_v5 }
 0x177   :  { %1808 = vmatprep.subr.bf16.mxu0 %v15704_v34 }
 0x179   :  { %2096 = vmatpush1.bf16.msra.mxu1 %v17717_v63 }
 0x17a   :  { %1809 = vmatpush1.bf16.msra.mxu0 %v15702_v36  ;;  %2097 = vmatprep.subr.bf16.mxu1 %v18726_v5 }
 0x17b   :  { %1837 = vmatprep.subr.bf16.mxu0 %v15710_v37 }
 0x17d   :  { %13584 = vmatmul.mubr.msk.bf16.vlgmr.msra.gmra.mxu0 %vm1489_vm0, %v17697_v13  ;;  %2098 = vmatpush1.bf16.msra.mxu1 %v17725_v43  ;;  %v15726_v13 = vld [vmem:[#allocation2 + $0x160] ss:$40 sps:$4 sm:$0xff]  }
 0x17e   :  { %1838 = vmatpush1.bf16.msra.mxu0 %v15708_v40  ;;  %1869 = vmatprep.mubr.bf16.mxu0 %v17054_v44 }
 0x17f   :  { %1839 = vmatprep.subr.bf16.mxu0 %v15716_v38  ;;  %2099 = vmatprep.subr.bf16.mxu1 %v18726_v5 }
 0x181   :  { %2100 = vmatpush1.bf16.msra.mxu1 %v17732_v47 }
 0x182   :  { %1840 = vmatpush1.bf16.msra.mxu0 %v15714_v41  ;;  %2101 = vmatprep.subr.bf16.mxu1 %v18726_v5 }
 0x183   :  { %1841 = vmatprep.subr.bf16.mxu0 %v15722_v42  ;;  %v485_v42 = vrot.slane %v17800_v26, %v17797_v25 }
 0x185   :  { %2102 = vmatpush1.bf16.msra.mxu1 %v17736_v49 }
 0x186   :  { %1842 = vmatpush1.bf16.msra.mxu0 %v15720_v45  ;;  %2103 = vmatprep.subr.bf16.mxu1 %v18726_v5 }
 0x187   :  { %1843 = vmatprep.subr.bf16.mxu0 %v15728_v46 }
 0x189   :  { %2104 = vmatpush1.bf16.msra.mxu1 %v17740_v52 }
 0x18a   :  { %1844 = vmatpush1.bf16.msra.mxu0 %v15726_v13  ;;  %2105 = vmatprep.subr.bf16.mxu1 %v18726_v5 }
 0x18b   :  { %1845 = vmatprep.subr.bf16.mxu0 %v15734_v48 }
 0x18d   :  { %2106 = vmatpush1.bf16.msra.mxu1 %v17744_v55 }
 0x18e   :  { %1846 = vmatpush1.bf16.msra.mxu0 %v15732_v50  ;;  %2107 = vmatprep.subr.bf16.mxu1 %v18726_v5 }
 0x18f   :  { %1847 = vmatprep.subr.bf16.mxu0 %v15740_v51 }
 0x191   :  { %2108 = vmatpush1.bf16.msra.mxu1 %v17748_v58 }
 0x192   :  { %1848 = vmatpush1.bf16.msra.mxu0 %v15738_v53  ;;  %2117 = vmatprep.subr.bf16.mxu1 %v18726_v5 }
 0x193   :  { %1849 = vmatprep.subr.bf16.mxu0 %v15746_v54 }
 0x195   :  { %2118 = vmatpush2.bf16.msra.mxu1 %v17752_v61 }
 0x196   :  { %1850 = vmatpush1.bf16.msra.mxu0 %v15744_v56  ;;  %2119 = vmatprep.subr.bf16.mxu1 %v18726_v5 }
 0x197   :  { %1851 = vmatprep.subr.bf16.mxu0 %v15752_v57 }
 0x199   :  { %2120 = vmatpush2.bf16.msra.mxu1 %v17756_v1 }
 0x19a   :  { %1852 = vmatpush1.bf16.msra.mxu0 %v15750_v59  ;;  %2121 = vmatprep.subr.bf16.mxu1 %v18726_v5 }
 0x19b   :  { %1853 = vmatprep.subr.bf16.mxu0 %v15755_v60 }
 0x19d   :  { %2122 = vmatpush2.bf16.msra.mxu1 %v17760_v4 }
 0x19e   :  { %1854 = vmatpush2.bf16.msra.mxu0 %v15753_v62  ;;  %2123 = vmatprep.subr.bf16.mxu1 %v18726_v5 }
 0x19f   :  { %1855 = vmatprep.subr.bf16.mxu0 %v15758_v0 }
 0x1a1   :  { %2124 = vmatpush2.bf16.msra.mxu1 %v17764_v8 }
 0x1a2   :  { %1856 = vmatpush2.bf16.msra.mxu0 %v15756_v2  ;;  %2137 = vmatprep.subr.bf16.mxu1 %v18726_v5 }
 0x1a3   :  { %1857 = vmatprep.subr.bf16.mxu0 %v15761_v3 }
 0x1a6   :  { %1858 = vmatpush2.bf16.msra.mxu0 %v15759_v6  ;;  %v17827_v6 = vld [vmem:[#allocation6 + $0x38] sm:$0xff]  }
 0x1a7   :  { %1859 = vmatprep.subr.bf16.mxu0 %v15764_v7 }
 0x1aa   :  { %1860 = vmatpush2.bf16.msra.mxu0 %v15762_v9 }
 0x1ab   :  { %1861 = vmatprep.subr.bf16.mxu0 %v15767_v10 }
 0x1ae   :  { %1862 = vmatpush2.bf16.msra.mxu0 %v15765_v11 }
 0x1af   :  { %1863 = vmatprep.subr.bf16.mxu0 %v15770_v12 }
 0x1b2   :  { %1864 = vmatpush2.bf16.msra.mxu0 %v15768_v14 }
 0x1b3   :  { %1865 = vmatprep.subr.bf16.mxu0 %v15776_v15  ;;  %v17831_v15 = vld [vmem:[#allocation6 + $0x30] sm:$0xff]  }
 0x1b6   :  { %1866 = vmatpush2.bf16.msra.mxu0 %v15774_v16 }
 0x1b7   :  { %1867 = vmatprep.subr.bf16.mxu0 %v15782_v17 }
 0x1ba   :  { %1868 = vmatpush2.bf16.msra.mxu0 %v15780_v18 }
 0x1bb   :  { %2181 = vmatprep.subr.bf16.mxu0 %v18726_v5 }
 0x1bd   :  { %1870 = vmatmul.mubr.bf16.vlgmr.msra.gmra.mxu0 %v17055_v19 }
 0x1be   :  { %2182 = vmatpush1.bf16.msra.mxu0 %v17714_v39 }
 0x1bf   :  { %2183 = vmatprep.subr.bf16.mxu0 %v18726_v5 }
 0x1c2   :  { %2184 = vmatpush1.bf16.msra.mxu0 %v17717_v63 }
 0x1c3   :  { %2185 = vmatprep.subr.bf16.mxu0 %v18726_v5 }
 0x1c6   :  { %2186 = vmatpush1.bf16.msra.mxu0 %v17725_v43 }
 0x1c7   :  { %2187 = vmatprep.subr.bf16.mxu0 %v18726_v5 }
 0x1ca   :  { %2188 = vmatpush1.bf16.msra.mxu0 %v17732_v47 }
 0x1cb   :  { %2189 = vmatprep.subr.bf16.mxu0 %v18726_v5 }
 0x1ce   :  { %2190 = vmatpush1.bf16.msra.mxu0 %v17736_v49  ;;  %v489_v49 = vrot.slane %v17800_v26, %v17804_v28 }
 0x1cf   :  { %2191 = vmatprep.subr.bf16.mxu0 %v18726_v5 }
 0x1d2   :  { %2192 = vmatpush1.bf16.msra.mxu0 %v17740_v52 }
 0x1d3   :  { %2193 = vmatprep.subr.bf16.mxu0 %v18726_v5 }
 0x1d6   :  { %2194 = vmatpush1.bf16.msra.mxu0 %v17744_v55 }
 0x1d7   :  { %2195 = vmatprep.subr.bf16.mxu0 %v18726_v5 }
 0x1d9   :  { %v1527_v24 = vpop.f32.mrf.mxu0 }
 0x1da   :  { %2196 = vmatpush1.bf16.msra.mxu0 %v17748_v58  ;;  %v1528_v33 = vadd.f32 %v1527_v24, %v477_v30 }
 0x1db   :  { %v1529_v27 = vpop.f32.mrf.mxu0  ;;  %2205 = vmatprep.subr.bf16.mxu0 %v18726_v5 }
 0x1dc   :  { %v1613_v35 = vpop.f32.mrf.mxu1  ;;  %v1530_v36 = vadd.f32 %v1529_v27, %v481_v31  ;;  %v17838_v27 = vld [vmem:[#allocation6 + $0x28] sm:$0xff]  }
 0x1dd   :  { %v1531_v29 = vpop.f32.mrf.mxu0  ;;  %v1614_v52 = vadd.f32 %v1613_v35, %v485_v42  ;;  %v17878_v35 = vld [vmem:[#allocation6 + $0x58] sm:$0xff]  }
 0x1de   :  { %2206 = vmatpush2.bf16.msra.mxu0 %v17752_v61  ;;  %v1532_v40 = vadd.f32 %v1531_v29, %v477_v30  ;;  %v1615_v43 = vpop.f32.mrf.mxu1  ;;  %v17843_v29 = vsub.s32 4, %v17778_v21  ;;  %v17848_v30 = vld [vmem:[#allocation6 + $0x20] sm:$0xff]  }
 0x1df   :  { %2207 = vmatprep.subr.bf16.mxu0 %v18726_v5  ;;  %v1533_v32 = vpop.f32.mrf.mxu0  ;;  %v1616_v56 = vadd.f32 %v1615_v43, %v489_v49 }
 0x1e0   :  { %v1534_v44 = vadd.f32 %v1533_v32, %v481_v31  ;;  %v1617_v50 = vpop.f32.mrf.mxu1  ;;  %v17854_v31 = vld [vmem:[#allocation6 + $0x18] sm:$0xff]   ;;  %v17860_v32 = vld [vmem:[#allocation6 + $0x10] sm:$0xff]  }
 0x1e1   :  { %v1618_v0 = vadd.f32 %v1617_v50, %v485_v42  ;;  %v493_v42 = vrot.slane %v17800_v26, %v17843_v29  ;;  %v17925_v50 = vsub.s32 7, %v17778_v21 }
 0x1e2   :  { %2208 = vmatpush2.bf16.msra.mxu0 %v17756_v1  ;;  %v1619_v60 = vpop.f32.mrf.mxu1 }
 0x1e3   :  { %2209 = vmatprep.subr.bf16.mxu0 %v18726_v5  ;;  %18753 = vst [vmem:[#allocation41_spill] sm:$0xff] %v17925_v50 }
 0x1e5   :  { %v1570_v34 = vpop.f32.mrf.mxu0 }
 0x1e6   :  { %v1571_v37 = vadd.f32 %v1570_v34, %v1528_v33  ;;  %2210 = vmatpush2.bf16.msra.mxu0 %v17760_v4  ;;  %v1620_v4 = vadd.f32 %v1619_v60, %v489_v49  ;;  %v17866_v33 = vld [vmem:[#allocation6 + $0x8] sm:$0xff]   ;;  %v17872_v34 = vld [vmem:[#allocation6] sm:$0xff]   ;;  %v17933_v60 = vsub.s32 6, %v17778_v21 }
 0x1e7   :  { %v1572_v39 = vpop.f32.mrf.mxu0  ;;  %2211 = vmatprep.subr.bf16.mxu0 %v18726_v5 }
 0x1e8   :  { %vm1923_vm1 = vcmp.ge.f32.partialorder %v1571_v37, 0.0  ;;  %v1943_v38 = vmul.f32 0.1, %v1571_v37  ;;  %v1573_v63 = vadd.f32 %v1572_v39, %v1530_v36  ;;  %v17884_v36 = vld [vmem:[#allocation6 + $0x50] sm:$0xff]   ;;  %v17896_v39 = vld [vmem:[#allocation6 + $0x40] sm:$0xff]   ;;  %18754 = vst [vmem:[#allocation42_spill] sm:$0xff] %v17933_v60 }
 0x1e9   :  { %v1574_v41 = vpop.f32.mrf.mxu0 }
 0x1ea   :  { %vm1924_vm3 = vcmp.ge.f32.partialorder %v1573_v63, 0.0  ;;  %v1944_v45 = vmul.f32 0.1, %v1573_v63  ;;  %v1575_v46 = vadd.f32 %v1574_v41, %v1532_v40  ;;  %2212 = vmatpush2.bf16.msra.mxu0 %v17764_v8  ;;  %v1963_v57 = vsel %vm1923_vm1, %v1571_v37, %v1943_v38  ;;  %v17890_v37 = vld [vmem:[#allocation6 + $0x48] sm:$0xff]   ;;  %v1742_v40 = vpop.f32.mrf.mxu1 }
 0x1eb   :  { %v1576_v47 = vpop.f32.mrf.mxu0  ;;  %2269 = vmatprep.subr.bf16.mxu0 %v18726_v5  ;;  %v17912_v41 = vsub.s32 5, %v17778_v21  ;;  %v501_v21 = vrot.slane %v17800_v26, %v17933_v60 }
 0x1ec   :  { %vm1933_vm4 = vcmp.ge.f32.partialorder %v1575_v46, 0.0  ;;  %v1953_v13 = vmul.f32 0.1, %v1575_v46  ;;  %v1577_v48 = vadd.f32 %v1576_v47, %v1534_v44  ;;  %v1964_v54 = vsel %vm1924_vm3, %v1573_v63, %v1944_v45  ;;  %v1744_v38 = vpop.f32.mrf.mxu1 }
 0x1ed   :  { %18752 = vst [vmem:[#allocation40_spill] sm:$0xff] %v17912_v41  ;;  %v497_v44 = vrot.slane %v17800_v26, %v17912_v41  ;;  %v18220_v41 = vld [vmem:[#allocation9 + $0x80] ss:$8 sps:$4 sm:$0xff]  }
 0x1ee   :  { %vm1934_vm5 = vcmp.ge.f32.partialorder %v1577_v48, 0.0  ;;  %v1954_v51 = vmul.f32 0.1, %v1577_v48  ;;  %v1973_v53 = vsel %vm1933_vm4, %v1575_v46, %v1953_v13  ;;  %v1746_v63 = vpop.f32.mrf.mxu1 }
 0x1ef   :  { %v1983_v61 = vpack.c.bf16 %v1973_v53, %v1963_v57 }
 0x1f0   :  { %v1974_v55 = vsel %vm1934_vm5, %v1577_v48, %v1954_v51  ;;  %v1748_v43 = vpop.f32.mrf.mxu1 }
 0x1f1   :  { %v17823_v58 = vpack.c.bf16 %v1974_v55, %v1964_v54  ;;  %v1656_v59 = vpop.f32.mrf.mxu0 }
 0x1f2   :  { %v1657_v62 = vadd.f32 %v1656_v59, %v1614_v52 }
 0x1f3   :  { %v1658_v1 = vpop.f32.mrf.mxu0  ;;  %13598 = vmatprep.mubr.msk.bf16.mxu1 %vm2089_vm2, %v17823_v58 }
 0x1f4   :  { %vm1925_vm6 = vcmp.ge.f32.partialorder %v1657_v62, 0.0  ;;  %v1945_v2 = vmul.f32 0.1, %v1657_v62  ;;  %v1659_v3 = vadd.f32 %v1658_v1, %v1616_v56  ;;  %2126 = vmatmul.mubr.bf16.vlgmr.msra.gmra.mxu1 %v1983_v61 }
 0x1f5   :  { %2138 = vmatpush1.bf16.msra.mxu1 %v17827_v6  ;;  %v1660_v7 = vpop.f32.mrf.mxu0 }
 0x1f6   :  { %vm1926_vm7 = vcmp.ge.f32.partialorder %v1659_v3, 0.0  ;;  %v1946_v8 = vmul.f32 0.1, %v1659_v3  ;;  %v1661_v9 = vadd.f32 %v1660_v7, %v1618_v0  ;;  %2139 = vmatprep.subr.bf16.mxu1 %v18726_v5  ;;  %v1965_v11 = vsel %vm1925_vm6, %v1657_v62, %v1945_v2 }
 0x1f7   :  { %v1662_v10 = vpop.f32.mrf.mxu0 }
 0x1f8   :  { %vm1935_vm8 = vcmp.ge.f32.partialorder %v1661_v9, 0.0  ;;  %v1955_v12 = vmul.f32 0.1, %v1661_v9  ;;  %v1663_v14 = vadd.f32 %v1662_v10, %v1620_v4  ;;  %v1966_v19 = vsel %vm1926_vm7, %v1659_v3, %v1946_v8 }
 0x1f9   :  { %2140 = vmatpush1.bf16.msra.mxu1 %v17831_v15 }
 0x1fa   :  { %v1975_v16 = vsel %vm1935_vm8, %v1661_v9, %v1955_v12  ;;  %vm1936_vm9 = vcmp.ge.f32.partialorder %v1663_v14, 0.0  ;;  %v1956_v17 = vmul.f32 0.1, %v1663_v14  ;;  %2141 = vmatprep.subr.bf16.mxu1 %v18726_v5 }
 0x1fb   :  { %v1985_v18 = vpack.c.bf16 %v1975_v16, %v1965_v11 }
 0x1fc   :  { %v1976_v20 = vsel %vm1936_vm9, %v1663_v14, %v1956_v17 }
 0x1fd   :  { %v17836_v24 = vpack.c.bf16 %v1976_v20, %v1966_v19  ;;  %2142 = vmatpush1.bf16.msra.mxu1 %v17838_v27  ;;  %13599 = vmatprep.mubr.msk.bf16.mxu1 %vm2089_vm2, %v1985_v18 }
 0x1fe   :  { %2143 = vmatprep.subr.bf16.mxu1 %v18726_v5 }
 0x1ff   :  { %13600 = vmatprep.mubr.msk.bf16.mxu0 %vm2089_vm2, %v17836_v24 }
 0x200   :  { %2214 = vmatmul.mubr.bf16.vlgmr.msra.gmra.mxu0 %v1985_v18 }
 0x201   :  { %2144 = vmatpush1.bf16.msra.mxu1 %v17848_v30  ;;  %2270 = vmatpush1.bf16.msra.mxu0 %v17827_v6 }
 0x202   :  { %2145 = vmatprep.subr.bf16.mxu1 %v18726_v5  ;;  %2271 = vmatprep.subr.bf16.mxu0 %v18726_v5 }
 0x205   :  { %2146 = vmatpush1.bf16.msra.mxu1 %v17854_v31  ;;  %2272 = vmatpush1.bf16.msra.mxu0 %v17831_v15 }
 0x206   :  { %2147 = vmatprep.subr.bf16.mxu1 %v18726_v5  ;;  %2273 = vmatprep.subr.bf16.mxu0 %v18726_v5 }
 0x209   :  { %2148 = vmatpush1.bf16.msra.mxu1 %v17860_v32  ;;  %2274 = vmatpush1.bf16.msra.mxu0 %v17838_v27 }
 0x20a   :  { %2149 = vmatprep.subr.bf16.mxu1 %v18726_v5  ;;  %2275 = vmatprep.subr.bf16.mxu0 %v18726_v5 }
 0x20d   :  { %2150 = vmatpush1.bf16.msra.mxu1 %v17866_v33  ;;  %2276 = vmatpush1.bf16.msra.mxu0 %v17848_v30 }
 0x20e   :  { %2151 = vmatprep.subr.bf16.mxu1 %v18726_v5  ;;  %2277 = vmatprep.subr.bf16.mxu0 %v18726_v5 }
 0x211   :  { %2152 = vmatpush1.bf16.msra.mxu1 %v17872_v34  ;;  %2278 = vmatpush1.bf16.msra.mxu0 %v17854_v31 }
 0x212   :  { %2161 = vmatprep.subr.bf16.mxu1 %v18726_v5  ;;  %2279 = vmatprep.subr.bf16.mxu0 %v18726_v5 }
 0x215   :  { %2162 = vmatpush2.bf16.msra.mxu1 %v17878_v35  ;;  %2280 = vmatpush1.bf16.msra.mxu0 %v17860_v32 }
 0x216   :  { %2163 = vmatprep.subr.bf16.mxu1 %v18726_v5  ;;  %2281 = vmatprep.subr.bf16.mxu0 %v18726_v5 }
 0x219   :  { %2164 = vmatpush2.bf16.msra.mxu1 %v17884_v36  ;;  %2282 = vmatpush1.bf16.msra.mxu0 %v17866_v33 }
 0x21a   :  { %2165 = vmatprep.subr.bf16.mxu1 %v18726_v5  ;;  %2283 = vmatprep.subr.bf16.mxu0 %v18726_v5 }
 0x21d   :  { %2166 = vmatpush2.bf16.msra.mxu1 %v17890_v37  ;;  %2284 = vmatpush1.bf16.msra.mxu0 %v17872_v34 }
 0x21e   :  { %2167 = vmatprep.subr.bf16.mxu1 %v18726_v5  ;;  %2293 = vmatprep.subr.bf16.mxu0 %v18726_v5 }
 0x221   :  { %2168 = vmatpush2.bf16.msra.mxu1 %v17896_v39  ;;  %2294 = vmatpush2.bf16.msra.mxu0 %v17878_v35 }
 0x222   :  { %2225 = vmatprep.subr.bf16.mxu1 %v18726_v5  ;;  %2295 = vmatprep.subr.bf16.mxu0 %v18726_v5 }
 0x224   :  { %2170 = vmatmul.mubr.bf16.vlgmr.msra.gmra.mxu1 %v17823_v58  ;;  %v505_v58 = vrot.slane %v17800_v26, %v17925_v50 }
 0x225   :  { %2226 = vmatpush1.bf16.msra.mxu1 %v17827_v6  ;;  %2296 = vmatpush2.bf16.msra.mxu0 %v17884_v36 }
 0x226   :  { %2227 = vmatprep.subr.bf16.mxu1 %v18726_v5  ;;  %2297 = vmatprep.subr.bf16.mxu0 %v18726_v5 }
 0x228   :  { %v1785_v46 = vpop.f32.mrf.mxu1 }
 0x229   :  { %2228 = vmatpush1.bf16.msra.mxu1 %v17831_v15  ;;  %2298 = vmatpush2.bf16.msra.mxu0 %v17890_v37  ;;  %v1786_v19 = vadd.f32 %v1785_v46, %v501_v21 }
 0x22a   :  { %2229 = vmatprep.subr.bf16.mxu1 %v18726_v5  ;;  %2299 = vmatprep.subr.bf16.mxu0 %v18726_v5  ;;  %v1787_v52 = vpop.f32.mrf.mxu1 }
 0x22b   :  { %v1788_v4 = vadd.f32 %v1787_v52, %v505_v58 }
 0x22c   :  { %v1789_v61 = vpop.f32.mrf.mxu1 }
 0x22d   :  { %2230 = vmatpush1.bf16.msra.mxu1 %v17838_v27  ;;  %2300 = vmatpush2.bf16.msra.mxu0 %v17896_v39  ;;  %v1790_v26 = vadd.f32 %v1789_v61, %v501_v21  ;;  %v17073_v21 = vld [vmem:[#allocation6 + $0x10] sm:$0xff]  }
 0x22e   :  { %2231 = vmatprep.subr.bf16.mxu1 %v18726_v5  ;;  %2357 = vmatprep.subr.bf16.mxu0 %v18726_v5  ;;  %v1791_v10 = vpop.f32.mrf.mxu1 }
 0x22f   :  { %v1792_v18 = vadd.f32 %v1791_v10, %v505_v58 }
 0x231   :  { %2232 = vmatpush1.bf16.msra.mxu1 %v17848_v30  ;;  %v1699_v45 = vpop.f32.mrf.mxu0 }
 0x232   :  { %v1700_v47 = vadd.f32 %v1699_v45, %v493_v42  ;;  %2233 = vmatprep.subr.bf16.mxu1 %v18726_v5 }
 0x233   :  { %v1701_v13 = vpop.f32.mrf.mxu0 }
 0x234   :  { %v1743_v48 = vadd.f32 %v1742_v40, %v1700_v47  ;;  %v1702_v49 = vadd.f32 %v1701_v13, %v497_v44 }
 0x235   :  { %2234 = vmatpush1.bf16.msra.mxu1 %v17854_v31  ;;  %v1703_v51 = vpop.f32.mrf.mxu0 }
 0x236   :  { %v1704_v53 = vadd.f32 %v1703_v51, %v493_v42  ;;  %2235 = vmatprep.subr.bf16.mxu1 %v18726_v5  ;;  %v1745_v54 = vadd.f32 %v1744_v38, %v1702_v49  ;;  %v1947_v56 = vmul.f32 0.1, %v1743_v48  ;;  %vm1927_vm10 = vcmp.ge.f32.partialorder %v1743_v48, 0.0 }
 0x237   :  { %v1705_v55 = vpop.f32.mrf.mxu0 }
 0x238   :  { %v1747_v57 = vadd.f32 %v1746_v63, %v1704_v53  ;;  %v1706_v59 = vadd.f32 %v1705_v55, %v497_v44  ;;  %v1948_v0 = vmul.f32 0.1, %v1745_v54  ;;  %v1967_v2 = vsel %vm1927_vm10, %v1743_v48, %v1947_v56 }
 0x239   :  { %2236 = vmatpush1.bf16.msra.mxu1 %v17860_v32  ;;  %vm1928_vm12 = vcmp.ge.f32.partialorder %v1745_v54, 0.0 }
 0x23a   :  { %vm1937_vm11 = vcmp.ge.f32.partialorder %v1747_v57, 0.0  ;;  %v1957_v62 = vmul.f32 0.1, %v1747_v57  ;;  %2237 = vmatprep.subr.bf16.mxu1 %v18726_v5  ;;  %v1749_v1 = vadd.f32 %v1748_v43, %v1706_v59  ;;  %v1968_v11 = vsel %vm1928_vm12, %v1745_v54, %v1948_v0  ;;  %v17071_v54 = vld [vmem:[#allocation6 + $0x20] sm:$0xff]  }
 0x23c   :  { %v1977_v3 = vsel %vm1937_vm11, %v1747_v57, %v1957_v62  ;;  %vm1938_vm13 = vcmp.ge.f32.partialorder %v1749_v1, 0.0  ;;  %v1958_v7 = vmul.f32 0.1, %v1749_v1 }
 0x23d   :  { %2238 = vmatpush1.bf16.msra.mxu1 %v17866_v33  ;;  %v1987_v8 = vpack.c.bf16 %v1977_v3, %v1967_v2  ;;  %v1828_v9 = vpop.f32.mrf.mxu0 }
 0x23e   :  { %2239 = vmatprep.subr.bf16.mxu1 %v18726_v5  ;;  %v1978_v12 = vsel %vm1938_vm13, %v1749_v1, %v1958_v7  ;;  %v1829_v42 = vadd.f32 %v1828_v9, %v1786_v19  ;;  %v17072_v1 = vld [vmem:[#allocation6 + $0x18] sm:$0xff]   ;;  %v17077_v19 = vld [vmem:[#allocation6 + $0x50] sm:$0xff]  }
 0x23f   :  { %13601 = vmatprep.mubr.msk.bf16.mxu1 %vm2089_vm2, %v1987_v8  ;;  %v1830_v14 = vpop.f32.mrf.mxu0  ;;  %v17941_v16 = vpack.c.bf16 %v1978_v12, %v1968_v11 }
 0x240   :  { %v1831_v17 = vadd.f32 %v1830_v14, %v1788_v4  ;;  %v1949_v47 = vmul.f32 0.1, %v1829_v42  ;;  %vm1929_vm0 = vcmp.ge.f32.partialorder %v1829_v42, 0.0 }
 0x241   :  { %2240 = vmatpush1.bf16.msra.mxu1 %v17872_v34  ;;  %v1832_v20 = vpop.f32.mrf.mxu0  ;;  %13602 = vmatprep.mubr.msk.bf16.mxu0 %vm2089_vm2, %v17941_v16 }
 0x242   :  { %2249 = vmatprep.subr.bf16.mxu1 %v18726_v5  ;;  %v1950_v40 = vmul.f32 0.1, %v1831_v17  ;;  %2302 = vmatmul.mubr.bf16.vlgmr.msra.gmra.mxu0 %v1987_v8  ;;  %vm1930_vm14 = vcmp.ge.f32.partialorder %v1831_v17, 0.0  ;;  %v1833_v44 = vadd.f32 %v1832_v20, %v1790_v26  ;;  %v1969_v49 = vsel %vm1929_vm0, %v1829_v42, %v1949_v47  ;;  %v18032_v20 = vld [vmem:[#allocation9 + $0x174] ss:$8 sps:$4 sm:$0xff]  }
 0x243   :  { %v1834_v38 = vpop.f32.mrf.mxu0  ;;  %2358 = vmatpush1.bf16.msra.mxu0 %v17827_v6  ;;  %v17078_v26 = vld [vmem:[#allocation6 + $0x48] sm:$0xff]  }
 0x244   :  { %v1835_v63 = vadd.f32 %v1834_v38, %v1792_v18  ;;  %2359 = vmatprep.subr.bf16.mxu0 %v18726_v5  ;;  %v1970_v43 = vsel %vm1930_vm14, %v1831_v17, %v1950_v40  ;;  %vm1939_vm1 = vcmp.ge.f32.partialorder %v1833_v44, 0.0  ;;  %v1959_v48 = vmul.f32 0.1, %v1833_v44  ;;  %v17075_v17 = vld [vmem:[#allocation6] sm:$0xff]   ;;  %v17076_v18 = vld [vmem:[#allocation6 + $0x58] sm:$0xff]  }
 0x245   :  { %2250 = vmatpush2.bf16.msra.mxu1 %v17878_v35  ;;  %v18036_v40 = vld [vmem:[#allocation9 + $0x170] ss:$8 sps:$4 sm:$0xff]   ;;  %v18038_v38 = vld [vmem:[#allocation9 + $0x164] ss:$8 sps:$4 sm:$0xff]   ;;  %v18042_v42 = vld [vmem:[#allocation9 + $0x160] ss:$8 sps:$4 sm:$0xff]  }
 0x246   :  { %2251 = vmatprep.subr.bf16.mxu1 %v18726_v5  ;;  %vm1940_vm15 = vcmp.ge.f32.partialorder %v1835_v63, 0.0  ;;  %v1960_v45 = vmul.f32 0.1, %v1835_v63  ;;  %v1979_v51 = vsel %vm1939_vm1, %v1833_v44, %v1959_v48  ;;  %v18050_v44 = vld [vmem:[#allocation9 + $0x150] ss:$8 sps:$4 sm:$0xff]  }
 0x247   :  { %2360 = vmatpush1.bf16.msra.mxu0 %v17831_v15  ;;  %v1989_v52 = vpack.c.bf16 %v1979_v51, %v1969_v49  ;;  %v18059_v47 = vld [vmem:[#allocation9 + $0x134] ss:$8 sps:$4 sm:$0xff]   ;;  %v18068_v51 = vld [vmem:[#allocation9 + $0x130] ss:$8 sps:$4 sm:$0xff]  }
 0x248   :  { %v1980_v46 = vsel %vm1940_vm15, %v1835_v63, %v1960_v45  ;;  %2361 = vmatprep.subr.bf16.mxu0 %v18726_v5  ;;  %v17079_v63 = vld [vmem:[#allocation6 + $0x40] sm:$0xff]   ;;  %v18052_v45 = vld [vmem:[#allocation9 + $0x144] ss:$8 sps:$4 sm:$0xff]  }
 0x249   :  { %2252 = vmatpush2.bf16.msra.mxu1 %v17884_v36  ;;  %v17954_v13 = vpack.c.bf16 %v1980_v46, %v1970_v43  ;;  %v18044_v43 = vld [vmem:[#allocation9 + $0x154] ss:$8 sps:$4 sm:$0xff]   ;;  %v18057_v46 = vld [vmem:[#allocation9 + $0x140] ss:$8 sps:$4 sm:$0xff]  }
 0x24a   :  { %2253 = vmatprep.subr.bf16.mxu1 %v18726_v5  ;;  %v18061_v48 = vld [vmem:[#allocation9 + $0x74] ss:$8 sps:$4 sm:$0xff]  }
 0x24b   :  { %13604 = vmatprep.mubr.msk.bf16.mxu0 %vm2089_vm2, %v17954_v13  ;;  %2362 = vmatpush1.bf16.msra.mxu0 %v17838_v27  ;;  %v18066_v49 = vld [vmem:[#allocation7] sm:$0xff] }
 0x24c   :  { %2363 = vmatprep.subr.bf16.mxu0 %v18726_v5 }
 0x24d   :  { %2254 = vmatpush2.bf16.msra.mxu1 %v17890_v37 }
 0x24e   :  { %2255 = vmatprep.subr.bf16.mxu1 %v18726_v5 }
 0x24f   :  { %2364 = vmatpush1.bf16.msra.mxu0 %v17848_v30 }
 0x250   :  { %2365 = vmatprep.subr.bf16.mxu0 %v18726_v5 }
 0x251   :  { %2256 = vmatpush2.bf16.msra.mxu1 %v17896_v39 }
 0x252   :  { %2313 = vmatprep.subr.bf16.mxu1 %v18726_v5 }
 0x253   :  { %2366 = vmatpush1.bf16.msra.mxu0 %v17854_v31 }
 0x254   :  { %2258 = vmatmul.mubr.bf16.vlgmr.msra.gmra.mxu1 %v17836_v24  ;;  %2367 = vmatprep.subr.bf16.mxu0 %v18726_v5  ;;  %v17069_v24 = vld [vmem:[#allocation6 + $0x30] sm:$0xff]  }
 0x255   :  { %2314 = vmatpush1.bf16.msra.mxu1 %v17827_v6  ;;  %13603 = vmatprep.mubr.msk.bf16.mxu1 %vm2089_vm2, %v1989_v52  ;;  %v17068_v6 = vld [vmem:[#allocation6 + $0x38] sm:$0xff]  }
 0x256   :  { %2315 = vmatprep.subr.bf16.mxu1 %v18726_v5 }
 0x257   :  { %2368 = vmatpush1.bf16.msra.mxu0 %v17860_v32 }
 0x258   :  { %2369 = vmatprep.subr.bf16.mxu0 %v18726_v5 }
 0x259   :  { %2316 = vmatpush1.bf16.msra.mxu1 %v17831_v15  ;;  %v471_v15 = vld [vmem:[#allocation4 + $0x8] sm:$0x3] }
 0x25a   :  { %2317 = vmatprep.subr.bf16.mxu1 %v18726_v5 }
 0x25b   :  { %2370 = vmatpush1.bf16.msra.mxu0 %v17866_v33 }
 0x25c   :  { %2371 = vmatprep.subr.bf16.mxu0 %v18726_v5 }
 0x25d   :  { %2318 = vmatpush1.bf16.msra.mxu1 %v17838_v27  ;;  %v1914_v27 = vpop.f32.mrf.mxu1 }
 0x25e   :  { %2319 = vmatprep.subr.bf16.mxu1 %v18726_v5 }
 0x25f   :  { %2372 = vmatpush1.bf16.msra.mxu0 %v17872_v34 }
 0x260   :  { %2381 = vmatprep.subr.bf16.mxu0 %v18726_v5 }
 0x261   :  { %2320 = vmatpush1.bf16.msra.mxu1 %v17848_v30  ;;  %v509_v30 = vrot.slane %v471_v15, %v17783_v22 }
 0x262   :  { %2321 = vmatprep.subr.bf16.mxu1 %v18726_v5 }
 0x263   :  { %2382 = vmatpush2.bf16.msra.mxu0 %v17878_v35 }
 0x264   :  { %2383 = vmatprep.subr.bf16.mxu0 %v18726_v5 }
 0x265   :  { %2322 = vmatpush1.bf16.msra.mxu1 %v17854_v31  ;;  %v17070_v31 = vld [vmem:[#allocation6 + $0x28] sm:$0xff]  }
 0x266   :  { %2323 = vmatprep.subr.bf16.mxu1 %v18726_v5 }
 0x267   :  { %2384 = vmatpush2.bf16.msra.mxu0 %v17884_v36 }
 0x268   :  { %2385 = vmatprep.subr.bf16.mxu0 %v18726_v5 }
 0x269   :  { %2324 = vmatpush1.bf16.msra.mxu1 %v17860_v32  ;;  %v513_v32 = vrot.slane %v471_v15, %v17786_v23  ;;  %v18074_v15 = vld [vmem:[#allocation9 + $0x64] ss:$8 sps:$4 sm:$0xff]  }
 0x26a   :  { %2325 = vmatprep.subr.bf16.mxu1 %v18726_v5 }
 0x26b   :  { %2386 = vmatpush2.bf16.msra.mxu0 %v17890_v37 }
 0x26c   :  { %2387 = vmatprep.subr.bf16.mxu0 %v18726_v5 }
 0x26d   :  { %2326 = vmatpush1.bf16.msra.mxu1 %v17866_v33  ;;  %v1916_v33 = vpop.f32.mrf.mxu1 }
 0x26e   :  { %2327 = vmatprep.subr.bf16.mxu1 %v18726_v5 }
 0x26f   :  { %2388 = vmatpush2.bf16.msra.mxu0 %v17896_v39  ;;  %v1918_v56 = vpop.f32.mrf.mxu1 }
 0x270   :  { %2445 = vmatprep.subr.bf16.mxu0 %v18726_v5 }
 0x271   :  { %2328 = vmatpush1.bf16.msra.mxu1 %v17872_v34  ;;  %v1920_v2 = vpop.f32.mrf.mxu1 }
 0x272   :  { %2337 = vmatprep.subr.bf16.mxu1 %v18726_v5  ;;  %2390 = vmatmul.mubr.bf16.vlgmr.msra.gmra.mxu0 %v1989_v52  ;;  %v18070_v52 = vld [vmem:[#allocation9 + $0x70] ss:$8 sps:$4 sm:$0xff]  }
 0x273   :  { %2446 = vmatpush1.bf16.msra.mxu0 %v17068_v6 }
 0x274   :  { %2447 = vmatprep.subr.bf16.mxu0 %v18726_v5 }
 0x275   :  { %2338 = vmatpush2.bf16.msra.mxu1 %v17878_v35 }
 0x276   :  { %2339 = vmatprep.subr.bf16.mxu1 %v18726_v5 }
 0x277   :  { %2448 = vmatpush1.bf16.msra.mxu0 %v17069_v24 }
 0x278   :  { %2449 = vmatprep.subr.bf16.mxu0 %v18726_v5 }
 0x279   :  { %2340 = vmatpush2.bf16.msra.mxu1 %v17884_v36 }
 0x27a   :  { %2341 = vmatprep.subr.bf16.mxu1 %v18726_v5 }
 0x27b   :  { %2450 = vmatpush1.bf16.msra.mxu0 %v17070_v31 }
 0x27c   :  { %2451 = vmatprep.subr.bf16.mxu0 %v18726_v5 }
 0x27d   :  { %2342 = vmatpush2.bf16.msra.mxu1 %v17890_v37  ;;  %v1871_v34 = vpop.f32.mrf.mxu0 }
 0x27e   :  { %v1872_v35 = vadd.f32 %v1871_v34, %v509_v30  ;;  %2343 = vmatprep.subr.bf16.mxu1 %v18726_v5 }
 0x27f   :  { %v1873_v36 = vpop.f32.mrf.mxu0  ;;  %2452 = vmatpush1.bf16.msra.mxu0 %v17071_v54 }
 0x280   :  { %v1915_v53 = vadd.f32 %v1914_v27, %v1872_v35  ;;  %v1874_v55 = vadd.f32 %v1873_v36, %v513_v32  ;;  %2453 = vmatprep.subr.bf16.mxu0 %v18726_v5  ;;  %v18083_v27 = vrot.slane %v18066_v49, %v17783_v22  ;;  %v18096_v35 = vld [vmem:[#allocation9 + $0x110] ss:$8 sps:$4 sm:$0xff]  }
 0x281   :  { %2344 = vmatpush2.bf16.msra.mxu1 %v17896_v39  ;;  %v1875_v57 = vpop.f32.mrf.mxu0 }
 0x282   :  { %vm1931_vm3 = vcmp.ge.f32.partialorder %v1915_v53, 0.0  ;;  %v1951_v58 = vmul.f32 0.1, %v1915_v53  ;;  %v1917_v37 = vadd.f32 %v1916_v33, %v1874_v55  ;;  %v1876_v59 = vadd.f32 %v1875_v57, %v509_v30  ;;  %2401 = vmatprep.subr.bf16.mxu1 %v18726_v5  ;;  %v18085_v30 = vld [vmem:[#allocation9 + $0x60] ss:$8 sps:$4 sm:$0xff]  }
 0x283   :  { %v1877_v61 = vpop.f32.mrf.mxu0  ;;  %2454 = vmatpush1.bf16.msra.mxu0 %v17072_v1  ;;  %v18090_v33 = vld [vmem:[#allocation9 + $0x54] ss:$8 sps:$4 sm:$0xff]   ;;  %v18107_v55 = vld [vmem:[#allocation9 + $0x44] ss:$8 sps:$4 sm:$0xff]   ;;  %v18113_v57 = vld [vmem:[#allocation9 + $0x100] ss:$8 sps:$4 sm:$0xff]  }
 0x284   :  { %vm1932_vm4 = vcmp.ge.f32.partialorder %v1917_v37, 0.0  ;;  %v1952_v62 = vmul.f32 0.1, %v1917_v37  ;;  %v1919_v0 = vadd.f32 %v1918_v56, %v1876_v59  ;;  %2346 = vmatmul.mubr.bf16.vlgmr.msra.gmra.mxu1 %v17941_v16  ;;  %v1878_v3 = vadd.f32 %v1877_v61, %v513_v32  ;;  %2455 = vmatprep.subr.bf16.mxu0 %v18726_v5  ;;  %v17074_v16 = vld [vmem:[#allocation6 + $0x8] sm:$0xff]  }
 0x285   :  { %2402 = vmatpush1.bf16.msra.mxu1 %v17068_v6  ;;  %v1971_v39 = vsel %vm1931_vm3, %v1915_v53, %v1951_v58  ;;  %v18072_v6 = vld [vmem:[#allocation9 + $0x124] ss:$8 sps:$4 sm:$0xff]   ;;  %v18101_v53 = vld [vmem:[#allocation9 + $0x50] ss:$8 sps:$4 sm:$0xff]   ;;  %v18120_v59 = vld [vmem:[#allocation9 + $0x34] ss:$8 sps:$4 sm:$0xff]   ;;  %v2501_v61 = vrot.slane %v18066_v49, %v17797_v25 }
 0x286   :  { %vm1941_vm5 = vcmp.ge.f32.partialorder %v1919_v0, 0.0  ;;  %v1961_v4 = vmul.f32 0.1, %v1919_v0  ;;  %2403 = vmatprep.subr.bf16.mxu1 %v18726_v5  ;;  %v1921_v7 = vadd.f32 %v1920_v2, %v1878_v3  ;;  %v1972_v11 = vsel %vm1932_vm4, %v1917_v37, %v1952_v62  ;;  %v18118_v37 = vld [vmem:[#allocation9 + $0x40] ss:$8 sps:$4 sm:$0xff]  }
 0x287   :  { %2456 = vmatpush1.bf16.msra.mxu0 %v17073_v21  ;;  %v18128_v62 = vld [vmem:[#allocation9 + $0x30] ss:$8 sps:$4 sm:$0xff]  }
 0x288   :  { %v1981_v8 = vsel %vm1941_vm5, %v1919_v0, %v1961_v4  ;;  %vm1942_vm6 = vcmp.ge.f32.partialorder %v1921_v7, 0.0  ;;  %v1962_v10 = vmul.f32 0.1, %v1921_v7  ;;  %2457 = vmatprep.subr.bf16.mxu0 %v18726_v5  ;;  %v18136_v4 = vld [vmem:[#allocation9 + $0x20] ss:$8 sps:$4 sm:$0xff]  }
 0x289   :  { %v1991_v9 = vpack.c.bf16 %v1981_v8, %v1971_v39  ;;  %2404 = vmatpush1.bf16.msra.mxu1 %v17069_v24  ;;  %v18079_v24 = vld [vmem:[#allocation9 + $0x120] ss:$8 sps:$4 sm:$0xff]   ;;  %v18138_v8 = vld [vmem:[#allocation9 + $0x14] ss:$8 sps:$4 sm:$0xff]   ;;  %v18212_v25 = vld [vmem:[#allocation9 + $0x90] ss:$8 sps:$4 sm:$0xff]  }
 0x28a   :  { %2405 = vmatprep.subr.bf16.mxu1 %v18726_v5  ;;  %v1982_v12 = vsel %vm1942_vm6, %v1921_v7, %v1962_v10 }
 0x28b   :  { %13605 = vmatprep.mubr.msk.bf16.mxu1 %vm2089_vm2, %v1991_v9  ;;  %v1992_v14 = vpack.c.bf16 %v1982_v12, %v1972_v11  ;;  %2458 = vmatpush1.bf16.msra.mxu0 %v17074_v16  ;;  %v18142_v11 = vld [vmem:[#allocation9 + $0x10] ss:$8 sps:$4 sm:$0xff]   ;;  %v18144_v12 = vld [vmem:[#allocation9 + $0x4] ss:$8 sps:$4 sm:$0xff]  }
 0x28c   :  { %2459 = vmatprep.subr.bf16.mxu0 %v18726_v5  ;;  %18755 = vst [vmem:[#allocation43_spill] sm:$0xff] %v18144_v12 }
 0x28d   :  { %2406 = vmatpush1.bf16.msra.mxu1 %v17070_v31  ;;  %13606 = vmatprep.mubr.msk.bf16.mxu0 %vm2089_vm2, %v1992_v14  ;;  %v18087_v31 = vld [vmem:[#allocation9 + $0x114] ss:$8 sps:$4 sm:$0xff]  }
 0x28e   :  { %2407 = vmatprep.subr.bf16.mxu1 %v18726_v5 }
 0x28f   :  { %2460 = vmatpush1.bf16.msra.mxu0 %v17075_v17 }
 0x290   :  { %2469 = vmatprep.subr.bf16.mxu0 %v18726_v5 }
 0x291   :  { %2408 = vmatpush1.bf16.msra.mxu1 %v17071_v54 }
 0x292   :  { %2409 = vmatprep.subr.bf16.mxu1 %v18726_v5 }
 0x293   :  { %2470 = vmatpush2.bf16.msra.mxu0 %v17076_v18 }
 0x294   :  { %2471 = vmatprep.subr.bf16.mxu0 %v18726_v5 }
 0x295   :  { %2410 = vmatpush1.bf16.msra.mxu1 %v17072_v1  ;;  %v18130_v1 = vld [vmem:[#allocation9 + $0x24] ss:$8 sps:$4 sm:$0xff]  }
 0x296   :  { %2411 = vmatprep.subr.bf16.mxu1 %v18726_v5 }
 0x297   :  { %2472 = vmatpush2.bf16.msra.mxu0 %v17077_v19 }
 0x298   :  { %2473 = vmatprep.subr.bf16.mxu0 %v18726_v5 }
 0x299   :  { %2412 = vmatpush1.bf16.msra.mxu1 %v17073_v21 }
 0x29a   :  { %2413 = vmatprep.subr.bf16.mxu1 %v18726_v5 }
 0x29b   :  { %2474 = vmatpush2.bf16.msra.mxu0 %v17078_v26 }
 0x29c   :  { %2475 = vmatprep.subr.bf16.mxu0 %v18726_v5 }
 0x29d   :  { %2414 = vmatpush1.bf16.msra.mxu1 %v17074_v16 }
 0x29e   :  { %2415 = vmatprep.subr.bf16.mxu1 %v18726_v5 }
 0x29f   :  { %2476 = vmatpush2.bf16.msra.mxu0 %v17079_v63 }
 0x2a0   :  { %2947 = vmatprep.subr.bf16.mxu0 %v18032_v20 }
 0x2a1   :  { %2416 = vmatpush1.bf16.msra.mxu1 %v17075_v17 }
 0x2a2   :  { %2425 = vmatprep.subr.bf16.mxu1 %v18726_v5  ;;  %2478 = vmatmul.mubr.bf16.vlgmr.msra.gmra.mxu0 %v1991_v9 }
 0x2a3   :  { %2948 = vmatpush1.bf16.msra.mxu0 %v18036_v40  ;;  %2979 = vmatprep.mubr.bf16.mxu0 %v18726_v5 }
 0x2a4   :  { %2949 = vmatprep.subr.bf16.mxu0 %v18038_v38 }
 0x2a5   :  { %2426 = vmatpush2.bf16.msra.mxu1 %v17076_v18  ;;  %v18150_v18 = vld [vmem:[#allocation9] ss:$8 sps:$4 sm:$0xff]  }
 0x2a6   :  { %2427 = vmatprep.subr.bf16.mxu1 %v18726_v5 }
 0x2a7   :  { %2950 = vmatpush1.bf16.msra.mxu0 %v18042_v42 }
 0x2a8   :  { %2951 = vmatprep.subr.bf16.mxu0 %v18044_v43 }
 0x2a9   :  { %2428 = vmatpush2.bf16.msra.mxu1 %v17077_v19  ;;  %v18153_v19 = vld [vmem:[#allocation9 + $0xf4] ss:$8 sps:$4 sm:$0xff]  }
 0x2aa   :  { %2429 = vmatprep.subr.bf16.mxu1 %v18726_v5 }
 0x2ab   :  { %2952 = vmatpush1.bf16.msra.mxu0 %v18050_v44 }
 0x2ac   :  { %2953 = vmatprep.subr.bf16.mxu0 %v18052_v45 }
 0x2ad   :  { %2430 = vmatpush2.bf16.msra.mxu1 %v17078_v26  ;;  %v18159_v26 = vld [vmem:[#allocation9 + $0xf0] ss:$8 sps:$4 sm:$0xff]  }
 0x2ae   :  { %2431 = vmatprep.subr.bf16.mxu1 %v18726_v5 }
 0x2af   :  { %2954 = vmatpush1.bf16.msra.mxu0 %v18057_v46 }
 0x2b0   :  { %2955 = vmatprep.subr.bf16.mxu0 %v18059_v47 }
 0x2b1   :  { %2432 = vmatpush2.bf16.msra.mxu1 %v17079_v63  ;;  %v18161_v63 = vld [vmem:[#allocation9 + $0xe4] ss:$8 sps:$4 sm:$0xff]  }
 0x2b2   :  { %2904 = vmatprep.subr.bf16.mxu1 %v18061_v48 }
 0x2b3   :  { %2956 = vmatpush1.bf16.msra.mxu0 %v18068_v51 }
 0x2b4   :  { %2434 = vmatmul.mubr.bf16.vlgmr.msra.gmra.mxu1 %v17954_v13  ;;  %v2127_v32 = vpop.f32.mrf.mxu1  ;;  %2957 = vmatprep.subr.bf16.mxu0 %v18072_v6  ;;  %v18103_v13 = vld [vmem:[#allocation9 + $0x104] ss:$8 sps:$4 sm:$0xff]  }
 0x2b5   :  { %2905 = vmatpush1.bf16.msra.mxu1 %v18070_v52  ;;  %v18099_v36 = vadd.f32 %v18083_v27, %v2127_v32  ;;  %v18167_v32 = vld [vmem:[#allocation9 + $0xe0] ss:$8 sps:$4 sm:$0xff]  }
 0x2b6   :  { %v2129_v34 = vpop.f32.mrf.mxu1  ;;  %2906 = vmatprep.subr.bf16.mxu1 %v18074_v15 }
 0x2b7   :  { %2958 = vmatpush1.bf16.msra.mxu0 %v18079_v24  ;;  %v18116_v58 = vmul.f32 0.1, %v18099_v36  ;;  %v18169_v34 = vld [vmem:[#allocation9 + $0xd4] ss:$8 sps:$4 sm:$0xff]   ;;  %vm2553_vm9 = vcmp.ge.f32.partialorder %v18099_v36, 0.0 }
 0x2b8   :  { %v18105_v54 = vpop.f32.mrf.mxu1  ;;  %2959 = vmatprep.subr.bf16.mxu0 %v18087_v31 }
 0x2b9   :  { %2907 = vmatpush1.bf16.msra.mxu1 %v18085_v30 }
 0x2ba   :  { %v2132_v56 = vpop.f32.mrf.mxu1  ;;  %2908 = vmatprep.subr.bf16.mxu1 %v18090_v33 }
 0x2bb   :  { %2960 = vmatpush1.bf16.msra.mxu0 %v18096_v35  ;;  %v18175_v56 = vld [vmem:[#allocation9 + $0xd0] ss:$8 sps:$4 sm:$0xff]  }
 0x2bc   :  { %2961 = vmatprep.subr.bf16.mxu0 %v18103_v13 }
 0x2bd   :  { %2909 = vmatpush1.bf16.msra.mxu1 %v18101_v53 }
 0x2be   :  { %2910 = vmatprep.subr.bf16.mxu1 %v18107_v55 }
 0x2bf   :  { %2962 = vmatpush1.bf16.msra.mxu0 %v18113_v57 }
 0x2c0   :  { %v2215_v0 = vpop.f32.mrf.mxu0  ;;  %2990 = vmatprep.subr.bf16.mxu0 %v18061_v48 }
 0x2c1   :  { %v2537_v2 = vadd.f32 %v2501_v61, %v2215_v0  ;;  %2911 = vmatpush1.bf16.msra.mxu1 %v18118_v37  ;;  %v18183_v0 = vld [vmem:[#allocation9 + $0xc0] ss:$8 sps:$4 sm:$0xff]  }
 0x2c2   :  { %v2217_v3 = vpop.f32.mrf.mxu0  ;;  %2912 = vmatprep.subr.bf16.mxu1 %v18120_v59 }
 0x2c3   :  { %vm2555_vm2 = vcmp.ge.f32.partialorder %v2537_v2, 0.0  ;;  %v2573_v39 = vmul.f32 0.1, %v2537_v2  ;;  %v2544_v3 = vadd.f32 %v18083_v27, %v18105_v54  ;;  %v18205_v54 = vld [vmem:[#allocation9 + $0x94] ss:$8 sps:$4 sm:$0xff]  }
 0x2c4   :  { %v2218_v7 = vpop.f32.mrf.mxu0 }
 0x2c5   :  { %v2546_v21 = vadd.f32 %v2501_v61, %v2218_v7  ;;  %2913 = vmatpush1.bf16.msra.mxu1 %v18128_v62  ;;  %v2591_v14 = vsel %vm2555_vm2, %v2537_v2, %v2573_v39  ;;  %v18177_v61 = vld [vmem:[#allocation9 + $0xc4] ss:$8 sps:$4 sm:$0xff]   ;;  %v18185_v2 = vld [vmem:[#allocation9 + $0xb4] ss:$8 sps:$4 sm:$0xff]   ;;  %v18193_v39 = vld [vmem:[#allocation9 + $0xb0] ss:$8 sps:$4 sm:$0xff]  }
 0x2c6   :  { %v2220_v9 = vpop.f32.mrf.mxu0  ;;  %2914 = vmatprep.subr.bf16.mxu1 %v18130_v1  ;;  %v18195_v7 = vld [vmem:[#allocation9 + $0xa4] ss:$8 sps:$4 sm:$0xff]   ;;  %vm2562_vm8 = vcmp.ge.f32.partialorder %v2544_v3, 0.0 }
 0x2c7   :  { %vm2564_vm7 = vcmp.ge.f32.partialorder %v2546_v21, 0.0  ;;  %v2582_v10 = vmul.f32 0.1, %v2546_v21  ;;  %v2580_v9 = vmul.f32 0.1, %v2544_v3 }
 0x2c9   :  { %v2600_v16 = vsel %vm2564_vm7, %v2546_v21, %v2582_v10  ;;  %2915 = vmatpush1.bf16.msra.mxu1 %v18136_v4  ;;  %v2497_v21 = vrot.slane %v18066_v49, %v17786_v23  ;;  %v18203_v10 = vld [vmem:[#allocation9 + $0xa0] ss:$8 sps:$4 sm:$0xff]   ;;  %v18214_v23 = vld [vmem:[#allocation9 + $0x84] ss:$8 sps:$4 sm:$0xff]  }
 0x2ca   :  { %v18147_v17 = vpack.c.bf16 %v2600_v16, %v2591_v14  ;;  %2916 = vmatprep.subr.bf16.mxu1 %v18138_v8 }
 0x2cc   :  { %2980 = vmatmul.mubr.bf16.vlgmr.msra.gmra.mxu0 %v18147_v17 }
 0x2cd   :  { %2917 = vmatpush1.bf16.msra.mxu1 %v18142_v11  ;;  %2991 = vmatpush1.bf16.msra.mxu0 %v18070_v52 }
 0x2ce   :  { %2918 = vmatprep.subr.bf16.mxu1 %v18144_v12  ;;  %2992 = vmatprep.subr.bf16.mxu0 %v18074_v15 }
 0x2d1   :  { %2919 = vmatpush1.bf16.msra.mxu1 %v18150_v18  ;;  %2993 = vmatpush1.bf16.msra.mxu0 %v18085_v30 }
 0x2d2   :  { %2920 = vmatprep.subr.bf16.mxu1 %v18153_v19  ;;  %2994 = vmatprep.subr.bf16.mxu0 %v18090_v33 }
 0x2d5   :  { %2921 = vmatpush2.bf16.msra.mxu1 %v18159_v26  ;;  %2995 = vmatpush1.bf16.msra.mxu0 %v18101_v53 }
 0x2d6   :  { %2922 = vmatprep.subr.bf16.mxu1 %v18161_v63  ;;  %2996 = vmatprep.subr.bf16.mxu0 %v18107_v55 }
 0x2d9   :  { %2923 = vmatpush2.bf16.msra.mxu1 %v18167_v32  ;;  %2997 = vmatpush1.bf16.msra.mxu0 %v18118_v37 }
 0x2da   :  { %2924 = vmatprep.subr.bf16.mxu1 %v18169_v34  ;;  %2998 = vmatprep.subr.bf16.mxu0 %v18120_v59 }
 0x2dd   :  { %2925 = vmatpush2.bf16.msra.mxu1 %v18175_v56  ;;  %2999 = vmatpush1.bf16.msra.mxu0 %v18128_v62 }
 0x2de   :  { %2926 = vmatprep.subr.bf16.mxu1 %v18177_v61  ;;  %3000 = vmatprep.subr.bf16.mxu0 %v18130_v1 }
 0x2e1   :  { %2927 = vmatpush2.bf16.msra.mxu1 %v18183_v0  ;;  %3001 = vmatpush1.bf16.msra.mxu0 %v18136_v4 }
 0x2e2   :  { %2928 = vmatprep.subr.bf16.mxu1 %v18185_v2  ;;  %3002 = vmatprep.subr.bf16.mxu0 %v18138_v8 }
 0x2e4   :  { %v2171_v27 = vpop.f32.mrf.mxu1 }
 0x2e5   :  { %v2536_v14 = vadd.f32 %v2497_v21, %v2171_v27  ;;  %2929 = vmatpush2.bf16.msra.mxu1 %v18193_v39  ;;  %3003 = vmatpush1.bf16.msra.mxu0 %v18142_v11 }
 0x2e6   :  { %v2173_v16 = vpop.f32.mrf.mxu1  ;;  %2930 = vmatprep.subr.bf16.mxu1 %v18195_v7  ;;  %3004 = vmatprep.subr.bf16.mxu0 %v18144_v12 }
 0x2e7   :  { %vm2554_vm10 = vcmp.ge.f32.partialorder %v2536_v14, 0.0  ;;  %v2572_v5 = vmul.f32 0.1, %v2536_v14 }
 0x2e8   :  { %v2174_v22 = vpop.f32.mrf.mxu1 }
 0x2e9   :  { %v2545_v50 = vadd.f32 %v2497_v21, %v2174_v22  ;;  %2931 = vmatpush2.bf16.msra.mxu1 %v18203_v10  ;;  %3005 = vmatpush1.bf16.msra.mxu0 %v18150_v18  ;;  %v2590_v60 = vsel %vm2554_vm10, %v2536_v14, %v2572_v5  ;;  %v2598_v21 = vsel %vm2562_vm8, %v2544_v3, %v2580_v9 }
 0x2ea   :  { %v2176_v27 = vpop.f32.mrf.mxu1  ;;  %2932 = vmatprep.subr.bf16.mxu1 %v18205_v54  ;;  %3006 = vmatprep.subr.bf16.mxu0 %v18153_v19 }
 0x2eb   :  { %vm2563_vm11 = vcmp.ge.f32.partialorder %v2545_v50, 0.0  ;;  %v2581_v16 = vmul.f32 0.1, %v2545_v50  ;;  %v2589_v27 = vsel %vm2553_vm9, %v18099_v36, %v18116_v58 }
 0x2ec   :  { %v2607_v5 = vpack.c.bf16 %v2598_v21, %v2589_v27 }
 0x2ed   :  { %2933 = vmatpush2.bf16.msra.mxu1 %v18212_v25  ;;  %v2599_v12 = vsel %vm2563_vm11, %v2545_v50, %v2581_v16  ;;  %3007 = vmatpush2.bf16.msra.mxu0 %v18159_v26  ;;  %v18756_v50 = vmov 0   ;;  %v18322_v16 = vld [vmem:[#allocation9 + $0x124] ss:$8 sps:$4 sm:$0xff]  }
 0x2ee   :  { %2934 = vmatprep.subr.bf16.mxu1 %v18214_v23  ;;  %v2608_v22 = vpack.c.bf16 %v2599_v12, %v2590_v60  ;;  %3008 = vmatprep.subr.bf16.mxu0 %v18161_v63 }
 0x2f0   :  { %2936 = vmatprep.mubr.bf16.mxu1 %v2608_v22 }
 0x2f1   :  { %2935 = vmatpush2.bf16.msra.mxu1 %v18220_v41  ;;  %3009 = vmatpush2.bf16.msra.mxu0 %v18167_v32 }
 0x2f2   :  { %3033 = vmatprep.subr.bf16.mxu1 %v18032_v20  ;;  %3010 = vmatprep.subr.bf16.mxu0 %v18169_v34  ;;  %v2509_v20 = vrot.slane %v18066_v49, %v17843_v29 }
 0x2f4   :  { %2937 = vmatmul.mubr.bf16.vlgmr.msra.gmra.mxu1 %v2607_v5  ;;  %v18330_v5 = vld [vmem:[#allocation9 + $0x114] ss:$8 sps:$4 sm:$0xff]  }
 0x2f5   :  { %3034 = vmatpush1.bf16.msra.mxu1 %v18036_v40  ;;  %3011 = vmatpush2.bf16.msra.mxu0 %v18175_v56 }
 0x2f6   :  { %3035 = vmatprep.subr.bf16.mxu1 %v18038_v38  ;;  %3012 = vmatprep.subr.bf16.mxu0 %v18177_v61 }
 0x2f7   :  { %3065 = vmatprep.mubr.bf16.mxu1 %v18756_v50 }
 0x2f9   :  { %3036 = vmatpush1.bf16.msra.mxu1 %v18042_v42  ;;  %3013 = vmatpush2.bf16.msra.mxu0 %v18183_v0 }
 0x2fa   :  { %3037 = vmatprep.subr.bf16.mxu1 %v18044_v43  ;;  %3014 = vmatprep.subr.bf16.mxu0 %v18185_v2 }
 0x2fd   :  { %3038 = vmatpush1.bf16.msra.mxu1 %v18050_v44  ;;  %3015 = vmatpush2.bf16.msra.mxu0 %v18193_v39 }
 0x2fe   :  { %3039 = vmatprep.subr.bf16.mxu1 %v18052_v45  ;;  %3016 = vmatprep.subr.bf16.mxu0 %v18195_v7 }
 0x301   :  { %3040 = vmatpush1.bf16.msra.mxu1 %v18057_v46  ;;  %3017 = vmatpush2.bf16.msra.mxu0 %v18203_v10  ;;  %v18261_v46 = vld [vmem:[#allocation9 + $0x174] ss:$8 sps:$4 sm:$0xff]  }
 0x302   :  { %3041 = vmatprep.subr.bf16.mxu1 %v18059_v47  ;;  %3018 = vmatprep.subr.bf16.mxu0 %v18205_v54  ;;  %v2303_v60 = vpop.f32.mrf.mxu0 }
 0x303   :  { %v2539_v42 = vadd.f32 %v2509_v20, %v2303_v60 }
 0x304   :  { %v2305_v40 = vpop.f32.mrf.mxu0 }
 0x305   :  { %3042 = vmatpush1.bf16.msra.mxu1 %v18068_v51  ;;  %3019 = vmatpush2.bf16.msra.mxu0 %v18212_v25  ;;  %vm2557_vm12 = vcmp.ge.f32.partialorder %v2539_v42, 0.0  ;;  %v2575_v47 = vmul.f32 0.1, %v2539_v42 }
 0x306   :  { %3043 = vmatprep.subr.bf16.mxu1 %v18072_v6  ;;  %3020 = vmatprep.subr.bf16.mxu0 %v18214_v23  ;;  %v2306_v38 = vpop.f32.mrf.mxu0 }
 0x307   :  { %v2548_v43 = vadd.f32 %v2509_v20, %v2306_v38  ;;  %v2593_v6 = vsel %vm2557_vm12, %v2539_v42, %v2575_v47  ;;  %v17098_v47 = vld [vmem:[#allocation9 + $0x70] ss:$8 sps:$4 sm:$0xff]  }
 0x308   :  { %v2308_v44 = vpop.f32.mrf.mxu0 }
 0x309   :  { %3044 = vmatpush1.bf16.msra.mxu1 %v18079_v24  ;;  %3021 = vmatpush2.bf16.msra.mxu0 %v18220_v41  ;;  %v2584_v45 = vmul.f32 0.1, %v2548_v43  ;;  %vm2566_vm13 = vcmp.ge.f32.partialorder %v2548_v43, 0.0  ;;  %v2505_v24 = vrot.slane %v18066_v49, %v17804_v28  ;;  %v17097_v44 = vld [vmem:[#allocation9 + $0x74] ss:$8 sps:$4 sm:$0xff]  }
 0x30a   :  { %3045 = vmatprep.subr.bf16.mxu1 %v18087_v31  ;;  %3119 = vmatprep.subr.bf16.mxu0 %v18261_v46 }
 0x30b   :  { %v2602_v51 = vsel %vm2566_vm13, %v2548_v43, %v2584_v45  ;;  %v18342_v43 = vld [vmem:[#allocation9 + $0x100] ss:$8 sps:$4 sm:$0xff]  }
 0x30c   :  { %v18269_v36 = vpack.c.bf16 %v2602_v51, %v2593_v6 }
 0x30d   :  { %3046 = vmatpush1.bf16.msra.mxu1 %v18096_v35 }
 0x30e   :  { %3047 = vmatprep.subr.bf16.mxu1 %v18103_v13 }
 0x311   :  { %3048 = vmatpush1.bf16.msra.mxu1 %v18113_v57 }
 0x312   :  { %3076 = vmatprep.subr.bf16.mxu1 %v18061_v48 }
 0x314   :  { %v2259_v31 = vpop.f32.mrf.mxu1  ;;  %3066 = vmatmul.mubr.bf16.vlgmr.msra.gmra.mxu1 %v18269_v36 }
 0x315   :  { %v2538_v58 = vadd.f32 %v2505_v24, %v2259_v31  ;;  %3077 = vmatpush1.bf16.msra.mxu1 %v18070_v52  ;;  %v18281_v52 = vld [vmem:[#allocation9 + $0x170] ss:$8 sps:$4 sm:$0xff]   ;;  %v17101_v31 = vld [vmem:[#allocation9 + $0x54] ss:$8 sps:$4 sm:$0xff]  }
 0x316   :  { %v2261_v35 = vpop.f32.mrf.mxu1  ;;  %3078 = vmatprep.subr.bf16.mxu1 %v18074_v15  ;;  %v18285_v15 = vld [vmem:[#allocation9 + $0x164] ss:$8 sps:$4 sm:$0xff]  }
 0x317   :  { %vm2556_vm14 = vcmp.ge.f32.partialorder %v2538_v58, 0.0  ;;  %v2574_v12 = vmul.f32 0.1, %v2538_v58 }
 0x318   :  { %v2262_v13 = vpop.f32.mrf.mxu1 }
 0x319   :  { %v2547_v57 = vadd.f32 %v2505_v24, %v2262_v13  ;;  %3079 = vmatpush1.bf16.msra.mxu1 %v18085_v30  ;;  %v2592_v3 = vsel %vm2556_vm14, %v2538_v58, %v2574_v12  ;;  %v18290_v30 = vld [vmem:[#allocation9 + $0x160] ss:$8 sps:$4 sm:$0xff]   ;;  %v17102_v13 = vld [vmem:[#allocation9 + $0x50] ss:$8 sps:$4 sm:$0xff]   ;;  %v17103_v12 = vld [vmem:[#allocation9 + $0x44] ss:$8 sps:$4 sm:$0xff]  }
 0x31a   :  { %v2264_v49 = vpop.f32.mrf.mxu1  ;;  %3080 = vmatprep.subr.bf16.mxu1 %v18090_v33  ;;  %v18294_v33 = vld [vmem:[#allocation9 + $0x154] ss:$8 sps:$4 sm:$0xff]   ;;  %v17100_v24 = vld [vmem:[#allocation9 + $0x60] ss:$8 sps:$4 sm:$0xff]  }
 0x31b   :  { %vm2565_vm15 = vcmp.ge.f32.partialorder %v2547_v57, 0.0  ;;  %v2583_v48 = vmul.f32 0.1, %v2547_v57  ;;  %v17104_v49 = vld [vmem:[#allocation9 + $0x40] ss:$8 sps:$4 sm:$0xff]  }
 0x31d   :  { %3081 = vmatpush1.bf16.msra.mxu1 %v18101_v53  ;;  %v2601_v9 = vsel %vm2565_vm15, %v2547_v57, %v2583_v48  ;;  %v18298_v53 = vld [vmem:[#allocation9 + $0x150] ss:$8 sps:$4 sm:$0xff]  }
 0x31e   :  { %v2610_v14 = vpack.c.bf16 %v2601_v9, %v2592_v3  ;;  %3082 = vmatprep.subr.bf16.mxu1 %v18107_v55  ;;  %v18302_v55 = vld [vmem:[#allocation9 + $0x144] ss:$8 sps:$4 sm:$0xff]   ;;  %v17106_v3 = vld [vmem:[#allocation9 + $0x30] ss:$8 sps:$4 sm:$0xff]   ;;  %v17113_v9 = vld [vmem:[#allocation9 + $0xf4] ss:$8 sps:$4 sm:$0xff]  }
 0x320   :  { %3022 = vmatprep.mubr.bf16.mxu0 %v2610_v14  ;;  %v17114_v14 = vld [vmem:[#allocation9 + $0xf0] ss:$8 sps:$4 sm:$0xff]  }
 0x321   :  { %3023 = vmatmul.mubr.bf16.vlgmr.msra.gmra.mxu0 %v18147_v17  ;;  %3083 = vmatpush1.bf16.msra.mxu1 %v18118_v37  ;;  %v18306_v37 = vld [vmem:[#allocation9 + $0x140] ss:$8 sps:$4 sm:$0xff]   ;;  %v18318_v17 = vld [vmem:[#allocation9 + $0x130] ss:$8 sps:$4 sm:$0xff]  }
 0x322   :  { %3120 = vmatpush1.bf16.msra.mxu0 %v18281_v52  ;;  %3084 = vmatprep.subr.bf16.mxu1 %v18120_v59  ;;  %v18757_v59 = vld [vmem:[#allocation43_spill] sm:$0xff] }
 0x323   :  { %3121 = vmatprep.subr.bf16.mxu0 %v18285_v15  ;;  %3151 = vmatprep.mubr.bf16.mxu0 %v18756_v50 }
 0x325   :  { %3085 = vmatpush1.bf16.msra.mxu1 %v18128_v62  ;;  %v18310_v62 = vld [vmem:[#allocation9 + $0x134] ss:$8 sps:$4 sm:$0xff]  }
 0x326   :  { %3122 = vmatpush1.bf16.msra.mxu0 %v18290_v30  ;;  %3086 = vmatprep.subr.bf16.mxu1 %v18130_v1  ;;  %v18314_v1 = vld [vmem:[#allocation7] sm:$0xff] }
 0x327   :  { %3123 = vmatprep.subr.bf16.mxu0 %v18294_v33 }
 0x329   :  { %3087 = vmatpush1.bf16.msra.mxu1 %v18136_v4  ;;  %v18758_v4 = vld [vmem:[#allocation42_spill] sm:$0xff] }
 0x32a   :  { %3124 = vmatpush1.bf16.msra.mxu0 %v18298_v53  ;;  %3088 = vmatprep.subr.bf16.mxu1 %v18138_v8  ;;  %v2517_v8 = vrot.slane %v18314_v1, %v18758_v4 }
 0x32b   :  { %3125 = vmatprep.subr.bf16.mxu0 %v18302_v55 }
 0x32d   :  { %3089 = vmatpush1.bf16.msra.mxu1 %v18142_v11 }
 0x32e   :  { %3126 = vmatpush1.bf16.msra.mxu0 %v18306_v37  ;;  %3090 = vmatprep.subr.bf16.mxu1 %v18757_v59  ;;  %v17117_v59 = vld [vmem:[#allocation9 + $0xd4] ss:$8 sps:$4 sm:$0xff]  }
 0x32f   :  { %3127 = vmatprep.subr.bf16.mxu0 %v18310_v62 }
 0x331   :  { %3091 = vmatpush1.bf16.msra.mxu1 %v18150_v18  ;;  %v18326_v18 = vld [vmem:[#allocation9 + $0x120] ss:$8 sps:$4 sm:$0xff]  }
 0x332   :  { %3128 = vmatpush1.bf16.msra.mxu0 %v18318_v17  ;;  %3092 = vmatprep.subr.bf16.mxu1 %v18153_v19  ;;  %v2391_v11 = vpop.f32.mrf.mxu0 }
 0x333   :  { %3129 = vmatprep.subr.bf16.mxu0 %v18322_v16  ;;  %v2541_v22 = vadd.f32 %v2517_v8, %v2391_v11 }
 0x334   :  { %v2393_v21 = vpop.f32.mrf.mxu0 }
 0x335   :  { %3093 = vmatpush2.bf16.msra.mxu1 %v18159_v26  ;;  %vm2559_vm0 = vcmp.ge.f32.partialorder %v2541_v22, 0.0  ;;  %v2577_v20 = vmul.f32 0.1, %v2541_v22  ;;  %v18334_v26 = vld [vmem:[#allocation9 + $0x110] ss:$8 sps:$4 sm:$0xff]  }
 0x336   :  { %3130 = vmatpush1.bf16.msra.mxu0 %v18326_v18  ;;  %3094 = vmatprep.subr.bf16.mxu1 %v18161_v63  ;;  %v2394_v27 = vpop.f32.mrf.mxu0  ;;  %v18338_v63 = vld [vmem:[#allocation9 + $0x104] ss:$8 sps:$4 sm:$0xff]  }
 0x337   :  { %3131 = vmatprep.subr.bf16.mxu0 %v18330_v5  ;;  %v2550_v19 = vadd.f32 %v2517_v8, %v2394_v27  ;;  %v2595_v42 = vsel %vm2559_vm0, %v2541_v22, %v2577_v20  ;;  %v17119_v21 = vld [vmem:[#allocation9 + $0xc4] ss:$8 sps:$4 sm:$0xff]  }
 0x338   :  { %v2396_v60 = vpop.f32.mrf.mxu0  ;;  %v15872_v27 = vld [vmem:[#allocation12 + $0xe4] ss:$16 sps:$4 sm:$0xff]  }
 0x339   :  { %3095 = vmatpush2.bf16.msra.mxu1 %v18167_v32  ;;  %vm2568_vm1 = vcmp.ge.f32.partialorder %v2550_v19, 0.0  ;;  %v2586_v40 = vmul.f32 0.1, %v2550_v19  ;;  %v17121_v60 = vld [vmem:[#allocation9 + $0xb4] ss:$8 sps:$4 sm:$0xff]  }
 0x33a   :  { %3132 = vmatpush1.bf16.msra.mxu0 %v18334_v26  ;;  %3096 = vmatprep.subr.bf16.mxu1 %v18169_v34  ;;  %v18759_v34 = vld [vmem:[#allocation40_spill] sm:$0xff]  ;;  %v15875_v20 = vld [vmem:[#allocation12 + $0xc4] ss:$16 sps:$4 sm:$0xff]  }
 0x33b   :  { %3133 = vmatprep.subr.bf16.mxu0 %v18338_v63  ;;  %v2604_v38 = vsel %vm2568_vm1, %v2550_v19, %v2586_v40  ;;  %v2513_v45 = vrot.slane %v18314_v1, %v18759_v34 }
 0x33c   :  { %v18346_v32 = vpack.c.bf16 %v2604_v38, %v2595_v42 }
 0x33d   :  { %3097 = vmatpush2.bf16.msra.mxu1 %v18175_v56  ;;  %v17099_v56 = vld [vmem:[#allocation9 + $0x64] ss:$8 sps:$4 sm:$0xff]  }
 0x33e   :  { %3134 = vmatpush1.bf16.msra.mxu0 %v18342_v43  ;;  %3098 = vmatprep.subr.bf16.mxu1 %v18177_v61 }
 0x33f   :  { %3162 = vmatprep.subr.bf16.mxu0 %v17097_v44  ;;  %v17122_v44 = vld [vmem:[#allocation9 + $0xb0] ss:$8 sps:$4 sm:$0xff]  }
 0x341   :  { %3152 = vmatmul.mubr.bf16.vlgmr.msra.gmra.mxu0 %v18346_v32  ;;  %3099 = vmatpush2.bf16.msra.mxu1 %v18183_v0 }
 0x342   :  { %3163 = vmatpush1.bf16.msra.mxu0 %v17098_v47  ;;  %3100 = vmatprep.subr.bf16.mxu1 %v18185_v2  ;;  %v15878_v47 = vld [vmem:[#allocation12 + $0xa4] ss:$16 sps:$4 sm:$0xff]  }
 0x343   :  { %3164 = vmatprep.subr.bf16.mxu0 %v17099_v56 }
 0x344   :  { %v2347_v51 = vpop.f32.mrf.mxu1 }
 0x345   :  { %v2540_v6 = vadd.f32 %v2513_v45, %v2347_v51  ;;  %3101 = vmatpush2.bf16.msra.mxu1 %v18193_v39 }
 0x346   :  { %v2349_v61 = vpop.f32.mrf.mxu1  ;;  %3165 = vmatpush1.bf16.msra.mxu0 %v17100_v24  ;;  %3102 = vmatprep.subr.bf16.mxu1 %v18195_v7  ;;  %v15881_v24 = vld [vmem:[#allocation12 + $0x84] ss:$16 sps:$4 sm:$0xff]  }
 0x347   :  { %3166 = vmatprep.subr.bf16.mxu0 %v17101_v31  ;;  %v2576_v58 = vmul.f32 0.1, %v2540_v6  ;;  %vm2558_vm3 = vcmp.ge.f32.partialorder %v2540_v6, 0.0 }
 0x348   :  { %v2350_v0 = vpop.f32.mrf.mxu1 }
 0x349   :  { %v2549_v35 = vadd.f32 %v2513_v45, %v2350_v0  ;;  %3103 = vmatpush2.bf16.msra.mxu1 %v18203_v10  ;;  %v2594_v7 = vsel %vm2558_vm3, %v2540_v6, %v2576_v58  ;;  %v17105_v10 = vld [vmem:[#allocation9 + $0x34] ss:$8 sps:$4 sm:$0xff]   ;;  %v17124_v6 = vld [vmem:[#allocation9 + $0xa0] ss:$8 sps:$4 sm:$0xff]  }
 0x34a   :  { %v2352_v2 = vpop.f32.mrf.mxu1  ;;  %3167 = vmatpush1.bf16.msra.mxu0 %v17102_v13  ;;  %3104 = vmatprep.subr.bf16.mxu1 %v18205_v54  ;;  %v17107_v54 = vld [vmem:[#allocation9 + $0x24] ss:$8 sps:$4 sm:$0xff]  }
 0x34b   :  { %vm2567_vm4 = vcmp.ge.f32.partialorder %v2549_v35, 0.0  ;;  %v2585_v39 = vmul.f32 0.1, %v2549_v35  ;;  %3168 = vmatprep.subr.bf16.mxu0 %v17103_v12  ;;  %v15908_v58 = vld [vmem:[#allocation12 + $0x2e4] ss:$16 sps:$4 sm:$0xff]  }
 0x34c   :  { %v17126_v2 = vld [vmem:[#allocation9 + $0x90] ss:$8 sps:$4 sm:$0xff]  }
 0x34d   :  { %3105 = vmatpush2.bf16.msra.mxu1 %v18212_v25  ;;  %v2603_v57 = vsel %vm2567_vm4, %v2549_v35, %v2585_v39  ;;  %v17108_v25 = vld [vmem:[#allocation9 + $0x20] ss:$8 sps:$4 sm:$0xff]   ;;  %v17127_v39 = vld [vmem:[#allocation9 + $0x84] ss:$8 sps:$4 sm:$0xff]  }
 0x34e   :  { %3169 = vmatpush1.bf16.msra.mxu0 %v17104_v49  ;;  %3106 = vmatprep.subr.bf16.mxu1 %v18214_v23  ;;  %v2612_v48 = vpack.c.bf16 %v2603_v57, %v2594_v7  ;;  %v17109_v23 = vld [vmem:[#allocation9 + $0x14] ss:$8 sps:$4 sm:$0xff]   ;;  %v15879_v12 = vld [vmem:[#allocation12 + $0x80] ss:$16 sps:$4 sm:$0xff]  }
 0x34f   :  { %3170 = vmatprep.subr.bf16.mxu0 %v17105_v10  ;;  %v15884_v7 = vld [vmem:[#allocation12 + $0x64] ss:$16 sps:$4 sm:$0xff]   ;;  %v15906_v57 = vld [vmem:[#allocation12 + $0x2e0] ss:$16 sps:$4 sm:$0xff]  }
 0x350   :  { %3108 = vmatprep.mubr.bf16.mxu1 %v2612_v48  ;;  %v17128_v10 = vld [vmem:[#allocation9 + $0x80] ss:$8 sps:$4 sm:$0xff]  }
 0x351   :  { %3107 = vmatpush2.bf16.msra.mxu1 %v18220_v41  ;;  %v17110_v41 = vld [vmem:[#allocation9 + $0x10] ss:$8 sps:$4 sm:$0xff]  }
 0x352   :  { %3171 = vmatpush1.bf16.msra.mxu0 %v17106_v3  ;;  %3205 = vmatprep.subr.bf16.mxu1 %v18261_v46  ;;  %v17111_v46 = vld [vmem:[#allocation9 + $0x4] ss:$8 sps:$4 sm:$0xff]  }
 0x353   :  { %3172 = vmatprep.subr.bf16.mxu0 %v17107_v54  ;;  %v15882_v54 = vld [vmem:[#allocation12 + $0x60] ss:$16 sps:$4 sm:$0xff]  }
 0x354   :  { %3109 = vmatmul.mubr.bf16.vlgmr.msra.gmra.mxu1 %v18269_v36  ;;  %v17112_v36 = vld [vmem:[#allocation9] ss:$8 sps:$4 sm:$0xff]  }
 0x355   :  { %3206 = vmatpush1.bf16.msra.mxu1 %v18281_v52  ;;  %3237 = vmatprep.mubr.bf16.mxu1 %v18756_v50 }
 0x356   :  { %3173 = vmatpush1.bf16.msra.mxu0 %v17108_v25  ;;  %3207 = vmatprep.subr.bf16.mxu1 %v18285_v15  ;;  %v17115_v15 = vld [vmem:[#allocation9 + $0xe4] ss:$8 sps:$4 sm:$0xff]  }
 0x357   :  { %3174 = vmatprep.subr.bf16.mxu0 %v17109_v23  ;;  %v15914_v25 = vld [vmem:[#allocation12 + $0x2c4] ss:$16 sps:$4 sm:$0xff]  }
 0x358   :  { %v15887_v23 = vld [vmem:[#allocation12 + $0x44] ss:$16 sps:$4 sm:$0xff]  }
 0x359   :  { %3208 = vmatpush1.bf16.msra.mxu1 %v18290_v30 }
 0x35a   :  { %3175 = vmatpush1.bf16.msra.mxu0 %v17110_v41  ;;  %3209 = vmatprep.subr.bf16.mxu1 %v18294_v33  ;;  %v13607_v33 = vld [vmem:[#allocation7 + $0x8] ss:$0 sm:$0xff]  ;;  %v15912_v41 = vld [vmem:[#allocation12 + $0x2c0] ss:$16 sps:$4 sm:$0xff]  }
 0x35b   :  { %3176 = vmatprep.subr.bf16.mxu0 %v17111_v46  ;;  %v15885_v46 = vld [vmem:[#allocation12 + $0x40] ss:$16 sps:$4 sm:$0xff]  }
 0x35d   :  { %3210 = vmatpush1.bf16.msra.mxu1 %v18298_v53  ;;  %v17116_v53 = vld [vmem:[#allocation9 + $0xe0] ss:$8 sps:$4 sm:$0xff]  }
 0x35e   :  { %3177 = vmatpush1.bf16.msra.mxu0 %v17112_v36  ;;  %3211 = vmatprep.subr.bf16.mxu1 %v18302_v55  ;;  %v15920_v36 = vld [vmem:[#allocation12 + $0x2a4] ss:$16 sps:$4 sm:$0xff]  }
 0x35f   :  { %3178 = vmatprep.subr.bf16.mxu0 %v17113_v9  ;;  %v15890_v9 = vld [vmem:[#allocation12 + $0x24] ss:$16 sps:$4 sm:$0xff]  }
 0x361   :  { %3212 = vmatpush1.bf16.msra.mxu1 %v18306_v37 }
 0x362   :  { %3179 = vmatpush2.bf16.msra.mxu0 %v17114_v14  ;;  %3213 = vmatprep.subr.bf16.mxu1 %v18310_v62  ;;  %v2479_v52 = vpop.f32.mrf.mxu0  ;;  %v17118_v62 = vld [vmem:[#allocation9 + $0xd0] ss:$8 sps:$4 sm:$0xff]  }
 0x363   :  { %3180 = vmatprep.subr.bf16.mxu0 %v17115_v15  ;;  %v2543_v37 = vadd.f32 %v13607_v33, %v2479_v52  ;;  %v15918_v14 = vld [vmem:[#allocation12 + $0x2a0] ss:$16 sps:$4 sm:$0xff]   ;;  %v15926_v52 = vld [vmem:[#allocation12 + $0x284] ss:$16 sps:$4 sm:$0xff]  }
 0x364   :  { %v2481_v30 = vpop.f32.mrf.mxu0  ;;  %v15888_v15 = vld [vmem:[#allocation12 + $0x20] ss:$16 sps:$4 sm:$0xff]  }
 0x365   :  { %3214 = vmatpush1.bf16.msra.mxu1 %v18318_v17  ;;  %v2579_v17 = vmul.f32 0.1, %v2543_v37  ;;  %vm2561_vm6 = vcmp.ge.f32.partialorder %v2543_v37, 0.0  ;;  %v15893_v30 = vld [vmem:[#allocation12 + $0x4] ss:$16 sps:$4 sm:$0xff]  }
 0x366   :  { %3181 = vmatpush2.bf16.msra.mxu0 %v17116_v53  ;;  %3215 = vmatprep.subr.bf16.mxu1 %v18322_v16  ;;  %v2482_v55 = vpop.f32.mrf.mxu0  ;;  %v17120_v16 = vld [vmem:[#allocation9 + $0xc0] ss:$8 sps:$4 sm:$0xff]   ;;  %v15932_v53 = vld [vmem:[#allocation12 + $0x264] ss:$16 sps:$4 sm:$0xff]  }
 0x367   :  { %3182 = vmatprep.subr.bf16.mxu0 %v17117_v59  ;;  %v2552_v8 = vadd.f32 %v13607_v33, %v2482_v55  ;;  %v2597_v40 = vsel %vm2561_vm6, %v2543_v37, %v2579_v17  ;;  %v15924_v33 = vld [vmem:[#allocation12 + $0x280] ss:$16 sps:$4 sm:$0xff]   ;;  %v15896_v55 = vld [vmem:[#allocation12 + $0x1e4] ss:$16 sps:$4 sm:$0xff]  }
 0x368   :  { %v2484_v11 = vpop.f32.mrf.mxu0  ;;  %v15930_v59 = vld [vmem:[#allocation12 + $0x260] ss:$16 sps:$4 sm:$0xff]   ;;  %v15902_v17 = vld [vmem:[#allocation12 + $0x1a4] ss:$16 sps:$4 sm:$0xff]  }
 0x369   :  { %3216 = vmatpush1.bf16.msra.mxu1 %v18326_v18  ;;  %v2588_v22 = vmul.f32 0.1, %v2552_v8  ;;  %vm2570_vm5 = vcmp.ge.f32.partialorder %v2552_v8, 0.0  ;;  %v15870_v18 = vld [vmem:[#allocation12 + $0xe0] ss:$16 sps:$4 sm:$0xff]  }
 0x36a   :  { %3183 = vmatpush2.bf16.msra.mxu0 %v17118_v62  ;;  %3217 = vmatprep.subr.bf16.mxu1 %v18330_v5  ;;  %v18760_v5 = vld [vmem:[#allocation41_spill] sm:$0xff]  ;;  %v15894_v37 = vld [vmem:[#allocation12 + $0x1e0] ss:$16 sps:$4 sm:$0xff]  }
 0x36b   :  { %3184 = vmatprep.subr.bf16.mxu0 %v17119_v21  ;;  %v2606_v19 = vsel %vm2570_vm5, %v2552_v8, %v2588_v22  ;;  %v2521_v38 = vrot.slane %v18314_v1, %v18760_v5  ;;  %v15876_v1 = vld [vmem:[#allocation12 + $0xa0] ss:$16 sps:$4 sm:$0xff]   ;;  %v15935_v8 = vld [vmem:[#allocation12 + $0x244] ss:$16 sps:$4 sm:$0xff]  }
 0x36c   :  { %v2615_v42 = vpack.c.bf16 %v2606_v19, %v2597_v40  ;;  %v15899_v11 = vld [vmem:[#allocation12 + $0x1c4] ss:$16 sps:$4 sm:$0xff]   ;;  %v15933_v62 = vld [vmem:[#allocation12 + $0x240] ss:$16 sps:$4 sm:$0xff]  }
 0x36d   :  { %3218 = vmatpush1.bf16.msra.mxu1 %v18334_v26  ;;  %v17123_v26 = vld [vmem:[#allocation9 + $0xa4] ss:$8 sps:$4 sm:$0xff]   ;;  %v15897_v21 = vld [vmem:[#allocation12 + $0x1c0] ss:$16 sps:$4 sm:$0xff]  }
 0x36e   :  { %3185 = vmatpush2.bf16.msra.mxu0 %v17120_v16  ;;  %3219 = vmatprep.subr.bf16.mxu1 %v18338_v63  ;;  %v15873_v63 = vld [vmem:[#allocation12 + $0xc0] ss:$16 sps:$4 sm:$0xff]   ;;  %v15938_v22 = vld [vmem:[#allocation12 + $0x224] ss:$16 sps:$4 sm:$0xff]  }
 0x36f   :  { %3186 = vmatprep.subr.bf16.mxu0 %v17121_v60  ;;  %v15936_v16 = vld [vmem:[#allocation12 + $0x220] ss:$16 sps:$4 sm:$0xff]   ;;  %v15905_v60 = vld [vmem:[#allocation12 + $0x184] ss:$16 sps:$4 sm:$0xff]  }
 0x370   :  { %v15900_v19 = vld [vmem:[#allocation12 + $0x1a0] ss:$16 sps:$4 sm:$0xff]  }
 0x371   :  { %3220 = vmatpush1.bf16.msra.mxu1 %v18342_v43  ;;  %v17125_v43 = vld [vmem:[#allocation9 + $0x94] ss:$8 sps:$4 sm:$0xff]   ;;  %v15903_v40 = vld [vmem:[#allocation12 + $0x180] ss:$16 sps:$4 sm:$0xff]  }
 0x372   :  { %3187 = vmatpush2.bf16.msra.mxu0 %v17122_v44  ;;  %4920 = vmatprep.subr.bf16.mxu1 %v15872_v27  ;;  %v15941_v27 = vld [vmem:[#allocation12 + $0x204] ss:$16 sps:$4 sm:$0xff]  }
 0x373   :  { %3188 = vmatprep.subr.bf16.mxu0 %v17123_v26  ;;  %v15947_v44 = vld [vmem:[#allocation12 + $0x3c4] ss:$16 sps:$4 sm:$0xff]   ;;  %v15909_v26 = vld [vmem:[#allocation12 + $0x160] ss:$16 sps:$4 sm:$0xff]  }
 0x374   :  { %v2435_v45 = vpop.f32.mrf.mxu1  ;;  %3238 = vmatmul.mubr.bf16.vlgmr.msra.gmra.mxu1 %v2615_v42  ;;  %v15942_v42 = vld [vmem:[#allocation12 + $0x3e0] ss:$16 sps:$4 sm:$0xff]  }
 0x375   :  { %v2542_v56 = vadd.f32 %v2521_v38, %v2435_v45  ;;  %4921 = vmatpush1.bf16.msra.mxu1 %v15870_v18  ;;  %v15939_v18 = vld [vmem:[#allocation12 + $0x200] ss:$16 sps:$4 sm:$0xff]   ;;  %v15917_v45 = vld [vmem:[#allocation12 + $0x144] ss:$16 sps:$4 sm:$0xff]  }
 0x376   :  { %v2437_v51 = vpop.f32.mrf.mxu1  ;;  %3189 = vmatpush2.bf16.msra.mxu0 %v17124_v6  ;;  %4922 = vmatprep.subr.bf16.mxu1 %v15875_v20  ;;  %v15944_v20 = vld [vmem:[#allocation12 + $0x3e4] ss:$16 sps:$4 sm:$0xff]   ;;  %v15948_v6 = vld [vmem:[#allocation12 + $0x3a0] ss:$16 sps:$4 sm:$0xff]  }
 0x377   :  { %vm2560_vm2 = vcmp.ge.f32.partialorder %v2542_v56, 0.0  ;;  %3190 = vmatprep.subr.bf16.mxu0 %v17125_v43  ;;  %v2578_v31 = vmul.f32 0.1, %v2542_v56  ;;  %v15923_v51 = vld [vmem:[#allocation12 + $0x124] ss:$16 sps:$4 sm:$0xff]  }
 0x378   :  { %v2438_v61 = vpop.f32.mrf.mxu1  ;;  %v15921_v43 = vld [vmem:[#allocation12 + $0x120] ss:$16 sps:$4 sm:$0xff]  }
 0x379   :  { %v2551_v0 = vadd.f32 %v2521_v38, %v2438_v61  ;;  %4923 = vmatpush1.bf16.msra.mxu1 %v15873_v63  ;;  %v2596_v49 = vsel %vm2560_vm2, %v2542_v56, %v2578_v31  ;;  %v15911_v38 = vld [vmem:[#allocation12 + $0x164] ss:$16 sps:$4 sm:$0xff]   ;;  %v15945_v63 = vld [vmem:[#allocation12 + $0x3c0] ss:$16 sps:$4 sm:$0xff]  }
 0x37a   :  { %v2440_v35 = vpop.f32.mrf.mxu1  ;;  %3191 = vmatpush2.bf16.msra.mxu0 %v17126_v2  ;;  %4924 = vmatprep.subr.bf16.mxu1 %v15878_v47  ;;  %v15950_v47 = vld [vmem:[#allocation12 + $0x3a4] ss:$16 sps:$4 sm:$0xff]   ;;  %v15915_v56 = vld [vmem:[#allocation12 + $0x140] ss:$16 sps:$4 sm:$0xff]  }
 0x37b   :  { %vm2569_vm7 = vcmp.ge.f32.partialorder %v2551_v0, 0.0  ;;  %v2587_v13 = vmul.f32 0.1, %v2551_v0  ;;  %3192 = vmatprep.subr.bf16.mxu0 %v17127_v39  ;;  %v15929_v61 = vld [vmem:[#allocation12 + $0x104] ss:$16 sps:$4 sm:$0xff]  }
 0x37c   :  { %v15927_v31 = vld [vmem:[#allocation12 + $0x100] ss:$16 sps:$4 sm:$0xff]   ;;  %v15959_v35 = vld [vmem:[#allocation12 + $0x4e4] ss:$16 sps:$4 sm:$0xff]  }
 0x37d   :  { %v2605_v48 = vsel %vm2569_vm7, %v2551_v0, %v2587_v13  ;;  %4925 = vmatpush1.bf16.msra.mxu1 %v15876_v1  ;;  %v15953_v1 = vld [vmem:[#allocation12 + $0x384] ss:$16 sps:$4 sm:$0xff]   ;;  %v15960_v39 = vld [vmem:[#allocation12 + $0x340] ss:$16 sps:$4 sm:$0xff]  }
 0x37e   :  { %3193 = vmatpush2.bf16.msra.mxu0 %v17128_v10  ;;  %v2614_v3 = vpack.c.bf16 %v2605_v48, %v2596_v49  ;;  %4926 = vmatprep.subr.bf16.mxu1 %v15881_v24  ;;  %v15951_v24 = vld [vmem:[#allocation12 + $0x380] ss:$16 sps:$4 sm:$0xff]   ;;  %v15956_v0 = vld [vmem:[#allocation12 + $0x364] ss:$16 sps:$4 sm:$0xff]   ;;  %v18382_v49 = vld [vmem:[#allocation10] sm:$0xff] }
 0x37f   :  { %4963 = vmatprep.subr.bf16.mxu0 %v15908_v58  ;;  %v15954_v58 = vld [vmem:[#allocation12 + $0x360] ss:$16 sps:$4 sm:$0xff]   ;;  %v15962_v13 = vld [vmem:[#allocation12 + $0x344] ss:$16 sps:$4 sm:$0xff]  }
 0x380   :  { %3194 = vmatprep.mubr.bf16.mxu0 %v2614_v3  ;;  %v15966_v48 = vld [vmem:[#allocation12 + $0x320] ss:$16 sps:$4 sm:$0xff]  }
 0x381   :  { %3195 = vmatmul.mubr.bf16.vlgmr.msra.gmra.mxu0 %v18346_v32  ;;  %4927 = vmatpush1.bf16.msra.mxu1 %v15879_v12  ;;  %v15891_v32 = vld [vmem:[#allocation12] ss:$16 sps:$4 sm:$0xff]   ;;  %v15968_v12 = vld [vmem:[#allocation12 + $0x324] ss:$16 sps:$4 sm:$0xff]  }
 0x382   :  { %4928 = vmatprep.subr.bf16.mxu1 %v15884_v7  ;;  %4964 = vmatpush1.bf16.msra.mxu0 %v15906_v57  ;;  %v18761_v10 = vld [vmem:[#allocation38_spill] sm:$0xff] }
 0x383   :  { %4965 = vmatprep.subr.bf16.mxu0 %v15914_v25  ;;  %v3257_v3 = vrot.slane %v18382_v49, %v18761_v10 }
 0x385   :  { %4929 = vmatpush1.bf16.msra.mxu1 %v15882_v54  ;;  %v15974_v54 = vld [vmem:[#allocation12 + $0x304] ss:$16 sps:$4 sm:$0xff]  }
 0x386   :  { %4930 = vmatprep.subr.bf16.mxu1 %v15887_v23  ;;  %4966 = vmatpush1.bf16.msra.mxu0 %v15912_v41 }
 0x387   :  { %4967 = vmatprep.subr.bf16.mxu0 %v15920_v36 }
 0x389   :  { %4931 = vmatpush1.bf16.msra.mxu1 %v15885_v46  ;;  %v18762_v46 = vld [vmem:[#allocation37_spill] sm:$0xff] }
 0x38a   :  { %4932 = vmatprep.subr.bf16.mxu1 %v15890_v9  ;;  %4968 = vmatpush1.bf16.msra.mxu0 %v15918_v14  ;;  %v3253_v36 = vrot.slane %v18382_v49, %v18762_v46 }
 0x38b   :  { %4969 = vmatprep.subr.bf16.mxu0 %v15926_v52 }
 0x38c   :  { %v2981_v2 = vpop.f32.mrf.mxu0 }
 0x38d   :  { %4933 = vmatpush1.bf16.msra.mxu1 %v15888_v15 }
 0x38e   :  { %4934 = vmatprep.subr.bf16.mxu1 %v15893_v30  ;;  %4970 = vmatpush1.bf16.msra.mxu0 %v15924_v33  ;;  %v2983_v7 = vpop.f32.mrf.mxu0  ;;  %v15972_v30 = vld [vmem:[#allocation12 + $0x300] ss:$16 sps:$4 sm:$0xff]  }
 0x38f   :  { %4971 = vmatprep.subr.bf16.mxu0 %v15932_v53 }
 0x390   :  { %v2985_v23 = vpop.f32.mrf.mxu0 }
 0x391   :  { %4935 = vmatpush1.bf16.msra.mxu1 %v15891_v32 }
 0x392   :  { %4936 = vmatprep.subr.bf16.mxu1 %v15896_v55  ;;  %4972 = vmatpush1.bf16.msra.mxu0 %v15930_v59  ;;  %v2987_v53 = vpop.f32.mrf.mxu0  ;;  %v16004_v59 = vld [vmem:[#allocation12 + $0x6e4] ss:$16 sps:$4 sm:$0xff]  }
 0x393   :  { %4973 = vmatprep.subr.bf16.mxu0 %v15935_v8 }
 0x395   :  { %4937 = vmatpush2.bf16.msra.mxu1 %v15894_v37 }
 0x396   :  { %4938 = vmatprep.subr.bf16.mxu1 %v15899_v11  ;;  %4974 = vmatpush1.bf16.msra.mxu0 %v15933_v62 }
 0x397   :  { %4975 = vmatprep.subr.bf16.mxu0 %v15938_v22 }
 0x399   :  { %4939 = vmatpush2.bf16.msra.mxu1 %v15897_v21 }
 0x39a   :  { %4940 = vmatprep.subr.bf16.mxu1 %v15902_v17  ;;  %4976 = vmatpush1.bf16.msra.mxu0 %v15936_v16 }
 0x39b   :  { %4977 = vmatprep.subr.bf16.mxu0 %v15941_v27 }
 0x39d   :  { %4941 = vmatpush2.bf16.msra.mxu1 %v15900_v19 }
 0x39e   :  { %4942 = vmatprep.subr.bf16.mxu1 %v15905_v60  ;;  %4978 = vmatpush1.bf16.msra.mxu0 %v15939_v18  ;;  %v15957_v18 = vld [vmem:[#allocation12 + $0x4e0] ss:$16 sps:$4 sm:$0xff]  }
 0x39f   :  { %4979 = vmatprep.subr.bf16.mxu0 %v15944_v20 }
 0x3a1   :  { %4943 = vmatpush2.bf16.msra.mxu1 %v15903_v40  ;;  %v15965_v40 = vld [vmem:[#allocation12 + $0x4c4] ss:$16 sps:$4 sm:$0xff]  }
 0x3a2   :  { %4944 = vmatprep.subr.bf16.mxu1 %v15911_v38  ;;  %4980 = vmatpush2.bf16.msra.mxu0 %v15942_v42  ;;  %v15963_v38 = vld [vmem:[#allocation12 + $0x4c0] ss:$16 sps:$4 sm:$0xff]   ;;  %v15971_v42 = vld [vmem:[#allocation12 + $0x4a4] ss:$16 sps:$4 sm:$0xff]  }
 0x3a3   :  { %4981 = vmatprep.subr.bf16.mxu0 %v15947_v44  ;;  %v15969_v44 = vld [vmem:[#allocation12 + $0x4a0] ss:$16 sps:$4 sm:$0xff]  }
 0x3a5   :  { %4945 = vmatpush2.bf16.msra.mxu1 %v15909_v26  ;;  %v15977_v26 = vld [vmem:[#allocation12 + $0x484] ss:$16 sps:$4 sm:$0xff]  }
 0x3a6   :  { %4946 = vmatprep.subr.bf16.mxu1 %v15917_v45  ;;  %4982 = vmatpush2.bf16.msra.mxu0 %v15945_v63  ;;  %v15975_v45 = vld [vmem:[#allocation12 + $0x480] ss:$16 sps:$4 sm:$0xff]   ;;  %v15980_v63 = vld [vmem:[#allocation12 + $0x464] ss:$16 sps:$4 sm:$0xff]  }
 0x3a7   :  { %4983 = vmatprep.subr.bf16.mxu0 %v15950_v47  ;;  %v15978_v47 = vld [vmem:[#allocation12 + $0x460] ss:$16 sps:$4 sm:$0xff]  }
 0x3a9   :  { %4947 = vmatpush2.bf16.msra.mxu1 %v15915_v56  ;;  %v15983_v56 = vld [vmem:[#allocation12 + $0x444] ss:$16 sps:$4 sm:$0xff]  }
 0x3aa   :  { %4948 = vmatprep.subr.bf16.mxu1 %v15923_v51  ;;  %4984 = vmatpush2.bf16.msra.mxu0 %v15948_v6  ;;  %v15981_v51 = vld [vmem:[#allocation12 + $0x440] ss:$16 sps:$4 sm:$0xff]   ;;  %v15986_v6 = vld [vmem:[#allocation12 + $0x424] ss:$16 sps:$4 sm:$0xff]  }
 0x3ab   :  { %4985 = vmatprep.subr.bf16.mxu0 %v15953_v1 }
 0x3ad   :  { %4949 = vmatpush2.bf16.msra.mxu1 %v15921_v43  ;;  %v15984_v43 = vld [vmem:[#allocation12 + $0x420] ss:$16 sps:$4 sm:$0xff]  }
 0x3ae   :  { %4950 = vmatprep.subr.bf16.mxu1 %v15929_v61  ;;  %4986 = vmatpush2.bf16.msra.mxu0 %v15951_v24  ;;  %v15989_v61 = vld [vmem:[#allocation12 + $0x404] ss:$16 sps:$4 sm:$0xff]   ;;  %v15987_v24 = vld [vmem:[#allocation12 + $0x400] ss:$16 sps:$4 sm:$0xff]  }
 0x3af   :  { %4987 = vmatprep.subr.bf16.mxu0 %v15956_v0  ;;  %v15992_v0 = vld [vmem:[#allocation12 + $0x5e4] ss:$16 sps:$4 sm:$0xff]  }
 0x3b1   :  { %4951 = vmatpush2.bf16.msra.mxu1 %v15927_v31 }
 0x3b2   :  { %4988 = vmatpush2.bf16.msra.mxu0 %v15954_v58  ;;  %5006 = vmatprep.subr.bf16.mxu1 %v15959_v35 }
 0x3b3   :  { %4989 = vmatprep.subr.bf16.mxu0 %v15962_v13  ;;  %v15990_v13 = vld [vmem:[#allocation12 + $0x5e0] ss:$16 sps:$4 sm:$0xff]  }
 0x3b4   :  { %v2938_v57 = vpop.f32.mrf.mxu1 }
 0x3b5   :  { %v2982_v41 = vadd.f32 %v2981_v2, %v2938_v57  ;;  %v3265_v2 = vrot.slane %v18382_v49, %v17804_v28 }
 0x3b6   :  { %v2940_v25 = vpop.f32.mrf.mxu1  ;;  %4990 = vmatpush2.bf16.msra.mxu0 %v15960_v39 }
 0x3b7   :  { %v2984_v9 = vadd.f32 %v2983_v7, %v2940_v25  ;;  %4991 = vmatprep.subr.bf16.mxu0 %v15968_v12  ;;  %v3290_v32 = vadd.f32 %v3253_v36, %v2982_v41  ;;  %v18763_v7 = vld [vmem:[#allocation39_spill] sm:$0xff] }
 0x3b8   :  { %v2942_v14 = vpop.f32.mrf.mxu1  ;;  %v3261_v57 = vrot.slane %v18382_v49, %v18763_v7 }
 0x3b9   :  { %v3291_v52 = vadd.f32 %v3257_v3, %v2984_v9  ;;  %v2986_v15 = vadd.f32 %v2985_v23, %v2942_v14  ;;  %v3322_v22 = vmul.f32 0.1, %v3290_v32  ;;  %vm3306_vm10 = vcmp.ge.f32.partialorder %v3290_v32, 0.0 }
 0x3ba   :  { %v2944_v33 = vpop.f32.mrf.mxu1  ;;  %4992 = vmatpush2.bf16.msra.mxu0 %v15966_v48 }
 0x3bb   :  { %v3298_v55 = vadd.f32 %v3253_v36, %v2986_v15  ;;  %4993 = vmatprep.subr.bf16.mxu0 %v15974_v54  ;;  %v3323_v8 = vmul.f32 0.1, %v3291_v52  ;;  %v2988_v37 = vadd.f32 %v2987_v53, %v2944_v33  ;;  %vm3307_vm9 = vcmp.ge.f32.partialorder %v3291_v52, 0.0  ;;  %v15993_v36 = vld [vmem:[#allocation12 + $0x5c0] ss:$16 sps:$4 sm:$0xff]  }
 0x3bc   :  { %v3338_v19 = vsel %vm3306_vm10, %v3290_v32, %v3322_v22  ;;  %v15998_v15 = vld [vmem:[#allocation12 + $0x5a4] ss:$16 sps:$4 sm:$0xff]  }
 0x3bd   :  { %vm3314_vm8 = vcmp.ge.f32.partialorder %v3298_v55, 0.0  ;;  %v3330_v11 = vmul.f32 0.1, %v3298_v55  ;;  %v3299_v62 = vadd.f32 %v3257_v3, %v2988_v37  ;;  %v3339_v16 = vsel %vm3307_vm9, %v3291_v52, %v3323_v8  ;;  %v15995_v3 = vld [vmem:[#allocation12 + $0x5c4] ss:$16 sps:$4 sm:$0xff]  }
 0x3be   :  { %4994 = vmatpush2.bf16.msra.mxu0 %v15972_v30  ;;  %v16001_v8 = vld [vmem:[#allocation12 + $0x584] ss:$16 sps:$4 sm:$0xff]  }
 0x3bf   :  { %5049 = vmatprep.subr.bf16.mxu0 %v16004_v59  ;;  %v3331_v21 = vmul.f32 0.1, %v3299_v62  ;;  %vm3315_vm11 = vcmp.ge.f32.partialorder %v3299_v62, 0.0  ;;  %v3346_v17 = vsel %vm3314_vm8, %v3298_v55, %v3330_v11  ;;  %v15996_v55 = vld [vmem:[#allocation12 + $0x5a0] ss:$16 sps:$4 sm:$0xff]  }
 0x3c0   :  { %v18390_v20 = vpack.c.bf16 %v3346_v17, %v3338_v19  ;;  %v16007_v19 = vld [vmem:[#allocation12 + $0x564] ss:$16 sps:$4 sm:$0xff]  }
 0x3c1   :  { %v3347_v27 = vsel %vm3315_vm11, %v3299_v62, %v3331_v21  ;;  %v15999_v21 = vld [vmem:[#allocation12 + $0x580] ss:$16 sps:$4 sm:$0xff]  }
 0x3c2   :  { %v18388_v60 = vpack.c.bf16 %v3347_v27, %v3339_v16  ;;  %v16002_v27 = vld [vmem:[#allocation12 + $0x6e0] ss:$16 sps:$4 sm:$0xff]  }
 0x3c4   :  { %4952 = vmatprep.mubr.bf16.mxu1 %v18388_v60 }
 0x3c5   :  { %4953 = vmatmul.mubr.bf16.vlgmr.msra.gmra.mxu1 %v18390_v20 }
 0x3c6   :  { %5007 = vmatpush1.bf16.msra.mxu1 %v15957_v18 }
 0x3c7   :  { %5008 = vmatprep.subr.bf16.mxu1 %v15965_v40  ;;  %v16010_v40 = vld [vmem:[#allocation12 + $0x6c4] ss:$16 sps:$4 sm:$0xff]  }
 0x3ca   :  { %5009 = vmatpush1.bf16.msra.mxu1 %v15963_v38  ;;  %v16005_v38 = vld [vmem:[#allocation12 + $0x560] ss:$16 sps:$4 sm:$0xff]  }
 0x3cb   :  { %5010 = vmatprep.subr.bf16.mxu1 %v15971_v42  ;;  %v16008_v42 = vld [vmem:[#allocation12 + $0x6c0] ss:$16 sps:$4 sm:$0xff]  }
 0x3ce   :  { %5011 = vmatpush1.bf16.msra.mxu1 %v15969_v44  ;;  %v16013_v44 = vld [vmem:[#allocation12 + $0x544] ss:$16 sps:$4 sm:$0xff]  }
 0x3cf   :  { %5012 = vmatprep.subr.bf16.mxu1 %v15977_v26  ;;  %v16016_v26 = vld [vmem:[#allocation12 + $0x6a4] ss:$16 sps:$4 sm:$0xff]  }
 0x3d2   :  { %5013 = vmatpush1.bf16.msra.mxu1 %v15975_v45  ;;  %v16011_v45 = vld [vmem:[#allocation12 + $0x540] ss:$16 sps:$4 sm:$0xff]  }
 0x3d3   :  { %5014 = vmatprep.subr.bf16.mxu1 %v15980_v63  ;;  %v16014_v63 = vld [vmem:[#allocation12 + $0x6a0] ss:$16 sps:$4 sm:$0xff]  }
 0x3d4   :  { %v3067_v1 = vpop.f32.mrf.mxu1 }
 0x3d6   :  { %5015 = vmatpush1.bf16.msra.mxu1 %v15978_v47  ;;  %v3069_v31 = vpop.f32.mrf.mxu1  ;;  %v16019_v47 = vld [vmem:[#allocation12 + $0x524] ss:$16 sps:$4 sm:$0xff]  }
 0x3d7   :  { %5016 = vmatprep.subr.bf16.mxu1 %v15983_v56  ;;  %v16022_v56 = vld [vmem:[#allocation12 + $0x684] ss:$16 sps:$4 sm:$0xff]  }
 0x3d8   :  { %v3071_v39 = vpop.f32.mrf.mxu1 }
 0x3da   :  { %5017 = vmatpush1.bf16.msra.mxu1 %v15981_v51  ;;  %v3073_v9 = vpop.f32.mrf.mxu1  ;;  %v16017_v51 = vld [vmem:[#allocation12 + $0x520] ss:$16 sps:$4 sm:$0xff]  }
 0x3db   :  { %5018 = vmatprep.subr.bf16.mxu1 %v15986_v6  ;;  %v16020_v6 = vld [vmem:[#allocation12 + $0x680] ss:$16 sps:$4 sm:$0xff]  }
 0x3de   :  { %5019 = vmatpush1.bf16.msra.mxu1 %v15984_v43  ;;  %v16025_v43 = vld [vmem:[#allocation12 + $0x504] ss:$16 sps:$4 sm:$0xff]  }
 0x3df   :  { %5020 = vmatprep.subr.bf16.mxu1 %v15989_v61  ;;  %v16023_v61 = vld [vmem:[#allocation12 + $0x500] ss:$16 sps:$4 sm:$0xff]  }
 0x3e1   :  { %v3024_v58 = vpop.f32.mrf.mxu0 }
 0x3e2   :  { %5021 = vmatpush1.bf16.msra.mxu1 %v15987_v24  ;;  %v3068_v12 = vadd.f32 %v3067_v1, %v3024_v58  ;;  %v16028_v1 = vld [vmem:[#allocation12 + $0x664] ss:$16 sps:$4 sm:$0xff]   ;;  %v16026_v24 = vld [vmem:[#allocation12 + $0x660] ss:$16 sps:$4 sm:$0xff]  }
 0x3e3   :  { %v3026_v35 = vpop.f32.mrf.mxu0  ;;  %5022 = vmatprep.subr.bf16.mxu1 %v15992_v0  ;;  %v16034_v0 = vld [vmem:[#allocation12 + $0x644] ss:$16 sps:$4 sm:$0xff]   ;;  %v16032_v58 = vld [vmem:[#allocation12 + $0x640] ss:$16 sps:$4 sm:$0xff]  }
 0x3e4   :  { %v3070_v48 = vadd.f32 %v3069_v31, %v3026_v35  ;;  %v3292_v14 = vadd.f32 %v3261_v57, %v3068_v12  ;;  %v16031_v31 = vld [vmem:[#allocation12 + $0xec] ss:$16 sps:$4 sm:$0xff]   ;;  %v16040_v35 = vld [vmem:[#allocation12 + $0x624] ss:$16 sps:$4 sm:$0xff]  }
 0x3e5   :  { %v3028_v54 = vpop.f32.mrf.mxu0  ;;  %v16052_v12 = vld [vmem:[#allocation12 + $0x7e4] ss:$16 sps:$4 sm:$0xff]  }
 0x3e6   :  { %v3072_v25 = vadd.f32 %v3071_v39, %v3028_v54  ;;  %v3293_v23 = vadd.f32 %v3265_v2, %v3070_v48  ;;  %5023 = vmatpush2.bf16.msra.mxu1 %v15990_v13  ;;  %v3324_v59 = vmul.f32 0.1, %v3292_v14  ;;  %vm3308_vm14 = vcmp.ge.f32.partialorder %v3292_v14, 0.0  ;;  %v16046_v13 = vld [vmem:[#allocation12 + $0x604] ss:$16 sps:$4 sm:$0xff]  }
 0x3e7   :  { %v3030_v41 = vpop.f32.mrf.mxu0  ;;  %5024 = vmatprep.subr.bf16.mxu1 %v15995_v3  ;;  %v16044_v39 = vld [vmem:[#allocation12 + $0x600] ss:$16 sps:$4 sm:$0xff]   ;;  %v16058_v3 = vld [vmem:[#allocation12 + $0x7c4] ss:$16 sps:$4 sm:$0xff]  }
 0x3e8   :  { %v3300_v52 = vadd.f32 %v3261_v57, %v3072_v25  ;;  %v3074_v30 = vadd.f32 %v3073_v9, %v3030_v41  ;;  %v3325_v53 = vmul.f32 0.1, %v3293_v23  ;;  %vm3309_vm13 = vcmp.ge.f32.partialorder %v3293_v23, 0.0  ;;  %v16050_v48 = vld [vmem:[#allocation12 + $0x7e0] ss:$16 sps:$4 sm:$0xff]  }
 0x3e9   :  { %v3340_v17 = vsel %vm3308_vm14, %v3292_v14, %v3324_v59  ;;  %v16064_v41 = vld [vmem:[#allocation12 + $0x7a4] ss:$16 sps:$4 sm:$0xff]   ;;  %v3273_v9 = vrot.slane %v18382_v49, %v18759_v34 }
 0x3ea   :  { %v3332_v33 = vmul.f32 0.1, %v3300_v52  ;;  %vm3316_vm12 = vcmp.ge.f32.partialorder %v3300_v52, 0.0  ;;  %v3301_v32 = vadd.f32 %v3265_v2, %v3074_v30  ;;  %5025 = vmatpush2.bf16.msra.mxu1 %v15993_v36  ;;  %v3341_v62 = vsel %vm3309_vm13, %v3293_v23, %v3325_v53  ;;  %v16038_v2 = vld [vmem:[#allocation12 + $0x620] ss:$16 sps:$4 sm:$0xff]  }
 0x3eb   :  { %5026 = vmatprep.subr.bf16.mxu1 %v15998_v15  ;;  %v16056_v23 = vld [vmem:[#allocation12 + $0x7c0] ss:$16 sps:$4 sm:$0xff]   ;;  %v3269_v15 = vrot.slane %v18382_v49, %v17843_v29 }
 0x3ec   :  { %v3333_v37 = vmul.f32 0.1, %v3301_v32  ;;  %vm3317_vm15 = vcmp.ge.f32.partialorder %v3301_v32, 0.0  ;;  %v3348_v11 = vsel %vm3316_vm12, %v3300_v52, %v3332_v33  ;;  %v16062_v53 = vld [vmem:[#allocation12 + $0x7a0] ss:$16 sps:$4 sm:$0xff]  }
 0x3ed   :  { %v18400_v18 = vpack.c.bf16 %v3348_v11, %v3340_v17 }
 0x3ee   :  { %v3349_v22 = vsel %vm3317_vm15, %v3301_v32, %v3333_v37  ;;  %5027 = vmatpush2.bf16.msra.mxu1 %v15996_v55  ;;  %v16070_v55 = vld [vmem:[#allocation12 + $0x784] ss:$16 sps:$4 sm:$0xff]  }
 0x3ef   :  { %v18398_v16 = vpack.c.bf16 %v3349_v22, %v3341_v62  ;;  %5028 = vmatprep.subr.bf16.mxu1 %v16001_v8 }
 0x3f1   :  { %4995 = vmatprep.mubr.bf16.mxu0 %v18398_v16 }
 0x3f2   :  { %4996 = vmatmul.mubr.bf16.vlgmr.msra.gmra.mxu0 %v18400_v18  ;;  %5029 = vmatpush2.bf16.msra.mxu1 %v15999_v21  ;;  %v16068_v21 = vld [vmem:[#allocation12 + $0x780] ss:$16 sps:$4 sm:$0xff]  }
 0x3f3   :  { %5050 = vmatpush1.bf16.msra.mxu0 %v16002_v27  ;;  %5030 = vmatprep.subr.bf16.mxu1 %v16007_v19  ;;  %v16076_v27 = vld [vmem:[#allocation12 + $0x764] ss:$16 sps:$4 sm:$0xff]  }
 0x3f4   :  { %5051 = vmatprep.subr.bf16.mxu0 %v16010_v40 }
 0x3f6   :  { %5031 = vmatpush2.bf16.msra.mxu1 %v16005_v38 }
 0x3f7   :  { %5052 = vmatpush1.bf16.msra.mxu0 %v16008_v42  ;;  %5032 = vmatprep.subr.bf16.mxu1 %v16013_v44  ;;  %v16074_v44 = vld [vmem:[#allocation12 + $0x760] ss:$16 sps:$4 sm:$0xff]  }
 0x3f8   :  { %5053 = vmatprep.subr.bf16.mxu0 %v16016_v26 }
 0x3fa   :  { %5033 = vmatpush2.bf16.msra.mxu1 %v16011_v45  ;;  %v16082_v45 = vld [vmem:[#allocation12 + $0x744] ss:$16 sps:$4 sm:$0xff]  }
 0x3fb   :  { %5054 = vmatpush1.bf16.msra.mxu0 %v16014_v63  ;;  %5034 = vmatprep.subr.bf16.mxu1 %v16019_v47 }
 0x3fc   :  { %5055 = vmatprep.subr.bf16.mxu0 %v16022_v56 }
 0x3fe   :  { %5035 = vmatpush2.bf16.msra.mxu1 %v16017_v51 }
 0x3ff   :  { %5056 = vmatpush1.bf16.msra.mxu0 %v16020_v6  ;;  %5036 = vmatprep.subr.bf16.mxu1 %v16025_v43  ;;  %v16029_v6 = vld [vmem:[#allocation12 + $0xe8] ss:$16 sps:$4 sm:$0xff]  }
 0x400   :  { %5057 = vmatprep.subr.bf16.mxu0 %v16028_v1  ;;  %v16037_v1 = vld [vmem:[#allocation12 + $0xcc] ss:$16 sps:$4 sm:$0xff]  }
 0x401   :  { %v3153_v57 = vpop.f32.mrf.mxu0 }
 0x402   :  { %5037 = vmatpush2.bf16.msra.mxu1 %v16023_v61  ;;  %v16080_v61 = vld [vmem:[#allocation12 + $0x740] ss:$16 sps:$4 sm:$0xff]  }
 0x403   :  { %5058 = vmatpush1.bf16.msra.mxu0 %v16026_v24  ;;  %5092 = vmatprep.subr.bf16.mxu1 %v16031_v31  ;;  %v3155_v54 = vpop.f32.mrf.mxu0  ;;  %v16088_v24 = vld [vmem:[#allocation12 + $0x724] ss:$16 sps:$4 sm:$0xff]   ;;  %v16035_v31 = vld [vmem:[#allocation12 + $0xc8] ss:$16 sps:$4 sm:$0xff]  }
 0x404   :  { %5059 = vmatprep.subr.bf16.mxu0 %v16034_v0  ;;  %v16043_v0 = vld [vmem:[#allocation12 + $0xac] ss:$16 sps:$4 sm:$0xff]  }
 0x405   :  { %v3157_v14 = vpop.f32.mrf.mxu0 }
 0x407   :  { %5060 = vmatpush1.bf16.msra.mxu0 %v16032_v58  ;;  %v3159_v37 = vpop.f32.mrf.mxu0  ;;  %v16086_v58 = vld [vmem:[#allocation12 + $0x720] ss:$16 sps:$4 sm:$0xff]  }
 0x408   :  { %5061 = vmatprep.subr.bf16.mxu0 %v16040_v35  ;;  %v16094_v35 = vld [vmem:[#allocation12 + $0x704] ss:$16 sps:$4 sm:$0xff]  }
 0x40b   :  { %5062 = vmatpush1.bf16.msra.mxu0 %v16038_v2  ;;  %v16041_v2 = vld [vmem:[#allocation12 + $0xa8] ss:$16 sps:$4 sm:$0xff]  }
 0x40c   :  { %5063 = vmatprep.subr.bf16.mxu0 %v16046_v13  ;;  %v16049_v13 = vld [vmem:[#allocation12 + $0x8c] ss:$16 sps:$4 sm:$0xff]  }
 0x40f   :  { %5064 = vmatpush1.bf16.msra.mxu0 %v16044_v39  ;;  %v16092_v39 = vld [vmem:[#allocation12 + $0x700] ss:$16 sps:$4 sm:$0xff]  }
 0x410   :  { %5065 = vmatprep.subr.bf16.mxu0 %v16052_v12  ;;  %v16100_v12 = vld [vmem:[#allocation12 + $0x2ec] ss:$16 sps:$4 sm:$0xff]  }
 0x413   :  { %5066 = vmatpush2.bf16.msra.mxu0 %v16050_v48  ;;  %v16055_v48 = vld [vmem:[#allocation12 + $0x6c] ss:$16 sps:$4 sm:$0xff]  }
 0x414   :  { %v3110_v25 = vpop.f32.mrf.mxu1  ;;  %5067 = vmatprep.subr.bf16.mxu0 %v16058_v3  ;;  %v16061_v3 = vld [vmem:[#allocation12 + $0x4c] ss:$16 sps:$4 sm:$0xff]  }
 0x415   :  { %v3154_v52 = vadd.f32 %v3153_v57, %v3110_v25  ;;  %v16047_v57 = vld [vmem:[#allocation12 + $0x88] ss:$16 sps:$4 sm:$0xff]   ;;  %v16067_v25 = vld [vmem:[#allocation12 + $0x2c] ss:$16 sps:$4 sm:$0xff]  }
 0x416   :  { %v3112_v36 = vpop.f32.mrf.mxu1 }
 0x417   :  { %v3156_v30 = vadd.f32 %v3155_v54, %v3112_v36  ;;  %5068 = vmatpush2.bf16.msra.mxu0 %v16056_v23  ;;  %v3294_v11 = vadd.f32 %v3269_v15, %v3154_v52  ;;  %v16059_v54 = vld [vmem:[#allocation12 + $0x48] ss:$16 sps:$4 sm:$0xff]   ;;  %v16073_v36 = vld [vmem:[#allocation12 + $0xc] ss:$16 sps:$4 sm:$0xff]  }
 0x418   :  { %v3114_v33 = vpop.f32.mrf.mxu1  ;;  %5069 = vmatprep.subr.bf16.mxu0 %v16064_v41  ;;  %v16065_v23 = vld [vmem:[#allocation12 + $0x28] ss:$16 sps:$4 sm:$0xff]   ;;  %v16079_v52 = vld [vmem:[#allocation12 + $0x1ec] ss:$16 sps:$4 sm:$0xff]  }
 0x419   :  { %v3158_v32 = vadd.f32 %v3157_v14, %v3114_v33  ;;  %v3295_v59 = vadd.f32 %v3273_v9, %v3156_v30  ;;  %v3326_v38 = vmul.f32 0.1, %v3294_v11  ;;  %vm3310_vm3 = vcmp.ge.f32.partialorder %v3294_v11, 0.0 }
 0x41a   :  { %v3116_v8 = vpop.f32.mrf.mxu1  ;;  %v3281_v33 = vrot.slane %v18382_v49, %v18760_v5 }
 0x41b   :  { %v3302_v62 = vadd.f32 %v3269_v15, %v3158_v32  ;;  %v3160_v22 = vadd.f32 %v3159_v37, %v3116_v8  ;;  %5070 = vmatpush2.bf16.msra.mxu0 %v16062_v53  ;;  %v3327_v19 = vmul.f32 0.1, %v3295_v59  ;;  %vm3311_vm1 = vcmp.ge.f32.partialorder %v3295_v59, 0.0  ;;  %v16077_v53 = vld [vmem:[#allocation12 + $0x1e8] ss:$16 sps:$4 sm:$0xff]  }
 0x41c   :  { %5071 = vmatprep.subr.bf16.mxu0 %v16070_v55  ;;  %v3342_v56 = vsel %vm3310_vm3, %v3294_v11, %v3326_v38  ;;  %v16085_v37 = vld [vmem:[#allocation12 + $0x1cc] ss:$16 sps:$4 sm:$0xff]  }
 0x41d   :  { %v3334_v17 = vmul.f32 0.1, %v3302_v62  ;;  %vm3318_vm0 = vcmp.ge.f32.partialorder %v3302_v62, 0.0  ;;  %v3303_v40 = vadd.f32 %v3273_v9, %v3160_v22  ;;  %v3343_v63 = vsel %vm3311_vm1, %v3295_v59, %v3327_v19  ;;  %v16071_v9 = vld [vmem:[#allocation12 + $0x8] ss:$16 sps:$4 sm:$0xff]  }
 0x41e   :  { %v3277_v59 = vrot.slane %v18382_v49, %v18758_v4  ;;  %v16091_v38 = vld [vmem:[#allocation12 + $0x1ac] ss:$16 sps:$4 sm:$0xff]   ;;  %v16089_v49 = vld [vmem:[#allocation12 + $0x1a8] ss:$16 sps:$4 sm:$0xff]  }
 0x41f   :  { %vm3319_vm4 = vcmp.ge.f32.partialorder %v3303_v40, 0.0  ;;  %v3335_v42 = vmul.f32 0.1, %v3303_v40  ;;  %5072 = vmatpush2.bf16.msra.mxu0 %v16068_v21  ;;  %v3350_v26 = vsel %vm3318_vm0, %v3302_v62, %v3334_v17  ;;  %v16083_v17 = vld [vmem:[#allocation12 + $0x1c8] ss:$16 sps:$4 sm:$0xff]  }
 0x420   :  { %5073 = vmatprep.subr.bf16.mxu0 %v16076_v27  ;;  %v18410_v43 = vpack.c.bf16 %v3350_v26, %v3342_v56 }
 0x421   :  { %v3351_v47 = vsel %vm3319_vm4, %v3303_v40, %v3335_v42 }
 0x422   :  { %v18408_v51 = vpack.c.bf16 %v3351_v47, %v3343_v63  ;;  %v16097_v47 = vld [vmem:[#allocation12 + $0x18c] ss:$16 sps:$4 sm:$0xff]  }
 0x423   :  { %5074 = vmatpush2.bf16.msra.mxu0 %v16074_v44 }
 0x424   :  { %5038 = vmatprep.mubr.bf16.mxu1 %v18408_v51  ;;  %5075 = vmatprep.subr.bf16.mxu0 %v16082_v45 }
 0x425   :  { %5039 = vmatmul.mubr.bf16.vlgmr.msra.gmra.mxu1 %v18410_v43 }
 0x426   :  { %5093 = vmatpush1.bf16.msra.mxu1 %v16029_v6  ;;  %5124 = vmatprep.mubr.bf16.mxu1 %v18388_v60  ;;  %v16053_v60 = vld [vmem:[#allocation12 + $0x68] ss:$16 sps:$4 sm:$0xff]  }
 0x427   :  { %5094 = vmatprep.subr.bf16.mxu1 %v16037_v1  ;;  %5076 = vmatpush2.bf16.msra.mxu0 %v16080_v61  ;;  %v16095_v1 = vld [vmem:[#allocation12 + $0x188] ss:$16 sps:$4 sm:$0xff]  }
 0x428   :  { %5077 = vmatprep.subr.bf16.mxu0 %v16088_v24 }
 0x42a   :  { %5095 = vmatpush1.bf16.msra.mxu1 %v16035_v31 }
 0x42b   :  { %5096 = vmatprep.subr.bf16.mxu1 %v16043_v0  ;;  %5078 = vmatpush2.bf16.msra.mxu0 %v16086_v58  ;;  %v16098_v58 = vld [vmem:[#allocation12 + $0x2e8] ss:$16 sps:$4 sm:$0xff]  }
 0x42c   :  { %5079 = vmatprep.subr.bf16.mxu0 %v16094_v35 }
 0x42e   :  { %5097 = vmatpush1.bf16.msra.mxu1 %v16041_v2  ;;  %v16103_v2 = vld [vmem:[#allocation12 + $0x16c] ss:$16 sps:$4 sm:$0xff]  }
 0x42f   :  { %5098 = vmatprep.subr.bf16.mxu1 %v16049_v13  ;;  %5080 = vmatpush2.bf16.msra.mxu0 %v16092_v39  ;;  %v16106_v13 = vld [vmem:[#allocation12 + $0x2cc] ss:$16 sps:$4 sm:$0xff]   ;;  %v16101_v39 = vld [vmem:[#allocation12 + $0x168] ss:$16 sps:$4 sm:$0xff]  }
 0x430   :  { %5135 = vmatprep.subr.bf16.mxu0 %v16100_v12  ;;  %v16104_v12 = vld [vmem:[#allocation12 + $0x2c8] ss:$16 sps:$4 sm:$0xff]  }
 0x432   :  { %5099 = vmatpush1.bf16.msra.mxu1 %v16047_v57  ;;  %v16109_v57 = vld [vmem:[#allocation12 + $0x14c] ss:$16 sps:$4 sm:$0xff]  }
 0x433   :  { %5100 = vmatprep.subr.bf16.mxu1 %v16055_v48  ;;  %v16112_v48 = vld [vmem:[#allocation12 + $0x2ac] ss:$16 sps:$4 sm:$0xff]  }
 0x434   :  { %v3239_v41 = vpop.f32.mrf.mxu1 }
 0x436   :  { %5101 = vmatpush1.bf16.msra.mxu1 %v16053_v60  ;;  %v3241_v14 = vpop.f32.mrf.mxu1  ;;  %v16107_v60 = vld [vmem:[#allocation12 + $0x148] ss:$16 sps:$4 sm:$0xff]  }
 0x437   :  { %5102 = vmatprep.subr.bf16.mxu1 %v16061_v3  ;;  %v16110_v3 = vld [vmem:[#allocation12 + $0x2a8] ss:$16 sps:$4 sm:$0xff]  }
 0x438   :  { %v3243_v32 = vpop.f32.mrf.mxu1 }
 0x43a   :  { %5103 = vmatpush1.bf16.msra.mxu1 %v16059_v54  ;;  %v3245_v27 = vpop.f32.mrf.mxu1  ;;  %v16115_v54 = vld [vmem:[#allocation12 + $0x12c] ss:$16 sps:$4 sm:$0xff]  }
 0x43b   :  { %5104 = vmatprep.subr.bf16.mxu1 %v16067_v25  ;;  %v16118_v25 = vld [vmem:[#allocation12 + $0x28c] ss:$16 sps:$4 sm:$0xff]  }
 0x43e   :  { %5105 = vmatpush1.bf16.msra.mxu1 %v16065_v23  ;;  %v16113_v23 = vld [vmem:[#allocation12 + $0x128] ss:$16 sps:$4 sm:$0xff]  }
 0x43f   :  { %5106 = vmatprep.subr.bf16.mxu1 %v16073_v36  ;;  %v16121_v36 = vld [vmem:[#allocation12 + $0x10c] ss:$16 sps:$4 sm:$0xff]  }
 0x441   :  { %v3196_v15 = vpop.f32.mrf.mxu0 }
 0x442   :  { %5107 = vmatpush1.bf16.msra.mxu1 %v16071_v9  ;;  %v3240_v55 = vadd.f32 %v3239_v41, %v3196_v15  ;;  %v16116_v41 = vld [vmem:[#allocation12 + $0x288] ss:$16 sps:$4 sm:$0xff]   ;;  %v16130_v15 = vld [vmem:[#allocation12 + $0x24c] ss:$16 sps:$4 sm:$0xff]  }
 0x443   :  { %v3198_v30 = vpop.f32.mrf.mxu0  ;;  %5108 = vmatprep.subr.bf16.mxu1 %v16079_v52  ;;  %v16119_v9 = vld [vmem:[#allocation12 + $0x108] ss:$16 sps:$4 sm:$0xff]   ;;  %v16127_v52 = vld [vmem:[#allocation12 + $0x4ec] ss:$16 sps:$4 sm:$0xff]  }
 0x444   :  { %v3242_v8 = vadd.f32 %v3241_v14, %v3198_v30  ;;  %v3296_v19 = vadd.f32 %v3277_v59, %v3240_v55  ;;  %v16122_v14 = vld [vmem:[#allocation12 + $0x268] ss:$16 sps:$4 sm:$0xff]  }
 0x445   :  { %v3200_v11 = vpop.f32.mrf.mxu0  ;;  %v16125_v30 = vld [vmem:[#allocation12 + $0x4e8] ss:$16 sps:$4 sm:$0xff]  }
 0x446   :  { %v3244_v62 = vadd.f32 %v3243_v32, %v3200_v11  ;;  %v3297_v22 = vadd.f32 %v3281_v33, %v3242_v8  ;;  %5109 = vmatpush2.bf16.msra.mxu1 %v16077_v53  ;;  %v3328_v63 = vmul.f32 0.1, %v3296_v19  ;;  %vm3312_vm2 = vcmp.ge.f32.partialorder %v3296_v19, 0.0  ;;  %v16133_v53 = vld [vmem:[#allocation12 + $0x4cc] ss:$16 sps:$4 sm:$0xff]  }
 0x447   :  { %v3202_v21 = vpop.f32.mrf.mxu0  ;;  %5110 = vmatprep.subr.bf16.mxu1 %v16085_v37  ;;  %v16136_v32 = vld [vmem:[#allocation12 + $0x22c] ss:$16 sps:$4 sm:$0xff]   ;;  %v16131_v55 = vld [vmem:[#allocation12 + $0x4c8] ss:$16 sps:$4 sm:$0xff]  }
 0x448   :  { %v3304_v40 = vadd.f32 %v3277_v59, %v3244_v62  ;;  %v3246_v42 = vadd.f32 %v3245_v27, %v3202_v21  ;;  %v3329_v26 = vmul.f32 0.1, %v3297_v22  ;;  %vm3313_vm6 = vcmp.ge.f32.partialorder %v3297_v22, 0.0  ;;  %v16134_v59 = vld [vmem:[#allocation12 + $0x228] ss:$16 sps:$4 sm:$0xff]  }
 0x449   :  { %v3344_v31 = vsel %vm3312_vm2, %v3296_v19, %v3328_v63  ;;  %v16139_v8 = vld [vmem:[#allocation12 + $0x4ac] ss:$16 sps:$4 sm:$0xff]   ;;  %v16137_v11 = vld [vmem:[#allocation12 + $0x4a8] ss:$16 sps:$4 sm:$0xff]  }
 0x44a   :  { %v3336_v44 = vmul.f32 0.1, %v3304_v40  ;;  %vm3320_vm5 = vcmp.ge.f32.partialorder %v3304_v40, 0.0  ;;  %v3305_v45 = vadd.f32 %v3281_v33, %v3246_v42  ;;  %5111 = vmatpush2.bf16.msra.mxu1 %v16083_v17  ;;  %v3345_v61 = vsel %vm3313_vm6, %v3297_v22, %v3329_v26  ;;  %v16128_v33 = vld [vmem:[#allocation12 + $0x248] ss:$16 sps:$4 sm:$0xff]  }
 0x44b   :  { %5112 = vmatprep.subr.bf16.mxu1 %v16091_v38  ;;  %v16142_v37 = vld [vmem:[#allocation12 + $0x20c] ss:$16 sps:$4 sm:$0xff]   ;;  %v16140_v62 = vld [vmem:[#allocation12 + $0x208] ss:$16 sps:$4 sm:$0xff]  }
 0x44c   :  { %vm3321_vm7 = vcmp.ge.f32.partialorder %v3305_v45, 0.0  ;;  %v3337_v56 = vmul.f32 0.1, %v3305_v45  ;;  %v3352_v6 = vsel %vm3320_vm5, %v3304_v40, %v3336_v44  ;;  %v16145_v22 = vld [vmem:[#allocation12 + $0x48c] ss:$16 sps:$4 sm:$0xff]  }
 0x44d   :  { %v18421_v35 = vpack.c.bf16 %v3352_v6, %v3344_v31  ;;  %v16148_v21 = vld [vmem:[#allocation12 + $0x3ec] ss:$16 sps:$4 sm:$0xff]   ;;  %v16149_v19 = vld [vmem:[#allocation12 + $0x468] ss:$16 sps:$4 sm:$0xff]  }
 0x44e   :  { %5113 = vmatpush2.bf16.msra.mxu1 %v16089_v49  ;;  %v3353_v24 = vsel %vm3321_vm7, %v3305_v45, %v3337_v56  ;;  %v16151_v17 = vld [vmem:[#allocation12 + $0x46c] ss:$16 sps:$4 sm:$0xff]   ;;  %v16152_v40 = vld [vmem:[#allocation12 + $0x3c8] ss:$16 sps:$4 sm:$0xff]  }
 0x44f   :  { %5114 = vmatprep.subr.bf16.mxu1 %v16097_v47  ;;  %v18419_v0 = vpack.c.bf16 %v3353_v24, %v3345_v61  ;;  %v16154_v27 = vld [vmem:[#allocation12 + $0x3cc] ss:$16 sps:$4 sm:$0xff]   ;;  %v16155_v44 = vld [vmem:[#allocation12 + $0x448] ss:$16 sps:$4 sm:$0xff]  }
 0x450   :  { %v16157_v38 = vld [vmem:[#allocation12 + $0x44c] ss:$16 sps:$4 sm:$0xff]   ;;  %v16158_v26 = vld [vmem:[#allocation12 + $0x3a8] ss:$16 sps:$4 sm:$0xff]  }
 0x451   :  { %5081 = vmatprep.mubr.bf16.mxu0 %v18419_v0  ;;  %v16160_v42 = vld [vmem:[#allocation12 + $0x3ac] ss:$16 sps:$4 sm:$0xff]   ;;  %v16161_v63 = vld [vmem:[#allocation12 + $0x428] ss:$16 sps:$4 sm:$0xff]  }
 0x452   :  { %5115 = vmatpush2.bf16.msra.mxu1 %v16095_v1  ;;  %5082 = vmatmul.mubr.bf16.vlgmr.msra.gmra.mxu0 %v18421_v35  ;;  %v16163_v45 = vld [vmem:[#allocation12 + $0x42c] ss:$16 sps:$4 sm:$0xff]   ;;  %v16164_v47 = vld [vmem:[#allocation12 + $0x388] ss:$16 sps:$4 sm:$0xff]  }
 0x453   :  { %5136 = vmatpush1.bf16.msra.mxu0 %v16098_v58  ;;  %5167 = vmatprep.mubr.bf16.mxu0 %v18398_v16  ;;  %v16124_v16 = vld [vmem:[#allocation12 + $0x26c] ss:$16 sps:$4 sm:$0xff]   ;;  %v16167_v1 = vld [vmem:[#allocation12 + $0x408] ss:$16 sps:$4 sm:$0xff]  }
 0x454   :  { %5116 = vmatprep.subr.bf16.mxu1 %v16103_v2  ;;  %5137 = vmatprep.subr.bf16.mxu0 %v16106_v13  ;;  %v16166_v49 = vld [vmem:[#allocation12 + $0x38c] ss:$16 sps:$4 sm:$0xff]   ;;  %v16170_v61 = vld [vmem:[#allocation12 + $0x368] ss:$16 sps:$4 sm:$0xff]  }
 0x455   :  { %v16169_v56 = vld [vmem:[#allocation12 + $0x40c] ss:$16 sps:$4 sm:$0xff]   ;;  %v16173_v58 = vld [vmem:[#allocation12 + $0x5e8] ss:$16 sps:$4 sm:$0xff]  }
 0x456   :  { %5117 = vmatpush2.bf16.msra.mxu1 %v16101_v39  ;;  %v16172_v6 = vld [vmem:[#allocation12 + $0x36c] ss:$16 sps:$4 sm:$0xff]   ;;  %v16176_v2 = vld [vmem:[#allocation12 + $0x348] ss:$16 sps:$4 sm:$0xff]  }
 0x457   :  { %5138 = vmatpush1.bf16.msra.mxu0 %v16104_v12  ;;  %5118 = vmatprep.subr.bf16.mxu1 %v16109_v57  ;;  %v16175_v24 = vld [vmem:[#allocation12 + $0x5ec] ss:$16 sps:$4 sm:$0xff]   ;;  %v16179_v12 = vld [vmem:[#allocation12 + $0x5c8] ss:$16 sps:$4 sm:$0xff]  }
 0x458   :  { %5139 = vmatprep.subr.bf16.mxu0 %v16112_v48  ;;  %v16178_v31 = vld [vmem:[#allocation12 + $0x34c] ss:$16 sps:$4 sm:$0xff]   ;;  %v16182_v57 = vld [vmem:[#allocation12 + $0x328] ss:$16 sps:$4 sm:$0xff]  }
 0x459   :  { %v16181_v13 = vld [vmem:[#allocation12 + $0x5cc] ss:$16 sps:$4 sm:$0xff]  }
 0x45a   :  { %5119 = vmatpush2.bf16.msra.mxu1 %v16107_v60  ;;  %v16184_v39 = vld [vmem:[#allocation12 + $0x32c] ss:$16 sps:$4 sm:$0xff]  }
 0x45b   :  { %5140 = vmatpush1.bf16.msra.mxu0 %v16110_v3  ;;  %5120 = vmatprep.subr.bf16.mxu1 %v16115_v54  ;;  %v16187_v48 = vld [vmem:[#allocation12 + $0x5ac] ss:$16 sps:$4 sm:$0xff]   ;;  %v16185_v3 = vld [vmem:[#allocation12 + $0x5a8] ss:$16 sps:$4 sm:$0xff]  }
 0x45c   :  { %5141 = vmatprep.subr.bf16.mxu0 %v16118_v25  ;;  %v16190_v60 = vld [vmem:[#allocation12 + $0x30c] ss:$16 sps:$4 sm:$0xff]   ;;  %v16188_v54 = vld [vmem:[#allocation12 + $0x308] ss:$16 sps:$4 sm:$0xff]  }
 0x45d   :  { %v16193_v25 = vld [vmem:[#allocation12 + $0x58c] ss:$16 sps:$4 sm:$0xff]  }
 0x45e   :  { %5121 = vmatpush2.bf16.msra.mxu1 %v16113_v23  ;;  %v16196_v23 = vld [vmem:[#allocation12 + $0x6ec] ss:$16 sps:$4 sm:$0xff]  }
 0x45f   :  { %5142 = vmatpush1.bf16.msra.mxu0 %v16116_v41  ;;  %5122 = vmatprep.subr.bf16.mxu1 %v16121_v36  ;;  %v16191_v41 = vld [vmem:[#allocation12 + $0x588] ss:$16 sps:$4 sm:$0xff]  }
 0x460   :  { %5143 = vmatprep.subr.bf16.mxu0 %v16124_v16  ;;  %v16194_v36 = vld [vmem:[#allocation12 + $0x6e8] ss:$16 sps:$4 sm:$0xff]   ;;  %v16199_v16 = vld [vmem:[#allocation12 + $0x56c] ss:$16 sps:$4 sm:$0xff]  }
 0x462   :  { %5123 = vmatpush2.bf16.msra.mxu1 %v16119_v9  ;;  %v16202_v9 = vld [vmem:[#allocation12 + $0x6cc] ss:$16 sps:$4 sm:$0xff]  }
 0x463   :  { %5144 = vmatpush1.bf16.msra.mxu0 %v16122_v14  ;;  %5178 = vmatprep.subr.bf16.mxu1 %v16127_v52  ;;  %v16197_v14 = vld [vmem:[#allocation12 + $0x568] ss:$16 sps:$4 sm:$0xff]  }
 0x464   :  { %5145 = vmatprep.subr.bf16.mxu0 %v16130_v15  ;;  %v16200_v52 = vld [vmem:[#allocation12 + $0x6c8] ss:$16 sps:$4 sm:$0xff]   ;;  %v16205_v15 = vld [vmem:[#allocation12 + $0x54c] ss:$16 sps:$4 sm:$0xff]  }
 0x465   :  { %5125 = vmatmul.mubr.bf16.vlgmr.msra.gmra.mxu1 %v18390_v20  ;;  %v16143_v20 = vld [vmem:[#allocation12 + $0x488] ss:$16 sps:$4 sm:$0xff]  }
 0x466   :  { %5179 = vmatpush1.bf16.msra.mxu1 %v16125_v30  ;;  %5210 = vmatprep.mubr.bf16.mxu1 %v18408_v51  ;;  %v16146_v51 = vld [vmem:[#allocation12 + $0x3e8] ss:$16 sps:$4 sm:$0xff]   ;;  %v16208_v30 = vld [vmem:[#allocation12 + $0x6ac] ss:$16 sps:$4 sm:$0xff]  }
 0x467   :  { %5146 = vmatpush1.bf16.msra.mxu0 %v16128_v33  ;;  %5180 = vmatprep.subr.bf16.mxu1 %v16133_v53  ;;  %v16203_v33 = vld [vmem:[#allocation12 + $0x548] ss:$16 sps:$4 sm:$0xff]  }
 0x468   :  { %5147 = vmatprep.subr.bf16.mxu0 %v16136_v32  ;;  %v16206_v53 = vld [vmem:[#allocation12 + $0x6a8] ss:$16 sps:$4 sm:$0xff]   ;;  %v16211_v32 = vld [vmem:[#allocation12 + $0x52c] ss:$16 sps:$4 sm:$0xff]  }
 0x46a   :  { %5181 = vmatpush1.bf16.msra.mxu1 %v16131_v55  ;;  %v16214_v55 = vld [vmem:[#allocation12 + $0x68c] ss:$16 sps:$4 sm:$0xff]  }
 0x46b   :  { %5148 = vmatpush1.bf16.msra.mxu0 %v16134_v59  ;;  %5182 = vmatprep.subr.bf16.mxu1 %v16139_v8  ;;  %v16212_v59 = vld [vmem:[#allocation12 + $0x688] ss:$16 sps:$4 sm:$0xff]   ;;  %v16217_v8 = vld [vmem:[#allocation12 + $0x50c] ss:$16 sps:$4 sm:$0xff]  }
 0x46c   :  { %5149 = vmatprep.subr.bf16.mxu0 %v16142_v37  ;;  %v16215_v37 = vld [vmem:[#allocation12 + $0x508] ss:$16 sps:$4 sm:$0xff]  }
 0x46e   :  { %5183 = vmatpush1.bf16.msra.mxu1 %v16137_v11  ;;  %v16218_v11 = vld [vmem:[#allocation12 + $0x668] ss:$16 sps:$4 sm:$0xff]  }
 0x46f   :  { %5150 = vmatpush1.bf16.msra.mxu0 %v16140_v62  ;;  %5184 = vmatprep.subr.bf16.mxu1 %v16145_v22  ;;  %v16254_v62 = vld [vmem:[#allocation15 + $0x78] sm:$0xff]  }
 0x470   :  { %5151 = vmatprep.subr.bf16.mxu0 %v16148_v21  ;;  %v16223_v22 = vld [vmem:[#allocation12 + $0x64c] ss:$16 sps:$4 sm:$0xff]  }
 0x471   :  { %v16255_v21 = vld [vmem:[#allocation15 + $0x38] sm:$0xff]  }
 0x472   :  { %5185 = vmatpush1.bf16.msra.mxu1 %v16143_v20  ;;  %v16221_v20 = vld [vmem:[#allocation12 + $0x648] ss:$16 sps:$4 sm:$0xff]  }
 0x473   :  { %5152 = vmatpush2.bf16.msra.mxu0 %v16146_v51  ;;  %5186 = vmatprep.subr.bf16.mxu1 %v16151_v17  ;;  %v16256_v51 = vld [vmem:[#allocation15 + $0x70] sm:$0xff]   ;;  %v16226_v17 = vld [vmem:[#allocation12 + $0x62c] ss:$16 sps:$4 sm:$0xff]  }
 0x474   :  { %5153 = vmatprep.subr.bf16.mxu0 %v16154_v27  ;;  %v16257_v27 = vld [vmem:[#allocation15 + $0x30] sm:$0xff]  }
 0x476   :  { %5187 = vmatpush1.bf16.msra.mxu1 %v16149_v19  ;;  %v16224_v19 = vld [vmem:[#allocation12 + $0x628] ss:$16 sps:$4 sm:$0xff]  }
 0x477   :  { %5154 = vmatpush2.bf16.msra.mxu0 %v16152_v40  ;;  %5188 = vmatprep.subr.bf16.mxu1 %v16157_v38  ;;  %v16258_v40 = vld [vmem:[#allocation15 + $0x68] sm:$0xff]  }
 0x478   :  { %5155 = vmatprep.subr.bf16.mxu0 %v16160_v42  ;;  %v16229_v38 = vld [vmem:[#allocation12 + $0x60c] ss:$16 sps:$4 sm:$0xff]  }
 0x479   :  { %v16259_v42 = vld [vmem:[#allocation15 + $0x28] sm:$0xff]  }
 0x47a   :  { %5189 = vmatpush1.bf16.msra.mxu1 %v16155_v44  ;;  %v16227_v44 = vld [vmem:[#allocation12 + $0x608] ss:$16 sps:$4 sm:$0xff]  }
 0x47b   :  { %5156 = vmatpush2.bf16.msra.mxu0 %v16158_v26  ;;  %5190 = vmatprep.subr.bf16.mxu1 %v16163_v45  ;;  %v16260_v26 = vld [vmem:[#allocation15 + $0x60] sm:$0xff]   ;;  %v16232_v45 = vld [vmem:[#allocation12 + $0x7ec] ss:$16 sps:$4 sm:$0xff]  }
 0x47c   :  { %5157 = vmatprep.subr.bf16.mxu0 %v16166_v49  ;;  %v16261_v49 = vld [vmem:[#allocation15 + $0x20] sm:$0xff]  }
 0x47e   :  { %5191 = vmatpush1.bf16.msra.mxu1 %v16161_v63  ;;  %v16262_v63 = vld [vmem:[#allocation15 + $0x58] sm:$0xff]  }
 0x47f   :  { %5158 = vmatpush2.bf16.msra.mxu0 %v16164_v47  ;;  %5192 = vmatprep.subr.bf16.mxu1 %v16169_v56  ;;  %v16235_v47 = vld [vmem:[#allocation12 + $0x7cc] ss:$16 sps:$4 sm:$0xff]  }
 0x480   :  { %5159 = vmatprep.subr.bf16.mxu0 %v16172_v6  ;;  %v16263_v56 = vld [vmem:[#allocation15 + $0x18] sm:$0xff]   ;;  %v16233_v6 = vld [vmem:[#allocation12 + $0x7c8] ss:$16 sps:$4 sm:$0xff]  }
 0x482   :  { %5193 = vmatpush1.bf16.msra.mxu1 %v16167_v1  ;;  %v16264_v1 = vld [vmem:[#allocation15 + $0x50] sm:$0xff]  }
 0x483   :  { %5160 = vmatpush2.bf16.msra.mxu0 %v16170_v61  ;;  %5194 = vmatprep.subr.bf16.mxu1 %v16175_v24  ;;  %v16238_v61 = vld [vmem:[#allocation12 + $0x7ac] ss:$16 sps:$4 sm:$0xff]   ;;  %v16265_v24 = vld [vmem:[#allocation15 + $0x10] sm:$0xff]  }
 0x484   :  { %5161 = vmatprep.subr.bf16.mxu0 %v16178_v31  ;;  %v16236_v31 = vld [vmem:[#allocation12 + $0x7a8] ss:$16 sps:$4 sm:$0xff]  }
 0x486   :  { %5195 = vmatpush2.bf16.msra.mxu1 %v16173_v58  ;;  %v16266_v58 = vld [vmem:[#allocation15 + $0x48] sm:$0xff]  }
 0x487   :  { %5162 = vmatpush2.bf16.msra.mxu0 %v16176_v2  ;;  %5196 = vmatprep.subr.bf16.mxu1 %v16181_v13  ;;  %v16241_v2 = vld [vmem:[#allocation12 + $0x78c] ss:$16 sps:$4 sm:$0xff]  }
 0x488   :  { %5163 = vmatprep.subr.bf16.mxu0 %v16184_v39  ;;  %v16267_v13 = vld [vmem:[#allocation15 + $0x8] sm:$0xff]   ;;  %v16239_v39 = vld [vmem:[#allocation12 + $0x788] ss:$16 sps:$4 sm:$0xff]  }
 0x48a   :  { %5197 = vmatpush2.bf16.msra.mxu1 %v16179_v12  ;;  %v16268_v12 = vld [vmem:[#allocation15 + $0x40] sm:$0xff]  }
 0x48b   :  { %5164 = vmatpush2.bf16.msra.mxu0 %v16182_v57  ;;  %5198 = vmatprep.subr.bf16.mxu1 %v16187_v48  ;;  %v16244_v57 = vld [vmem:[#allocation12 + $0x76c] ss:$16 sps:$4 sm:$0xff]   ;;  %v16269_v48 = vld [vmem:[#allocation15] sm:$0xff]  }
 0x48c   :  { %5165 = vmatprep.subr.bf16.mxu0 %v16190_v60  ;;  %v16242_v60 = vld [vmem:[#allocation12 + $0x768] ss:$16 sps:$4 sm:$0xff]  }
 0x48e   :  { %5199 = vmatpush2.bf16.msra.mxu1 %v16185_v3  ;;  %v16247_v3 = vld [vmem:[#allocation12 + $0x74c] ss:$16 sps:$4 sm:$0xff]  }
 0x48f   :  { %5166 = vmatpush2.bf16.msra.mxu0 %v16188_v54  ;;  %5200 = vmatprep.subr.bf16.mxu1 %v16193_v25  ;;  %v16245_v54 = vld [vmem:[#allocation12 + $0x748] ss:$16 sps:$4 sm:$0xff]   ;;  %v16250_v25 = vld [vmem:[#allocation12 + $0x72c] ss:$16 sps:$4 sm:$0xff]  }
 0x490   :  { %5221 = vmatprep.subr.bf16.mxu0 %v16196_v23  ;;  %v16248_v23 = vld [vmem:[#allocation12 + $0x728] ss:$16 sps:$4 sm:$0xff]  }
 0x492   :  { %5168 = vmatmul.mubr.bf16.vlgmr.msra.gmra.mxu0 %v18400_v18  ;;  %5201 = vmatpush2.bf16.msra.mxu1 %v16191_v41  ;;  %v16209_v18 = vld [vmem:[#allocation12 + $0x528] ss:$16 sps:$4 sm:$0xff]   ;;  %v16253_v41 = vld [vmem:[#allocation12 + $0x70c] ss:$16 sps:$4 sm:$0xff]  }
 0x493   :  { %5222 = vmatpush1.bf16.msra.mxu0 %v16194_v36  ;;  %5253 = vmatprep.mubr.bf16.mxu0 %v18419_v0  ;;  %v16220_v0 = vld [vmem:[#allocation12 + $0x66c] ss:$16 sps:$4 sm:$0xff]   ;;  %v16251_v36 = vld [vmem:[#allocation12 + $0x708] ss:$16 sps:$4 sm:$0xff]  }
 0x494   :  { %5202 = vmatprep.subr.bf16.mxu1 %v16199_v16  ;;  %5223 = vmatprep.subr.bf16.mxu0 %v16202_v9  ;;  %v16270_v16 = vld [vmem:[#allocation15 + $0xf8] sm:$0xff]  }
 0x495   :  { %v16271_v9 = vld [vmem:[#allocation15 + $0xb8] sm:$0xff]  }
 0x496   :  { %5203 = vmatpush2.bf16.msra.mxu1 %v16197_v14  ;;  %v16272_v14 = vld [vmem:[#allocation15 + $0xf0] sm:$0xff]  }
 0x497   :  { %5224 = vmatpush1.bf16.msra.mxu0 %v16200_v52  ;;  %5204 = vmatprep.subr.bf16.mxu1 %v16205_v15  ;;  %v16273_v52 = vld [vmem:[#allocation15 + $0xb0] sm:$0xff]   ;;  %v16274_v15 = vld [vmem:[#allocation15 + $0xe8] sm:$0xff]  }
 0x498   :  { %5225 = vmatprep.subr.bf16.mxu0 %v16208_v30  ;;  %v16275_v30 = vld [vmem:[#allocation15 + $0xa8] sm:$0xff]  }
 0x49a   :  { %5205 = vmatpush2.bf16.msra.mxu1 %v16203_v33  ;;  %v16276_v33 = vld [vmem:[#allocation15 + $0xe0] sm:$0xff]  }
 0x49b   :  { %5226 = vmatpush1.bf16.msra.mxu0 %v16206_v53  ;;  %5206 = vmatprep.subr.bf16.mxu1 %v16211_v32  ;;  %v16277_v53 = vld [vmem:[#allocation15 + $0xa0] sm:$0xff]   ;;  %v16278_v32 = vld [vmem:[#allocation15 + $0xd8] sm:$0xff]  }
 0x49c   :  { %5227 = vmatprep.subr.bf16.mxu0 %v16214_v55  ;;  %v4954_v55 = vpop.f32.mrf.mxu1 }
 0x49e   :  { %5207 = vmatpush2.bf16.msra.mxu1 %v16209_v18 }
 0x49f   :  { %5228 = vmatpush1.bf16.msra.mxu0 %v16212_v59  ;;  %5208 = vmatprep.subr.bf16.mxu1 %v16217_v8 }
 0x4a0   :  { %5229 = vmatprep.subr.bf16.mxu0 %v16220_v0 }
 0x4a2   :  { %5209 = vmatpush2.bf16.msra.mxu1 %v16215_v37 }
 0x4a3   :  { %5230 = vmatpush1.bf16.msra.mxu0 %v16218_v11  ;;  %14697 = vmatprep.subr.bf16.mxu1 %v16254_v62  ;;  %v18432_v11 = vld [vmem:[#allocation13] sm:$0xf] }
 0x4a4   :  { %5231 = vmatprep.subr.bf16.mxu0 %v16223_v22  ;;  %v3627_v62 = vrot.slane %v18432_v11, %v18761_v10  ;;  %v3623_v22 = vrot.slane %v18432_v11, %v18762_v46 }
 0x4a5   :  { %5211 = vmatmul.mubr.bf16.vlgmr.msra.gmra.mxu1 %v18410_v43  ;;  %v16230_v43 = vld [vmem:[#allocation12 + $0x7e8] ss:$16 sps:$4 sm:$0xff]  }
 0x4a6   :  { %14698 = vmatpush3.bf16.msra.mxu1 %v16255_v21 }
 0x4a7   :  { %5232 = vmatpush1.bf16.msra.mxu0 %v16221_v20  ;;  %14699 = vmatprep.subr.bf16.mxu1 %v16256_v51 }
 0x4a8   :  { %5233 = vmatprep.subr.bf16.mxu0 %v16226_v17  ;;  %v4955_v17 = vadd.f32 %v4954_v55, %v3623_v22 }
 0x4aa   :  { %14700 = vmatpush3.bf16.msra.mxu1 %v16257_v27 }
 0x4ab   :  { %5234 = vmatpush1.bf16.msra.mxu0 %v16224_v19  ;;  %14701 = vmatprep.subr.bf16.mxu1 %v16258_v40  ;;  %v16279_v40 = vld [vmem:[#allocation15 + $0x98] sm:$0xff]  }
 0x4ac   :  { %5235 = vmatprep.subr.bf16.mxu0 %v16229_v38 }
 0x4ae   :  { %14702 = vmatpush3.bf16.msra.mxu1 %v16259_v42 }
 0x4af   :  { %5236 = vmatpush1.bf16.msra.mxu0 %v16227_v44  ;;  %14703 = vmatprep.subr.bf16.mxu1 %v16260_v26 }
 0x4b0   :  { %5237 = vmatprep.subr.bf16.mxu0 %v16232_v45 }
 0x4b2   :  { %14704 = vmatpush3.bf16.msra.mxu1 %v16261_v49  ;;  %v4997_v59 = vpop.f32.mrf.mxu0 }
 0x4b3   :  { %5238 = vmatpush2.bf16.msra.mxu0 %v16230_v43  ;;  %14705 = vmatprep.subr.bf16.mxu1 %v16262_v63  ;;  %v4998_v44 = vadd.f32 %v4997_v59, %v4955_v17  ;;  %v16280_v63 = vld [vmem:[#allocation15 + $0xd0] sm:$0xff]   ;;  %v5681_v59 = vld [vmem:[#allocation16 + $0x180] sm:$0xff] }
 0x4b4   :  { %5239 = vmatprep.subr.bf16.mxu0 %v16235_v47  ;;  %v4999_v0 = vpop.f32.mrf.mxu0  ;;  %v5669_v17 = vld [vmem:[#allocation16 + $0x120] sm:$0xff] }
 0x4b6   :  { %14706 = vmatpush3.bf16.msra.mxu1 %v16263_v56  ;;  %v5001_v21 = vpop.f32.mrf.mxu0 }
 0x4b7   :  { %5240 = vmatpush2.bf16.msra.mxu0 %v16233_v6  ;;  %14707 = vmatprep.subr.bf16.mxu1 %v16264_v1  ;;  %v16281_v1 = vld [vmem:[#allocation15 + $0x90] sm:$0xff]  }
 0x4b8   :  { %5241 = vmatprep.subr.bf16.mxu0 %v16238_v61  ;;  %v5003_v27 = vpop.f32.mrf.mxu0 }
 0x4ba   :  { %14708 = vmatpush3.bf16.msra.mxu1 %v16265_v24 }
 0x4bb   :  { %5242 = vmatpush2.bf16.msra.mxu0 %v16236_v31  ;;  %14709 = vmatprep.subr.bf16.mxu1 %v16266_v58 }
 0x4bc   :  { %5243 = vmatprep.subr.bf16.mxu0 %v16241_v2 }
 0x4be   :  { %14710 = vmatpush3.bf16.msra.mxu1 %v16267_v13 }
 0x4bf   :  { %5244 = vmatpush2.bf16.msra.mxu0 %v16239_v39  ;;  %14711 = vmatprep.subr.bf16.mxu1 %v16268_v12  ;;  %v16282_v12 = vld [vmem:[#allocation15 + $0xc8] sm:$0xff]  }
 0x4c0   :  { %5245 = vmatprep.subr.bf16.mxu0 %v16244_v57 }
 0x4c2   :  { %14712 = vmatpush3.bf16.msra.mxu1 %v16269_v48  ;;  %v16283_v48 = vld [vmem:[#allocation15 + $0x88] sm:$0xff]  }
 0x4c3   :  { %5246 = vmatpush2.bf16.msra.mxu0 %v16242_v60 }
 0x4c4   :  { %5247 = vmatprep.subr.bf16.mxu0 %v16247_v3 }
 0x4c7   :  { %5248 = vmatpush2.bf16.msra.mxu0 %v16245_v54 }
 0x4c8   :  { %5249 = vmatprep.subr.bf16.mxu0 %v16250_v25 }
 0x4cb   :  { %5250 = vmatpush2.bf16.msra.mxu0 %v16248_v23 }
 0x4cc   :  { %5251 = vmatprep.subr.bf16.mxu0 %v16253_v41  ;;  %v16284_v41 = vld [vmem:[#allocation15 + $0xc0] sm:$0xff]  }
 0x4cf   :  { %5252 = vmatpush2.bf16.msra.mxu0 %v16251_v36 }
 0x4d0   :  { %14719 = vmatprep.subr.bf16.mxu0 %v16270_v16  ;;  %v16285_v16 = vld [vmem:[#allocation15 + $0x80] sm:$0xff]  }
 0x4d2   :  { %5254 = vmatmul.mubr.bf16.vlgmr.msra.gmra.mxu0 %v18421_v35  ;;  %v4956_v35 = vpop.f32.mrf.mxu1 }
 0x4d3   :  { %14720 = vmatpush3.bf16.msra.mxu0 %v16271_v9  ;;  %v4957_v51 = vadd.f32 %v4956_v35, %v3627_v62 }
 0x4d4   :  { %14721 = vmatprep.subr.bf16.mxu0 %v16272_v14  ;;  %v4958_v18 = vpop.f32.mrf.mxu1 }
 0x4d5   :  { %v4959_v38 = vadd.f32 %v4958_v18, %v3623_v22  ;;  %v5000_v42 = vadd.f32 %v4999_v0, %v4957_v51  ;;  %v18441_v18 = vld [vmem:[#allocation16 + $0x1e8] sm:$0xff]  ;;  %v5677_v22 = vld [vmem:[#allocation16 + $0x160] sm:$0xff] }
 0x4d6   :  { %v4960_v8 = vpop.f32.mrf.mxu1  ;;  %v5665_v51 = vld [vmem:[#allocation16 + $0x100] sm:$0xff] }
 0x4d7   :  { %14722 = vmatpush3.bf16.msra.mxu0 %v16273_v52  ;;  %v4961_v45 = vadd.f32 %v4960_v8, %v3627_v62  ;;  %v5002_v49 = vadd.f32 %v5001_v21, %v4959_v38  ;;  %v5685_v8 = vld [vmem:[#allocation16 + $0x1a0] sm:$0xff] }
 0x4d8   :  { %14723 = vmatprep.subr.bf16.mxu0 %v16274_v15  ;;  %v13993_v62 = vcombine.high %v5681_v59, %v5685_v8  ;;  %v13992_v21 = vcombine.low %v5681_v59, %v5685_v8  ;;  %v5661_v38 = vld [vmem:[#allocation16 + $0xe0] sm:$0xff] }
 0x4d9   :  { %v5004_v61 = vadd.f32 %v5003_v27, %v4961_v45 }
 0x4db   :  { %14724 = vmatpush3.bf16.msra.mxu0 %v16275_v30 }
 0x4dc   :  { %14725 = vmatprep.subr.bf16.mxu0 %v16276_v33  ;;  %v5689_v33 = vld [vmem:[#allocation16 + $0x1c0] sm:$0xff] }
 0x4df   :  { %14726 = vmatpush3.bf16.msra.mxu0 %v16277_v53  ;;  %v5693_v53 = vld [vmem:[#allocation16 + $0x1e0] sm:$0xff] }
 0x4e0   :  { %14727 = vmatprep.subr.bf16.mxu0 %v16278_v32  ;;  %v18439_v32 = vld [vmem:[#allocation16 + $0x1c8] sm:$0xff]  ;;  %v14000_v55 = vcombine.low %v5689_v33, %v5693_v53  ;;  %v14001_v35 = vcombine.high %v5689_v33, %v5693_v53 }
 0x4e1   :  { %v14003_v0 = vcombine.high %v18439_v32, %v18441_v18 }
 0x4e2   :  { %6059 = vmatprep.subr.bf16.mxu1 %v14001_v35 }
 0x4e3   :  { %14728 = vmatpush3.bf16.msra.mxu0 %v16279_v40  ;;  %v5657_v40 = vld [vmem:[#allocation16 + $0xc0] sm:$0xff] }
 0x4e4   :  { %14729 = vmatprep.subr.bf16.mxu0 %v16280_v63 }
 0x4e5   :  { %v5040_v37 = vpop.f32.mrf.mxu1 }
 0x4e6   :  { %v5041_v47 = vadd.f32 %v5040_v37, %v4998_v44  ;;  %v5673_v37 = vld [vmem:[#allocation16 + $0x140] sm:$0xff]  ;;  %v13969_v44 = vcombine.high %v5657_v40, %v5661_v38 }
 0x4e7   :  { %v5042_v20 = vpop.f32.mrf.mxu1  ;;  %14730 = vmatpush3.bf16.msra.mxu0 %v16281_v1  ;;  %v13984_v27 = vcombine.low %v5673_v37, %v5677_v22  ;;  %v3635_v1 = vrot.slane %v18432_v11, %v17804_v28 }
 0x4e8   :  { %v5043_v43 = vadd.f32 %v5042_v20, %v5000_v42  ;;  %14731 = vmatprep.subr.bf16.mxu0 %v16282_v12  ;;  %v13985_v20 = vcombine.high %v5673_v37, %v5677_v22  ;;  %v13976_v42 = vcombine.low %v5665_v51, %v5669_v17  ;;  %v5682_v37 = vld [vmem:[#allocation16 + $0x188] sm:$0xff] }
 0x4e9   :  { %v5044_v19 = vpop.f32.mrf.mxu1 }
 0x4ea   :  { %v5045_v24 = vadd.f32 %v5044_v19, %v5002_v49  ;;  %v13977_v19 = vcombine.high %v5665_v51, %v5669_v17  ;;  %v14002_v17 = vcombine.low %v18439_v32, %v18441_v18  ;;  %v5662_v32 = vld [vmem:[#allocation16 + $0xe8] sm:$0xff] }
 0x4eb   :  { %v5046_v56 = vpop.f32.mrf.mxu1  ;;  %14732 = vmatpush3.bf16.msra.mxu0 %v16283_v48 }
 0x4ec   :  { %v5047_v13 = vadd.f32 %v5046_v56, %v5004_v61  ;;  %14733 = vmatprep.subr.bf16.mxu0 %v16284_v41  ;;  %v3631_v61 = vrot.slane %v18432_v11, %v18763_v7 }
 0x4ef   :  { %14734 = vmatpush3.bf16.msra.mxu0 %v16285_v16 }
 0x4f0   :  { %6102 = vmatprep.subr.bf16.mxu0 %v14003_v0 }
 0x512   :  { %v5083_v26 = vpop.f32.mrf.mxu0 }
 0x513   :  { %v5084_v58 = vadd.f32 %v5083_v26, %v5041_v47  ;;  %v13968_v26 = vcombine.low %v5657_v40, %v5661_v38  ;;  %v5674_v40 = vld [vmem:[#allocation16 + $0x148] sm:$0xff] }
 0x514   :  { %v5085_v6 = vpop.f32.mrf.mxu0  ;;  %v5678_v38 = vld [vmem:[#allocation16 + $0x168] sm:$0xff] }
 0x515   :  { %v5086_v31 = vadd.f32 %v5085_v6, %v5043_v43  ;;  %v5272_v25 = vmul.f32 0.1, %v5084_v58  ;;  %vm5264_vm10 = vcmp.ge.f32.partialorder %v5084_v58, 0.0 }
 0x516   :  { %v5087_v2 = vpop.f32.mrf.mxu0 }
 0x517   :  { %v5088_v39 = vadd.f32 %v5087_v2, %v5045_v24  ;;  %v5273_v60 = vmul.f32 0.1, %v5086_v31  ;;  %vm5265_vm9 = vcmp.ge.f32.partialorder %v5086_v31, 0.0  ;;  %v5280_v52 = vsel %vm5264_vm10, %v5084_v58, %v5272_v25 }
 0x518   :  { %v5089_v57 = vpop.f32.mrf.mxu0 }
 0x519   :  { %vm5268_vm8 = vcmp.ge.f32.partialorder %v5088_v39, 0.0  ;;  %v5276_v3 = vmul.f32 0.1, %v5088_v39  ;;  %v5090_v54 = vadd.f32 %v5089_v57, %v5047_v13  ;;  %v5281_v9 = vsel %vm5265_vm9, %v5086_v31, %v5273_v60 }
 0x51b   :  { %vm5269_vm11 = vcmp.ge.f32.partialorder %v5090_v54, 0.0  ;;  %v5277_v23 = vmul.f32 0.1, %v5090_v54  ;;  %v5284_v36 = vsel %vm5268_vm8, %v5088_v39, %v5276_v3 }
 0x51c   :  { %v5288_v30 = vpack.c.bf16 %v5284_v36, %v5280_v52 }
 0x51d   :  { %v5285_v14 = vsel %vm5269_vm11, %v5090_v54, %v5277_v23 }
 0x51e   :  { %v5289_v15 = vpack.c.bf16 %v5285_v14, %v5281_v9 }
 0x520   :  { %5580 = vmatprep.mubr.bf16.mxu1 %v5289_v15 }
 0x521   :  { %5581 = vmatmul.mubr.bf16.vlgmr.msra.gmra.mxu1 %v5288_v30 }
 0x522   :  { %6091 = vmatprep.mubr.bf16.mxu1 %v18756_v50  ;;  %6060 = vmatpush1.bf16.msra.mxu1 %v14000_v55 }
 0x523   :  { %6061 = vmatprep.subr.bf16.mxu1 %v13993_v62  ;;  %v5686_v62 = vld [vmem:[#allocation16 + $0x1a8] sm:$0xff] }
 0x525   :  { %v5126_v45 = vpop.f32.mrf.mxu1 }
 0x526   :  { %6062 = vmatpush1.bf16.msra.mxu1 %v13992_v21  ;;  %v5127_v2 = vadd.f32 %v5126_v45, %v3631_v61  ;;  %v5670_v45 = vld [vmem:[#allocation16 + $0x128] sm:$0xff] }
 0x527   :  { %6063 = vmatprep.subr.bf16.mxu1 %v13985_v20  ;;  %v5128_v49 = vpop.f32.mrf.mxu1 }
 0x528   :  { %v5129_v58 = vadd.f32 %v5128_v49, %v3635_v1  ;;  %v13986_v49 = vcombine.low %v5674_v40, %v5678_v38 }
 0x529   :  { %v5130_v43 = vpop.f32.mrf.mxu1 }
 0x52a   :  { %6064 = vmatpush1.bf16.msra.mxu1 %v13984_v27  ;;  %v5131_v12 = vadd.f32 %v5130_v43, %v3631_v61  ;;  %v5650_v61 = vld [vmem:[#allocation16 + $0x88] sm:$0xff] }
 0x52b   :  { %6065 = vmatprep.subr.bf16.mxu1 %v13977_v19  ;;  %v5132_v47 = vpop.f32.mrf.mxu1  ;;  %v13995_v19 = vcombine.high %v5682_v37, %v5686_v62 }
 0x52c   :  { %v5133_v3 = vadd.f32 %v5132_v47, %v3635_v1  ;;  %v5653_v1 = vld [vmem:[#allocation16 + $0xa0] sm:$0xff] }
 0x52e   :  { %6066 = vmatpush1.bf16.msra.mxu1 %v13976_v42  ;;  %v13994_v42 = vcombine.low %v5682_v37, %v5686_v62 }
 0x52f   :  { %6067 = vmatprep.subr.bf16.mxu1 %v13969_v44  ;;  %v13987_v44 = vcombine.high %v5674_v40, %v5678_v38 }
 0x532   :  { %6068 = vmatpush1.bf16.msra.mxu1 %v13968_v26  ;;  %v5666_v26 = vld [vmem:[#allocation16 + $0x108] sm:$0xff] }
 0x533   :  { %v13979_v43 = vcombine.high %v5666_v26, %v5670_v45  ;;  %v13978_v18 = vcombine.low %v5666_v26, %v5670_v45  ;;  %v5687_v26 = vld [vmem:[#allocation16 + $0x1b0] sm:$0xff]  ;;  %v5684_v45 = vld [vmem:[#allocation16 + $0x198] sm:$0xff] }
 0x552   :  { %v5169_v63 = vpop.f32.mrf.mxu0 }
 0x553   :  { %v5170_v48 = vadd.f32 %v5169_v63, %v5127_v2  ;;  %v5658_v63 = vld [vmem:[#allocation16 + $0xc8] sm:$0xff] }
 0x554   :  { %v5171_v56 = vpop.f32.mrf.mxu0  ;;  %v13971_v47 = vcombine.high %v5658_v63, %v5662_v32 }
 0x555   :  { %v5172_v57 = vadd.f32 %v5171_v56, %v5129_v58  ;;  %v13970_v56 = vcombine.low %v5658_v63, %v5662_v32 }
 0x556   :  { %v5173_v24 = vpop.f32.mrf.mxu0 }
 0x557   :  { %v5174_v54 = vadd.f32 %v5173_v24, %v5131_v12  ;;  %v5645_v12 = vld [vmem:[#allocation16 + $0x60] sm:$0xff] }
 0x558   :  { %v5175_v13 = vpop.f32.mrf.mxu0 }
 0x559   :  { %v5176_v16 = vadd.f32 %v5175_v13, %v5133_v3 }
 0x565   :  { %v5212_v6 = vpop.f32.mrf.mxu1 }
 0x566   :  { %v5213_v23 = vadd.f32 %v5212_v6, %v5170_v48  ;;  %v5649_v6 = vld [vmem:[#allocation16 + $0x80] sm:$0xff] }
 0x567   :  { %v5214_v31 = vpop.f32.mrf.mxu1  ;;  %v13961_v24 = vcombine.high %v5649_v6, %v5653_v1  ;;  %v13960_v58 = vcombine.low %v5649_v6, %v5653_v1  ;;  %v5676_v6 = vld [vmem:[#allocation16 + $0x158] sm:$0xff] }
 0x568   :  { %v5215_v25 = vadd.f32 %v5214_v31, %v5172_v57  ;;  %v5654_v31 = vld [vmem:[#allocation16 + $0xa8] sm:$0xff]  ;;  %v5680_v1 = vld [vmem:[#allocation16 + $0x178] sm:$0xff] }
 0x569   :  { %v5216_v39 = vpop.f32.mrf.mxu1  ;;  %v13962_v2 = vcombine.low %v5650_v61, %v5654_v31  ;;  %v13963_v13 = vcombine.high %v5650_v61, %v5654_v31  ;;  %6069 = vmatprep.subr.bf16.mxu1 %v13961_v24  ;;  %v5642_v57 = vld [vmem:[#allocation16 + $0x48] sm:$0xff] }
 0x56a   :  { %v5217_v9 = vadd.f32 %v5216_v39, %v5174_v54  ;;  %6070 = vmatpush1.bf16.msra.mxu1 %v13960_v58  ;;  %v5641_v39 = vld [vmem:[#allocation16 + $0x40] sm:$0xff]  ;;  %v13991_v58 = vcombine.high %v5676_v6, %v5680_v1 }
 0x56b   :  { %v5218_v41 = vpop.f32.mrf.mxu1  ;;  %v13953_v48 = vcombine.high %v5641_v39, %v5645_v12  ;;  %v13952_v3 = vcombine.low %v5641_v39, %v5645_v12  ;;  %v5668_v39 = vld [vmem:[#allocation16 + $0x118] sm:$0xff] }
 0x56c   :  { %v5219_v15 = vadd.f32 %v5218_v41, %v5176_v16  ;;  %v5637_v41 = vld [vmem:[#allocation16 + $0x20] sm:$0xff]  ;;  %v5672_v12 = vld [vmem:[#allocation16 + $0x138] sm:$0xff] }
 0x56d   :  { %6071 = vmatprep.subr.bf16.mxu1 %v13953_v48  ;;  %v13990_v48 = vcombine.low %v5676_v6, %v5680_v1  ;;  %v16293_v6 = vld [vmem:[#allocation19 + $0xb0] sm:$0xff]   ;;  %v16294_v1 = vld [vmem:[#allocation19 + $0x68] sm:$0xff]  }
 0x56e   :  { %6072 = vmatpush1.bf16.msra.mxu1 %v13952_v3  ;;  %v13983_v3 = vcombine.high %v5668_v39, %v5672_v12 }
 0x592   :  { %v5255_v60 = vpop.f32.mrf.mxu0 }
 0x593   :  { %v5256_v11 = vadd.f32 %v5255_v60, %v5213_v23  ;;  %v5646_v60 = vld [vmem:[#allocation16 + $0x68] sm:$0xff]  ;;  %v5633_v23 = vld [vmem:[#allocation16] sm:$0xff] }
 0x594   :  { %v5257_v36 = vpop.f32.mrf.mxu0  ;;  %v13954_v54 = vcombine.low %v5642_v57, %v5646_v60  ;;  %v13945_v16 = vcombine.high %v5633_v23, %v5637_v41 }
 0x595   :  { %v5258_v14 = vadd.f32 %v5257_v36, %v5215_v25  ;;  %v5274_v59 = vmul.f32 0.1, %v5256_v11  ;;  %vm5266_vm14 = vcmp.ge.f32.partialorder %v5256_v11, 0.0  ;;  %v13955_v25 = vcombine.high %v5642_v57, %v5646_v60  ;;  %v5634_v36 = vld [vmem:[#allocation16 + $0x8] sm:$0xff] }
 0x596   :  { %v5259_v52 = vpop.f32.mrf.mxu0  ;;  %6073 = vmatprep.subr.bf16.mxu1 %v13945_v16  ;;  %v13982_v16 = vcombine.low %v5668_v39, %v5672_v12  ;;  %v16302_v39 = vld [vmem:[#allocation19 + $0x58] sm:$0xff]  }
 0x597   :  { %v5260_v30 = vadd.f32 %v5259_v52, %v5217_v9  ;;  %v5275_v53 = vmul.f32 0.1, %v5258_v14  ;;  %vm5267_vm13 = vcmp.ge.f32.partialorder %v5258_v14, 0.0  ;;  %v5282_v20 = vsel %vm5266_vm14, %v5256_v11, %v5274_v59  ;;  %v5638_v9 = vld [vmem:[#allocation16 + $0x28] sm:$0xff]  ;;  %v16303_v12 = vld [vmem:[#allocation19 + $0xd8] sm:$0xff]  }
 0x598   :  { %v5261_v33 = vpop.f32.mrf.mxu0  ;;  %v13946_v11 = vcombine.low %v5634_v36, %v5638_v9  ;;  %v13947_v52 = vcombine.high %v5634_v36, %v5638_v9 }
 0x599   :  { %vm5270_vm12 = vcmp.ge.f32.partialorder %v5260_v30, 0.0  ;;  %v5278_v55 = vmul.f32 0.1, %v5260_v30  ;;  %v5262_v35 = vadd.f32 %v5261_v33, %v5219_v15  ;;  %v5283_v22 = vsel %vm5267_vm13, %v5258_v14, %v5275_v53  ;;  %v5691_v15 = vld [vmem:[#allocation16 + $0x1d0] sm:$0xff]  ;;  %v5692_v33 = vld [vmem:[#allocation16 + $0x1d8] sm:$0xff] }
 0x59a   :  { %v13944_v14 = vcombine.low %v5633_v23, %v5637_v41  ;;  %v5660_v23 = vld [vmem:[#allocation16 + $0xd8] sm:$0xff] }
 0x59b   :  { %vm5271_vm15 = vcmp.ge.f32.partialorder %v5262_v35, 0.0  ;;  %v5279_v8 = vmul.f32 0.1, %v5262_v35  ;;  %v5286_v0 = vsel %vm5270_vm12, %v5260_v30, %v5278_v55  ;;  %v5695_v30 = vld [vmem:[#allocation16 + $0x1f0] sm:$0xff]  ;;  %v5696_v55 = vld [vmem:[#allocation16 + $0x1f8] sm:$0xff] }
 0x59c   :  { %v5290_v27 = vpack.c.bf16 %v5286_v0, %v5282_v20  ;;  %6074 = vmatpush1.bf16.msra.mxu1 %v13944_v14  ;;  %v14005_v53 = vcombine.high %v5691_v15, %v5695_v30  ;;  %v14006_v59 = vcombine.low %v5692_v33, %v5696_v55  ;;  %v5664_v41 = vld [vmem:[#allocation16 + $0xf8] sm:$0xff]  ;;  %v5651_v14 = vld [vmem:[#allocation16 + $0x90] sm:$0xff] }
 0x59d   :  { %v5287_v21 = vsel %vm5271_vm15, %v5262_v35, %v5279_v8  ;;  %v14004_v35 = vcombine.low %v5691_v15, %v5695_v30  ;;  %v14007_v8 = vcombine.high %v5692_v33, %v5696_v55  ;;  %v5656_v15 = vld [vmem:[#allocation16 + $0xb8] sm:$0xff]  ;;  %v13974_v33 = vcombine.low %v5660_v23, %v5664_v41 }
 0x59e   :  { %v5291_v51 = vpack.c.bf16 %v5287_v21, %v5283_v22  ;;  %6145 = vmatprep.subr.bf16.mxu1 %v14005_v53 }
 0x5a0   :  { %5621 = vmatprep.mubr.bf16.mxu0 %v5291_v51 }
 0x5a1   :  { %5622 = vmatmul.mubr.bf16.vlgmr.msra.gmra.mxu0 %v5290_v27 }
 0x5a2   :  { %6103 = vmatpush1.bf16.msra.mxu0 %v14002_v17  ;;  %6134 = vmatprep.mubr.bf16.mxu0 %v18756_v50 }
 0x5a3   :  { %6104 = vmatprep.subr.bf16.mxu0 %v13995_v19 }
 0x5a6   :  { %6105 = vmatpush1.bf16.msra.mxu0 %v13994_v42 }
 0x5a7   :  { %6106 = vmatprep.subr.bf16.mxu0 %v13987_v44  ;;  %v5683_v44 = vld [vmem:[#allocation16 + $0x190] sm:$0xff] }
 0x5a8   :  { %v13997_v32 = vcombine.high %v5683_v44, %v5687_v26  ;;  %v13996_v61 = vcombine.low %v5683_v44, %v5687_v26 }
 0x5aa   :  { %6107 = vmatpush1.bf16.msra.mxu0 %v13986_v49  ;;  %v5688_v49 = vld [vmem:[#allocation16 + $0x1b8] sm:$0xff] }
 0x5ab   :  { %6108 = vmatprep.subr.bf16.mxu0 %v13979_v43  ;;  %v13998_v24 = vcombine.low %v5684_v45, %v5688_v49 }
 0x5ae   :  { %6109 = vmatpush1.bf16.msra.mxu0 %v13978_v18  ;;  %v13999_v18 = vcombine.high %v5684_v45, %v5688_v49  ;;  %v16286_v45 = vld [vmem:[#allocation19 + $0x78] sm:$0xff]  }
 0x5af   :  { %6110 = vmatprep.subr.bf16.mxu0 %v13971_v47  ;;  %v5675_v47 = vld [vmem:[#allocation16 + $0x150] sm:$0xff]  ;;  %v16287_v49 = vld [vmem:[#allocation19 + $0xf8] sm:$0xff]  }
 0x5b2   :  { %6111 = vmatpush1.bf16.msra.mxu0 %v13970_v56  ;;  %v5679_v56 = vld [vmem:[#allocation16 + $0x170] sm:$0xff] }
 0x5b3   :  { %6112 = vmatprep.subr.bf16.mxu0 %v13963_v13  ;;  %v13989_v31 = vcombine.high %v5675_v47, %v5679_v56  ;;  %v5671_v13 = vld [vmem:[#allocation16 + $0x130] sm:$0xff]  ;;  %v13988_v57 = vcombine.low %v5675_v47, %v5679_v56  ;;  %v16291_v47 = vld [vmem:[#allocation19 + $0xf0] sm:$0xff]  }
 0x5b4   :  { %v16292_v56 = vld [vmem:[#allocation19 + $0x30] sm:$0xff]  }
 0x5b6   :  { %6113 = vmatpush1.bf16.msra.mxu0 %v13962_v2  ;;  %v5667_v2 = vld [vmem:[#allocation16 + $0x110] sm:$0xff] }
 0x5b7   :  { %6114 = vmatprep.subr.bf16.mxu0 %v13955_v25  ;;  %v13981_v60 = vcombine.high %v5667_v2, %v5671_v13  ;;  %v5663_v25 = vld [vmem:[#allocation16 + $0xf0] sm:$0xff]  ;;  %v13980_v36 = vcombine.low %v5667_v2, %v5671_v13  ;;  %v16299_v2 = vld [vmem:[#allocation19 + $0xe0] sm:$0xff]  }
 0x5b8   :  { %v16300_v13 = vld [vmem:[#allocation19 + $0x20] sm:$0xff]  }
 0x5ba   :  { %6115 = vmatpush1.bf16.msra.mxu0 %v13954_v54  ;;  %v5659_v54 = vld [vmem:[#allocation16 + $0xd0] sm:$0xff] }
 0x5bb   :  { %6116 = vmatprep.subr.bf16.mxu0 %v13947_v52  ;;  %v13973_v9 = vcombine.high %v5659_v54, %v5663_v25  ;;  %v5652_v52 = vld [vmem:[#allocation16 + $0x98] sm:$0xff]  ;;  %v13972_v30 = vcombine.low %v5659_v54, %v5663_v25 }
 0x5bc   :  { %v13967_v55 = vcombine.high %v5652_v52, %v5656_v15  ;;  %v16308_v54 = vld [vmem:[#allocation19 + $0x10] sm:$0xff]  }
 0x5bd   :  { %v16309_v25 = vld [vmem:[#allocation19 + $0x90] sm:$0xff]  }
 0x5be   :  { %6117 = vmatpush1.bf16.msra.mxu0 %v13946_v11  ;;  %v5655_v11 = vld [vmem:[#allocation16 + $0xb0] sm:$0xff] }
 0x5bf   :  { %6188 = vmatprep.subr.bf16.mxu0 %v14007_v8  ;;  %v13965_v53 = vcombine.high %v5651_v14, %v5655_v11  ;;  %v5644_v8 = vld [vmem:[#allocation16 + $0x58] sm:$0xff] }
 0x5e1   :  { %v14713_v0 = vpop.f32.mrf.mxu1 }
 0x5e3   :  { %v14714_v37 = vpop.f32.mrf.mxu1 }
 0x5e4   :  { %v14715_v20 = vadd.f32 %v14714_v37, %v14713_v0  ;;  %v5648_v0 = vld [vmem:[#allocation16 + $0x78] sm:$0xff]  ;;  %v13964_v37 = vcombine.low %v5651_v14, %v5655_v11  ;;  %v16316_v14 = vld [vmem:[#allocation19] sm:$0xff]  }
 0x5e5   :  { %v14716_v62 = vpop.f32.mrf.mxu1  ;;  %v16317_v11 = vld [vmem:[#allocation19 + $0x80] sm:$0xff]  }
 0x5e7   :  { %v14717_v17 = vpop.f32.mrf.mxu1 }
 0x5e8   :  { %v14718_v38 = vadd.f32 %v14717_v17, %v14716_v62  ;;  %v13966_v62 = vcombine.low %v5652_v52, %v5656_v15  ;;  %v5636_v17 = vld [vmem:[#allocation16 + $0x18] sm:$0xff]  ;;  %v16318_v52 = vld [vmem:[#allocation19 + $0x178] sm:$0xff]  }
 0x5e9   :  { %v16319_v15 = vld [vmem:[#allocation19 + $0x1f8] sm:$0xff]  }
 0x661   :  { %v14735_v22 = vpop.f32.mrf.mxu0 }
 0x663   :  { %v14736_v21 = vpop.f32.mrf.mxu0 }
 0x664   :  { %v14737_v51 = vadd.f32 %v14736_v21, %v14735_v22  ;;  %v13959_v21 = vcombine.high %v5644_v8, %v5648_v0 }
 0x665   :  { %v14738_v27 = vpop.f32.mrf.mxu0 }
 0x666   :  { %v5624_v19 = vadd.f32 %v14737_v51, %v14715_v20  ;;  %v5635_v20 = vld [vmem:[#allocation16 + $0x10] sm:$0xff] }
 0x667   :  { %v14739_v40 = vpop.f32.mrf.mxu0  ;;  %v5639_v51 = vld [vmem:[#allocation16 + $0x30] sm:$0xff] }
 0x668   :  { %5630 = vst [vmem:[%s18724_s19] sm:$0xff] %v5624_v19  ;;  %v14740_v42 = vadd.f32 %v14739_v40, %v14738_v27  ;;  %v5640_v27 = vld [vmem:[#allocation16 + $0x38] sm:$0xff]  ;;  %v13958_v40 = vcombine.low %v5644_v8, %v5648_v0  ;;  %v13948_v44 = vcombine.low %v5635_v20, %v5639_v51 }
 0x669   :  { %v13950_v26 = vcombine.low %v5636_v17, %v5640_v27 }
 0x66a   :  { %v5627_v43 = vadd.f32 %v14740_v42, %v14718_v38  ;;  %v13949_v38 = vcombine.high %v5635_v20, %v5639_v51  ;;  %v13951_v42 = vcombine.high %v5636_v17, %v5640_v27 }
 0x66c   :  { %5631 = vst [vmem:[%s18724_s19 + $0x8] sm:$0xff] %v5627_v43  ;;  %v18458_v63 = vpack.c.bf16 %v5627_v43, %v5624_v19  ;;  %v16288_v43 = vld [vmem:[#allocation19 + $0x38] sm:$0xff]  }
 0x66e   :  { %6092 = vmatmul.mubr.bf16.vlgmr.msra.gmra.mxu1 %v18458_v63  ;;  %6135 = vmatmul.mubr.bf16.vlgmr.msra.gmra.mxu0 %v18458_v63 }
 0x66f   :  { %6146 = vmatpush1.bf16.msra.mxu1 %v14004_v35  ;;  %6189 = vmatpush1.bf16.msra.mxu0 %v14006_v59  ;;  %v5643_v35 = vld [vmem:[#allocation16 + $0x50] sm:$0xff] }
 0x670   :  { %6147 = vmatprep.subr.bf16.mxu1 %v13997_v32  ;;  %6190 = vmatprep.subr.bf16.mxu0 %v13999_v18  ;;  %v5647_v59 = vld [vmem:[#allocation16 + $0x70] sm:$0xff]  ;;  %v16289_v32 = vld [vmem:[#allocation19 + $0xb8] sm:$0xff]   ;;  %v16290_v18 = vld [vmem:[#allocation19 + $0x70] sm:$0xff]  }
 0x671   :  { %6177 = vmatprep.mubr.bf16.mxu1 %v18756_v50  ;;  %6220 = vmatprep.mubr.bf16.mxu0 %v18756_v50  ;;  %v13975_v50 = vcombine.high %v5660_v23, %v5664_v41  ;;  %v13957_v22 = vcombine.high %v5643_v35, %v5647_v59  ;;  %v13956_v19 = vcombine.low %v5643_v35, %v5647_v59  ;;  %v16310_v23 = vld [vmem:[#allocation19 + $0x48] sm:$0xff]  }
 0x672   :  { %v16311_v41 = vld [vmem:[#allocation19 + $0xc8] sm:$0xff]  }
 0x673   :  { %6148 = vmatpush1.bf16.msra.mxu1 %v13996_v61  ;;  %6191 = vmatpush1.bf16.msra.mxu0 %v13998_v24  ;;  %v16295_v61 = vld [vmem:[#allocation19 + $0xe8] sm:$0xff]  }
 0x674   :  { %6149 = vmatprep.subr.bf16.mxu1 %v13989_v31  ;;  %6192 = vmatprep.subr.bf16.mxu0 %v13991_v58  ;;  %v16296_v24 = vld [vmem:[#allocation19 + $0x28] sm:$0xff]   ;;  %v16298_v58 = vld [vmem:[#allocation19 + $0x60] sm:$0xff]  }
 0x675   :  { %v16297_v31 = vld [vmem:[#allocation19 + $0xa8] sm:$0xff]  }
 0x677   :  { %6150 = vmatpush1.bf16.msra.mxu1 %v13988_v57  ;;  %6193 = vmatpush1.bf16.msra.mxu0 %v13990_v48  ;;  %v16304_v57 = vld [vmem:[#allocation19 + $0x18] sm:$0xff]  }
 0x678   :  { %6151 = vmatprep.subr.bf16.mxu1 %v13981_v60  ;;  %6194 = vmatprep.subr.bf16.mxu0 %v13983_v3  ;;  %v16305_v48 = vld [vmem:[#allocation19 + $0x98] sm:$0xff]   ;;  %v16306_v60 = vld [vmem:[#allocation19 + $0x50] sm:$0xff]  }
 0x679   :  { %v16307_v3 = vld [vmem:[#allocation19 + $0xd0] sm:$0xff]  }
 0x67b   :  { %6152 = vmatpush1.bf16.msra.mxu1 %v13980_v36  ;;  %6195 = vmatpush1.bf16.msra.mxu0 %v13982_v16  ;;  %v16312_v36 = vld [vmem:[#allocation19 + $0x8] sm:$0xff]  }
 0x67c   :  { %6153 = vmatprep.subr.bf16.mxu1 %v13973_v9  ;;  %6196 = vmatprep.subr.bf16.mxu0 %v13975_v50  ;;  %v16313_v16 = vld [vmem:[#allocation19 + $0x88] sm:$0xff]   ;;  %v16314_v9 = vld [vmem:[#allocation19 + $0x40] sm:$0xff]  }
 0x67d   :  { %v16315_v50 = vld [vmem:[#allocation19 + $0xc0] sm:$0xff]  }
 0x67f   :  { %6154 = vmatpush1.bf16.msra.mxu1 %v13972_v30  ;;  %6197 = vmatpush1.bf16.msra.mxu0 %v13974_v33  ;;  %v18466_v30 = vld [vmem:[#allocation18] sm:$0xff] }
 0x680   :  { %6155 = vmatprep.subr.bf16.mxu1 %v13965_v53  ;;  %6198 = vmatprep.subr.bf16.mxu0 %v13967_v55  ;;  %v5702_v33 = vrot.slane %v18466_v30, %v18762_v46  ;;  %v5706_v35 = vrot.slane %v18466_v30, %v18761_v10  ;;  %v5714_v59 = vrot.slane %v18466_v30, %v17804_v28 }
 0x681   :  { %v5710_v8 = vrot.slane %v18466_v30, %v18763_v7 }
 0x683   :  { %6156 = vmatpush1.bf16.msra.mxu1 %v13964_v37  ;;  %6199 = vmatpush1.bf16.msra.mxu0 %v13966_v62 }
 0x684   :  { %6157 = vmatprep.subr.bf16.mxu1 %v13957_v22  ;;  %6200 = vmatprep.subr.bf16.mxu0 %v13959_v21 }
 0x687   :  { %6158 = vmatpush1.bf16.msra.mxu1 %v13956_v19  ;;  %6201 = vmatpush1.bf16.msra.mxu0 %v13958_v40 }
 0x688   :  { %6159 = vmatprep.subr.bf16.mxu1 %v13949_v38  ;;  %6202 = vmatprep.subr.bf16.mxu0 %v13951_v42 }
 0x68b   :  { %6160 = vmatpush1.bf16.msra.mxu1 %v13948_v44  ;;  %6203 = vmatpush1.bf16.msra.mxu0 %v13950_v26 }
 0x68c   :  { %14741 = vmatprep.subr.bf16.mxu1 %v16286_v45  ;;  %14763 = vmatprep.subr.bf16.mxu0 %v16287_v49 }
 0x68e   :  { %6178 = vmatmul.mubr.bf16.vlgmr.msra.gmra.mxu1 %v18458_v63  ;;  %6221 = vmatmul.mubr.bf16.vlgmr.msra.gmra.mxu0 %v18458_v63  ;;  %v16301_v63 = vld [vmem:[#allocation19 + $0xa0] sm:$0xff]  }
 0x68f   :  { %14742 = vmatpush3.bf16.msra.mxu1 %v16288_v43  ;;  %14764 = vmatpush3.bf16.msra.mxu0 %v16289_v32 }
 0x690   :  { %14743 = vmatprep.subr.bf16.mxu1 %v16290_v18  ;;  %14765 = vmatprep.subr.bf16.mxu0 %v16291_v47 }
 0x693   :  { %14744 = vmatpush3.bf16.msra.mxu1 %v16292_v56  ;;  %14766 = vmatpush3.bf16.msra.mxu0 %v16293_v6 }
 0x694   :  { %14745 = vmatprep.subr.bf16.mxu1 %v16294_v1  ;;  %14767 = vmatprep.subr.bf16.mxu0 %v16295_v61 }
 0x697   :  { %14746 = vmatpush3.bf16.msra.mxu1 %v16296_v24  ;;  %14768 = vmatpush3.bf16.msra.mxu0 %v16297_v31 }
 0x698   :  { %14747 = vmatprep.subr.bf16.mxu1 %v16298_v58  ;;  %14769 = vmatprep.subr.bf16.mxu0 %v16299_v2 }
 0x69b   :  { %14748 = vmatpush3.bf16.msra.mxu1 %v16300_v13  ;;  %14770 = vmatpush3.bf16.msra.mxu0 %v16301_v63  ;;  %v16320_v63 = vld [vmem:[#allocation19 + $0x138] sm:$0xff]  }
 0x69c   :  { %14749 = vmatprep.subr.bf16.mxu1 %v16302_v39  ;;  %14771 = vmatprep.subr.bf16.mxu0 %v16303_v12 }
 0x69f   :  { %14750 = vmatpush3.bf16.msra.mxu1 %v16304_v57  ;;  %14772 = vmatpush3.bf16.msra.mxu0 %v16305_v48  ;;  %v16321_v48 = vld [vmem:[#allocation19 + $0x1b8] sm:$0xff]  }
 0x6a0   :  { %14751 = vmatprep.subr.bf16.mxu1 %v16306_v60  ;;  %14773 = vmatprep.subr.bf16.mxu0 %v16307_v3  ;;  %v16322_v3 = vld [vmem:[#allocation19 + $0x170] sm:$0xff]  }
 0x6a3   :  { %14752 = vmatpush3.bf16.msra.mxu1 %v16308_v54  ;;  %14774 = vmatpush3.bf16.msra.mxu0 %v16309_v25  ;;  %v16323_v54 = vld [vmem:[#allocation19 + $0x1f0] sm:$0xff]  }
 0x6a4   :  { %14753 = vmatprep.subr.bf16.mxu1 %v16310_v23  ;;  %14775 = vmatprep.subr.bf16.mxu0 %v16311_v41  ;;  %v16324_v25 = vld [vmem:[#allocation19 + $0x130] sm:$0xff]   ;;  %v16326_v41 = vld [vmem:[#allocation19 + $0x168] sm:$0xff]  }
 0x6a5   :  { %v16325_v23 = vld [vmem:[#allocation19 + $0x1b0] sm:$0xff]  }
 0x6a7   :  { %14754 = vmatpush3.bf16.msra.mxu1 %v16312_v36  ;;  %14776 = vmatpush3.bf16.msra.mxu0 %v16313_v16  ;;  %v16327_v36 = vld [vmem:[#allocation19 + $0x1e8] sm:$0xff]  }
 0x6a8   :  { %14755 = vmatprep.subr.bf16.mxu1 %v16314_v9  ;;  %14777 = vmatprep.subr.bf16.mxu0 %v16315_v50  ;;  %v16328_v16 = vld [vmem:[#allocation19 + $0x128] sm:$0xff]   ;;  %v16330_v50 = vld [vmem:[#allocation19 + $0x160] sm:$0xff]  }
 0x6a9   :  { %v16329_v9 = vld [vmem:[#allocation19 + $0x1a8] sm:$0xff]  }
 0x6ab   :  { %14756 = vmatpush3.bf16.msra.mxu1 %v16316_v14  ;;  %14778 = vmatpush3.bf16.msra.mxu0 %v16317_v11  ;;  %v16331_v14 = vld [vmem:[#allocation19 + $0x1e0] sm:$0xff]  }
 0x6ac   :  { %14785 = vmatprep.subr.bf16.mxu1 %v16318_v52  ;;  %14807 = vmatprep.subr.bf16.mxu0 %v16319_v15  ;;  %v16332_v11 = vld [vmem:[#allocation19 + $0x120] sm:$0xff]   ;;  %v16334_v15 = vld [vmem:[#allocation19 + $0x158] sm:$0xff]  }
 0x6ad   :  { %v16333_v52 = vld [vmem:[#allocation19 + $0x1a0] sm:$0xff]  }
 0x72e   :  { %v6093_v53 = vpop.f32.mrf.mxu1  ;;  %v6136_v55 = vpop.f32.mrf.mxu0 }
 0x72f   :  { %v6094_v62 = vadd.f32 %v6093_v53, %v5702_v33  ;;  %v6137_v19 = vadd.f32 %v6136_v55, %v5710_v8  ;;  %v16336_v53 = vld [vmem:[#allocation19 + $0x118] sm:$0xff]  }
 0x730   :  { %v6095_v0 = vpop.f32.mrf.mxu1  ;;  %v6138_v37 = vpop.f32.mrf.mxu0  ;;  %v16337_v55 = vld [vmem:[#allocation19 + $0x198] sm:$0xff]  }
 0x731   :  { %v6096_v22 = vadd.f32 %v6095_v0, %v5706_v35  ;;  %v6139_v51 = vadd.f32 %v6138_v37, %v5714_v59  ;;  %vm6231_vm0 = vcmp.ge.f32.partialorder %v6094_v62, 0.0  ;;  %v6247_v43 = vmul.f32 0.1, %v6094_v62  ;;  %v16341_v0 = vld [vmem:[#allocation19 + $0x190] sm:$0xff]   ;;  %v16342_v37 = vld [vmem:[#allocation19 + $0x148] sm:$0xff]  }
 0x732   :  { %v6097_v21 = vpop.f32.mrf.mxu1  ;;  %v6140_v20 = vpop.f32.mrf.mxu0  ;;  %v6249_v18 = vmul.f32 0.1, %v6137_v19  ;;  %vm6233_vm2 = vcmp.ge.f32.partialorder %v6137_v19, 0.0 }
 0x733   :  { %v6098_v17 = vadd.f32 %v6097_v21, %v5702_v33  ;;  %v6141_v27 = vadd.f32 %v6140_v20, %v5710_v8  ;;  %v6248_v42 = vmul.f32 0.1, %v6096_v22  ;;  %vm6232_vm3 = vcmp.ge.f32.partialorder %v6096_v22, 0.0  ;;  %v16335_v33 = vld [vmem:[#allocation19 + $0x1d8] sm:$0xff]   ;;  %v16340_v8 = vld [vmem:[#allocation19 + $0x110] sm:$0xff]   ;;  %v16345_v21 = vld [vmem:[#allocation19 + $0x188] sm:$0xff]  }
 0x734   :  { %v6099_v40 = vpop.f32.mrf.mxu1  ;;  %v6142_v38 = vpop.f32.mrf.mxu0  ;;  %v6250_v32 = vmul.f32 0.1, %v6139_v51  ;;  %vm6234_vm5 = vcmp.ge.f32.partialorder %v6139_v51, 0.0  ;;  %v6263_v31 = vsel %vm6231_vm0, %v6094_v62, %v6247_v43  ;;  %v6265_v39 = vsel %vm6233_vm2, %v6137_v19, %v6249_v18  ;;  %v16343_v62 = vld [vmem:[#allocation19 + $0x1c8] sm:$0xff]   ;;  %v16346_v20 = vld [vmem:[#allocation19 + $0x140] sm:$0xff]   ;;  %v16350_v19 = vld [vmem:[#allocation19 + $0x278] sm:$0xff]  }
 0x735   :  { %v6255_v44 = vmul.f32 0.1, %v6098_v17  ;;  %vm6239_vm1 = vcmp.ge.f32.partialorder %v6098_v17, 0.0  ;;  %v6257_v26 = vmul.f32 0.1, %v6141_v27  ;;  %v6100_v45 = vadd.f32 %v6099_v40, %v5706_v35  ;;  %v16338_v35 = vld [vmem:[#allocation19 + $0x150] sm:$0xff]  }
 0x736   :  { %v6143_v49 = vadd.f32 %v6142_v38, %v5714_v59  ;;  %vm6241_vm4 = vcmp.ge.f32.partialorder %v6141_v27, 0.0  ;;  %v6264_v1 = vsel %vm6232_vm3, %v6096_v22, %v6248_v42  ;;  %v6266_v58 = vsel %vm6234_vm5, %v6139_v51, %v6250_v32  ;;  %v16339_v59 = vld [vmem:[#allocation19 + $0x1d0] sm:$0xff]   ;;  %v16344_v22 = vld [vmem:[#allocation19 + $0x108] sm:$0xff]   ;;  %v16347_v51 = vld [vmem:[#allocation19 + $0x1c0] sm:$0xff]  }
 0x737   :  { %vm6240_vm6 = vcmp.ge.f32.partialorder %v6100_v45, 0.0  ;;  %v6256_v47 = vmul.f32 0.1, %v6100_v45  ;;  %v6271_v56 = vsel %vm6239_vm1, %v6098_v17, %v6255_v44  ;;  %v6273_v61 = vsel %vm6241_vm4, %v6141_v27, %v6257_v26  ;;  %v16348_v17 = vld [vmem:[#allocation19 + $0x100] sm:$0xff]   ;;  %v16351_v40 = vld [vmem:[#allocation19 + $0x2f8] sm:$0xff]   ;;  %v16354_v44 = vld [vmem:[#allocation19 + $0x270] sm:$0xff]  }
 0x738   :  { %vm6242_vm7 = vcmp.ge.f32.partialorder %v6143_v49, 0.0  ;;  %v6258_v6 = vmul.f32 0.1, %v6143_v49  ;;  %v18479_v12 = vpack.c.bf16 %v6271_v56, %v6263_v31  ;;  %v18483_v60 = vpack.c.bf16 %v6273_v61, %v6265_v39  ;;  %v16349_v27 = vld [vmem:[#allocation19 + $0x180] sm:$0xff]   ;;  %v16352_v38 = vld [vmem:[#allocation19 + $0x238] sm:$0xff]   ;;  %v16355_v26 = vld [vmem:[#allocation19 + $0x2f0] sm:$0xff]  }
 0x739   :  { %v6272_v24 = vsel %vm6240_vm6, %v6100_v45, %v6256_v47  ;;  %v16353_v42 = vld [vmem:[#allocation19 + $0x2b8] sm:$0xff]   ;;  %v16356_v45 = vld [vmem:[#allocation19 + $0x230] sm:$0xff]   ;;  %v16358_v43 = vld [vmem:[#allocation19 + $0x268] sm:$0xff]  }
 0x73a   :  { %v18477_v2 = vpack.c.bf16 %v6272_v24, %v6264_v1  ;;  %v6274_v13 = vsel %vm6242_vm7, %v6143_v49, %v6258_v6  ;;  %v16357_v49 = vld [vmem:[#allocation19 + $0x2b0] sm:$0xff]   ;;  %v16359_v32 = vld [vmem:[#allocation19 + $0x2e8] sm:$0xff]   ;;  %v16362_v56 = vld [vmem:[#allocation19 + $0x260] sm:$0xff]  }
 0x73b   :  { %v18481_v57 = vpack.c.bf16 %v6274_v13, %v6266_v58  ;;  %v16360_v18 = vld [vmem:[#allocation19 + $0x228] sm:$0xff]   ;;  %v16363_v6 = vld [vmem:[#allocation19 + $0x2e0] sm:$0xff]   ;;  %v16366_v24 = vld [vmem:[#allocation19 + $0x258] sm:$0xff]  }
 0x73c   :  { %6575 = vmatprep.mubr.bf16.mxu1 %v18477_v2  ;;  %v16361_v47 = vld [vmem:[#allocation19 + $0x2a8] sm:$0xff]   ;;  %v16364_v1 = vld [vmem:[#allocation19 + $0x220] sm:$0xff]   ;;  %v16367_v31 = vld [vmem:[#allocation19 + $0x2d8] sm:$0xff]  }
 0x73d   :  { %6616 = vmatprep.mubr.bf16.mxu0 %v18481_v57  ;;  %6576 = vmatmul.mubr.bf16.vlgmr.msra.gmra.mxu1 %v18479_v12  ;;  %v16365_v61 = vld [vmem:[#allocation19 + $0x2a0] sm:$0xff]   ;;  %v16368_v58 = vld [vmem:[#allocation19 + $0x218] sm:$0xff]   ;;  %v16371_v39 = vld [vmem:[#allocation19 + $0x2d0] sm:$0xff]  }
 0x73e   :  { %6617 = vmatmul.mubr.bf16.vlgmr.msra.gmra.mxu0 %v18483_v60  ;;  %14786 = vmatpush3.bf16.msra.mxu1 %v16320_v63  ;;  %v16369_v13 = vld [vmem:[#allocation19 + $0x298] sm:$0xff]   ;;  %v16370_v63 = vld [vmem:[#allocation19 + $0x250] sm:$0xff]  }
 0x73f   :  { %14808 = vmatpush3.bf16.msra.mxu0 %v16321_v48  ;;  %6914 = vmatprep.mubr.bf16.mxu1 %v18477_v2  ;;  %v16372_v48 = vld [vmem:[#allocation19 + $0x210] sm:$0xff]  }
 0x740   :  { %6955 = vmatprep.mubr.bf16.mxu0 %v18481_v57  ;;  %14787 = vmatprep.subr.bf16.mxu1 %v16322_v3  ;;  %v16373_v3 = vld [vmem:[#allocation19 + $0x290] sm:$0xff]  }
 0x741   :  { %14809 = vmatprep.subr.bf16.mxu0 %v16323_v54  ;;  %v16374_v54 = vld [vmem:[#allocation19 + $0x248] sm:$0xff]  }
 0x742   :  { %14788 = vmatpush3.bf16.msra.mxu1 %v16324_v25  ;;  %v16375_v25 = vld [vmem:[#allocation19 + $0x2c8] sm:$0xff]  }
 0x743   :  { %14810 = vmatpush3.bf16.msra.mxu0 %v16325_v23  ;;  %14789 = vmatprep.subr.bf16.mxu1 %v16326_v41  ;;  %v16376_v23 = vld [vmem:[#allocation19 + $0x208] sm:$0xff]  }
 0x744   :  { %14811 = vmatprep.subr.bf16.mxu0 %v16327_v36  ;;  %v16377_v41 = vld [vmem:[#allocation19 + $0x288] sm:$0xff]   ;;  %v16378_v36 = vld [vmem:[#allocation19 + $0x240] sm:$0xff]  }
 0x746   :  { %14790 = vmatpush3.bf16.msra.mxu1 %v16328_v16  ;;  %v16379_v16 = vld [vmem:[#allocation19 + $0x2c0] sm:$0xff]  }
 0x747   :  { %14812 = vmatpush3.bf16.msra.mxu0 %v16329_v9  ;;  %14791 = vmatprep.subr.bf16.mxu1 %v16330_v50  ;;  %v16380_v9 = vld [vmem:[#allocation19 + $0x200] sm:$0xff]  }
 0x748   :  { %14813 = vmatprep.subr.bf16.mxu0 %v16331_v14  ;;  %v16381_v50 = vld [vmem:[#allocation19 + $0x280] sm:$0xff]   ;;  %v16382_v14 = vld [vmem:[#allocation19 + $0x378] sm:$0xff]  }
 0x74a   :  { %14792 = vmatpush3.bf16.msra.mxu1 %v16332_v11  ;;  %v16383_v11 = vld [vmem:[#allocation19 + $0x3f8] sm:$0xff]  }
 0x74b   :  { %14814 = vmatpush3.bf16.msra.mxu0 %v16333_v52  ;;  %14793 = vmatprep.subr.bf16.mxu1 %v16334_v15  ;;  %v16384_v52 = vld [vmem:[#allocation19 + $0x338] sm:$0xff]  }
 0x74c   :  { %14815 = vmatprep.subr.bf16.mxu0 %v16335_v33  ;;  %v16385_v15 = vld [vmem:[#allocation19 + $0x3b8] sm:$0xff]   ;;  %v16386_v33 = vld [vmem:[#allocation19 + $0x370] sm:$0xff]  }
 0x74e   :  { %14794 = vmatpush3.bf16.msra.mxu1 %v16336_v53  ;;  %v16387_v53 = vld [vmem:[#allocation19 + $0x3f0] sm:$0xff]  }
 0x74f   :  { %14816 = vmatpush3.bf16.msra.mxu0 %v16337_v55  ;;  %14795 = vmatprep.subr.bf16.mxu1 %v16338_v35  ;;  %v16388_v55 = vld [vmem:[#allocation19 + $0x330] sm:$0xff]  }
 0x750   :  { %14817 = vmatprep.subr.bf16.mxu0 %v16339_v59  ;;  %v16389_v35 = vld [vmem:[#allocation19 + $0x3b0] sm:$0xff]   ;;  %v16390_v59 = vld [vmem:[#allocation19 + $0x368] sm:$0xff]  }
 0x752   :  { %14796 = vmatpush3.bf16.msra.mxu1 %v16340_v8  ;;  %v16391_v8 = vld [vmem:[#allocation19 + $0x3e8] sm:$0xff]  }
 0x753   :  { %14818 = vmatpush3.bf16.msra.mxu0 %v16341_v0  ;;  %14797 = vmatprep.subr.bf16.mxu1 %v16342_v37  ;;  %v16392_v0 = vld [vmem:[#allocation19 + $0x328] sm:$0xff]  }
 0x754   :  { %14819 = vmatprep.subr.bf16.mxu0 %v16343_v62  ;;  %v16393_v37 = vld [vmem:[#allocation19 + $0x3a8] sm:$0xff]   ;;  %v16394_v62 = vld [vmem:[#allocation19 + $0x360] sm:$0xff]  }
 0x756   :  { %14798 = vmatpush3.bf16.msra.mxu1 %v16344_v22  ;;  %v18499_v22 = vpop.f32.mrf.mxu1 }
 0x757   :  { %14820 = vmatpush3.bf16.msra.mxu0 %v16345_v21  ;;  %14799 = vmatprep.subr.bf16.mxu1 %v16346_v20  ;;  %v16395_v21 = vld [vmem:[#allocation19 + $0x3e0] sm:$0xff]  }
 0x758   :  { %14821 = vmatprep.subr.bf16.mxu0 %v16347_v51  ;;  %v16397_v20 = vld [vmem:[#allocation19 + $0x3a0] sm:$0xff]   ;;  %v16398_v51 = vld [vmem:[#allocation19 + $0x358] sm:$0xff]  }
 0x75a   :  { %14800 = vmatpush3.bf16.msra.mxu1 %v16348_v17  ;;  %v6181_v17 = vpop.f32.mrf.mxu1 }
 0x75b   :  { %14822 = vmatpush3.bf16.msra.mxu0 %v16349_v27  ;;  %14829 = vmatprep.subr.bf16.mxu1 %v16350_v19  ;;  %v16399_v27 = vld [vmem:[#allocation19 + $0x3d8] sm:$0xff]  }
 0x75c   :  { %14851 = vmatprep.subr.bf16.mxu0 %v16351_v40  ;;  %v16400_v19 = vld [vmem:[#allocation19 + $0x318] sm:$0xff]  }
 0x75d   :  { %6915 = vmatmul.mubr.bf16.vlgmr.msra.gmra.mxu1 %v18479_v12  ;;  %v16401_v40 = vld [vmem:[#allocation19 + $0x398] sm:$0xff]  }
 0x75e   :  { %6956 = vmatmul.mubr.bf16.vlgmr.msra.gmra.mxu0 %v18483_v60  ;;  %14830 = vmatpush3.bf16.msra.mxu1 %v16352_v38  ;;  %v16402_v38 = vld [vmem:[#allocation19 + $0x350] sm:$0xff]  }
 0x75f   :  { %7253 = vmatprep.mubr.bf16.mxu1 %v18477_v2  ;;  %14852 = vmatpush3.bf16.msra.mxu0 %v16353_v42  ;;  %v18501_v42 = vpop.f32.mrf.mxu1 }
 0x760   :  { %7294 = vmatprep.mubr.bf16.mxu0 %v18481_v57  ;;  %14831 = vmatprep.subr.bf16.mxu1 %v16354_v44  ;;  %v16403_v44 = vld [vmem:[#allocation19 + $0x3d0] sm:$0xff]  }
 0x761   :  { %14853 = vmatprep.subr.bf16.mxu0 %v16355_v26  ;;  %v16404_v26 = vld [vmem:[#allocation19 + $0x310] sm:$0xff]  }
 0x762   :  { %14832 = vmatpush3.bf16.msra.mxu1 %v16356_v45  ;;  %v16405_v45 = vld [vmem:[#allocation19 + $0x390] sm:$0xff]  }
 0x763   :  { %14854 = vmatpush3.bf16.msra.mxu0 %v16357_v49  ;;  %14833 = vmatprep.subr.bf16.mxu1 %v16358_v43  ;;  %v16406_v49 = vld [vmem:[#allocation19 + $0x348] sm:$0xff]   ;;  %v6185_v43 = vpop.f32.mrf.mxu1 }
 0x764   :  { %14855 = vmatprep.subr.bf16.mxu0 %v16359_v32  ;;  %v16407_v32 = vld [vmem:[#allocation19 + $0x3c8] sm:$0xff]  }
 0x766   :  { %14834 = vmatpush3.bf16.msra.mxu1 %v16360_v18  ;;  %v5722_v18 = vrot.slane %v18466_v30, %v18759_v34 }
 0x767   :  { %14856 = vmatpush3.bf16.msra.mxu0 %v16361_v47  ;;  %14835 = vmatprep.subr.bf16.mxu1 %v16362_v56  ;;  %v16408_v47 = vld [vmem:[#allocation19 + $0x308] sm:$0xff]  }
 0x768   :  { %14857 = vmatprep.subr.bf16.mxu0 %v16363_v6  ;;  %v6186_v56 = vadd.f32 %v6185_v43, %v5722_v18  ;;  %v16409_v6 = vld [vmem:[#allocation19 + $0x388] sm:$0xff]  }
 0x76a   :  { %14836 = vmatpush3.bf16.msra.mxu1 %v16364_v1  ;;  %v16410_v1 = vld [vmem:[#allocation19 + $0x340] sm:$0xff]   ;;  %vm6244_vm8 = vcmp.ge.f32.partialorder %v6186_v56, 0.0 }
 0x76b   :  { %14858 = vmatpush3.bf16.msra.mxu0 %v16365_v61  ;;  %14837 = vmatprep.subr.bf16.mxu1 %v16366_v24  ;;  %v16411_v61 = vld [vmem:[#allocation19 + $0x3c0] sm:$0xff]   ;;  %v6182_v24 = vadd.f32 %v6181_v17, %v5722_v18  ;;  %v16439_v17 = vld [vmem:[#allocation19 + $0x4c8] sm:$0xff]   ;;  %v16446_v18 = vld [vmem:[#allocation19 + $0x578] sm:$0xff]  }
 0x76c   :  { %14859 = vmatprep.subr.bf16.mxu0 %v16367_v31  ;;  %v16412_v31 = vld [vmem:[#allocation19 + $0x300] sm:$0xff]  }
 0x76d   :  { %vm6236_vm9 = vcmp.ge.f32.partialorder %v6182_v24, 0.0 }
 0x76e   :  { %14838 = vmatpush3.bf16.msra.mxu1 %v16368_v58  ;;  %v6260_v58 = vmul.f32 0.1, %v6186_v56 }
 0x76f   :  { %14860 = vmatpush3.bf16.msra.mxu0 %v16369_v13  ;;  %14839 = vmatprep.subr.bf16.mxu1 %v16370_v63  ;;  %v16413_v13 = vld [vmem:[#allocation19 + $0x380] sm:$0xff]   ;;  %v16414_v63 = vld [vmem:[#allocation19 + $0x478] sm:$0xff]  }
 0x770   :  { %14861 = vmatprep.subr.bf16.mxu0 %v16371_v39  ;;  %v16415_v39 = vld [vmem:[#allocation19 + $0x4f8] sm:$0xff]  }
 0x772   :  { %14840 = vmatpush3.bf16.msra.mxu1 %v16372_v48  ;;  %v6252_v48 = vmul.f32 0.1, %v6182_v24 }
 0x773   :  { %14862 = vmatpush3.bf16.msra.mxu0 %v16373_v3  ;;  %14841 = vmatprep.subr.bf16.mxu1 %v16374_v54  ;;  %v16416_v3 = vld [vmem:[#allocation19 + $0x438] sm:$0xff]   ;;  %v6276_v54 = vsel %vm6244_vm8, %v6186_v56, %v6260_v58  ;;  %v16453_v58 = vld [vmem:[#allocation19 + $0x5b0] sm:$0xff]  }
 0x774   :  { %14863 = vmatprep.subr.bf16.mxu0 %v16375_v25  ;;  %v16417_v25 = vld [vmem:[#allocation19 + $0x4b8] sm:$0xff]  }
 0x776   :  { %14842 = vmatpush3.bf16.msra.mxu1 %v16376_v23  ;;  %v16418_v23 = vld [vmem:[#allocation19 + $0x470] sm:$0xff]  }
 0x777   :  { %14864 = vmatpush3.bf16.msra.mxu0 %v16377_v41  ;;  %14843 = vmatprep.subr.bf16.mxu1 %v16378_v36  ;;  %v6268_v41 = vsel %vm6236_vm9, %v6182_v24, %v6252_v48  ;;  %v16419_v36 = vld [vmem:[#allocation19 + $0x4f0] sm:$0xff]   ;;  %v16457_v48 = vld [vmem:[#allocation19 + $0x5a8] sm:$0xff]  }
 0x778   :  { %14865 = vmatprep.subr.bf16.mxu0 %v16379_v16  ;;  %v18506_v16 = vpack.c.bf16 %v6276_v54, %v6268_v41  ;;  %v16451_v24 = vld [vmem:[#allocation19 + $0x5f0] sm:$0xff]   ;;  %v18521_v54 = vpop.f32.mrf.mxu0  ;;  %v16462_v41 = vld [vmem:[#allocation19 + $0x558] sm:$0xff]  }
 0x77a   :  { %14844 = vmatpush3.bf16.msra.mxu1 %v16380_v9  ;;  %v16420_v9 = vld [vmem:[#allocation19 + $0x430] sm:$0xff]  }
 0x77b   :  { %14866 = vmatpush3.bf16.msra.mxu0 %v16381_v50  ;;  %14873 = vmatprep.subr.bf16.mxu1 %v16382_v14  ;;  %v16421_v50 = vld [vmem:[#allocation19 + $0x4b0] sm:$0xff]   ;;  %v16422_v14 = vld [vmem:[#allocation19 + $0x468] sm:$0xff]  }
 0x77c   :  { %14895 = vmatprep.subr.bf16.mxu0 %v16383_v11  ;;  %v16423_v11 = vld [vmem:[#allocation19 + $0x4e8] sm:$0xff]  }
 0x77d   :  { %7254 = vmatmul.mubr.bf16.vlgmr.msra.gmra.mxu1 %v18479_v12 }
 0x77e   :  { %7295 = vmatmul.mubr.bf16.vlgmr.msra.gmra.mxu0 %v18483_v60  ;;  %14874 = vmatpush3.bf16.msra.mxu1 %v16384_v52  ;;  %v16424_v52 = vld [vmem:[#allocation19 + $0x428] sm:$0xff]  }
 0x77f   :  { %7592 = vmatprep.mubr.bf16.mxu1 %v18477_v2  ;;  %14896 = vmatpush3.bf16.msra.mxu0 %v16385_v15  ;;  %v16396_v2 = vld [vmem:[#allocation19 + $0x320] sm:$0xff]  }
 0x780   :  { %7633 = vmatprep.mubr.bf16.mxu0 %v18481_v57  ;;  %14875 = vmatprep.subr.bf16.mxu1 %v16386_v33  ;;  %v16426_v15 = vld [vmem:[#allocation19 + $0x460] sm:$0xff]  }
 0x781   :  { %14897 = vmatprep.subr.bf16.mxu0 %v16387_v53  ;;  %v16427_v33 = vld [vmem:[#allocation19 + $0x4e0] sm:$0xff]  }
 0x782   :  { %14876 = vmatpush3.bf16.msra.mxu1 %v16388_v55  ;;  %v16428_v53 = vld [vmem:[#allocation19 + $0x420] sm:$0xff]  }
 0x783   :  { %14898 = vmatpush3.bf16.msra.mxu0 %v16389_v35  ;;  %14877 = vmatprep.subr.bf16.mxu1 %v16390_v59  ;;  %v16429_v55 = vld [vmem:[#allocation19 + $0x4a0] sm:$0xff]   ;;  %v16430_v35 = vld [vmem:[#allocation19 + $0x458] sm:$0xff]  }
 0x784   :  { %14899 = vmatprep.subr.bf16.mxu0 %v16391_v8  ;;  %v16431_v59 = vld [vmem:[#allocation19 + $0x4d8] sm:$0xff]  }
 0x785   :  { %v16432_v8 = vld [vmem:[#allocation19 + $0x418] sm:$0xff]  }
 0x786   :  { %14878 = vmatpush3.bf16.msra.mxu1 %v16392_v0  ;;  %v16433_v0 = vld [vmem:[#allocation19 + $0x498] sm:$0xff]  }
 0x787   :  { %14900 = vmatpush3.bf16.msra.mxu0 %v16393_v37  ;;  %14879 = vmatprep.subr.bf16.mxu1 %v16394_v62  ;;  %v16434_v37 = vld [vmem:[#allocation19 + $0x450] sm:$0xff]  }
 0x788   :  { %14901 = vmatprep.subr.bf16.mxu0 %v16395_v21  ;;  %v16435_v62 = vld [vmem:[#allocation19 + $0x4d0] sm:$0xff]  }
 0x789   :  { %v16436_v21 = vld [vmem:[#allocation19 + $0x410] sm:$0xff]  }
 0x78a   :  { %14880 = vmatpush3.bf16.msra.mxu1 %v16396_v2  ;;  %v5718_v2 = vrot.slane %v18466_v30, %v17843_v29 }
 0x78b   :  { %14902 = vmatpush3.bf16.msra.mxu0 %v16397_v20  ;;  %14881 = vmatprep.subr.bf16.mxu1 %v16398_v51  ;;  %v16437_v20 = vld [vmem:[#allocation19 + $0x490] sm:$0xff]   ;;  %v16438_v51 = vld [vmem:[#allocation19 + $0x448] sm:$0xff]  }
 0x78c   :  { %14903 = vmatprep.subr.bf16.mxu0 %v16399_v27  ;;  %v6184_v27 = vadd.f32 %v18501_v42, %v5718_v2  ;;  %v16447_v42 = vld [vmem:[#allocation19 + $0x5f8] sm:$0xff]  }
 0x78e   :  { %14882 = vmatpush3.bf16.msra.mxu1 %v16400_v19  ;;  %v16440_v19 = vld [vmem:[#allocation19 + $0x408] sm:$0xff]   ;;  %vm6243_vm10 = vcmp.ge.f32.partialorder %v6184_v27, 0.0 }
 0x78f   :  { %14904 = vmatpush3.bf16.msra.mxu0 %v16401_v40  ;;  %14883 = vmatprep.subr.bf16.mxu1 %v16402_v38  ;;  %v6180_v40 = vadd.f32 %v18499_v22, %v5718_v2  ;;  %v16441_v38 = vld [vmem:[#allocation19 + $0x488] sm:$0xff]   ;;  %v16448_v22 = vld [vmem:[#allocation19 + $0x538] sm:$0xff]  }
 0x790   :  { %14905 = vmatprep.subr.bf16.mxu0 %v16403_v44  ;;  %v16442_v44 = vld [vmem:[#allocation19 + $0x440] sm:$0xff]  }
 0x791   :  { %v6251_v43 = vmul.f32 0.1, %v6180_v40  ;;  %vm6235_vm11 = vcmp.ge.f32.partialorder %v6180_v40, 0.0 }
 0x792   :  { %14884 = vmatpush3.bf16.msra.mxu1 %v16404_v26  ;;  %v16443_v26 = vld [vmem:[#allocation19 + $0x4c0] sm:$0xff]  }
 0x793   :  { %14906 = vmatpush3.bf16.msra.mxu0 %v16405_v45  ;;  %14885 = vmatprep.subr.bf16.mxu1 %v16406_v49  ;;  %v6259_v45 = vmul.f32 0.1, %v6184_v27  ;;  %v16444_v49 = vld [vmem:[#allocation19 + $0x400] sm:$0xff]   ;;  %v6267_v56 = vsel %vm6235_vm11, %v6180_v40, %v6251_v43  ;;  %v16483_v43 = vld [vmem:[#allocation19 + $0x6f0] sm:$0xff]  }
 0x794   :  { %14907 = vmatprep.subr.bf16.mxu0 %v16407_v32  ;;  %v16445_v32 = vld [vmem:[#allocation19 + $0x480] sm:$0xff]  }
 0x796   :  { %14886 = vmatpush3.bf16.msra.mxu1 %v16408_v47  ;;  %v6275_v47 = vsel %vm6243_vm10, %v6184_v27, %v6259_v45  ;;  %v16478_v27 = vld [vmem:[#allocation19 + $0x678] sm:$0xff]   ;;  %v16482_v45 = vld [vmem:[#allocation19 + $0x670] sm:$0xff]  }
 0x797   :  { %14908 = vmatpush3.bf16.msra.mxu0 %v16409_v6  ;;  %14887 = vmatprep.subr.bf16.mxu1 %v16410_v1  ;;  %v16449_v6 = vld [vmem:[#allocation19 + $0x5b8] sm:$0xff]   ;;  %v18515_v1 = vpack.c.bf16 %v6275_v47, %v6267_v56  ;;  %v16486_v47 = vld [vmem:[#allocation19 + $0x668] sm:$0xff]  }
 0x798   :  { %14909 = vmatprep.subr.bf16.mxu0 %v16411_v61  ;;  %v16450_v61 = vld [vmem:[#allocation19 + $0x570] sm:$0xff]   ;;  %v16489_v56 = vld [vmem:[#allocation19 + $0x6a8] sm:$0xff]  }
 0x79a   :  { %14888 = vmatpush3.bf16.msra.mxu1 %v16412_v31  ;;  %v16452_v31 = vld [vmem:[#allocation19 + $0x530] sm:$0xff]  }
 0x79b   :  { %14910 = vmatpush3.bf16.msra.mxu0 %v16413_v13  ;;  %14917 = vmatprep.subr.bf16.mxu1 %v16414_v63  ;;  %v16454_v13 = vld [vmem:[#allocation19 + $0x568] sm:$0xff]  }
 0x79c   :  { %14939 = vmatprep.subr.bf16.mxu0 %v16415_v39  ;;  %v16455_v63 = vld [vmem:[#allocation19 + $0x5e8] sm:$0xff]  }
 0x79d   :  { %7593 = vmatmul.mubr.bf16.vlgmr.msra.gmra.mxu1 %v18479_v12  ;;  %v16425_v12 = vld [vmem:[#allocation19 + $0x4a8] sm:$0xff]  }
 0x79e   :  { %7634 = vmatmul.mubr.bf16.vlgmr.msra.gmra.mxu0 %v18483_v60  ;;  %14918 = vmatpush3.bf16.msra.mxu1 %v16416_v3  ;;  %v16456_v39 = vld [vmem:[#allocation19 + $0x528] sm:$0xff]   ;;  %v16458_v3 = vld [vmem:[#allocation19 + $0x560] sm:$0xff]  }
 0x79f   :  { %7931 = vmatprep.mubr.bf16.mxu1 %v18481_v57  ;;  %14940 = vmatpush3.bf16.msra.mxu0 %v16417_v25  ;;  %v16459_v25 = vld [vmem:[#allocation19 + $0x5e0] sm:$0xff]  }
 0x7a0   :  { %7972 = vmatprep.mubr.bf16.mxu0 %v18506_v16  ;;  %14919 = vmatprep.subr.bf16.mxu1 %v16418_v23  ;;  %v16461_v23 = vld [vmem:[#allocation19 + $0x5a0] sm:$0xff]  }
 0x7a1   :  { %14941 = vmatprep.subr.bf16.mxu0 %v16419_v36  ;;  %v6224_v36 = vpop.f32.mrf.mxu0 }
 0x7a2   :  { %14920 = vmatpush3.bf16.msra.mxu1 %v16420_v9  ;;  %v16463_v9 = vld [vmem:[#allocation19 + $0x5d8] sm:$0xff]  }
 0x7a3   :  { %14942 = vmatpush3.bf16.msra.mxu0 %v16421_v50  ;;  %14921 = vmatprep.subr.bf16.mxu1 %v16422_v14  ;;  %v16464_v50 = vld [vmem:[#allocation19 + $0x518] sm:$0xff]  }
 0x7a4   :  { %14943 = vmatprep.subr.bf16.mxu0 %v16423_v11  ;;  %v16465_v14 = vld [vmem:[#allocation19 + $0x598] sm:$0xff]   ;;  %v16466_v11 = vld [vmem:[#allocation19 + $0x550] sm:$0xff]  }
 0x7a6   :  { %14922 = vmatpush3.bf16.msra.mxu1 %v16424_v52  ;;  %v18523_v52 = vpop.f32.mrf.mxu0 }
 0x7a7   :  { %14944 = vmatpush3.bf16.msra.mxu0 %v16425_v12  ;;  %14923 = vmatprep.subr.bf16.mxu1 %v16426_v15  ;;  %v16467_v12 = vld [vmem:[#allocation19 + $0x5d0] sm:$0xff]  }
 0x7a8   :  { %14945 = vmatprep.subr.bf16.mxu0 %v16427_v33  ;;  %v16468_v15 = vld [vmem:[#allocation19 + $0x510] sm:$0xff]  }
 0x7a9   :  { %v16469_v33 = vld [vmem:[#allocation19 + $0x590] sm:$0xff]  }
 0x7aa   :  { %14924 = vmatpush3.bf16.msra.mxu1 %v16428_v53  ;;  %v16470_v53 = vld [vmem:[#allocation19 + $0x548] sm:$0xff]  }
 0x7ab   :  { %14946 = vmatpush3.bf16.msra.mxu0 %v16429_v55  ;;  %14925 = vmatprep.subr.bf16.mxu1 %v16430_v35  ;;  %v6228_v55 = vpop.f32.mrf.mxu0  ;;  %v16471_v35 = vld [vmem:[#allocation19 + $0x5c8] sm:$0xff]  }
 0x7ac   :  { %14947 = vmatprep.subr.bf16.mxu0 %v16431_v59  ;;  %v5730_v59 = vrot.slane %v18466_v30, %v18760_v5 }
 0x7ae   :  { %14926 = vmatpush3.bf16.msra.mxu1 %v16432_v8  ;;  %v16472_v8 = vld [vmem:[#allocation19 + $0x508] sm:$0xff]   ;;  %v6225_v2 = vadd.f32 %v6224_v36, %v5730_v59 }
 0x7af   :  { %14948 = vmatpush3.bf16.msra.mxu0 %v16433_v0  ;;  %14927 = vmatprep.subr.bf16.mxu1 %v16434_v37  ;;  %v6229_v0 = vadd.f32 %v6228_v55, %v5730_v59  ;;  %v16473_v37 = vld [vmem:[#allocation19 + $0x588] sm:$0xff]   ;;  %v16509_v55 = vld [vmem:[#allocation19 + $0x680] sm:$0xff]  }
 0x7b0   :  { %14949 = vmatprep.subr.bf16.mxu0 %v16435_v62  ;;  %v16474_v62 = vld [vmem:[#allocation19 + $0x540] sm:$0xff]   ;;  %v6254_v40 = vmul.f32 0.1, %v6225_v2  ;;  %vm6238_vm13 = vcmp.ge.f32.partialorder %v6225_v2, 0.0  ;;  %v16503_v36 = vld [vmem:[#allocation19 + $0x6c8] sm:$0xff]  }
 0x7b1   :  { %vm6246_vm12 = vcmp.ge.f32.partialorder %v6229_v0, 0.0 }
 0x7b2   :  { %14928 = vmatpush3.bf16.msra.mxu1 %v16436_v21  ;;  %v16475_v21 = vld [vmem:[#allocation19 + $0x5c0] sm:$0xff]  }
 0x7b3   :  { %14950 = vmatpush3.bf16.msra.mxu0 %v16437_v20  ;;  %14929 = vmatprep.subr.bf16.mxu1 %v16438_v51  ;;  %v16476_v20 = vld [vmem:[#allocation19 + $0x500] sm:$0xff]   ;;  %v6262_v51 = vmul.f32 0.1, %v6229_v0 }
 0x7b4   :  { %14951 = vmatprep.subr.bf16.mxu0 %v16439_v17  ;;  %v16477_v17 = vld [vmem:[#allocation19 + $0x580] sm:$0xff]  }
 0x7b6   :  { %14930 = vmatpush3.bf16.msra.mxu1 %v16440_v19  ;;  %v16479_v19 = vld [vmem:[#allocation19 + $0x6f8] sm:$0xff]  }
 0x7b7   :  { %14952 = vmatpush3.bf16.msra.mxu0 %v16441_v38  ;;  %14931 = vmatprep.subr.bf16.mxu1 %v16442_v44  ;;  %v16480_v38 = vld [vmem:[#allocation19 + $0x638] sm:$0xff]  }
 0x7b8   :  { %14953 = vmatprep.subr.bf16.mxu0 %v16443_v26  ;;  %v16481_v44 = vld [vmem:[#allocation19 + $0x6b8] sm:$0xff]   ;;  %v6278_v26 = vsel %vm6246_vm12, %v6229_v0, %v6262_v51  ;;  %v16518_v51 = vld [vmem:[#allocation19 + $0x768] sm:$0xff]  }
 0x7b9   :  { %v16513_v0 = vld [vmem:[#allocation19 + $0x7b8] sm:$0xff]  }
 0x7ba   :  { %14932 = vmatpush3.bf16.msra.mxu1 %v16444_v49  ;;  %v6270_v49 = vsel %vm6238_vm13, %v6225_v2, %v6254_v40  ;;  %v16516_v2 = vld [vmem:[#allocation19 + $0x730] sm:$0xff]   ;;  %v16522_v40 = vld [vmem:[#allocation19 + $0x760] sm:$0xff]  }
 0x7bb   :  { %14954 = vmatpush3.bf16.msra.mxu0 %v16445_v32  ;;  %14961 = vmatprep.subr.bf16.mxu1 %v16446_v18  ;;  %v18529_v32 = vpack.c.bf16 %v6278_v26, %v6270_v49  ;;  %v16484_v18 = vld [vmem:[#allocation19 + $0x630] sm:$0xff]   ;;  %v16525_v26 = vld [vmem:[#allocation19 + $0x7a0] sm:$0xff]   ;;  %v16527_v49 = vld [vmem:[#allocation19 + $0x7d8] sm:$0xff]  }
 0x7bc   :  { %14983 = vmatprep.subr.bf16.mxu0 %v16447_v42  ;;  %v16485_v42 = vld [vmem:[#allocation19 + $0x6b0] sm:$0xff]  }
 0x7bd   :  { %7932 = vmatmul.mubr.bf16.vlgmr.msra.gmra.mxu1 %v18483_v60 }
 0x7be   :  { %7973 = vmatmul.mubr.bf16.vlgmr.msra.gmra.mxu0 %v18515_v1  ;;  %14962 = vmatpush3.bf16.msra.mxu1 %v16448_v22  ;;  %v16487_v22 = vld [vmem:[#allocation19 + $0x6e8] sm:$0xff]  }
 0x7bf   :  { %8270 = vmatprep.mubr.bf16.mxu1 %v18481_v57  ;;  %14984 = vmatpush3.bf16.msra.mxu0 %v16449_v6  ;;  %v16460_v57 = vld [vmem:[#allocation19 + $0x520] sm:$0xff]  }
 0x7c0   :  { %8311 = vmatprep.mubr.bf16.mxu0 %v18506_v16  ;;  %14963 = vmatprep.subr.bf16.mxu1 %v16450_v61  ;;  %v16490_v6 = vld [vmem:[#allocation19 + $0x660] sm:$0xff]  }
 0x7c1   :  { %14985 = vmatprep.subr.bf16.mxu0 %v16451_v24  ;;  %v16491_v61 = vld [vmem:[#allocation19 + $0x6e0] sm:$0xff]  }
 0x7c2   :  { %14964 = vmatpush3.bf16.msra.mxu1 %v16452_v31  ;;  %v16492_v24 = vld [vmem:[#allocation19 + $0x620] sm:$0xff]  }
 0x7c3   :  { %14986 = vmatpush3.bf16.msra.mxu0 %v16453_v58  ;;  %14965 = vmatprep.subr.bf16.mxu1 %v16454_v13  ;;  %v16493_v31 = vld [vmem:[#allocation19 + $0x6a0] sm:$0xff]   ;;  %v16494_v58 = vld [vmem:[#allocation19 + $0x658] sm:$0xff]  }
 0x7c4   :  { %14987 = vmatprep.subr.bf16.mxu0 %v16455_v63  ;;  %v16495_v13 = vld [vmem:[#allocation19 + $0x6d8] sm:$0xff]  }
 0x7c5   :  { %v16496_v63 = vld [vmem:[#allocation19 + $0x618] sm:$0xff]  }
 0x7c6   :  { %14966 = vmatpush3.bf16.msra.mxu1 %v16456_v39  ;;  %v16497_v39 = vld [vmem:[#allocation19 + $0x698] sm:$0xff]  }
 0x7c7   :  { %14988 = vmatpush3.bf16.msra.mxu0 %v16457_v48  ;;  %14967 = vmatprep.subr.bf16.mxu1 %v16458_v3  ;;  %v16498_v48 = vld [vmem:[#allocation19 + $0x650] sm:$0xff]  }
 0x7c8   :  { %14989 = vmatprep.subr.bf16.mxu0 %v16459_v25  ;;  %v16499_v3 = vld [vmem:[#allocation19 + $0x6d0] sm:$0xff]  }
 0x7c9   :  { %v16500_v25 = vld [vmem:[#allocation19 + $0x610] sm:$0xff]  }
 0x7ca   :  { %14968 = vmatpush3.bf16.msra.mxu1 %v16460_v57  ;;  %v5726_v57 = vrot.slane %v18466_v30, %v18758_v4  ;;  %v16508_v30 = vld [vmem:[#allocation19 + $0x600] sm:$0xff]  }
 0x7cb   :  { %14990 = vmatpush3.bf16.msra.mxu0 %v16461_v23  ;;  %14969 = vmatprep.subr.bf16.mxu1 %v16462_v41  ;;  %v16501_v23 = vld [vmem:[#allocation19 + $0x690] sm:$0xff]   ;;  %v16502_v41 = vld [vmem:[#allocation19 + $0x648] sm:$0xff]  }
 0x7cc   :  { %14991 = vmatprep.subr.bf16.mxu0 %v16463_v9  ;;  %v6227_v9 = vadd.f32 %v18523_v52, %v5726_v57  ;;  %v16511_v52 = vld [vmem:[#allocation19 + $0x7f8] sm:$0xff]  }
 0x7ce   :  { %14970 = vmatpush3.bf16.msra.mxu1 %v16464_v50  ;;  %v16504_v50 = vld [vmem:[#allocation19 + $0x608] sm:$0xff]   ;;  %vm6245_vm14 = vcmp.ge.f32.partialorder %v6227_v9, 0.0 }
 0x7cf   :  { %14992 = vmatpush3.bf16.msra.mxu0 %v16465_v14  ;;  %14971 = vmatprep.subr.bf16.mxu1 %v16466_v11  ;;  %v6223_v14 = vadd.f32 %v18521_v54, %v5726_v57  ;;  %v16505_v11 = vld [vmem:[#allocation19 + $0x688] sm:$0xff]   ;;  %v16512_v54 = vld [vmem:[#allocation19 + $0x738] sm:$0xff]   ;;  %v16541_v57 = vld [vmem:[#allocation19 + $0x780] sm:$0xff]  }
 0x7d0   :  { %14993 = vmatprep.subr.bf16.mxu0 %v16467_v12  ;;  %v16506_v12 = vld [vmem:[#allocation19 + $0x640] sm:$0xff]  }
 0x7d1   :  { %vm6237_vm15 = vcmp.ge.f32.partialorder %v6223_v14, 0.0 }
 0x7d2   :  { %14972 = vmatpush3.bf16.msra.mxu1 %v16468_v15  ;;  %v16507_v15 = vld [vmem:[#allocation19 + $0x6c0] sm:$0xff]  }
 0x7d3   :  { %14994 = vmatpush3.bf16.msra.mxu0 %v16469_v33  ;;  %14973 = vmatprep.subr.bf16.mxu1 %v16470_v53  ;;  %v6261_v33 = vmul.f32 0.1, %v6227_v9  ;;  %v6253_v53 = vmul.f32 0.1, %v6223_v14 }
 0x7d4   :  { %14995 = vmatprep.subr.bf16.mxu0 %v16471_v35  ;;  %v16510_v35 = vld [vmem:[#allocation19 + $0x778] sm:$0xff]  }
 0x7d5   :  { %v6277_v59 = vsel %vm6245_vm14, %v6227_v9, %v6261_v33  ;;  %v16544_v9 = vld [vmem:[#allocation19 + $0x838] sm:$0xff]   ;;  %v16547_v33 = vld [vmem:[#allocation19 + $0x8f0] sm:$0xff]  }
 0x7d6   :  { %14974 = vmatpush3.bf16.msra.mxu1 %v16472_v8  ;;  %v6269_v8 = vsel %vm6237_vm15, %v6223_v14, %v6253_v53  ;;  %v16545_v14 = vld [vmem:[#allocation19 + $0x8b8] sm:$0xff]   ;;  %v16548_v53 = vld [vmem:[#allocation19 + $0x830] sm:$0xff]  }
 0x7d7   :  { %14996 = vmatpush3.bf16.msra.mxu0 %v16473_v37  ;;  %14975 = vmatprep.subr.bf16.mxu1 %v16474_v62  ;;  %v18537_v37 = vpack.c.bf16 %v6277_v59, %v6269_v8  ;;  %v16514_v62 = vld [vmem:[#allocation19 + $0x770] sm:$0xff]   ;;  %v16552_v8 = vld [vmem:[#allocation19 + $0x828] sm:$0xff]  }
 0x7d8   :  { %14997 = vmatprep.subr.bf16.mxu0 %v16475_v21  ;;  %v16515_v21 = vld [vmem:[#allocation19 + $0x7f0] sm:$0xff]  }
 0x7da   :  { %14976 = vmatpush3.bf16.msra.mxu1 %v16476_v20  ;;  %v16517_v20 = vld [vmem:[#allocation19 + $0x7b0] sm:$0xff]  }
 0x7db   :  { %14998 = vmatpush3.bf16.msra.mxu0 %v16477_v17  ;;  %15005 = vmatprep.subr.bf16.mxu1 %v16478_v27  ;;  %v16519_v17 = vld [vmem:[#allocation19 + $0x7e8] sm:$0xff]  }
 0x7dc   :  { %15027 = vmatprep.subr.bf16.mxu0 %v16479_v19  ;;  %v16520_v27 = vld [vmem:[#allocation19 + $0x728] sm:$0xff]  }
 0x7dd   :  { %8271 = vmatmul.mubr.bf16.vlgmr.msra.gmra.mxu1 %v18483_v60  ;;  %v16488_v60 = vld [vmem:[#allocation19 + $0x628] sm:$0xff]  }
 0x7de   :  { %8312 = vmatmul.mubr.bf16.vlgmr.msra.gmra.mxu0 %v18515_v1  ;;  %15006 = vmatpush3.bf16.msra.mxu1 %v16480_v38  ;;  %v16521_v19 = vld [vmem:[#allocation19 + $0x7a8] sm:$0xff]   ;;  %v16523_v38 = vld [vmem:[#allocation19 + $0x7e0] sm:$0xff]  }
 0x7df   :  { %8609 = vmatprep.mubr.bf16.mxu1 %v18506_v16  ;;  %15028 = vmatpush3.bf16.msra.mxu0 %v16481_v44  ;;  %v16524_v44 = vld [vmem:[#allocation19 + $0x720] sm:$0xff]  }
 0x7e0   :  { %8650 = vmatprep.mubr.bf16.mxu0 %v18529_v32  ;;  %15007 = vmatprep.subr.bf16.mxu1 %v16482_v45  ;;  %v16526_v45 = vld [vmem:[#allocation19 + $0x758] sm:$0xff]  }
 0x7e1   :  { %15029 = vmatprep.subr.bf16.mxu0 %v16483_v43  ;;  %v16528_v43 = vld [vmem:[#allocation19 + $0x718] sm:$0xff]  }
 0x7e2   :  { %15008 = vmatpush3.bf16.msra.mxu1 %v16484_v18  ;;  %v16529_v18 = vld [vmem:[#allocation19 + $0x798] sm:$0xff]  }
 0x7e3   :  { %15030 = vmatpush3.bf16.msra.mxu0 %v16485_v42  ;;  %15009 = vmatprep.subr.bf16.mxu1 %v16486_v47  ;;  %v16530_v42 = vld [vmem:[#allocation19 + $0x750] sm:$0xff]  }
 0x7e4   :  { %15031 = vmatprep.subr.bf16.mxu0 %v16487_v22  ;;  %v16531_v47 = vld [vmem:[#allocation19 + $0x7d0] sm:$0xff]  }
 0x7e5   :  { %v16532_v22 = vld [vmem:[#allocation19 + $0x710] sm:$0xff]  }
 0x7e6   :  { %15010 = vmatpush3.bf16.msra.mxu1 %v16488_v60 }
 0x7e7   :  { %15032 = vmatpush3.bf16.msra.mxu0 %v16489_v56  ;;  %15011 = vmatprep.subr.bf16.mxu1 %v16490_v6  ;;  %v16533_v56 = vld [vmem:[#allocation19 + $0x790] sm:$0xff]   ;;  %v16534_v6 = vld [vmem:[#allocation19 + $0x748] sm:$0xff]  }
 0x7e8   :  { %15033 = vmatprep.subr.bf16.mxu0 %v16491_v61 }
 0x7ea   :  { %15012 = vmatpush3.bf16.msra.mxu1 %v16492_v24  ;;  %v16535_v24 = vld [vmem:[#allocation19 + $0x7c8] sm:$0xff]  }
 0x7eb   :  { %15034 = vmatpush3.bf16.msra.mxu0 %v16493_v31  ;;  %15013 = vmatprep.subr.bf16.mxu1 %v16494_v58  ;;  %v16536_v31 = vld [vmem:[#allocation19 + $0x708] sm:$0xff]  }
 0x7ec   :  { %15035 = vmatprep.subr.bf16.mxu0 %v16495_v13  ;;  %v16537_v13 = vld [vmem:[#allocation19 + $0x788] sm:$0xff]  }
 0x7ee   :  { %15014 = vmatpush3.bf16.msra.mxu1 %v16496_v63  ;;  %v16538_v63 = vld [vmem:[#allocation19 + $0x740] sm:$0xff]  }
 0x7ef   :  { %15036 = vmatpush3.bf16.msra.mxu0 %v16497_v39  ;;  %15015 = vmatprep.subr.bf16.mxu1 %v16498_v48  ;;  %v16539_v48 = vld [vmem:[#allocation19 + $0x7c0] sm:$0xff]  }
 0x7f0   :  { %15037 = vmatprep.subr.bf16.mxu0 %v16499_v3  ;;  %v16540_v3 = vld [vmem:[#allocation19 + $0x700] sm:$0xff]  }
 0x7f2   :  { %15016 = vmatpush3.bf16.msra.mxu1 %v16500_v25 }
 0x7f3   :  { %15038 = vmatpush3.bf16.msra.mxu0 %v16501_v23  ;;  %15017 = vmatprep.subr.bf16.mxu1 %v16502_v41  ;;  %v16542_v23 = vld [vmem:[#allocation19 + $0x878] sm:$0xff]  }
 0x7f4   :  { %15039 = vmatprep.subr.bf16.mxu0 %v16503_v36  ;;  %v16543_v36 = vld [vmem:[#allocation19 + $0x8f8] sm:$0xff]  }
 0x7f6   :  { %15018 = vmatpush3.bf16.msra.mxu1 %v16504_v50 }
 0x7f7   :  { %15040 = vmatpush3.bf16.msra.mxu0 %v16505_v11  ;;  %15019 = vmatprep.subr.bf16.mxu1 %v16506_v12  ;;  %v16546_v12 = vld [vmem:[#allocation19 + $0x870] sm:$0xff]  }
 0x7f8   :  { %15041 = vmatprep.subr.bf16.mxu0 %v16507_v15 }
 0x7fa   :  { %15020 = vmatpush3.bf16.msra.mxu1 %v16508_v30 }
 0x7fb   :  { %15042 = vmatpush3.bf16.msra.mxu0 %v16509_v55  ;;  %15049 = vmatprep.subr.bf16.mxu1 %v16510_v35  ;;  %v16549_v35 = vld [vmem:[#allocation19 + $0x8b0] sm:$0xff]  }
 0x7fc   :  { %15071 = vmatprep.subr.bf16.mxu0 %v16511_v52  ;;  %v16550_v52 = vld [vmem:[#allocation19 + $0x868] sm:$0xff]  }
 0x7fd   :  { %8610 = vmatmul.mubr.bf16.vlgmr.msra.gmra.mxu1 %v18515_v1  ;;  %v18543_v60 = vpop.f32.mrf.mxu1 }
 0x7fe   :  { %8651 = vmatmul.mubr.bf16.vlgmr.msra.gmra.mxu0 %v18537_v37  ;;  %15050 = vmatpush3.bf16.msra.mxu1 %v16512_v54  ;;  %v18545_v61 = vpop.f32.mrf.mxu0  ;;  %v16551_v54 = vld [vmem:[#allocation19 + $0x8e8] sm:$0xff]  }
 0x7ff   :  { %8948 = vmatprep.mubr.bf16.mxu1 %v18506_v16  ;;  %15072 = vmatpush3.bf16.msra.mxu0 %v16513_v0  ;;  %v18547_v58 = vpop.f32.mrf.mxu1 }
 0x800   :  { %8989 = vmatprep.mubr.bf16.mxu0 %v18529_v32  ;;  %15051 = vmatprep.subr.bf16.mxu1 %v16514_v62  ;;  %v18549_v39 = vpop.f32.mrf.mxu0 }
 0x801   :  { %15073 = vmatprep.subr.bf16.mxu0 %v16515_v21  ;;  %v18551_v25 = vpop.f32.mrf.mxu1  ;;  %v16553_v21 = vld [vmem:[#allocation19 + $0x8a8] sm:$0xff]  }
 0x802   :  { %15052 = vmatpush3.bf16.msra.mxu1 %v16516_v2  ;;  %v18553_v41 = vpop.f32.mrf.mxu0  ;;  %v16554_v2 = vld [vmem:[#allocation19 + $0x860] sm:$0xff]  }
 0x803   :  { %15074 = vmatpush3.bf16.msra.mxu0 %v16517_v20  ;;  %15053 = vmatprep.subr.bf16.mxu1 %v16518_v51  ;;  %v18555_v50 = vpop.f32.mrf.mxu1  ;;  %v16556_v20 = vld [vmem:[#allocation19 + $0x820] sm:$0xff]  }
 0x804   :  { %15075 = vmatprep.subr.bf16.mxu0 %v16519_v17  ;;  %v18557_v11 = vpop.f32.mrf.mxu0 }
 0x806   :  { %15054 = vmatpush3.bf16.msra.mxu1 %v16520_v27  ;;  %v16558_v27 = vld [vmem:[#allocation19 + $0x858] sm:$0xff]  }
 0x807   :  { %15076 = vmatpush3.bf16.msra.mxu0 %v16521_v19  ;;  %15055 = vmatprep.subr.bf16.mxu1 %v16522_v40  ;;  %v16559_v19 = vld [vmem:[#allocation19 + $0x8d8] sm:$0xff]  }
 0x808   :  { %15077 = vmatprep.subr.bf16.mxu0 %v16523_v38 }
 0x80a   :  { %15056 = vmatpush3.bf16.msra.mxu1 %v16524_v44  ;;  %v16560_v44 = vld [vmem:[#allocation19 + $0x818] sm:$0xff]  }
 0x80b   :  { %15078 = vmatpush3.bf16.msra.mxu0 %v16525_v26  ;;  %15057 = vmatprep.subr.bf16.mxu1 %v16526_v45  ;;  %v16561_v26 = vld [vmem:[#allocation19 + $0x898] sm:$0xff]   ;;  %v16562_v45 = vld [vmem:[#allocation19 + $0x850] sm:$0xff]  }
 0x80c   :  { %15079 = vmatprep.subr.bf16.mxu0 %v16527_v49 }
 0x80e   :  { %15058 = vmatpush3.bf16.msra.mxu1 %v16528_v43 }
 0x80f   :  { %15080 = vmatpush3.bf16.msra.mxu0 %v16529_v18  ;;  %15059 = vmatprep.subr.bf16.mxu1 %v16530_v42  ;;  %v16563_v18 = vld [vmem:[#allocation19 + $0x8d0] sm:$0xff]  }
 0x810   :  { %15081 = vmatprep.subr.bf16.mxu0 %v16531_v47  ;;  %v16564_v47 = vld [vmem:[#allocation19 + $0x810] sm:$0xff]  }
 0x812   :  { %15060 = vmatpush3.bf16.msra.mxu1 %v16532_v22  ;;  %v18563_v22 = vld [vmem:[#allocation21] sm:$0xff] }
 0x813   :  { %15082 = vmatpush3.bf16.msra.mxu0 %v16533_v56  ;;  %15061 = vmatprep.subr.bf16.mxu1 %v16534_v6  ;;  %v16565_v56 = vld [vmem:[#allocation19 + $0x890] sm:$0xff]   ;;  %v16566_v6 = vld [vmem:[#allocation19 + $0x848] sm:$0xff]  }
 0x814   :  { %15083 = vmatprep.subr.bf16.mxu0 %v16535_v24 }
 0x816   :  { %15062 = vmatpush3.bf16.msra.mxu1 %v16536_v31  ;;  %v9348_v31 = vrot.slane %v18563_v22, %v18761_v10 }
 0x817   :  { %15084 = vmatpush3.bf16.msra.mxu0 %v16537_v13  ;;  %15063 = vmatprep.subr.bf16.mxu1 %v16538_v63  ;;  %v16567_v13 = vld [vmem:[#allocation19 + $0x8c8] sm:$0xff]  }
 0x818   :  { %15085 = vmatprep.subr.bf16.mxu0 %v16539_v48  ;;  %v16568_v48 = vld [vmem:[#allocation19 + $0x808] sm:$0xff]  }
 0x81a   :  { %15064 = vmatpush3.bf16.msra.mxu1 %v16540_v3  ;;  %v16569_v3 = vld [vmem:[#allocation19 + $0x888] sm:$0xff]  }
 0x81b   :  { %15086 = vmatpush3.bf16.msra.mxu0 %v16541_v57  ;;  %15093 = vmatprep.subr.bf16.mxu1 %v16542_v23  ;;  %v16570_v57 = vld [vmem:[#allocation19 + $0x840] sm:$0xff]  }
 0x81c   :  { %15115 = vmatprep.subr.bf16.mxu0 %v16543_v36  ;;  %v16571_v36 = vld [vmem:[#allocation19 + $0x8c0] sm:$0xff]  }
 0x81d   :  { %v14801_v15 = vpop.f32.mrf.mxu1  ;;  %8949 = vmatmul.mubr.bf16.vlgmr.msra.gmra.mxu1 %v18515_v1 }
 0x81e   :  { %v14823_v30 = vpop.f32.mrf.mxu0  ;;  %8990 = vmatmul.mubr.bf16.vlgmr.msra.gmra.mxu0 %v18537_v37  ;;  %15094 = vmatpush3.bf16.msra.mxu1 %v16544_v9 }
 0x81f   :  { %9287 = vmatprep.mubr.bf16.mxu1 %v18506_v16  ;;  %15116 = vmatpush3.bf16.msra.mxu0 %v16545_v14  ;;  %v14802_v55 = vpop.f32.mrf.mxu1  ;;  %v16555_v16 = vld [vmem:[#allocation19 + $0x8e0] sm:$0xff]  }
 0x820   :  { %9328 = vmatprep.mubr.bf16.mxu0 %v18529_v32  ;;  %v14824_v59 = vpop.f32.mrf.mxu0  ;;  %15095 = vmatprep.subr.bf16.mxu1 %v16546_v12  ;;  %v16557_v32 = vld [vmem:[#allocation19 + $0x8a0] sm:$0xff]   ;;  %v14803_v49 = vadd.f32 %v14802_v55, %v14801_v15 }
 0x821   :  { %15117 = vmatprep.subr.bf16.mxu0 %v16547_v33  ;;  %v14804_v0 = vpop.f32.mrf.mxu1  ;;  %v14825_v43 = vadd.f32 %v14824_v59, %v14823_v30  ;;  %v16572_v14 = vld [vmem:[#allocation19 + $0x800] sm:$0xff]  }
 0x822   :  { %15096 = vmatpush3.bf16.msra.mxu1 %v16548_v53  ;;  %v14826_v62 = vpop.f32.mrf.mxu0  ;;  %v16573_v12 = vld [vmem:[#allocation19 + $0x880] sm:$0xff]  }
 0x823   :  { %15118 = vmatpush3.bf16.msra.mxu0 %v16549_v35  ;;  %15097 = vmatprep.subr.bf16.mxu1 %v16550_v52  ;;  %v14805_v51 = vpop.f32.mrf.mxu1  ;;  %v6958_v24 = vadd.f32 %v14825_v43, %v14803_v49  ;;  %v16574_v15 = vld [vmem:[#allocation22 + $0x78] sm:$0xff]   ;;  %v16578_v59 = vld [vmem:[#allocation22 + $0x70] sm:$0xff]   ;;  %v14762_v43 = vadd.f32 %v18555_v50, %v18551_v25 }
 0x824   :  { %15119 = vmatprep.subr.bf16.mxu0 %v16551_v54  ;;  %v14827_v17 = vpop.f32.mrf.mxu0  ;;  %v14806_v40 = vadd.f32 %v14805_v51, %v14804_v0  ;;  %v16575_v30 = vld [vmem:[#allocation22 + $0xf8] sm:$0xff]   ;;  %v16579_v0 = vld [vmem:[#allocation22 + $0xf0] sm:$0xff]  }
 0x825   :  { %v14828_v38 = vadd.f32 %v14827_v17, %v14826_v62  ;;  %v9387_v23 = vadd.f32 %v9348_v31, %v6958_v24  ;;  %v16576_v53 = vld [vmem:[#allocation22 + $0x38] sm:$0xff]   ;;  %v16583_v17 = vld [vmem:[#allocation22 + $0xe8] sm:$0xff]  }
 0x826   :  { %15098 = vmatpush3.bf16.msra.mxu1 %v16552_v8  ;;  %v16577_v35 = vld [vmem:[#allocation22 + $0xb8] sm:$0xff]  }
 0x827   :  { %15120 = vmatpush3.bf16.msra.mxu0 %v16553_v21  ;;  %15099 = vmatprep.subr.bf16.mxu1 %v16554_v2  ;;  %v6961_v42 = vadd.f32 %v14828_v38, %v14806_v40  ;;  %v9423_v33 = vmul.f32 0.1, %v9387_v23  ;;  %vm9405_vm1 = vcmp.ge.f32.partialorder %v9387_v23, 0.0  ;;  %v16580_v21 = vld [vmem:[#allocation22 + $0x30] sm:$0xff]   ;;  %v16587_v40 = vld [vmem:[#allocation22 + $0xe0] sm:$0xff]   ;;  %v16590_v49 = vld [vmem:[#allocation22 + $0x58] sm:$0xff]  }
 0x828   :  { %15121 = vmatprep.subr.bf16.mxu0 %v16555_v16  ;;  %v16581_v16 = vld [vmem:[#allocation22 + $0xb0] sm:$0xff]   ;;  %v16588_v38 = vld [vmem:[#allocation22 + $0x20] sm:$0xff]  }
 0x829   :  { %v9396_v63 = vadd.f32 %v9348_v31, %v6961_v42  ;;  %v9441_v52 = vsel %vm9405_vm1, %v9387_v23, %v9423_v33  ;;  %v16591_v42 = vld [vmem:[#allocation22 + $0xd8] sm:$0xff]   ;;  %v16601_v33 = vld [vmem:[#allocation22 + $0x88] sm:$0xff]  }
 0x82a   :  { %15100 = vmatpush3.bf16.msra.mxu1 %v16556_v20  ;;  %v16582_v20 = vld [vmem:[#allocation22 + $0x68] sm:$0xff]   ;;  %v16592_v31 = vld [vmem:[#allocation22 + $0x18] sm:$0xff]  }
 0x82b   :  { %15122 = vmatpush3.bf16.msra.mxu0 %v16557_v32  ;;  %15101 = vmatprep.subr.bf16.mxu1 %v16558_v27  ;;  %v9432_v9 = vmul.f32 0.1, %v9396_v63  ;;  %vm9414_vm0 = vcmp.ge.f32.partialorder %v9396_v63, 0.0 }
 0x82c   :  { %15123 = vmatprep.subr.bf16.mxu0 %v16559_v19  ;;  %v16586_v19 = vld [vmem:[#allocation22 + $0x60] sm:$0xff]  }
 0x82d   :  { %v9450_v55 = vsel %vm9414_vm0, %v9396_v63, %v9432_v9  ;;  %v16594_v63 = vld [vmem:[#allocation22 + $0x50] sm:$0xff]   ;;  %v16599_v9 = vld [vmem:[#allocation22 + $0xc8] sm:$0xff]  }
 0x82e   :  { %15102 = vmatpush3.bf16.msra.mxu1 %v16560_v44  ;;  %v18568_v8 = vpack.c.bf16 %v9450_v55, %v9441_v52 }
 0x82f   :  { %15124 = vmatpush3.bf16.msra.mxu0 %v16561_v26  ;;  %15103 = vmatprep.subr.bf16.mxu1 %v16562_v45  ;;  %v16589_v45 = vld [vmem:[#allocation22 + $0xa0] sm:$0xff]  }
 0x830   :  { %15125 = vmatprep.subr.bf16.mxu0 %v16563_v18  ;;  %v14784_v18 = vadd.f32 %v18557_v11, %v18553_v41  ;;  %v16595_v41 = vld [vmem:[#allocation22 + $0xd0] sm:$0xff]  }
 0x832   :  { %15104 = vmatpush3.bf16.msra.mxu1 %v16564_v47  ;;  %v14759_v47 = vadd.f32 %v18547_v58, %v18543_v60  ;;  %v6622_v25 = vadd.f32 %v14784_v18, %v14762_v43  ;;  %v9344_v60 = vrot.slane %v18563_v22, %v18762_v46  ;;  %v16614_v43 = vld [vmem:[#allocation22 + $0x168] sm:$0xff]  }
 0x833   :  { %15126 = vmatpush3.bf16.msra.mxu0 %v16565_v56  ;;  %15105 = vmatprep.subr.bf16.mxu1 %v16566_v6  ;;  %v14781_v56 = vadd.f32 %v18549_v39, %v18545_v61  ;;  %v16596_v61 = vld [vmem:[#allocation22 + $0x10] sm:$0xff]  }
 0x834   :  { %15127 = vmatprep.subr.bf16.mxu0 %v16567_v13  ;;  %v16593_v13 = vld [vmem:[#allocation22 + $0x98] sm:$0xff]   ;;  %v16597_v39 = vld [vmem:[#allocation22 + $0x90] sm:$0xff]  }
 0x835   :  { %v6619_v11 = vadd.f32 %v14781_v56, %v14759_v47  ;;  %v16615_v47 = vld [vmem:[#allocation22 + $0x1e8] sm:$0xff]  }
 0x836   :  { %15106 = vmatpush3.bf16.msra.mxu1 %v16568_v48 }
 0x837   :  { %15128 = vmatpush3.bf16.msra.mxu0 %v16569_v3  ;;  %15107 = vmatprep.subr.bf16.mxu1 %v16570_v57  ;;  %v16598_v3 = vld [vmem:[#allocation22 + $0x48] sm:$0xff]   ;;  %v9395_v57 = vadd.f32 %v9344_v60, %v6622_v25 }
 0x838   :  { %15129 = vmatprep.subr.bf16.mxu0 %v16571_v36  ;;  %v9352_v36 = vrot.slane %v18563_v22, %v18763_v7 }
 0x839   :  { %vm9413_vm3 = vcmp.ge.f32.partialorder %v9395_v57, 0.0 }
 0x83a   :  { %15108 = vmatpush3.bf16.msra.mxu1 %v16572_v14  ;;  %v9386_v14 = vadd.f32 %v9344_v60, %v6619_v11  ;;  %v16619_v60 = vld [vmem:[#allocation22 + $0x1e0] sm:$0xff]  }
 0x83b   :  { %15130 = vmatpush3.bf16.msra.mxu0 %v16573_v12  ;;  %15137 = vmatprep.subr.bf16.mxu1 %v16574_v15  ;;  %v16600_v15 = vld [vmem:[#allocation22 + $0x8] sm:$0xff]  }
 0x83c   :  { %15159 = vmatprep.subr.bf16.mxu0 %v16575_v30  ;;  %v16602_v30 = vld [vmem:[#allocation22 + $0x40] sm:$0xff]   ;;  %v9422_v52 = vmul.f32 0.1, %v9386_v14  ;;  %vm9404_vm4 = vcmp.ge.f32.partialorder %v9386_v14, 0.0 }
 0x83d   :  { %v14845_v54 = vpop.f32.mrf.mxu1  ;;  %9288 = vmatmul.mubr.bf16.vlgmr.msra.gmra.mxu1 %v18515_v1  ;;  %v16584_v1 = vld [vmem:[#allocation22 + $0x28] sm:$0xff]  }
 0x83e   :  { %v14867_v62 = vpop.f32.mrf.mxu0  ;;  %9329 = vmatmul.mubr.bf16.vlgmr.msra.gmra.mxu0 %v18537_v37  ;;  %15138 = vmatpush3.bf16.msra.mxu1 %v16576_v53  ;;  %v16585_v37 = vld [vmem:[#allocation22 + $0xa8] sm:$0xff]   ;;  %v9431_v53 = vmul.f32 0.1, %v9395_v57 }
 0x83f   :  { %9627 = vmatprep.mubr.bf16.mxu1 %v18568_v8  ;;  %15160 = vmatpush3.bf16.msra.mxu0 %v16577_v35  ;;  %v14846_v2 = vpop.f32.mrf.mxu1  ;;  %v16603_v35 = vld [vmem:[#allocation22 + $0xc0] sm:$0xff]  }
 0x840   :  { %9797 = vmatprep.mubr.bf16.mxu0 %v18568_v8  ;;  %v14868_v51 = vpop.f32.mrf.mxu0  ;;  %15139 = vmatprep.subr.bf16.mxu1 %v16578_v59  ;;  %v14847_v50 = vadd.f32 %v14846_v2, %v14845_v54  ;;  %v16604_v54 = vld [vmem:[#allocation22] sm:$0xff]  }
 0x841   :  { %15161 = vmatprep.subr.bf16.mxu0 %v16579_v0  ;;  %v14848_v32 = vpop.f32.mrf.mxu1  ;;  %v14869_v48 = vadd.f32 %v14868_v51, %v14867_v62  ;;  %v16605_v0 = vld [vmem:[#allocation22 + $0x80] sm:$0xff]   ;;  %v16606_v62 = vld [vmem:[#allocation22 + $0x178] sm:$0xff]  }
 0x842   :  { %15140 = vmatpush3.bf16.msra.mxu1 %v16580_v21  ;;  %v14870_v27 = vpop.f32.mrf.mxu0  ;;  %v9449_v21 = vsel %vm9413_vm3, %v9395_v57, %v9431_v53  ;;  %v16608_v51 = vld [vmem:[#allocation22 + $0x138] sm:$0xff]   ;;  %v16621_v57 = vld [vmem:[#allocation22 + $0x1a0] sm:$0xff]   ;;  %v16627_v53 = vld [vmem:[#allocation22 + $0x1d0] sm:$0xff]  }
 0x843   :  { %15162 = vmatpush3.bf16.msra.mxu0 %v16581_v16  ;;  %15141 = vmatprep.subr.bf16.mxu1 %v16582_v20  ;;  %v14849_v44 = vpop.f32.mrf.mxu1  ;;  %v7297_v23 = vadd.f32 %v14869_v48, %v14847_v50  ;;  %v16607_v16 = vld [vmem:[#allocation22 + $0x1f8] sm:$0xff]   ;;  %v9440_v20 = vsel %vm9404_vm4, %v9386_v14, %v9422_v52  ;;  %v16617_v50 = vld [vmem:[#allocation22 + $0x1a8] sm:$0xff]   ;;  %v16618_v48 = vld [vmem:[#allocation22 + $0x160] sm:$0xff]  }
 0x844   :  { %15163 = vmatprep.subr.bf16.mxu0 %v16583_v17  ;;  %v14871_v26 = vpop.f32.mrf.mxu0  ;;  %v14850_v6 = vadd.f32 %v14849_v44, %v14848_v32  ;;  %v16609_v32 = vld [vmem:[#allocation22 + $0x1b8] sm:$0xff]  }
 0x845   :  { %v14872_v24 = vadd.f32 %v14871_v26, %v14870_v27  ;;  %v9388_v55 = vadd.f32 %v9352_v36, %v7297_v23  ;;  %v16612_v26 = vld [vmem:[#allocation22 + $0x130] sm:$0xff]   ;;  %v16622_v23 = vld [vmem:[#allocation22 + $0x158] sm:$0xff]  }
 0x846   :  { %15142 = vmatpush3.bf16.msra.mxu1 %v16584_v1  ;;  %v9458_v1 = vpack.c.bf16 %v9449_v21, %v9440_v20  ;;  %v16632_v21 = vld [vmem:[#allocation22 + $0x108] sm:$0xff]   ;;  %v16635_v20 = vld [vmem:[#allocation22 + $0x1c0] sm:$0xff]  }
 0x847   :  { %15164 = vmatpush3.bf16.msra.mxu0 %v16585_v37  ;;  %15143 = vmatprep.subr.bf16.mxu1 %v16586_v19  ;;  %v7300_v58 = vadd.f32 %v14872_v24, %v14850_v6  ;;  %v9424_v2 = vmul.f32 0.1, %v9388_v55  ;;  %vm9406_vm6 = vcmp.ge.f32.partialorder %v9388_v55, 0.0  ;;  %v16610_v37 = vld [vmem:[#allocation22 + $0x170] sm:$0xff]   ;;  %v9356_v6 = vrot.slane %v18563_v22, %v17804_v28 }
 0x848   :  { %15165 = vmatprep.subr.bf16.mxu0 %v16587_v40  ;;  %v16611_v19 = vld [vmem:[#allocation22 + $0x1f0] sm:$0xff]  }
 0x849   :  { %v9397_v12 = vadd.f32 %v9352_v36, %v7300_v58  ;;  %v9442_v27 = vsel %vm9406_vm6, %v9388_v55, %v9424_v2  ;;  %v16623_v36 = vld [vmem:[#allocation22 + $0x1d8] sm:$0xff]   ;;  %v16633_v2 = vld [vmem:[#allocation22 + $0x188] sm:$0xff]  }
 0x84a   :  { %15144 = vmatpush3.bf16.msra.mxu1 %v16588_v38 }
 0x84b   :  { %15166 = vmatpush3.bf16.msra.mxu0 %v16589_v45  ;;  %15145 = vmatprep.subr.bf16.mxu1 %v16590_v49  ;;  %v9433_v59 = vmul.f32 0.1, %v9397_v12  ;;  %vm9415_vm5 = vcmp.ge.f32.partialorder %v9397_v12, 0.0  ;;  %v16613_v49 = vld [vmem:[#allocation22 + $0x1b0] sm:$0xff]  }
 0x84c   :  { %15167 = vmatprep.subr.bf16.mxu0 %v16591_v42 }
 0x84d   :  { %v9451_v17 = vsel %vm9415_vm5, %v9397_v12, %v9433_v59  ;;  %v16624_v12 = vld [vmem:[#allocation22 + $0x118] sm:$0xff]   ;;  %v16628_v59 = vld [vmem:[#allocation22 + $0x110] sm:$0xff]  }
 0x84e   :  { %15146 = vmatpush3.bf16.msra.mxu1 %v16592_v31  ;;  %v18585_v38 = vpack.c.bf16 %v9451_v17, %v9442_v27  ;;  %v16637_v17 = vld [vmem:[#allocation22 + $0x180] sm:$0xff]   ;;  %v16639_v27 = vld [vmem:[#allocation22 + $0x238] sm:$0xff]  }
 0x84f   :  { %15168 = vmatpush3.bf16.msra.mxu0 %v16593_v13  ;;  %15147 = vmatprep.subr.bf16.mxu1 %v16594_v63  ;;  %v16616_v13 = vld [vmem:[#allocation22 + $0x128] sm:$0xff]  }
 0x850   :  { %15169 = vmatprep.subr.bf16.mxu0 %v16595_v41 }
 0x852   :  { %15148 = vmatpush3.bf16.msra.mxu1 %v16596_v61 }
 0x853   :  { %15170 = vmatpush3.bf16.msra.mxu0 %v16597_v39  ;;  %15149 = vmatprep.subr.bf16.mxu1 %v16598_v3  ;;  %v16620_v39 = vld [vmem:[#allocation22 + $0x120] sm:$0xff]  }
 0x854   :  { %15171 = vmatprep.subr.bf16.mxu0 %v16599_v9 }
 0x856   :  { %15150 = vmatpush3.bf16.msra.mxu1 %v16600_v15 }
 0x857   :  { %15172 = vmatpush3.bf16.msra.mxu0 %v16601_v33  ;;  %15151 = vmatprep.subr.bf16.mxu1 %v16602_v30  ;;  %v16625_v33 = vld [vmem:[#allocation22 + $0x198] sm:$0xff]   ;;  %v16626_v30 = vld [vmem:[#allocation22 + $0x150] sm:$0xff]  }
 0x858   :  { %15173 = vmatprep.subr.bf16.mxu0 %v16603_v35 }
 0x85a   :  { %15152 = vmatpush3.bf16.msra.mxu1 %v16604_v54  ;;  %v16629_v54 = vld [vmem:[#allocation22 + $0x190] sm:$0xff]  }
 0x85b   :  { %15174 = vmatpush3.bf16.msra.mxu0 %v16605_v0  ;;  %15181 = vmatprep.subr.bf16.mxu1 %v16606_v62  ;;  %v16630_v0 = vld [vmem:[#allocation22 + $0x148] sm:$0xff]  }
 0x85c   :  { %15203 = vmatprep.subr.bf16.mxu0 %v16607_v16  ;;  %v16631_v62 = vld [vmem:[#allocation22 + $0x1c8] sm:$0xff]   ;;  %v16634_v16 = vld [vmem:[#allocation22 + $0x140] sm:$0xff]  }
 0x85d   :  { %v14889_v40 = vpop.f32.mrf.mxu1  ;;  %9628 = vmatmul.mubr.bf16.vlgmr.msra.gmra.mxu1 %v9458_v1 }
 0x85e   :  { %v14911_v44 = vpop.f32.mrf.mxu0  ;;  %9798 = vmatmul.mubr.bf16.vlgmr.msra.gmra.mxu0 %v9458_v1  ;;  %15182 = vmatpush3.bf16.msra.mxu1 %v16608_v51  ;;  %v16636_v51 = vld [vmem:[#allocation22 + $0x100] sm:$0xff]   ;;  %v16638_v1 = vld [vmem:[#allocation22 + $0x278] sm:$0xff]  }
 0x85f   :  { %9967 = vmatprep.mubr.bf16.mxu1 %v18585_v38  ;;  %15204 = vmatpush3.bf16.msra.mxu0 %v16609_v32  ;;  %v14890_v45 = vpop.f32.mrf.mxu1  ;;  %v16648_v32 = vld [vmem:[#allocation22 + $0x2f8] sm:$0xff]  }
 0x860   :  { %v14891_v18 = vadd.f32 %v14890_v45, %v14889_v40  ;;  %v14912_v42 = vpop.f32.mrf.mxu0  ;;  %15183 = vmatprep.subr.bf16.mxu1 %v16610_v37  ;;  %15205 = vmatprep.subr.bf16.mxu0 %v16611_v19  ;;  %v16640_v37 = vld [vmem:[#allocation22 + $0x270] sm:$0xff]   ;;  %v16650_v19 = vld [vmem:[#allocation22 + $0x2b8] sm:$0xff]  }
 0x861   :  { %v14913_v56 = vadd.f32 %v14912_v42, %v14911_v44  ;;  %v14892_v24 = vpop.f32.mrf.mxu1  ;;  %v16652_v40 = vld [vmem:[#allocation22 + $0x2f0] sm:$0xff]  }
 0x862   :  { %v14914_v31 = vpop.f32.mrf.mxu0  ;;  %15184 = vmatpush3.bf16.msra.mxu1 %v16612_v26  ;;  %v16641_v45 = vld [vmem:[#allocation22 + $0x230] sm:$0xff]  }
 0x863   :  { %v7636_v63 = vadd.f32 %v14913_v56, %v14891_v18  ;;  %15206 = vmatpush3.bf16.msra.mxu0 %v16613_v49  ;;  %v14893_v25 = vpop.f32.mrf.mxu1  ;;  %15185 = vmatprep.subr.bf16.mxu1 %v16614_v43  ;;  %v16642_v43 = vld [vmem:[#allocation22 + $0x268] sm:$0xff]   ;;  %v16654_v18 = vld [vmem:[#allocation22 + $0x2b0] sm:$0xff]  }
 0x864   :  { %v14894_v41 = vadd.f32 %v14893_v25, %v14892_v24  ;;  %v14915_v11 = vpop.f32.mrf.mxu0  ;;  %15207 = vmatprep.subr.bf16.mxu0 %v16615_v47  ;;  %v16656_v56 = vld [vmem:[#allocation22 + $0x2e8] sm:$0xff]   ;;  %v9360_v24 = vrot.slane %v18563_v22, %v17843_v29  ;;  %v16644_v25 = vld [vmem:[#allocation22 + $0x260] sm:$0xff]  }
 0x865   :  { %v9389_v58 = vadd.f32 %v9356_v6, %v7636_v63  ;;  %v14916_v61 = vadd.f32 %v14915_v11, %v14914_v31  ;;  %v16660_v11 = vld [vmem:[#allocation22 + $0x2e0] sm:$0xff]  }
 0x866   :  { %15186 = vmatpush3.bf16.msra.mxu1 %v16616_v13  ;;  %v16643_v13 = vld [vmem:[#allocation22 + $0x228] sm:$0xff]  }
 0x867   :  { %v7639_v3 = vadd.f32 %v14916_v61, %v14894_v41  ;;  %15208 = vmatpush3.bf16.msra.mxu0 %v16617_v50  ;;  %15187 = vmatprep.subr.bf16.mxu1 %v16618_v48  ;;  %v9425_v9 = vmul.f32 0.1, %v9389_v58  ;;  %vm9407_vm2 = vcmp.ge.f32.partialorder %v9389_v58, 0.0  ;;  %v16658_v50 = vld [vmem:[#allocation22 + $0x2a8] sm:$0xff]   ;;  %v16645_v61 = vld [vmem:[#allocation22 + $0x220] sm:$0xff]  }
 0x868   :  { %15209 = vmatprep.subr.bf16.mxu0 %v16619_v60 }
 0x869   :  { %v9398_v14 = vadd.f32 %v9356_v6, %v7639_v3  ;;  %v9443_v55 = vsel %vm9407_vm2, %v9389_v58, %v9425_v9  ;;  %v16646_v3 = vld [vmem:[#allocation22 + $0x258] sm:$0xff]  }
 0x86a   :  { %15188 = vmatpush3.bf16.msra.mxu1 %v16620_v39 }
 0x86b   :  { %v9434_v15 = vmul.f32 0.1, %v9398_v14  ;;  %15210 = vmatpush3.bf16.msra.mxu0 %v16621_v57  ;;  %15189 = vmatprep.subr.bf16.mxu1 %v16622_v23  ;;  %vm9416_vm7 = vcmp.ge.f32.partialorder %v9398_v14, 0.0  ;;  %v16661_v57 = vld [vmem:[#allocation22 + $0x2a0] sm:$0xff]   ;;  %v16662_v23 = vld [vmem:[#allocation22 + $0x2d8] sm:$0xff]  }
 0x86c   :  { %15211 = vmatprep.subr.bf16.mxu0 %v16623_v36 }
 0x86d   :  { %v9452_v35 = vsel %vm9416_vm7, %v9398_v14, %v9434_v15  ;;  %v16647_v14 = vld [vmem:[#allocation22 + $0x218] sm:$0xff]   ;;  %v16649_v15 = vld [vmem:[#allocation22 + $0x250] sm:$0xff]  }
 0x86e   :  { %15190 = vmatpush3.bf16.msra.mxu1 %v16624_v12  ;;  %v18590_v52 = vpack.c.bf16 %v9452_v35, %v9443_v55 }
 0x86f   :  { %15212 = vmatpush3.bf16.msra.mxu0 %v16625_v33  ;;  %15191 = vmatprep.subr.bf16.mxu1 %v16626_v30  ;;  %v16663_v33 = vld [vmem:[#allocation22 + $0x298] sm:$0xff]   ;;  %v16664_v30 = vld [vmem:[#allocation22 + $0x2d0] sm:$0xff]  }
 0x870   :  { %10137 = vmatprep.mubr.bf16.mxu0 %v18590_v52  ;;  %15213 = vmatprep.subr.bf16.mxu0 %v16627_v53 }
 0x872   :  { %15192 = vmatpush3.bf16.msra.mxu1 %v16628_v59  ;;  %v16651_v59 = vld [vmem:[#allocation22 + $0x210] sm:$0xff]  }
 0x873   :  { %15214 = vmatpush3.bf16.msra.mxu0 %v16629_v54  ;;  %15193 = vmatprep.subr.bf16.mxu1 %v16630_v0  ;;  %v16653_v54 = vld [vmem:[#allocation22 + $0x248] sm:$0xff]   ;;  %v16665_v0 = vld [vmem:[#allocation22 + $0x290] sm:$0xff]  }
 0x874   :  { %15215 = vmatprep.subr.bf16.mxu0 %v16631_v62  ;;  %v16666_v62 = vld [vmem:[#allocation22 + $0x2c8] sm:$0xff]  }
 0x876   :  { %15194 = vmatpush3.bf16.msra.mxu1 %v16632_v21  ;;  %v16655_v21 = vld [vmem:[#allocation22 + $0x208] sm:$0xff]  }
 0x877   :  { %15216 = vmatpush3.bf16.msra.mxu0 %v16633_v2  ;;  %15195 = vmatprep.subr.bf16.mxu1 %v16634_v16  ;;  %v16657_v2 = vld [vmem:[#allocation22 + $0x240] sm:$0xff]   ;;  %v16667_v16 = vld [vmem:[#allocation22 + $0x288] sm:$0xff]  }
 0x878   :  { %15217 = vmatprep.subr.bf16.mxu0 %v16635_v20  ;;  %v16668_v20 = vld [vmem:[#allocation22 + $0x2c0] sm:$0xff]  }
 0x87a   :  { %15196 = vmatpush3.bf16.msra.mxu1 %v16636_v51  ;;  %v16659_v51 = vld [vmem:[#allocation22 + $0x200] sm:$0xff]  }
 0x87b   :  { %15218 = vmatpush3.bf16.msra.mxu0 %v16637_v17  ;;  %15225 = vmatprep.subr.bf16.mxu1 %v16638_v1  ;;  %v16669_v17 = vld [vmem:[#allocation22 + $0x280] sm:$0xff]   ;;  %v16670_v1 = vld [vmem:[#allocation22 + $0x378] sm:$0xff]  }
 0x87c   :  { %15247 = vmatprep.subr.bf16.mxu0 %v16648_v32  ;;  %v16686_v32 = vld [vmem:[#allocation22 + $0x3f8] sm:$0xff]  }
 0x87d   :  { %v14933_v44 = vpop.f32.mrf.mxu1  ;;  %9968 = vmatmul.mubr.bf16.vlgmr.msra.gmra.mxu1 %v18568_v8 }
 0x87e   :  { %v14955_v26 = vpop.f32.mrf.mxu0  ;;  %10138 = vmatmul.mubr.bf16.vlgmr.msra.gmra.mxu0 %v18585_v38  ;;  %15226 = vmatpush3.bf16.msra.mxu1 %v16639_v27  ;;  %v16671_v27 = vld [vmem:[#allocation22 + $0x338] sm:$0xff]  }
 0x87f   :  { %v14934_v49 = vpop.f32.mrf.mxu1  ;;  %15227 = vmatprep.subr.bf16.mxu1 %v16640_v37  ;;  %15248 = vmatpush3.bf16.msra.mxu0 %v16650_v19  ;;  %v16672_v37 = vld [vmem:[#allocation22 + $0x370] sm:$0xff]  }
 0x880   :  { %v14935_v42 = vadd.f32 %v14934_v49, %v14933_v44  ;;  %v14956_v47 = vpop.f32.mrf.mxu0  ;;  %15249 = vmatprep.subr.bf16.mxu0 %v16652_v40  ;;  %v16673_v44 = vld [vmem:[#allocation22 + $0x330] sm:$0xff]  }
 0x881   :  { %v14957_v6 = vadd.f32 %v14956_v47, %v14955_v26  ;;  %v14936_v31 = vpop.f32.mrf.mxu1 }
 0x882   :  { %v14958_v8 = vpop.f32.mrf.mxu0  ;;  %15228 = vmatpush3.bf16.msra.mxu1 %v16641_v45  ;;  %v16674_v45 = vld [vmem:[#allocation22 + $0x368] sm:$0xff]  }
 0x883   :  { %v7975_v38 = vadd.f32 %v14957_v6, %v14935_v42  ;;  %v14937_v63 = vpop.f32.mrf.mxu1  ;;  %15229 = vmatprep.subr.bf16.mxu1 %v16642_v43  ;;  %15250 = vmatpush3.bf16.msra.mxu0 %v16654_v18  ;;  %v9364_v42 = vrot.slane %v18563_v22, %v18759_v34  ;;  %v16675_v6 = vld [vmem:[#allocation22 + $0x328] sm:$0xff]  }
 0x884   :  { %v14938_v48 = vadd.f32 %v14937_v63, %v14936_v31  ;;  %v14959_v41 = vpop.f32.mrf.mxu0  ;;  %15251 = vmatprep.subr.bf16.mxu0 %v16656_v56 }
 0x885   :  { %v9390_v60 = vadd.f32 %v9360_v24, %v7975_v38  ;;  %v14960_v58 = vadd.f32 %v14959_v41, %v14958_v8 }
 0x886   :  { %15230 = vmatpush3.bf16.msra.mxu1 %v16643_v13 }
 0x887   :  { %v7978_v39 = vadd.f32 %v14960_v58, %v14938_v48  ;;  %15231 = vmatprep.subr.bf16.mxu1 %v16644_v25  ;;  %15252 = vmatpush3.bf16.msra.mxu0 %v16658_v50  ;;  %v9426_v36 = vmul.f32 0.1, %v9390_v60  ;;  %vm9408_vm8 = vcmp.ge.f32.partialorder %v9390_v60, 0.0  ;;  %v16677_v25 = vld [vmem:[#allocation22 + $0x320] sm:$0xff]   ;;  %v16678_v48 = vld [vmem:[#allocation22 + $0x358] sm:$0xff]  }
 0x888   :  { %15253 = vmatprep.subr.bf16.mxu0 %v16660_v11 }
 0x889   :  { %v9399_v9 = vadd.f32 %v9360_v24, %v7978_v39  ;;  %v9444_v53 = vsel %vm9408_vm8, %v9390_v60, %v9426_v36  ;;  %v16679_v60 = vld [vmem:[#allocation22 + $0x318] sm:$0xff]  }
 0x88a   :  { %15232 = vmatpush3.bf16.msra.mxu1 %v16645_v61  ;;  %v16680_v61 = vld [vmem:[#allocation22 + $0x350] sm:$0xff]   ;;  %v16687_v36 = vld [vmem:[#allocation22 + $0x3b8] sm:$0xff]  }
 0x88b   :  { %v9435_v12 = vmul.f32 0.1, %v9399_v9  ;;  %15233 = vmatprep.subr.bf16.mxu1 %v16646_v3  ;;  %vm9417_vm9 = vcmp.ge.f32.partialorder %v9399_v9, 0.0  ;;  %15254 = vmatpush3.bf16.msra.mxu0 %v16661_v57 }
 0x88c   :  { %15255 = vmatprep.subr.bf16.mxu0 %v16662_v23  ;;  %v16681_v23 = vld [vmem:[#allocation22 + $0x310] sm:$0xff]  }
 0x88d   :  { %v9453_v55 = vsel %vm9417_vm9, %v9399_v9, %v9435_v12  ;;  %v16682_v9 = vld [vmem:[#allocation22 + $0x348] sm:$0xff]  }
 0x88e   :  { %15234 = vmatpush3.bf16.msra.mxu1 %v16647_v14  ;;  %v18597_v35 = vpack.c.bf16 %v9453_v55, %v9444_v53  ;;  %v16688_v14 = vld [vmem:[#allocation22 + $0x3f0] sm:$0xff]   ;;  %v16683_v12 = vld [vmem:[#allocation22 + $0x308] sm:$0xff]   ;;  %v16685_v53 = vld [vmem:[#allocation22 + $0x300] sm:$0xff]  }
 0x88f   :  { %15235 = vmatprep.subr.bf16.mxu1 %v16649_v15  ;;  %15256 = vmatpush3.bf16.msra.mxu0 %v16663_v33  ;;  %v16689_v15 = vld [vmem:[#allocation22 + $0x3b0] sm:$0xff]   ;;  %v16684_v33 = vld [vmem:[#allocation22 + $0x340] sm:$0xff]   ;;  %v16691_v55 = vld [vmem:[#allocation22 + $0x3a8] sm:$0xff]  }
 0x890   :  { %10307 = vmatprep.mubr.bf16.mxu1 %v18597_v35  ;;  %15257 = vmatprep.subr.bf16.mxu0 %v16664_v30  ;;  %v16690_v30 = vld [vmem:[#allocation22 + $0x3e8] sm:$0xff]  }
 0x892   :  { %15236 = vmatpush3.bf16.msra.mxu1 %v16651_v59  ;;  %v16692_v59 = vld [vmem:[#allocation22 + $0x3e0] sm:$0xff]  }
 0x893   :  { %15237 = vmatprep.subr.bf16.mxu1 %v16653_v54  ;;  %15258 = vmatpush3.bf16.msra.mxu0 %v16665_v0  ;;  %v16702_v54 = vld [vmem:[#allocation22 + $0x478] sm:$0xff]   ;;  %v16693_v0 = vld [vmem:[#allocation22 + $0x3a0] sm:$0xff]  }
 0x894   :  { %15259 = vmatprep.subr.bf16.mxu0 %v16666_v62 }
 0x896   :  { %15238 = vmatpush3.bf16.msra.mxu1 %v16655_v21 }
 0x897   :  { %15239 = vmatprep.subr.bf16.mxu1 %v16657_v2  ;;  %15260 = vmatpush3.bf16.msra.mxu0 %v16667_v16  ;;  %v16695_v2 = vld [vmem:[#allocation22 + $0x398] sm:$0xff]  }
 0x898   :  { %15261 = vmatprep.subr.bf16.mxu0 %v16668_v20  ;;  %v16696_v20 = vld [vmem:[#allocation22 + $0x3d0] sm:$0xff]  }
 0x89a   :  { %15240 = vmatpush3.bf16.msra.mxu1 %v16659_v51 }
 0x89b   :  { %15262 = vmatpush3.bf16.msra.mxu0 %v16669_v17  ;;  %15269 = vmatprep.subr.bf16.mxu1 %v16670_v1 }
 0x89c   :  { %15291 = vmatprep.subr.bf16.mxu0 %v16686_v32  ;;  %v9368_v32 = vrot.slane %v18563_v22, %v18758_v4 }
 0x89d   :  { %v14977_v19 = vpop.f32.mrf.mxu1  ;;  %10308 = vmatmul.mubr.bf16.vlgmr.msra.gmra.mxu1 %v18590_v52  ;;  %v16676_v52 = vld [vmem:[#allocation22 + $0x360] sm:$0xff]  }
 0x89e   :  { %v14999_v40 = vpop.f32.mrf.mxu0  ;;  %15270 = vmatpush3.bf16.msra.mxu1 %v16671_v27 }
 0x89f   :  { %v14978_v26 = vpop.f32.mrf.mxu1  ;;  %15271 = vmatprep.subr.bf16.mxu1 %v16672_v37 }
 0x8a0   :  { %v14979_v49 = vadd.f32 %v14978_v26, %v14977_v19  ;;  %v15000_v43 = vpop.f32.mrf.mxu0  ;;  %v16697_v19 = vld [vmem:[#allocation22 + $0x390] sm:$0xff]   ;;  %v16698_v26 = vld [vmem:[#allocation22 + $0x3c8] sm:$0xff]  }
 0x8a1   :  { %v15001_v18 = vadd.f32 %v15000_v43, %v14999_v40  ;;  %v14980_v47 = vpop.f32.mrf.mxu1 }
 0x8a2   :  { %v15002_v56 = vpop.f32.mrf.mxu0  ;;  %15272 = vmatpush3.bf16.msra.mxu1 %v16673_v44 }
 0x8a3   :  { %v8314_v24 = vadd.f32 %v15001_v18, %v14979_v49  ;;  %v14981_v31 = vpop.f32.mrf.mxu1  ;;  %15273 = vmatprep.subr.bf16.mxu1 %v16674_v45 }
 0x8a4   :  { %v14982_v8 = vadd.f32 %v14981_v31, %v14980_v47  ;;  %v15003_v13 = vpop.f32.mrf.mxu0  ;;  %v16701_v31 = vld [vmem:[#allocation22 + $0x380] sm:$0xff]  }
 0x8a5   :  { %v9391_v38 = vadd.f32 %v9364_v42, %v8314_v24  ;;  %v15004_v63 = vadd.f32 %v15003_v13, %v15002_v56  ;;  %v16700_v56 = vld [vmem:[#allocation22 + $0x3c0] sm:$0xff]  }
 0x8a6   :  { %15274 = vmatpush3.bf16.msra.mxu1 %v16675_v6 }
 0x8a7   :  { %v8317_v50 = vadd.f32 %v15004_v63, %v14982_v8  ;;  %15275 = vmatprep.subr.bf16.mxu1 %v16676_v52  ;;  %v9427_v41 = vmul.f32 0.1, %v9391_v38  ;;  %vm9409_vm10 = vcmp.ge.f32.partialorder %v9391_v38, 0.0  ;;  %v16703_v8 = vld [vmem:[#allocation22 + $0x4f8] sm:$0xff]  }
 0x8a9   :  { %v9400_v11 = vadd.f32 %v9364_v42, %v8317_v50  ;;  %v9445_v39 = vsel %vm9409_vm10, %v9391_v38, %v9427_v41  ;;  %v16699_v42 = vld [vmem:[#allocation22 + $0x388] sm:$0xff]   ;;  %v16706_v50 = vld [vmem:[#allocation22 + $0x470] sm:$0xff]  }
 0x8aa   :  { %15276 = vmatpush3.bf16.msra.mxu1 %v16677_v25  ;;  %v16704_v25 = vld [vmem:[#allocation22 + $0x438] sm:$0xff]   ;;  %v16710_v41 = vld [vmem:[#allocation22 + $0x468] sm:$0xff]  }
 0x8ab   :  { %v9436_v58 = vmul.f32 0.1, %v9400_v11  ;;  %vm9418_vm11 = vcmp.ge.f32.partialorder %v9400_v11, 0.0  ;;  %15277 = vmatprep.subr.bf16.mxu1 %v16678_v48  ;;  %v16708_v48 = vld [vmem:[#allocation22 + $0x430] sm:$0xff]  }
 0x8ad   :  { %v9454_v3 = vsel %vm9418_vm11, %v9400_v11, %v9436_v58  ;;  %v16712_v11 = vld [vmem:[#allocation22 + $0x428] sm:$0xff]   ;;  %v16716_v58 = vld [vmem:[#allocation22 + $0x420] sm:$0xff]  }
 0x8ae   :  { %v18603_v57 = vpack.c.bf16 %v9454_v3, %v9445_v39  ;;  %15278 = vmatpush3.bf16.msra.mxu1 %v16679_v60  ;;  %v16714_v60 = vld [vmem:[#allocation22 + $0x460] sm:$0xff]  }
 0x8af   :  { %15279 = vmatprep.subr.bf16.mxu1 %v16680_v61  ;;  %v16718_v61 = vld [vmem:[#allocation22 + $0x458] sm:$0xff]  }
 0x8b0   :  { %10477 = vmatprep.mubr.bf16.mxu0 %v18603_v57 }
 0x8b1   :  { %10478 = vmatmul.mubr.bf16.vlgmr.msra.gmra.mxu0 %v18597_v35  ;;  %v16694_v35 = vld [vmem:[#allocation22 + $0x3d8] sm:$0xff]  }
 0x8b2   :  { %15280 = vmatpush3.bf16.msra.mxu1 %v16681_v23  ;;  %15292 = vmatpush3.bf16.msra.mxu0 %v16687_v36  ;;  %v16720_v23 = vld [vmem:[#allocation22 + $0x418] sm:$0xff]  }
 0x8b3   :  { %15281 = vmatprep.subr.bf16.mxu1 %v16682_v9  ;;  %15293 = vmatprep.subr.bf16.mxu0 %v16688_v14  ;;  %v16722_v9 = vld [vmem:[#allocation22 + $0x450] sm:$0xff]  }
 0x8b6   :  { %15282 = vmatpush3.bf16.msra.mxu1 %v16683_v12  ;;  %15294 = vmatpush3.bf16.msra.mxu0 %v16689_v15  ;;  %v9372_v15 = vrot.slane %v18563_v22, %v18760_v5  ;;  %v16732_v22 = vld [vmem:[#allocation22 + $0x400] sm:$0xff]  }
 0x8b7   :  { %15283 = vmatprep.subr.bf16.mxu1 %v16684_v33  ;;  %15295 = vmatprep.subr.bf16.mxu0 %v16690_v30 }
 0x8ba   :  { %15284 = vmatpush3.bf16.msra.mxu1 %v16685_v53  ;;  %15296 = vmatpush3.bf16.msra.mxu0 %v16691_v55  ;;  %v16724_v53 = vld [vmem:[#allocation22 + $0x410] sm:$0xff]  }
 0x8bb   :  { %15297 = vmatprep.subr.bf16.mxu0 %v16692_v59  ;;  %15313 = vmatprep.subr.bf16.mxu1 %v16702_v54  ;;  %v16726_v54 = vld [vmem:[#allocation22 + $0x448] sm:$0xff]  }
 0x8bd   :  { %v15021_v62 = vpop.f32.mrf.mxu1 }
 0x8be   :  { %v15043_v21 = vpop.f32.mrf.mxu0  ;;  %15298 = vmatpush3.bf16.msra.mxu0 %v16693_v0 }
 0x8bf   :  { %v15022_v16 = vpop.f32.mrf.mxu1  ;;  %15299 = vmatprep.subr.bf16.mxu0 %v16694_v35 }
 0x8c0   :  { %v15023_v51 = vadd.f32 %v15022_v16, %v15021_v62  ;;  %v15044_v17 = vpop.f32.mrf.mxu0 }
 0x8c1   :  { %v15045_v1 = vadd.f32 %v15044_v17, %v15043_v21  ;;  %v15024_v27 = vpop.f32.mrf.mxu1 }
 0x8c2   :  { %v15046_v37 = vpop.f32.mrf.mxu0  ;;  %15300 = vmatpush3.bf16.msra.mxu0 %v16695_v2  ;;  %v16728_v2 = vld [vmem:[#allocation22 + $0x408] sm:$0xff]  }
 0x8c3   :  { %v8653_v40 = vadd.f32 %v15045_v1, %v15023_v51  ;;  %v15025_v44 = vpop.f32.mrf.mxu1  ;;  %15301 = vmatprep.subr.bf16.mxu0 %v16696_v20  ;;  %v16730_v20 = vld [vmem:[#allocation22 + $0x440] sm:$0xff]  }
 0x8c4   :  { %v15026_v45 = vadd.f32 %v15025_v44, %v15024_v27  ;;  %v15047_v49 = vpop.f32.mrf.mxu0  ;;  %v16707_v44 = vld [vmem:[#allocation22 + $0x4f0] sm:$0xff]  }
 0x8c5   :  { %v9392_v43 = vadd.f32 %v9368_v32, %v8653_v40  ;;  %v15048_v18 = vadd.f32 %v15047_v49, %v15046_v37  ;;  %v16705_v40 = vld [vmem:[#allocation22 + $0x4b8] sm:$0xff]   ;;  %v16713_v49 = vld [vmem:[#allocation22 + $0x4a8] sm:$0xff]  }
 0x8c6   :  { %15302 = vmatpush3.bf16.msra.mxu0 %v16697_v19 }
 0x8c7   :  { %v8656_v47 = vadd.f32 %v15048_v18, %v15026_v45  ;;  %15303 = vmatprep.subr.bf16.mxu0 %v16698_v26  ;;  %v9428_v6 = vmul.f32 0.1, %v9392_v43  ;;  %vm9410_vm12 = vcmp.ge.f32.partialorder %v9392_v43, 0.0  ;;  %v16709_v26 = vld [vmem:[#allocation22 + $0x4b0] sm:$0xff]   ;;  %v16711_v45 = vld [vmem:[#allocation22 + $0x4e8] sm:$0xff]   ;;  %v16717_v18 = vld [vmem:[#allocation22 + $0x4a0] sm:$0xff]  }
 0x8c9   :  { %v9401_v24 = vadd.f32 %v9368_v32, %v8656_v47  ;;  %v9446_v13 = vsel %vm9410_vm12, %v9392_v43, %v9428_v6  ;;  %v16736_v32 = vld [vmem:[#allocation25 + $0xac] ss:$12 sps:$4 sm:$0xff]  }
 0x8ca   :  { %15304 = vmatpush3.bf16.msra.mxu0 %v16699_v42  ;;  %v16715_v43 = vld [vmem:[#allocation22 + $0x4e0] sm:$0xff]   ;;  %v16719_v42 = vld [vmem:[#allocation22 + $0x4d8] sm:$0xff]  }
 0x8cb   :  { %v9437_v52 = vmul.f32 0.1, %v9401_v24  ;;  %vm9419_vm13 = vcmp.ge.f32.partialorder %v9401_v24, 0.0  ;;  %15305 = vmatprep.subr.bf16.mxu0 %v16700_v56  ;;  %v16721_v6 = vld [vmem:[#allocation22 + $0x498] sm:$0xff]  }
 0x8cd   :  { %v9455_v38 = vsel %vm9419_vm13, %v9401_v24, %v9437_v52 }
 0x8ce   :  { %v18609_v63 = vpack.c.bf16 %v9455_v38, %v9446_v13  ;;  %15306 = vmatpush3.bf16.msra.mxu0 %v16701_v31  ;;  %v16723_v31 = vld [vmem:[#allocation22 + $0x4d0] sm:$0xff]  }
 0x8cf   :  { %15335 = vmatprep.subr.bf16.mxu0 %v16703_v8 }
 0x8d0   :  { %10647 = vmatprep.mubr.bf16.mxu1 %v18609_v63 }
 0x8d1   :  { %10648 = vmatmul.mubr.bf16.vlgmr.msra.gmra.mxu1 %v18603_v57 }
 0x8d2   :  { %15314 = vmatpush3.bf16.msra.mxu1 %v16704_v25 }
 0x8d3   :  { %15315 = vmatprep.subr.bf16.mxu1 %v16706_v50  ;;  %v16725_v50 = vld [vmem:[#allocation22 + $0x490] sm:$0xff]  }
 0x8d6   :  { %15316 = vmatpush3.bf16.msra.mxu1 %v16708_v48 }
 0x8d7   :  { %15317 = vmatprep.subr.bf16.mxu1 %v16710_v41 }
 0x8da   :  { %15318 = vmatpush3.bf16.msra.mxu1 %v16712_v11  ;;  %v16727_v11 = vld [vmem:[#allocation22 + $0x4c8] sm:$0xff]  }
 0x8db   :  { %15319 = vmatprep.subr.bf16.mxu1 %v16714_v60 }
 0x8dd   :  { %v15065_v39 = vpop.f32.mrf.mxu1 }
 0x8de   :  { %v15087_v3 = vpop.f32.mrf.mxu0  ;;  %15320 = vmatpush3.bf16.msra.mxu1 %v16716_v58 }
 0x8df   :  { %v15066_v36 = vpop.f32.mrf.mxu1  ;;  %15321 = vmatprep.subr.bf16.mxu1 %v16718_v61 }
 0x8e0   :  { %v15067_v57 = vadd.f32 %v15066_v36, %v15065_v39  ;;  %v15088_v14 = vpop.f32.mrf.mxu0  ;;  %v16731_v36 = vld [vmem:[#allocation22 + $0x4c0] sm:$0xff]  }
 0x8e1   :  { %v15089_v12 = vadd.f32 %v15088_v14, %v15087_v3  ;;  %v15068_v33 = vpop.f32.mrf.mxu1  ;;  %v16729_v3 = vld [vmem:[#allocation22 + $0x488] sm:$0xff]   ;;  %v16733_v14 = vld [vmem:[#allocation22 + $0x480] sm:$0xff]  }
 0x8e2   :  { %v15090_v30 = vpop.f32.mrf.mxu0  ;;  %15322 = vmatpush3.bf16.msra.mxu1 %v16720_v23 }
 0x8e3   :  { %v8992_v55 = vadd.f32 %v15089_v12, %v15067_v57  ;;  %v15069_v59 = vpop.f32.mrf.mxu1  ;;  %15323 = vmatprep.subr.bf16.mxu1 %v16722_v9 }
 0x8e4   :  { %v15070_v0 = vadd.f32 %v15069_v59, %v15068_v33  ;;  %v15091_v35 = vpop.f32.mrf.mxu0  ;;  %v16737_v59 = vld [vmem:[#allocation25 + $0x228] ss:$12 sps:$4 sm:$0xff]  }
 0x8e5   :  { %v9393_v62 = vadd.f32 %v9372_v15, %v8992_v55  ;;  %v15092_v21 = vadd.f32 %v15091_v35, %v15090_v30  ;;  %v16734_v55 = vld [vmem:[#allocation25 + $0xa8] ss:$12 sps:$4 sm:$0xff]   ;;  %v16740_v35 = vld [vmem:[#allocation25 + $0x90] ss:$12 sps:$4 sm:$0xff]  }
 0x8e6   :  { %15324 = vmatpush3.bf16.msra.mxu1 %v16724_v53 }
 0x8e7   :  { %v8995_v16 = vadd.f32 %v15092_v21, %v15070_v0  ;;  %15325 = vmatprep.subr.bf16.mxu1 %v16726_v54  ;;  %v9429_v51 = vmul.f32 0.1, %v9393_v62  ;;  %vm9411_vm14 = vcmp.ge.f32.partialorder %v9393_v62, 0.0  ;;  %v16742_v54 = vld [vmem:[#allocation25 + $0x94] ss:$12 sps:$4 sm:$0xff]  }
 0x8e8   :  { %v16745_v0 = vld [vmem:[#allocation25 + $0x214] ss:$12 sps:$4 sm:$0xff]   ;;  %v16748_v21 = vld [vmem:[#allocation25 + $0x7c] ss:$12 sps:$4 sm:$0xff]  }
 0x8e9   :  { %v9402_v17 = vadd.f32 %v9372_v15, %v8995_v16  ;;  %v9447_v27 = vsel %vm9411_vm14, %v9393_v62, %v9429_v51  ;;  %v16739_v15 = vld [vmem:[#allocation25 + $0x22c] ss:$12 sps:$4 sm:$0xff]   ;;  %v16743_v62 = vld [vmem:[#allocation25 + $0x210] ss:$12 sps:$4 sm:$0xff]  }
 0x8ea   :  { %15326 = vmatpush3.bf16.msra.mxu1 %v16728_v2  ;;  %v16751_v2 = vld [vmem:[#allocation25 + $0x1fc] ss:$12 sps:$4 sm:$0xff]   ;;  %v16746_v16 = vld [vmem:[#allocation25 + $0x78] ss:$12 sps:$4 sm:$0xff]  }
 0x8eb   :  { %v9438_v1 = vmul.f32 0.1, %v9402_v17  ;;  %vm9420_vm15 = vcmp.ge.f32.partialorder %v9402_v17, 0.0  ;;  %15327 = vmatprep.subr.bf16.mxu1 %v16730_v20  ;;  %v16749_v20 = vld [vmem:[#allocation25 + $0x1f8] ss:$12 sps:$4 sm:$0xff]  }
 0x8ec   :  { %v16754_v51 = vld [vmem:[#allocation25 + $0x64] ss:$12 sps:$4 sm:$0xff]  }
 0x8ed   :  { %v9456_v37 = vsel %vm9420_vm15, %v9402_v17, %v9438_v1  ;;  %v16757_v17 = vld [vmem:[#allocation25 + $0x1e4] ss:$12 sps:$4 sm:$0xff]   ;;  %v16755_v1 = vld [vmem:[#allocation25 + $0x1e0] ss:$12 sps:$4 sm:$0xff]  }
 0x8ee   :  { %v18615_v19 = vpack.c.bf16 %v9456_v37, %v9447_v27  ;;  %15328 = vmatpush3.bf16.msra.mxu1 %v16732_v22  ;;  %v16752_v22 = vld [vmem:[#allocation25 + $0x60] ss:$12 sps:$4 sm:$0xff]   ;;  %v18621_v37 = vld [vmem:[#allocation24] sm:$0xff] }
 0x8ef   :  { %12927 = vmatprep.subr.bf16.mxu1 %v16736_v32  ;;  %v16760_v32 = vld [vmem:[#allocation25 + $0x4c] ss:$12 sps:$4 sm:$0xff]  }
 0x8f0   :  { %10817 = vmatprep.mubr.bf16.mxu0 %v18615_v19  ;;  %v16763_v27 = vld [vmem:[#allocation25 + $0x1cc] ss:$12 sps:$4 sm:$0xff]  }
 0x8f1   :  { %10818 = vmatmul.mubr.bf16.vlgmr.msra.gmra.mxu0 %v18609_v63  ;;  %v14296_v63 = vld [vmem:[#allocation21 + $0x8] ss:$0 sm:$0xff] }
 0x8f2   :  { %15336 = vmatpush3.bf16.msra.mxu0 %v16705_v40  ;;  %v16758_v40 = vld [vmem:[#allocation25 + $0x48] ss:$12 sps:$4 sm:$0xff]  }
 0x8f3   :  { %15337 = vmatprep.subr.bf16.mxu0 %v16707_v44  ;;  %v16761_v44 = vld [vmem:[#allocation25 + $0x1c8] ss:$12 sps:$4 sm:$0xff]  }
 0x8f6   :  { %15338 = vmatpush3.bf16.msra.mxu0 %v16709_v26  ;;  %v11177_v26 = vrot.slane %v18621_v37, %v18761_v10 }
 0x8f7   :  { %15339 = vmatprep.subr.bf16.mxu0 %v16711_v45  ;;  %v16766_v45 = vld [vmem:[#allocation25 + $0x34] ss:$12 sps:$4 sm:$0xff]  }
 0x8fa   :  { %15340 = vmatpush3.bf16.msra.mxu0 %v16713_v49  ;;  %v16769_v49 = vld [vmem:[#allocation25 + $0x1b4] ss:$12 sps:$4 sm:$0xff]  }
 0x8fb   :  { %15341 = vmatprep.subr.bf16.mxu0 %v16715_v43 }
 0x8fd   :  { %v15109_v47 = vpop.f32.mrf.mxu1 }
 0x8fe   :  { %15342 = vmatpush3.bf16.msra.mxu0 %v16717_v18  ;;  %v15131_v56 = vpop.f32.mrf.mxu0 }
 0x8ff   :  { %v15110_v24 = vpop.f32.mrf.mxu1  ;;  %15343 = vmatprep.subr.bf16.mxu0 %v16719_v42 }
 0x900   :  { %v15111_v52 = vadd.f32 %v15110_v24, %v15109_v47  ;;  %v15132_v8 = vpop.f32.mrf.mxu0  ;;  %v16764_v47 = vld [vmem:[#allocation25 + $0x30] ss:$12 sps:$4 sm:$0xff]  }
 0x901   :  { %v15133_v13 = vadd.f32 %v15132_v8, %v15131_v56  ;;  %v15112_v38 = vpop.f32.mrf.mxu1  ;;  %v16767_v56 = vld [vmem:[#allocation25 + $0x1b0] ss:$12 sps:$4 sm:$0xff]  }
 0x902   :  { %15344 = vmatpush3.bf16.msra.mxu0 %v16721_v6  ;;  %v15134_v25 = vpop.f32.mrf.mxu0  ;;  %v16772_v24 = vld [vmem:[#allocation25 + $0x1c] ss:$12 sps:$4 sm:$0xff]  }
 0x903   :  { %v9331_v48 = vadd.f32 %v15133_v13, %v15111_v52  ;;  %v15113_v41 = vpop.f32.mrf.mxu1  ;;  %15345 = vmatprep.subr.bf16.mxu0 %v16723_v31  ;;  %v16775_v31 = vld [vmem:[#allocation25 + $0x19c] ss:$12 sps:$4 sm:$0xff]   ;;  %v16770_v13 = vld [vmem:[#allocation25 + $0x18] ss:$12 sps:$4 sm:$0xff]  }
 0x904   :  { %v15114_v60 = vadd.f32 %v15113_v41, %v15112_v38  ;;  %v15135_v58 = vpop.f32.mrf.mxu0  ;;  %v16773_v38 = vld [vmem:[#allocation25 + $0x198] ss:$12 sps:$4 sm:$0xff]  }
 0x905   :  { %v9394_v61 = vadd.f32 %v14296_v63, %v9331_v48  ;;  %v15136_v39 = vadd.f32 %v15135_v58, %v15134_v25  ;;  %v16781_v48 = vld [vmem:[#allocation25 + $0x184] ss:$12 sps:$4 sm:$0xff]  }
 0x906   :  { %15346 = vmatpush3.bf16.msra.mxu0 %v16725_v50  ;;  %v16778_v50 = vld [vmem:[#allocation25 + $0x4] ss:$12 sps:$4 sm:$0xff]  }
 0x907   :  { %v9334_v23 = vadd.f32 %v15136_v39, %v15114_v60  ;;  %15347 = vmatprep.subr.bf16.mxu0 %v16727_v11  ;;  %v9430_v9 = vmul.f32 0.1, %v9394_v61  ;;  %vm9412_vm0 = vcmp.ge.f32.partialorder %v9394_v61, 0.0  ;;  %v16776_v11 = vld [vmem:[#allocation25] ss:$12 sps:$4 sm:$0xff]  }
 0x908   :  { %v16779_v60 = vld [vmem:[#allocation25 + $0x180] ss:$12 sps:$4 sm:$0xff]  }
 0x909   :  { %v9403_v57 = vadd.f32 %v14296_v63, %v9334_v23  ;;  %v9448_v33 = vsel %vm9412_vm0, %v9394_v61, %v9430_v9  ;;  %v16784_v39 = vld [vmem:[#allocation25 + $0x16c] ss:$12 sps:$4 sm:$0xff]   ;;  %v16785_v9 = vld [vmem:[#allocation25 + $0x2e8] ss:$12 sps:$4 sm:$0xff]  }
 0x90a   :  { %15348 = vmatpush3.bf16.msra.mxu0 %v16729_v3  ;;  %v16787_v23 = vld [vmem:[#allocation25 + $0x2ec] ss:$12 sps:$4 sm:$0xff]  }
 0x90b   :  { %v9439_v12 = vmul.f32 0.1, %v9403_v57  ;;  %15349 = vmatprep.subr.bf16.mxu0 %v16731_v36  ;;  %vm9421_vm1 = vcmp.ge.f32.partialorder %v9403_v57, 0.0  ;;  %v16782_v36 = vld [vmem:[#allocation25 + $0x168] ss:$12 sps:$4 sm:$0xff]  }
 0x90d   :  { %v9457_v30 = vsel %vm9421_vm1, %v9403_v57, %v9439_v12  ;;  %v16793_v12 = vld [vmem:[#allocation25 + $0x2d4] ss:$12 sps:$4 sm:$0xff]  }
 0x90e   :  { %15350 = vmatpush3.bf16.msra.mxu0 %v16733_v14  ;;  %v9466_v53 = vpack.c.bf16 %v9457_v30, %v9448_v33  ;;  %v16790_v14 = vld [vmem:[#allocation25 + $0x154] ss:$12 sps:$4 sm:$0xff]   ;;  %v16791_v33 = vld [vmem:[#allocation25 + $0x2d0] ss:$12 sps:$4 sm:$0xff]  }
 0x90f   :  { %12970 = vmatprep.subr.bf16.mxu0 %v16739_v15  ;;  %v16788_v15 = vld [vmem:[#allocation25 + $0x150] ss:$12 sps:$4 sm:$0xff]  }
 0x910   :  { %10987 = vmatprep.mubr.bf16.mxu1 %v9466_v53  ;;  %11157 = vmatprep.mubr.bf16.mxu0 %v9466_v53  ;;  %v16796_v53 = vld [vmem:[#allocation25 + $0x13c] ss:$12 sps:$4 sm:$0xff]  }
 0x911   :  { %10988 = vmatmul.mubr.bf16.vlgmr.msra.gmra.mxu1 %v18615_v19  ;;  %11158 = vmatmul.mubr.bf16.vlgmr.msra.gmra.mxu0 %v18615_v19 }
 0x912   :  { %12928 = vmatpush1.bf16.msra.mxu1 %v16734_v55  ;;  %12971 = vmatpush1.bf16.msra.mxu0 %v16737_v59  ;;  %v16799_v55 = vld [vmem:[#allocation25 + $0x2bc] ss:$12 sps:$4 sm:$0xff]   ;;  %v16794_v59 = vld [vmem:[#allocation25 + $0x138] ss:$12 sps:$4 sm:$0xff]  }
 0x913   :  { %12929 = vmatprep.subr.bf16.mxu1 %v16742_v54  ;;  %12972 = vmatprep.subr.bf16.mxu0 %v16745_v0  ;;  %v16797_v54 = vld [vmem:[#allocation25 + $0x2b8] ss:$12 sps:$4 sm:$0xff]  }
 0x916   :  { %12930 = vmatpush1.bf16.msra.mxu1 %v16740_v35  ;;  %12973 = vmatpush1.bf16.msra.mxu0 %v16743_v62  ;;  %v16802_v35 = vld [vmem:[#allocation25 + $0x124] ss:$12 sps:$4 sm:$0xff]  }
 0x917   :  { %12931 = vmatprep.subr.bf16.mxu1 %v16748_v21  ;;  %12974 = vmatprep.subr.bf16.mxu0 %v16751_v2  ;;  %v16805_v62 = vld [vmem:[#allocation25 + $0x2a4] ss:$12 sps:$4 sm:$0xff]   ;;  %v16800_v21 = vld [vmem:[#allocation25 + $0x120] ss:$12 sps:$4 sm:$0xff]  }
 0x918   :  { %v16803_v2 = vld [vmem:[#allocation25 + $0x2a0] ss:$12 sps:$4 sm:$0xff]  }
 0x91a   :  { %12932 = vmatpush1.bf16.msra.mxu1 %v16746_v16  ;;  %12975 = vmatpush1.bf16.msra.mxu0 %v16749_v20  ;;  %v16808_v20 = vld [vmem:[#allocation25 + $0x10c] ss:$12 sps:$4 sm:$0xff]  }
 0x91b   :  { %12933 = vmatprep.subr.bf16.mxu1 %v16754_v51  ;;  %12976 = vmatprep.subr.bf16.mxu0 %v16757_v17  ;;  %v16811_v51 = vld [vmem:[#allocation25 + $0x28c] ss:$12 sps:$4 sm:$0xff]  }
 0x91d   :  { %v15153_v57 = vpop.f32.mrf.mxu1 }
 0x91e   :  { %12934 = vmatpush1.bf16.msra.mxu1 %v16752_v22  ;;  %12977 = vmatpush1.bf16.msra.mxu0 %v16755_v1  ;;  %v15175_v19 = vpop.f32.mrf.mxu0  ;;  %v16806_v1 = vld [vmem:[#allocation25 + $0x108] ss:$12 sps:$4 sm:$0xff]  }
 0x91f   :  { %12935 = vmatprep.subr.bf16.mxu1 %v16760_v32  ;;  %12978 = vmatprep.subr.bf16.mxu0 %v16763_v27  ;;  %v15154_v30 = vpop.f32.mrf.mxu1  ;;  %v16809_v32 = vld [vmem:[#allocation25 + $0x288] ss:$12 sps:$4 sm:$0xff]  }
 0x920   :  { %v15176_v43 = vpop.f32.mrf.mxu0 }
 0x921   :  { %v15177_v18 = vadd.f32 %v15176_v43, %v15175_v19  ;;  %v15156_v0 = vpop.f32.mrf.mxu1  ;;  %v11185_v19 = vrot.slane %v18621_v37, %v17804_v28  ;;  %v16812_v28 = vld [vmem:[#allocation25 + $0xf0] ss:$12 sps:$4 sm:$0xff]  }
 0x922   :  { %12936 = vmatpush1.bf16.msra.mxu1 %v16758_v40  ;;  %12979 = vmatpush1.bf16.msra.mxu0 %v16761_v44  ;;  %v15178_v42 = vpop.f32.mrf.mxu0  ;;  %v16814_v40 = vld [vmem:[#allocation25 + $0xf4] ss:$12 sps:$4 sm:$0xff]  }
 0x923   :  { %v11221_v6 = vadd.f32 %v15177_v18, %v11177_v26  ;;  %12937 = vmatprep.subr.bf16.mxu1 %v16766_v45  ;;  %12980 = vmatprep.subr.bf16.mxu0 %v16769_v49  ;;  %v15157_v16 = vpop.f32.mrf.mxu1  ;;  %v16817_v44 = vld [vmem:[#allocation25 + $0x274] ss:$12 sps:$4 sm:$0xff]   ;;  %v11173_v49 = vrot.slane %v18621_v37, %v18762_v46 }
 0x924   :  { %v15179_v52 = vpop.f32.mrf.mxu0 }
 0x925   :  { %v15180_v8 = vadd.f32 %v15179_v52, %v15178_v42  ;;  %v11261_v63 = vmul.f32 0.1, %v11221_v6  ;;  %vm11241_vm3 = vcmp.ge.f32.partialorder %v11221_v6, 0.0  ;;  %v15155_v42 = vadd.f32 %v15154_v30, %v15153_v57  ;;  %v16827_v30 = vld [vmem:[#allocation25 + $0x240] ss:$12 sps:$4 sm:$0xff]  }
 0x926   :  { %12938 = vmatpush1.bf16.msra.mxu1 %v16764_v47  ;;  %12981 = vmatpush1.bf16.msra.mxu0 %v16767_v56  ;;  %v11181_v56 = vrot.slane %v18621_v37, %v18763_v7 }
 0x927   :  { %v11231_v25 = vadd.f32 %v15180_v8, %v11177_v26  ;;  %12939 = vmatprep.subr.bf16.mxu1 %v16772_v24  ;;  %12982 = vmatprep.subr.bf16.mxu0 %v16775_v31  ;;  %v11281_v58 = vsel %vm11241_vm3, %v11221_v6, %v11261_v63  ;;  %v15158_v26 = vadd.f32 %v15157_v16, %v15156_v0  ;;  %v16815_v24 = vld [vmem:[#allocation25 + $0x270] ss:$12 sps:$4 sm:$0xff]   ;;  %v16830_v16 = vld [vmem:[#allocation25 + $0x3a8] ss:$12 sps:$4 sm:$0xff]  }
 0x928   :  { %v16820_v8 = vld [vmem:[#allocation25 + $0xdc] ss:$12 sps:$4 sm:$0xff]  }
 0x929   :  { %vm11251_vm4 = vcmp.ge.f32.partialorder %v11231_v25, 0.0  ;;  %v11271_v41 = vmul.f32 0.1, %v11231_v25 }
 0x92a   :  { %12940 = vmatpush1.bf16.msra.mxu1 %v16770_v13  ;;  %12983 = vmatpush1.bf16.msra.mxu0 %v16773_v38  ;;  %v16823_v13 = vld [vmem:[#allocation25 + $0x25c] ss:$12 sps:$4 sm:$0xff]   ;;  %v11230_v38 = vadd.f32 %v15158_v26, %v11173_v49  ;;  %v16881_v26 = vld [vmem:[#allocation25 + $0x4f8] ss:$12 sps:$4 sm:$0xff]  }
 0x92b   :  { %12941 = vmatprep.subr.bf16.mxu1 %v16778_v50  ;;  %12984 = vmatprep.subr.bf16.mxu0 %v16781_v48  ;;  %v11291_v61 = vsel %vm11251_vm4, %v11231_v25, %v11271_v41  ;;  %v11220_v48 = vadd.f32 %v15155_v42, %v11173_v49  ;;  %v16889_v49 = vld [vmem:[#allocation25 + $0x4e4] ss:$12 sps:$4 sm:$0xff]   ;;  %v16844_v42 = vld [vmem:[#allocation25 + $0x34c] ss:$12 sps:$4 sm:$0xff]  }
 0x92c   :  { %v18625_v3 = vpack.c.bf16 %v11291_v61, %v11281_v58  ;;  %v16821_v58 = vld [vmem:[#allocation25 + $0x258] ss:$12 sps:$4 sm:$0xff]   ;;  %vm11250_vm6 = vcmp.ge.f32.partialorder %v11230_v38, 0.0 }
 0x92d   :  { %vm11240_vm8 = vcmp.ge.f32.partialorder %v11220_v48, 0.0 }
 0x92e   :  { %12942 = vmatpush1.bf16.msra.mxu1 %v16776_v11  ;;  %12985 = vmatpush1.bf16.msra.mxu0 %v16779_v60  ;;  %v16818_v60 = vld [vmem:[#allocation25 + $0xd8] ss:$12 sps:$4 sm:$0xff]  }
 0x92f   :  { %12959 = vmatprep.mubr.bf16.mxu1 %v18625_v3  ;;  %12943 = vmatprep.subr.bf16.mxu1 %v16784_v39 }
 0x930   :  { %12986 = vmatprep.subr.bf16.mxu0 %v16787_v23  ;;  %v16826_v23 = vld [vmem:[#allocation25 + $0xc4] ss:$12 sps:$4 sm:$0xff]  }
 0x932   :  { %12944 = vmatpush2.bf16.msra.mxu1 %v16782_v36  ;;  %12987 = vmatpush2.bf16.msra.mxu0 %v16785_v9  ;;  %v16829_v36 = vld [vmem:[#allocation25 + $0x244] ss:$12 sps:$4 sm:$0xff]   ;;  %v11270_v9 = vmul.f32 0.1, %v11230_v38 }
 0x933   :  { %12945 = vmatprep.subr.bf16.mxu1 %v16790_v14  ;;  %12988 = vmatprep.subr.bf16.mxu0 %v16793_v12  ;;  %v16824_v14 = vld [vmem:[#allocation25 + $0xc0] ss:$12 sps:$4 sm:$0xff]  }
 0x936   :  { %12946 = vmatpush2.bf16.msra.mxu1 %v16788_v15  ;;  %12989 = vmatpush2.bf16.msra.mxu0 %v16791_v33  ;;  %v11260_v15 = vmul.f32 0.1, %v11220_v48 }
 0x937   :  { %12947 = vmatprep.subr.bf16.mxu1 %v16796_v53  ;;  %12990 = vmatprep.subr.bf16.mxu0 %v16799_v55 }
 0x93a   :  { %12948 = vmatpush2.bf16.msra.mxu1 %v16794_v59  ;;  %12991 = vmatpush2.bf16.msra.mxu0 %v16797_v54  ;;  %v16832_v59 = vld [vmem:[#allocation25 + $0x3ac] ss:$12 sps:$4 sm:$0xff]   ;;  %v11290_v54 = vsel %vm11250_vm6, %v11230_v38, %v11270_v9 }
 0x93b   :  { %12949 = vmatprep.subr.bf16.mxu1 %v16802_v35  ;;  %12992 = vmatprep.subr.bf16.mxu0 %v16805_v62  ;;  %v16871_v62 = vld [vmem:[#allocation25 + $0x52c] ss:$12 sps:$4 sm:$0xff]  }
 0x93c   :  { %v16848_v38 = vld [vmem:[#allocation25 + $0x318] ss:$12 sps:$4 sm:$0xff]  }
 0x93d   :  { %v15197_v17 = vpop.f32.mrf.mxu1 }
 0x93e   :  { %12950 = vmatpush2.bf16.msra.mxu1 %v16800_v21  ;;  %12993 = vmatpush2.bf16.msra.mxu0 %v16803_v2  ;;  %v15219_v22 = vpop.f32.mrf.mxu0  ;;  %v11280_v21 = vsel %vm11240_vm8, %v11220_v48, %v11260_v15  ;;  %v16851_v48 = vld [vmem:[#allocation25 + $0x300] ss:$12 sps:$4 sm:$0xff]  }
 0x93f   :  { %v15198_v27 = vpop.f32.mrf.mxu1  ;;  %12951 = vmatprep.subr.bf16.mxu1 %v16808_v20  ;;  %12994 = vmatprep.subr.bf16.mxu0 %v16811_v51  ;;  %v16869_v20 = vld [vmem:[#allocation25 + $0x528] ss:$12 sps:$4 sm:$0xff]   ;;  %v18639_v51 = vpack.c.bf16 %v11290_v54, %v11280_v21 }
 0x940   :  { %v15220_v45 = vpop.f32.mrf.mxu0  ;;  %v15199_v47 = vadd.f32 %v15198_v27, %v15197_v17  ;;  %v16875_v27 = vld [vmem:[#allocation25 + $0x510] ss:$12 sps:$4 sm:$0xff]  }
 0x941   :  { %v15221_v43 = vadd.f32 %v15220_v45, %v15219_v22  ;;  %v15200_v18 = vpop.f32.mrf.mxu1  ;;  %v16835_v22 = vld [vmem:[#allocation25 + $0x394] ss:$12 sps:$4 sm:$0xff]   ;;  %v16841_v45 = vld [vmem:[#allocation25 + $0x364] ss:$12 sps:$4 sm:$0xff]  }
 0x942   :  { %12952 = vmatpush2.bf16.msra.mxu1 %v16806_v1  ;;  %12995 = vmatpush2.bf16.msra.mxu0 %v16809_v32  ;;  %v15222_v6 = vpop.f32.mrf.mxu0  ;;  %v11222_v41 = vadd.f32 %v15199_v47, %v11181_v56  ;;  %v16877_v1 = vld [vmem:[#allocation25 + $0x514] ss:$12 sps:$4 sm:$0xff]   ;;  %v16833_v32 = vld [vmem:[#allocation25 + $0x390] ss:$12 sps:$4 sm:$0xff]   ;;  %v16892_v47 = vld [vmem:[#allocation25 + $0x4cc] ss:$12 sps:$4 sm:$0xff]  }
 0x943   :  { %v11223_v31 = vadd.f32 %v15221_v43, %v11185_v19  ;;  %v15201_v52 = vpop.f32.mrf.mxu1  ;;  %12953 = vmatprep.subr.bf16.mxu1 %v16814_v40  ;;  %12996 = vmatprep.subr.bf16.mxu0 %v16817_v44  ;;  %v16883_v40 = vld [vmem:[#allocation25 + $0x4fc] ss:$12 sps:$4 sm:$0xff]   ;;  %v16836_v44 = vld [vmem:[#allocation25 + $0x378] ss:$12 sps:$4 sm:$0xff]   ;;  %v16839_v43 = vld [vmem:[#allocation25 + $0x360] ss:$12 sps:$4 sm:$0xff]  }
 0x944   :  { %v15202_v63 = vadd.f32 %v15201_v52, %v15200_v18  ;;  %v15223_v25 = vpop.f32.mrf.mxu0  ;;  %v11262_v33 = vmul.f32 0.1, %v11222_v41  ;;  %vm11242_vm9 = vcmp.ge.f32.partialorder %v11222_v41, 0.0  ;;  %v16887_v18 = vld [vmem:[#allocation25 + $0x4e0] ss:$12 sps:$4 sm:$0xff]  }
 0x945   :  { %v15224_v50 = vadd.f32 %v15223_v25, %v15222_v6  ;;  %v11263_v61 = vmul.f32 0.1, %v11223_v31  ;;  %vm11243_vm5 = vcmp.ge.f32.partialorder %v11223_v31, 0.0  ;;  %v16890_v6 = vld [vmem:[#allocation25 + $0x4c8] ss:$12 sps:$4 sm:$0xff]  }
 0x946   :  { %v11232_v11 = vadd.f32 %v15202_v63, %v11181_v56  ;;  %12954 = vmatpush2.bf16.msra.mxu1 %v16812_v28  ;;  %12997 = vmatpush2.bf16.msra.mxu0 %v16815_v24  ;;  %v11282_v2 = vsel %vm11242_vm9, %v11222_v41, %v11262_v33  ;;  %v16842_v56 = vld [vmem:[#allocation25 + $0x348] ss:$12 sps:$4 sm:$0xff]   ;;  %v16893_v52 = vld [vmem:[#allocation25 + $0x4b0] ss:$12 sps:$4 sm:$0xff]   ;;  %v16896_v63 = vld [vmem:[#allocation25 + $0x498] ss:$12 sps:$4 sm:$0xff]  }
 0x947   :  { %v11233_v39 = vadd.f32 %v15224_v50, %v11185_v19  ;;  %12955 = vmatprep.subr.bf16.mxu1 %v16820_v8  ;;  %12998 = vmatprep.subr.bf16.mxu0 %v16823_v13  ;;  %v11283_v53 = vsel %vm11243_vm5, %v11223_v31, %v11263_v61  ;;  %v16838_v19 = vld [vmem:[#allocation25 + $0x37c] ss:$12 sps:$4 sm:$0xff]   ;;  %v16847_v28 = vld [vmem:[#allocation25 + $0x334] ss:$12 sps:$4 sm:$0xff]   ;;  %v16853_v25 = vld [vmem:[#allocation25 + $0x304] ss:$12 sps:$4 sm:$0xff]  }
 0x948   :  { %v11272_v57 = vmul.f32 0.1, %v11232_v11  ;;  %vm11252_vm2 = vcmp.ge.f32.partialorder %v11232_v11, 0.0  ;;  %v16895_v24 = vld [vmem:[#allocation25 + $0x4b4] ss:$12 sps:$4 sm:$0xff]  }
 0x949   :  { %vm11253_vm7 = vcmp.ge.f32.partialorder %v11233_v39, 0.0  ;;  %v11273_v12 = vmul.f32 0.1, %v11233_v39  ;;  %v16845_v31 = vld [vmem:[#allocation25 + $0x330] ss:$12 sps:$4 sm:$0xff]  }
 0x94a   :  { %12956 = vmatpush2.bf16.msra.mxu1 %v16818_v60  ;;  %12999 = vmatpush2.bf16.msra.mxu0 %v16821_v58  ;;  %v11292_v0 = vsel %vm11252_vm2, %v11232_v11, %v11272_v57  ;;  %v16850_v8 = vld [vmem:[#allocation25 + $0x31c] ss:$12 sps:$4 sm:$0xff]   ;;  %v16901_v50 = vld [vmem:[#allocation25 + $0x484] ss:$12 sps:$4 sm:$0xff]   ;;  %v16899_v41 = vld [vmem:[#allocation25 + $0x480] ss:$12 sps:$4 sm:$0xff]   ;;  %v11193_v57 = vrot.slane %v18621_v37, %v18759_v34 }
 0x94b   :  { %12957 = vmatprep.subr.bf16.mxu1 %v16826_v23  ;;  %13000 = vmatprep.subr.bf16.mxu0 %v16829_v36  ;;  %v11293_v55 = vsel %vm11253_vm7, %v11233_v39, %v11273_v12  ;;  %v18641_v17 = vpack.c.bf16 %v11292_v0, %v11282_v2  ;;  %v16898_v13 = vld [vmem:[#allocation25 + $0x49c] ss:$12 sps:$4 sm:$0xff]   ;;  %v16856_v11 = vld [vmem:[#allocation25 + $0x46c] ss:$12 sps:$4 sm:$0xff]   ;;  %v16859_v39 = vld [vmem:[#allocation25 + $0x454] ss:$12 sps:$4 sm:$0xff]  }
 0x94c   :  { %v18637_v35 = vpack.c.bf16 %v11293_v55, %v11283_v53  ;;  %v16904_v60 = vld [vmem:[#allocation25 + $0x5ec] ss:$12 sps:$4 sm:$0xff]   ;;  %v16854_v58 = vld [vmem:[#allocation25 + $0x468] ss:$12 sps:$4 sm:$0xff]   ;;  %v16908_v12 = vld [vmem:[#allocation25 + $0x5d0] ss:$12 sps:$4 sm:$0xff]  }
 0x94d   :  { %v16902_v61 = vld [vmem:[#allocation25 + $0x5e8] ss:$12 sps:$4 sm:$0xff]   ;;  %v16860_v0 = vld [vmem:[#allocation25 + $0x438] ss:$12 sps:$4 sm:$0xff]  }
 0x94e   :  { %12958 = vmatpush2.bf16.msra.mxu1 %v16824_v14  ;;  %13001 = vmatpush2.bf16.msra.mxu0 %v16827_v30  ;;  %v16910_v23 = vld [vmem:[#allocation25 + $0x5d4] ss:$12 sps:$4 sm:$0xff]   ;;  %v16857_v14 = vld [vmem:[#allocation25 + $0x450] ss:$12 sps:$4 sm:$0xff]  }
 0x94f   :  { %13002 = vmatprep.mubr.bf16.mxu0 %v18637_v35  ;;  %13013 = vmatprep.subr.bf16.mxu1 %v16832_v59  ;;  %v16862_v33 = vld [vmem:[#allocation25 + $0x43c] ss:$12 sps:$4 sm:$0xff]   ;;  %v16865_v2 = vld [vmem:[#allocation25 + $0x424] ss:$12 sps:$4 sm:$0xff]  }
 0x950   :  { %13056 = vmatprep.subr.bf16.mxu0 %v16871_v62  ;;  %v16916_v30 = vld [vmem:[#allocation25 + $0x5bc] ss:$12 sps:$4 sm:$0xff]   ;;  %v16914_v62 = vld [vmem:[#allocation25 + $0x5b8] ss:$12 sps:$4 sm:$0xff]  }
 0x951   :  { %12960 = vmatmul.mubr.bf16.vlgmr.msra.gmra.mxu1 %v18639_v51  ;;  %13003 = vmatmul.mubr.bf16.vlgmr.msra.gmra.mxu0 %v18641_v17  ;;  %v16922_v34 = vld [vmem:[#allocation25 + $0x5a4] ss:$12 sps:$4 sm:$0xff]  }
 0x952   :  { %13014 = vmatpush1.bf16.msra.mxu1 %v16830_v16  ;;  %13057 = vmatpush1.bf16.msra.mxu0 %v16869_v20 }
 0x953   :  { %13015 = vmatprep.subr.bf16.mxu1 %v16835_v22  ;;  %13058 = vmatprep.subr.bf16.mxu0 %v16877_v1 }
 0x956   :  { %13016 = vmatpush1.bf16.msra.mxu1 %v16833_v32  ;;  %13059 = vmatpush1.bf16.msra.mxu0 %v16875_v27  ;;  %v16863_v32 = vld [vmem:[#allocation25 + $0x420] ss:$12 sps:$4 sm:$0xff]  }
 0x957   :  { %13017 = vmatprep.subr.bf16.mxu1 %v16838_v19  ;;  %13060 = vmatprep.subr.bf16.mxu0 %v16883_v40  ;;  %v16920_v27 = vld [vmem:[#allocation25 + $0x5a0] ss:$12 sps:$4 sm:$0xff]  }
 0x958   :  { %v16868_v19 = vld [vmem:[#allocation25 + $0x40c] ss:$12 sps:$4 sm:$0xff]  }
 0x959   :  { %v16928_v40 = vld [vmem:[#allocation25 + $0x58c] ss:$12 sps:$4 sm:$0xff]  }
 0x95a   :  { %13018 = vmatpush1.bf16.msra.mxu1 %v16836_v44  ;;  %13061 = vmatpush1.bf16.msra.mxu0 %v16881_v26 }
 0x95b   :  { %13019 = vmatprep.subr.bf16.mxu1 %v16841_v45  ;;  %13062 = vmatprep.subr.bf16.mxu0 %v16889_v49  ;;  %v16866_v45 = vld [vmem:[#allocation25 + $0x408] ss:$12 sps:$4 sm:$0xff]  }
 0x95d   :  { %v15241_v36 = vpop.f32.mrf.mxu1 }
 0x95e   :  { %13020 = vmatpush1.bf16.msra.mxu1 %v16839_v43  ;;  %13063 = vmatpush1.bf16.msra.mxu0 %v16887_v18  ;;  %v16926_v18 = vld [vmem:[#allocation25 + $0x588] ss:$12 sps:$4 sm:$0xff]  }
 0x95f   :  { %13021 = vmatprep.subr.bf16.mxu1 %v16844_v42  ;;  %13064 = vmatprep.subr.bf16.mxu0 %v16892_v47  ;;  %v15242_v55 = vpop.f32.mrf.mxu1  ;;  %v16874_v47 = vld [vmem:[#allocation25 + $0x3f4] ss:$12 sps:$4 sm:$0xff]  }
 0x961   :  { %v15244_v20 = vpop.f32.mrf.mxu1 }
 0x962   :  { %13022 = vmatpush1.bf16.msra.mxu1 %v16842_v56  ;;  %13065 = vmatpush1.bf16.msra.mxu0 %v16890_v6  ;;  %v16934_v56 = vld [vmem:[#allocation25 + $0x574] ss:$12 sps:$4 sm:$0xff]  }
 0x963   :  { %13023 = vmatprep.subr.bf16.mxu1 %v16847_v28  ;;  %13066 = vmatprep.subr.bf16.mxu0 %v16895_v24  ;;  %v15245_v26 = vpop.f32.mrf.mxu1  ;;  %v15243_v28 = vadd.f32 %v15242_v55, %v15241_v36  ;;  %v11189_v24 = vrot.slane %v18621_v37, %v17843_v29  ;;  %v16931_v55 = vld [vmem:[#allocation25 + $0x64c] ss:$12 sps:$4 sm:$0xff]  }
 0x964   :  { %v15246_v6 = vadd.f32 %v15245_v26, %v15244_v20  ;;  %v11201_v26 = vrot.slane %v18621_v37, %v18760_v5 }
 0x966   :  { %13024 = vmatpush1.bf16.msra.mxu1 %v16845_v31  ;;  %13067 = vmatpush1.bf16.msra.mxu0 %v16893_v52  ;;  %v16872_v31 = vld [vmem:[#allocation25 + $0x3f0] ss:$12 sps:$4 sm:$0xff]  }
 0x967   :  { %13025 = vmatprep.subr.bf16.mxu1 %v16850_v8  ;;  %13068 = vmatprep.subr.bf16.mxu0 %v16898_v13  ;;  %v16932_v52 = vld [vmem:[#allocation25 + $0x570] ss:$12 sps:$4 sm:$0xff]  }
 0x968   :  { %v16880_v8 = vld [vmem:[#allocation25 + $0x3dc] ss:$12 sps:$4 sm:$0xff]  }
 0x969   :  { %v16940_v13 = vld [vmem:[#allocation25 + $0x55c] ss:$12 sps:$4 sm:$0xff]  }
 0x96a   :  { %13026 = vmatpush1.bf16.msra.mxu1 %v16848_v38  ;;  %13069 = vmatpush1.bf16.msra.mxu0 %v16896_v63  ;;  %v11234_v38 = vadd.f32 %v15246_v6, %v11189_v24  ;;  %v11224_v63 = vadd.f32 %v15243_v28, %v11189_v24 }
 0x96b   :  { %13027 = vmatprep.subr.bf16.mxu1 %v16853_v25  ;;  %13070 = vmatprep.subr.bf16.mxu0 %v16901_v50  ;;  %v16878_v25 = vld [vmem:[#allocation25 + $0x3d8] ss:$12 sps:$4 sm:$0xff]  }
 0x96c   :  { %v16938_v50 = vld [vmem:[#allocation25 + $0x558] ss:$12 sps:$4 sm:$0xff]   ;;  %vm11254_vm12 = vcmp.ge.f32.partialorder %v11234_v38, 0.0  ;;  %v11264_v29 = vmul.f32 0.1, %v11224_v63  ;;  %vm11244_vm13 = vcmp.ge.f32.partialorder %v11224_v63, 0.0 }
 0x96e   :  { %13028 = vmatpush1.bf16.msra.mxu1 %v16851_v48  ;;  %13071 = vmatpush1.bf16.msra.mxu0 %v16899_v41  ;;  %v16886_v48 = vld [vmem:[#allocation25 + $0x3c4] ss:$12 sps:$4 sm:$0xff]   ;;  %v11284_v36 = vsel %vm11244_vm13, %v11224_v63, %v11264_v29 }
 0x96f   :  { %13029 = vmatprep.subr.bf16.mxu1 %v16856_v11  ;;  %13072 = vmatprep.subr.bf16.mxu0 %v16904_v60  ;;  %v16946_v41 = vld [vmem:[#allocation25 + $0x544] ss:$12 sps:$4 sm:$0xff]   ;;  %v11274_v11 = vmul.f32 0.1, %v11234_v38  ;;  %v16884_v60 = vld [vmem:[#allocation25 + $0x3c0] ss:$12 sps:$4 sm:$0xff]  }
 0x971   :  { %v15263_v9 = vpop.f32.mrf.mxu0 }
 0x972   :  { %13030 = vmatpush2.bf16.msra.mxu1 %v16854_v58  ;;  %13073 = vmatpush2.bf16.msra.mxu0 %v16902_v61  ;;  %v16944_v58 = vld [vmem:[#allocation25 + $0x540] ss:$12 sps:$4 sm:$0xff]  }
 0x973   :  { %v15264_v15 = vpop.f32.mrf.mxu0  ;;  %13031 = vmatprep.subr.bf16.mxu1 %v16859_v39  ;;  %13074 = vmatprep.subr.bf16.mxu0 %v16910_v23  ;;  %v16907_v61 = vld [vmem:[#allocation25 + $0x6ac] ss:$12 sps:$4 sm:$0xff]   ;;  %v16953_v39 = vld [vmem:[#allocation25 + $0x170] ss:$12 sps:$4 sm:$0xff]   ;;  %v11294_v23 = vsel %vm11254_vm12, %v11234_v38, %v11274_v11 }
 0x974   :  { %v15265_v53 = vadd.f32 %v15264_v15, %v15263_v9  ;;  %v16905_v9 = vld [vmem:[#allocation25 + $0x6a8] ss:$12 sps:$4 sm:$0xff]  }
 0x975   :  { %v15266_v59 = vpop.f32.mrf.mxu0  ;;  %v16919_v15 = vld [vmem:[#allocation25 + $0x67c] ss:$12 sps:$4 sm:$0xff]  }
 0x976   :  { %v11225_v54 = vadd.f32 %v15265_v53, %v11193_v57  ;;  %13032 = vmatpush2.bf16.msra.mxu1 %v16857_v14  ;;  %13075 = vmatpush2.bf16.msra.mxu0 %v16908_v12  ;;  %v16913_v14 = vld [vmem:[#allocation25 + $0x694] ss:$12 sps:$4 sm:$0xff]   ;;  %v16911_v12 = vld [vmem:[#allocation25 + $0x690] ss:$12 sps:$4 sm:$0xff]  }
 0x977   :  { %v15267_v21 = vpop.f32.mrf.mxu0  ;;  %13033 = vmatprep.subr.bf16.mxu1 %v16862_v33  ;;  %13076 = vmatprep.subr.bf16.mxu0 %v16916_v30  ;;  %v16917_v33 = vld [vmem:[#allocation25 + $0x678] ss:$12 sps:$4 sm:$0xff]   ;;  %v16923_v53 = vld [vmem:[#allocation25 + $0x660] ss:$12 sps:$4 sm:$0xff]  }
 0x978   :  { %v15268_v16 = vadd.f32 %v15267_v21, %v15266_v59  ;;  %v11265_v22 = vmul.f32 0.1, %v11225_v54  ;;  %vm11245_vm10 = vcmp.ge.f32.partialorder %v11225_v54, 0.0  ;;  %v16925_v30 = vld [vmem:[#allocation25 + $0x664] ss:$12 sps:$4 sm:$0xff]  }
 0x979   :  { %v16929_v59 = vld [vmem:[#allocation25 + $0x648] ss:$12 sps:$4 sm:$0xff]  }
 0x97a   :  { %v11235_v1 = vadd.f32 %v15268_v16, %v11193_v57  ;;  %13034 = vmatpush2.bf16.msra.mxu1 %v16860_v0  ;;  %13077 = vmatpush2.bf16.msra.mxu0 %v16914_v62  ;;  %v11285_v49 = vsel %vm11245_vm10, %v11225_v54, %v11265_v22  ;;  %v18653_v57 = vpack.c.bf16 %v11294_v23, %v11284_v36  ;;  %v16937_v54 = vld [vmem:[#allocation25 + $0x634] ss:$12 sps:$4 sm:$0xff]   ;;  %v16935_v62 = vld [vmem:[#allocation25 + $0x630] ss:$12 sps:$4 sm:$0xff]   ;;  %v16958_v36 = vld [vmem:[#allocation25 + $0x158] ss:$12 sps:$4 sm:$0xff]  }
 0x97b   :  { %13035 = vmatprep.subr.bf16.mxu1 %v16865_v2  ;;  %13078 = vmatprep.subr.bf16.mxu0 %v16922_v34  ;;  %v16943_v21 = vld [vmem:[#allocation25 + $0x61c] ss:$12 sps:$4 sm:$0xff]   ;;  %v16941_v34 = vld [vmem:[#allocation25 + $0x618] ss:$12 sps:$4 sm:$0xff]   ;;  %v16947_v22 = vld [vmem:[#allocation25 + $0x600] ss:$12 sps:$4 sm:$0xff]  }
 0x97c   :  { %vm11255_vm11 = vcmp.ge.f32.partialorder %v11235_v1, 0.0  ;;  %v11275_v44 = vmul.f32 0.1, %v11235_v1  ;;  %v16949_v16 = vld [vmem:[#allocation25 + $0x604] ss:$12 sps:$4 sm:$0xff]  }
 0x97e   :  { %13036 = vmatpush2.bf16.msra.mxu1 %v16863_v32  ;;  %v11295_v43 = vsel %vm11255_vm11, %v11235_v1, %v11275_v44  ;;  %13079 = vmatpush2.bf16.msra.mxu0 %v16920_v27  ;;  %v16952_v1 = vld [vmem:[#allocation25 + $0x76c] ss:$12 sps:$4 sm:$0xff]   ;;  %v16950_v27 = vld [vmem:[#allocation25 + $0x768] ss:$12 sps:$4 sm:$0xff]  }
 0x97f   :  { %13037 = vmatprep.subr.bf16.mxu1 %v16868_v19  ;;  %v18648_v42 = vpack.c.bf16 %v11295_v43, %v11285_v49  ;;  %13080 = vmatprep.subr.bf16.mxu0 %v16928_v40  ;;  %v16957_v19 = vld [vmem:[#allocation25 + $0x754] ss:$12 sps:$4 sm:$0xff]   ;;  %v11197_v43 = vrot.slane %v18621_v37, %v18758_v4 }
 0x980   :  { %v16965_v4 = vld [vmem:[#allocation25 + $0x720] ss:$12 sps:$4 sm:$0xff]  }
 0x981   :  { %13045 = vmatprep.mubr.bf16.mxu1 %v18648_v42 }
 0x982   :  { %13038 = vmatpush2.bf16.msra.mxu1 %v16866_v45  ;;  %13081 = vmatpush2.bf16.msra.mxu0 %v16926_v18  ;;  %v16955_v45 = vld [vmem:[#allocation25 + $0x750] ss:$12 sps:$4 sm:$0xff]  }
 0x983   :  { %13039 = vmatprep.subr.bf16.mxu1 %v16874_v47  ;;  %13082 = vmatprep.subr.bf16.mxu0 %v16934_v56  ;;  %v16962_v47 = vld [vmem:[#allocation25 + $0x73c] ss:$12 sps:$4 sm:$0xff]  }
 0x986   :  { %13040 = vmatpush2.bf16.msra.mxu1 %v16872_v31  ;;  %13083 = vmatpush2.bf16.msra.mxu0 %v16932_v52  ;;  %v16960_v31 = vld [vmem:[#allocation25 + $0x738] ss:$12 sps:$4 sm:$0xff]  }
 0x987   :  { %13041 = vmatprep.subr.bf16.mxu1 %v16880_v8  ;;  %13084 = vmatprep.subr.bf16.mxu0 %v16940_v13  ;;  %v16967_v13 = vld [vmem:[#allocation25 + $0x724] ss:$12 sps:$4 sm:$0xff]  }
 0x98a   :  { %13042 = vmatpush2.bf16.msra.mxu1 %v16878_v25  ;;  %13085 = vmatpush2.bf16.msra.mxu0 %v16938_v50  ;;  %v16972_v50 = vld [vmem:[#allocation25 + $0x70c] ss:$12 sps:$4 sm:$0xff]  }
 0x98b   :  { %13043 = vmatprep.subr.bf16.mxu1 %v16886_v48  ;;  %13086 = vmatprep.subr.bf16.mxu0 %v16946_v41 }
 0x98e   :  { %13044 = vmatpush2.bf16.msra.mxu1 %v16884_v60  ;;  %13087 = vmatpush2.bf16.msra.mxu0 %v16944_v58  ;;  %v16970_v60 = vld [vmem:[#allocation25 + $0x708] ss:$12 sps:$4 sm:$0xff]  }
 0x98f   :  { %13099 = vmatprep.subr.bf16.mxu1 %v16907_v61  ;;  %15357 = vmatprep.subr.bf16.mxu0 %v16953_v39  ;;  %v16954_v39 = vld [vmem:[#allocation25 + $0xb0] ss:$12 sps:$4 sm:$0xff]  }
 0x991   :  { %13046 = vmatmul.mubr.bf16.vlgmr.msra.gmra.mxu1 %v18653_v57  ;;  %v15285_v0 = vpop.f32.mrf.mxu1 }
 0x992   :  { %13100 = vmatpush1.bf16.msra.mxu1 %v16905_v9  ;;  %v16977_v9 = vld [vmem:[#allocation25 + $0x6f4] ss:$12 sps:$4 sm:$0xff]  }
 0x993   :  { %13101 = vmatprep.subr.bf16.mxu1 %v16913_v14  ;;  %v15286_v2 = vpop.f32.mrf.mxu1  ;;  %v16975_v14 = vld [vmem:[#allocation25 + $0x6f0] ss:$12 sps:$4 sm:$0xff]  }
 0x994   :  { %v15287_v49 = vadd.f32 %v15286_v2, %v15285_v0  ;;  %v16969_v0 = vld [vmem:[#allocation25 + $0x68] ss:$12 sps:$4 sm:$0xff]   ;;  %v11167_v2 = vld [vmem:[#allocation24 + $0x8] sm:$0x3] }
 0x995   :  { %v15288_v20 = vpop.f32.mrf.mxu1 }
 0x996   :  { %13102 = vmatpush1.bf16.msra.mxu1 %v16911_v12  ;;  %v11226_v52 = vadd.f32 %v15287_v49, %v11197_v43  ;;  %v16959_v12 = vld [vmem:[#allocation25 + $0x98] ss:$12 sps:$4 sm:$0xff]  }
 0x997   :  { %13103 = vmatprep.subr.bf16.mxu1 %v16919_v15  ;;  %v15289_v32 = vpop.f32.mrf.mxu1  ;;  %v16982_v15 = vld [vmem:[#allocation25 + $0x6dc] ss:$12 sps:$4 sm:$0xff]  }
 0x998   :  { %v15290_v40 = vadd.f32 %v15289_v32, %v15288_v20  ;;  %v11266_v37 = vmul.f32 0.1, %v11226_v52  ;;  %vm11246_vm0 = vcmp.ge.f32.partialorder %v11226_v52, 0.0 }
 0x99a   :  { %13104 = vmatpush1.bf16.msra.mxu1 %v16917_v33  ;;  %v11236_v6 = vadd.f32 %v15290_v40, %v11197_v43  ;;  %v11286_v58 = vsel %vm11246_vm0, %v11226_v52, %v11266_v37  ;;  %v16963_v33 = vld [vmem:[#allocation25 + $0x140] ss:$12 sps:$4 sm:$0xff]  }
 0x99b   :  { %13105 = vmatprep.subr.bf16.mxu1 %v16925_v30  ;;  %v16980_v30 = vld [vmem:[#allocation25 + $0x6d8] ss:$12 sps:$4 sm:$0xff]  }
 0x99c   :  { %v11276_v38 = vmul.f32 0.1, %v11236_v6  ;;  %vm11256_vm14 = vcmp.ge.f32.partialorder %v11236_v6, 0.0 }
 0x99e   :  { %13106 = vmatpush1.bf16.msra.mxu1 %v16923_v53  ;;  %v11296_v41 = vsel %vm11256_vm14, %v11236_v6, %v11276_v38  ;;  %v16964_v53 = vld [vmem:[#allocation25 + $0x80] ss:$12 sps:$4 sm:$0xff]   ;;  %v16989_v38 = vld [vmem:[#allocation25 + $0x8] ss:$12 sps:$4 sm:$0xff]  }
 0x99f   :  { %13107 = vmatprep.subr.bf16.mxu1 %v16931_v55  ;;  %v18662_v23 = vpack.c.bf16 %v11296_v41, %v11286_v58  ;;  %v16987_v55 = vld [vmem:[#allocation25 + $0x6c4] ss:$12 sps:$4 sm:$0xff]   ;;  %v16984_v6 = vld [vmem:[#allocation25 + $0x20] ss:$12 sps:$4 sm:$0xff]  }
 0x9a0   :  { %v16993_v58 = vld [vmem:[#allocation25 + $0x3b0] ss:$12 sps:$4 sm:$0xff]  }
 0x9a2   :  { %13108 = vmatpush1.bf16.msra.mxu1 %v16929_v59  ;;  %v16968_v59 = vld [vmem:[#allocation25 + $0x128] ss:$12 sps:$4 sm:$0xff]  }
 0x9a3   :  { %13109 = vmatprep.subr.bf16.mxu1 %v16937_v54  ;;  %v16985_v54 = vld [vmem:[#allocation25 + $0x6c0] ss:$12 sps:$4 sm:$0xff]  }
 0x9a6   :  { %13110 = vmatpush1.bf16.msra.mxu1 %v16935_v62  ;;  %v16991_v62 = vld [vmem:[#allocation25 + $0x470] ss:$12 sps:$4 sm:$0xff]  }
 0x9a7   :  { %13111 = vmatprep.subr.bf16.mxu1 %v16943_v21  ;;  %v16974_v21 = vld [vmem:[#allocation25 + $0x50] ss:$12 sps:$4 sm:$0xff]  }
 0x9aa   :  { %13112 = vmatpush1.bf16.msra.mxu1 %v16941_v34  ;;  %v16978_v34 = vld [vmem:[#allocation25 + $0xf8] ss:$12 sps:$4 sm:$0xff]  }
 0x9ab   :  { %13113 = vmatprep.subr.bf16.mxu1 %v16949_v16 }
 0x9ae   :  { %13114 = vmatpush1.bf16.msra.mxu1 %v16947_v22 }
 0x9af   :  { %13115 = vmatprep.subr.bf16.mxu1 %v16952_v1  ;;  %v11205_v1 = vrot.slane %v11167_v2, %v18762_v46 }
 0x9b1   :  { %v15307_v44 = vpop.f32.mrf.mxu0 }
 0x9b2   :  { %13116 = vmatpush2.bf16.msra.mxu1 %v16950_v27  ;;  %v11209_v27 = vrot.slane %v11167_v2, %v18761_v10  ;;  %v17013_v2 = vld [vmem:[#allocation25 + $0x338] ss:$12 sps:$4 sm:$0xff]  }
 0x9b3   :  { %v15308_v18 = vpop.f32.mrf.mxu0  ;;  %13117 = vmatprep.subr.bf16.mxu1 %v16957_v19  ;;  %v16979_v19 = vld [vmem:[#allocation25 + $0x38] ss:$12 sps:$4 sm:$0xff]  }
 0x9b4   :  { %v15309_v56 = vadd.f32 %v15308_v18, %v15307_v44 }
 0x9b5   :  { %v15310_v28 = vpop.f32.mrf.mxu0 }
 0x9b6   :  { %v11227_v24 = vadd.f32 %v15309_v56, %v11201_v26  ;;  %13118 = vmatpush2.bf16.msra.mxu1 %v16955_v45 }
 0x9b7   :  { %v15311_v8 = vpop.f32.mrf.mxu0  ;;  %13119 = vmatprep.subr.bf16.mxu1 %v16962_v47 }
 0x9b8   :  { %v15312_v5 = vadd.f32 %v15311_v8, %v15310_v28  ;;  %v11267_v63 = vmul.f32 0.1, %v11227_v24  ;;  %vm11247_vm15 = vcmp.ge.f32.partialorder %v11227_v24, 0.0  ;;  %v16988_v28 = vld [vmem:[#allocation25 + $0xc8] ss:$12 sps:$4 sm:$0xff]  }
 0x9ba   :  { %v11237_v25 = vadd.f32 %v15312_v5, %v11201_v26  ;;  %13120 = vmatpush2.bf16.msra.mxu1 %v16960_v31  ;;  %v11287_v11 = vsel %vm11247_vm15, %v11227_v24, %v11267_v63  ;;  %v16983_v26 = vld [vmem:[#allocation25 + $0xe0] ss:$12 sps:$4 sm:$0xff]   ;;  %v16990_v63 = vld [vmem:[#allocation25 + $0x2f0] ss:$12 sps:$4 sm:$0xff]  }
 0x9bb   :  { %13121 = vmatprep.subr.bf16.mxu1 %v16967_v13 }
 0x9bc   :  { %vm11257_vm1 = vcmp.ge.f32.partialorder %v11237_v25, 0.0  ;;  %v11277_v48 = vmul.f32 0.1, %v11237_v25 }
 0x9be   :  { %v11297_v29 = vsel %vm11257_vm1, %v11237_v25, %v11277_v48  ;;  %13122 = vmatpush2.bf16.msra.mxu1 %v16965_v4 }
 0x9bf   :  { %v18660_v61 = vpack.c.bf16 %v11297_v29, %v11287_v11  ;;  %13123 = vmatprep.subr.bf16.mxu1 %v16972_v50  ;;  %v16992_v11 = vld [vmem:[#allocation25 + $0x230] ss:$12 sps:$4 sm:$0xff]  }
 0x9c1   :  { %13088 = vmatprep.mubr.bf16.mxu0 %v18660_v61 }
 0x9c2   :  { %13089 = vmatmul.mubr.bf16.vlgmr.msra.gmra.mxu0 %v18662_v23  ;;  %13124 = vmatpush2.bf16.msra.mxu1 %v16970_v60 }
 0x9c3   :  { %15358 = vmatpush3.bf16.msra.mxu0 %v16954_v39  ;;  %13174 = vmatprep.mubr.bf16.mxu0 %v18625_v3  ;;  %v16973_v3 = vld [vmem:[#allocation25 + $0x110] ss:$12 sps:$4 sm:$0xff]   ;;  %v16994_v39 = vld [vmem:[#allocation25 + $0x2d8] ss:$12 sps:$4 sm:$0xff]  }
 0x9c4   :  { %15359 = vmatprep.subr.bf16.mxu0 %v16958_v36  ;;  %13125 = vmatprep.subr.bf16.mxu1 %v16977_v9  ;;  %v16995_v36 = vld [vmem:[#allocation25 + $0x458] ss:$12 sps:$4 sm:$0xff]  }
 0x9c5   :  { %v16996_v9 = vld [vmem:[#allocation25 + $0x218] ss:$12 sps:$4 sm:$0xff]  }
 0x9c6   :  { %13126 = vmatpush2.bf16.msra.mxu1 %v16975_v14  ;;  %v16997_v14 = vld [vmem:[#allocation25 + $0x398] ss:$12 sps:$4 sm:$0xff]  }
 0x9c7   :  { %15360 = vmatpush3.bf16.msra.mxu0 %v16959_v12  ;;  %13127 = vmatprep.subr.bf16.mxu1 %v16982_v15  ;;  %v16998_v12 = vld [vmem:[#allocation25 + $0x2c0] ss:$12 sps:$4 sm:$0xff]  }
 0x9c8   :  { %15361 = vmatprep.subr.bf16.mxu0 %v16963_v33  ;;  %v16999_v15 = vld [vmem:[#allocation25 + $0x440] ss:$12 sps:$4 sm:$0xff]  }
 0x9c9   :  { %v17000_v33 = vld [vmem:[#allocation25 + $0x200] ss:$12 sps:$4 sm:$0xff]  }
 0x9ca   :  { %13128 = vmatpush2.bf16.msra.mxu1 %v16980_v30  ;;  %v17002_v30 = vld [vmem:[#allocation25 + $0x2a8] ss:$12 sps:$4 sm:$0xff]  }
 0x9cb   :  { %15362 = vmatpush3.bf16.msra.mxu0 %v16964_v53  ;;  %13129 = vmatprep.subr.bf16.mxu1 %v16987_v55  ;;  %v17003_v53 = vld [vmem:[#allocation25 + $0x428] ss:$12 sps:$4 sm:$0xff]  }
 0x9cc   :  { %15363 = vmatprep.subr.bf16.mxu0 %v16968_v59  ;;  %v17004_v55 = vld [vmem:[#allocation25 + $0x1e8] ss:$12 sps:$4 sm:$0xff]   ;;  %v17006_v59 = vld [vmem:[#allocation25 + $0x290] ss:$12 sps:$4 sm:$0xff]  }
 0x9ce   :  { %13130 = vmatpush2.bf16.msra.mxu1 %v16985_v54  ;;  %v17007_v54 = vld [vmem:[#allocation25 + $0x410] ss:$12 sps:$4 sm:$0xff]  }
 0x9cf   :  { %15364 = vmatpush3.bf16.msra.mxu0 %v16969_v0  ;;  %15401 = vmatprep.subr.bf16.mxu1 %v16991_v62  ;;  %v17009_v0 = vld [vmem:[#allocation25 + $0x350] ss:$12 sps:$4 sm:$0xff]   ;;  %v17010_v62 = vld [vmem:[#allocation25 + $0x278] ss:$12 sps:$4 sm:$0xff]  }
 0x9d0   :  { %15365 = vmatprep.subr.bf16.mxu0 %v16973_v3  ;;  %v17011_v3 = vld [vmem:[#allocation25 + $0x3f8] ss:$12 sps:$4 sm:$0xff]  }
 0x9d1   :  { %v15329_v16 = vpop.f32.mrf.mxu1  ;;  %v15351_v20 = vpop.f32.mrf.mxu0 }
 0x9d3   :  { %15366 = vmatpush3.bf16.msra.mxu0 %v16974_v21  ;;  %v15330_v22 = vpop.f32.mrf.mxu1  ;;  %v15352_v32 = vpop.f32.mrf.mxu0  ;;  %v17012_v21 = vld [vmem:[#allocation25 + $0x1b8] ss:$12 sps:$4 sm:$0xff]  }
 0x9d4   :  { %v15331_v40 = vadd.f32 %v15330_v22, %v15329_v16  ;;  %v15353_v44 = vadd.f32 %v15352_v32, %v15351_v20  ;;  %15367 = vmatprep.subr.bf16.mxu0 %v16978_v34  ;;  %v17014_v34 = vld [vmem:[#allocation25 + $0x260] ss:$12 sps:$4 sm:$0xff]   ;;  %v17019_v32 = vld [vmem:[#allocation25 + $0x3c8] ss:$12 sps:$4 sm:$0xff]  }
 0x9d5   :  { %v15332_v45 = vpop.f32.mrf.mxu1  ;;  %v15354_v49 = vpop.f32.mrf.mxu0  ;;  %v17015_v16 = vld [vmem:[#allocation25 + $0x3e0] ss:$12 sps:$4 sm:$0xff]  }
 0x9d6   :  { %v11228_v43 = vadd.f32 %v15331_v40, %v11205_v1  ;;  %v11229_v18 = vadd.f32 %v15353_v44, %v11209_v27  ;;  %v17016_v20 = vld [vmem:[#allocation25 + $0x1a0] ss:$12 sps:$4 sm:$0xff]   ;;  %v17022_v40 = vld [vmem:[#allocation25 + $0x5f0] ss:$12 sps:$4 sm:$0xff]  }
 0x9d7   :  { %15368 = vmatpush3.bf16.msra.mxu0 %v16979_v19  ;;  %v15333_v47 = vpop.f32.mrf.mxu1  ;;  %v15355_v56 = vpop.f32.mrf.mxu0  ;;  %v17017_v22 = vld [vmem:[#allocation25 + $0x320] ss:$12 sps:$4 sm:$0xff]   ;;  %v17021_v19 = vld [vmem:[#allocation25 + $0x308] ss:$12 sps:$4 sm:$0xff]   ;;  %v17023_v44 = vld [vmem:[#allocation25 + $0x770] ss:$12 sps:$4 sm:$0xff]  }
 0x9d8   :  { %15369 = vmatprep.subr.bf16.mxu0 %v16983_v26  ;;  %v15334_v24 = vadd.f32 %v15333_v47, %v15332_v45  ;;  %v15356_v31 = vadd.f32 %v15355_v56, %v15354_v49  ;;  %v11268_v52 = vmul.f32 0.1, %v11228_v43  ;;  %v11269_v8 = vmul.f32 0.1, %v11229_v18  ;;  %v17024_v26 = vld [vmem:[#allocation25 + $0x530] ss:$12 sps:$4 sm:$0xff]  }
 0x9d9   :  { %vm11248_vm3 = vcmp.ge.f32.partialorder %v11228_v43, 0.0  ;;  %vm11249_vm4 = vcmp.ge.f32.partialorder %v11229_v18, 0.0  ;;  %v17025_v45 = vld [vmem:[#allocation25 + $0x6b0] ss:$12 sps:$4 sm:$0xff]   ;;  %v17026_v49 = vld [vmem:[#allocation25 + $0x5d8] ss:$12 sps:$4 sm:$0xff]  }
 0x9da   :  { %v11238_v13 = vadd.f32 %v15334_v24, %v11205_v1  ;;  %v11239_v5 = vadd.f32 %v15356_v31, %v11209_v27  ;;  %v11288_v37 = vsel %vm11248_vm3, %v11228_v43, %v11268_v52  ;;  %v11289_v48 = vsel %vm11249_vm4, %v11229_v18, %v11269_v8  ;;  %v17018_v1 = vld [vmem:[#allocation25 + $0x248] ss:$12 sps:$4 sm:$0xff]   ;;  %v17027_v43 = vld [vmem:[#allocation25 + $0x758] ss:$12 sps:$4 sm:$0xff]   ;;  %v17030_v56 = vld [vmem:[#allocation25 + $0x5c0] ss:$12 sps:$4 sm:$0xff]  }
 0x9db   :  { %15370 = vmatpush3.bf16.msra.mxu0 %v16984_v6  ;;  %v17020_v27 = vld [vmem:[#allocation25 + $0x188] ss:$12 sps:$4 sm:$0xff]   ;;  %v17028_v18 = vld [vmem:[#allocation25 + $0x518] ss:$12 sps:$4 sm:$0xff]   ;;  %v17031_v6 = vld [vmem:[#allocation25 + $0x740] ss:$12 sps:$4 sm:$0xff]  }
 0x9dc   :  { %15371 = vmatprep.subr.bf16.mxu0 %v16988_v28  ;;  %vm11258_vm5 = vcmp.ge.f32.partialorder %v11238_v13, 0.0  ;;  %v11278_v25 = vmul.f32 0.1, %v11238_v13  ;;  %vm11259_vm6 = vcmp.ge.f32.partialorder %v11239_v5, 0.0  ;;  %v11279_v4 = vmul.f32 0.1, %v11239_v5 }
 0x9dd   :  { %v17029_v47 = vld [vmem:[#allocation25 + $0x698] ss:$12 sps:$4 sm:$0xff]   ;;  %v17032_v28 = vld [vmem:[#allocation25 + $0x500] ss:$12 sps:$4 sm:$0xff]   ;;  %v17034_v24 = vld [vmem:[#allocation25 + $0x5a8] ss:$12 sps:$4 sm:$0xff]  }
 0x9de   :  { %v11298_v50 = vsel %vm11258_vm5, %v11238_v13, %v11278_v25  ;;  %v11299_v41 = vsel %vm11259_vm6, %v11239_v5, %v11279_v4  ;;  %v17036_v31 = vld [vmem:[#allocation25 + $0x4e8] ss:$12 sps:$4 sm:$0xff]   ;;  %v17038_v52 = vld [vmem:[#allocation25 + $0x590] ss:$12 sps:$4 sm:$0xff]   ;;  %v17044_v25 = vld [vmem:[#allocation25 + $0x4b8] ss:$12 sps:$4 sm:$0xff]  }
 0x9df   :  { %15372 = vmatpush3.bf16.msra.mxu0 %v16989_v38  ;;  %v18669_v29 = vpack.c.bf16 %v11298_v50, %v11288_v37  ;;  %v18671_v60 = vpack.c.bf16 %v11299_v41, %v11289_v48  ;;  %v17039_v8 = vld [vmem:[#allocation25 + $0x710] ss:$12 sps:$4 sm:$0xff]   ;;  %v17042_v38 = vld [vmem:[#allocation25 + $0x578] ss:$12 sps:$4 sm:$0xff]   ;;  %v17046_v37 = vld [vmem:[#allocation25 + $0x560] ss:$12 sps:$4 sm:$0xff]  }
 0x9e0   :  { %15379 = vmatprep.subr.bf16.mxu0 %v16990_v63  ;;  %v17040_v13 = vld [vmem:[#allocation25 + $0x4d0] ss:$12 sps:$4 sm:$0xff]   ;;  %v17043_v63 = vld [vmem:[#allocation25 + $0x6f8] ss:$12 sps:$4 sm:$0xff]   ;;  %v17047_v50 = vld [vmem:[#allocation25 + $0x6e0] ss:$12 sps:$4 sm:$0xff]  }
 0x9e1   :  { %13131 = vmatprep.mubr.bf16.mxu1 %v18671_v60  ;;  %v17041_v5 = vld [vmem:[#allocation25 + $0x650] ss:$12 sps:$4 sm:$0xff]   ;;  %v17045_v4 = vld [vmem:[#allocation25 + $0x638] ss:$12 sps:$4 sm:$0xff]   ;;  %v17048_v48 = vld [vmem:[#allocation25 + $0x4a0] ss:$12 sps:$4 sm:$0xff]  }
 0x9e2   :  { %13175 = vmatmul.mubr.bf16.vlgmr.msra.gmra.mxu0 %v18639_v51  ;;  %13132 = vmatmul.mubr.bf16.vlgmr.msra.gmra.mxu1 %v18669_v29  ;;  %v17001_v51 = vld [vmem:[#allocation25 + $0x380] ss:$12 sps:$4 sm:$0xff]  }
 0x9e3   :  { %15380 = vmatpush3.bf16.msra.mxu0 %v16992_v11  ;;  %13215 = vmatprep.mubr.bf16.mxu0 %v18637_v35  ;;  %v17005_v35 = vld [vmem:[#allocation25 + $0x368] ss:$12 sps:$4 sm:$0xff]   ;;  %v17049_v41 = vld [vmem:[#allocation25 + $0x620] ss:$12 sps:$4 sm:$0xff]  }
 0x9e4   :  { %15402 = vmatpush3.bf16.msra.mxu1 %v16993_v58  ;;  %13256 = vmatprep.mubr.bf16.mxu1 %v18648_v42  ;;  %v17008_v42 = vld [vmem:[#allocation25 + $0x1d0] ss:$12 sps:$4 sm:$0xff]   ;;  %v17050_v11 = vld [vmem:[#allocation25 + $0x548] ss:$12 sps:$4 sm:$0xff]  }
 0x9e5   :  { %15381 = vmatprep.subr.bf16.mxu0 %v16994_v39  ;;  %15403 = vmatprep.subr.bf16.mxu1 %v16995_v36  ;;  %v17052_v58 = vld [vmem:[#allocation25 + $0x488] ss:$12 sps:$4 sm:$0xff]  }
 0x9e6   :  { %v17053_v39 = vld [vmem:[#allocation25 + $0x608] ss:$12 sps:$4 sm:$0xff]  }
 0x9e7   :  { %15382 = vmatpush3.bf16.msra.mxu0 %v16996_v9 }
 0x9e8   :  { %15404 = vmatpush3.bf16.msra.mxu1 %v16997_v14  ;;  %15383 = vmatprep.subr.bf16.mxu0 %v16998_v12 }
 0x9e9   :  { %15405 = vmatprep.subr.bf16.mxu1 %v16999_v15 }
 0x9eb   :  { %15384 = vmatpush3.bf16.msra.mxu0 %v17000_v33 }
 0x9ec   :  { %15406 = vmatpush3.bf16.msra.mxu1 %v17001_v51  ;;  %15385 = vmatprep.subr.bf16.mxu0 %v17002_v30  ;;  %v11630_v51 = vld [vmem:[#allocation27] sm:$0x7] }
 0x9ed   :  { %15407 = vmatprep.subr.bf16.mxu1 %v17003_v53 }
 0x9ef   :  { %15386 = vmatpush3.bf16.msra.mxu0 %v17004_v55  ;;  %v11635_v55 = vrot.slane %v11630_v51, %v18762_v46 }
 0x9f0   :  { %15408 = vmatpush3.bf16.msra.mxu1 %v17005_v35  ;;  %15387 = vmatprep.subr.bf16.mxu0 %v17006_v59  ;;  %v11639_v59 = vrot.slane %v11630_v51, %v18761_v10 }
 0x9f1   :  { %15409 = vmatprep.subr.bf16.mxu1 %v17007_v54 }
 0x9f3   :  { %15388 = vmatpush3.bf16.msra.mxu0 %v17008_v42 }
 0x9f4   :  { %15410 = vmatpush3.bf16.msra.mxu1 %v17009_v0  ;;  %15389 = vmatprep.subr.bf16.mxu0 %v17010_v62 }
 0x9f5   :  { %15411 = vmatprep.subr.bf16.mxu1 %v17011_v3 }
 0x9f7   :  { %15390 = vmatpush3.bf16.msra.mxu0 %v17012_v21 }
 0x9f8   :  { %15412 = vmatpush3.bf16.msra.mxu1 %v17013_v2  ;;  %15391 = vmatprep.subr.bf16.mxu0 %v17014_v34 }
 0x9f9   :  { %15413 = vmatprep.subr.bf16.mxu1 %v17015_v16 }
 0x9fb   :  { %15392 = vmatpush3.bf16.msra.mxu0 %v17016_v20 }
 0x9fc   :  { %15414 = vmatpush3.bf16.msra.mxu1 %v17017_v22  ;;  %15393 = vmatprep.subr.bf16.mxu0 %v17018_v1 }
 0x9fd   :  { %15415 = vmatprep.subr.bf16.mxu1 %v17019_v32 }
 0x9ff   :  { %15394 = vmatpush3.bf16.msra.mxu0 %v17020_v27 }
 0xa00   :  { %15416 = vmatpush3.bf16.msra.mxu1 %v17021_v19  ;;  %15423 = vmatprep.subr.bf16.mxu0 %v17022_v40 }
 0xa01   :  { %15445 = vmatprep.subr.bf16.mxu1 %v17023_v44 }
 0xa02   :  { %13216 = vmatmul.mubr.bf16.vlgmr.msra.gmra.mxu0 %v18641_v17  ;;  %v17033_v17 = vld [vmem:[#allocation25 + $0x680] ss:$12 sps:$4 sm:$0xff]  }
 0xa03   :  { %13257 = vmatmul.mubr.bf16.vlgmr.msra.gmra.mxu1 %v18653_v57  ;;  %15424 = vmatpush3.bf16.msra.mxu0 %v17024_v26  ;;  %v17035_v57 = vld [vmem:[#allocation25 + $0x728] ss:$12 sps:$4 sm:$0xff]  }
 0xa04   :  { %13297 = vmatprep.mubr.bf16.mxu0 %v18660_v61  ;;  %15446 = vmatpush3.bf16.msra.mxu1 %v17025_v45  ;;  %v17037_v61 = vld [vmem:[#allocation25 + $0x668] ss:$12 sps:$4 sm:$0xff]  }
 0xa05   :  { %13338 = vmatprep.mubr.bf16.mxu1 %v18671_v60  ;;  %15425 = vmatprep.subr.bf16.mxu0 %v17026_v49  ;;  %v17051_v60 = vld [vmem:[#allocation25 + $0x6c8] ss:$12 sps:$4 sm:$0xff]  }
 0xa06   :  { %15447 = vmatprep.subr.bf16.mxu1 %v17027_v43 }
 0xa07   :  { %15426 = vmatpush3.bf16.msra.mxu0 %v17028_v18 }
 0xa08   :  { %15448 = vmatpush3.bf16.msra.mxu1 %v17029_v47  ;;  %15427 = vmatprep.subr.bf16.mxu0 %v17030_v56 }
 0xa09   :  { %15449 = vmatprep.subr.bf16.mxu1 %v17031_v6 }
 0xa0b   :  { %15428 = vmatpush3.bf16.msra.mxu0 %v17032_v28 }
 0xa0c   :  { %15450 = vmatpush3.bf16.msra.mxu1 %v17033_v17  ;;  %15429 = vmatprep.subr.bf16.mxu0 %v17034_v24 }
 0xa0d   :  { %15451 = vmatprep.subr.bf16.mxu1 %v17035_v57 }
 0xa0f   :  { %15430 = vmatpush3.bf16.msra.mxu0 %v17036_v31 }
 0xa10   :  { %15452 = vmatpush3.bf16.msra.mxu1 %v17037_v61  ;;  %15431 = vmatprep.subr.bf16.mxu0 %v17038_v52 }
 0xa11   :  { %15453 = vmatprep.subr.bf16.mxu1 %v17039_v8  ;;  %v12961_v36 = vpop.f32.mrf.mxu1  ;;  %v13004_v9 = vpop.f32.mrf.mxu0 }
 0xa12   :  { %v12962_v0 = vadd.f32 %v12961_v36, %v11635_v55 }
 0xa13   :  { %15432 = vmatpush3.bf16.msra.mxu0 %v17040_v13  ;;  %v12963_v14 = vpop.f32.mrf.mxu1  ;;  %v13006_v12 = vpop.f32.mrf.mxu0 }
 0xa14   :  { %15454 = vmatpush3.bf16.msra.mxu1 %v17041_v5  ;;  %15433 = vmatprep.subr.bf16.mxu0 %v17042_v38  ;;  %v13005_v3 = vadd.f32 %v13004_v9, %v12962_v0 }
 0xa15   :  { %15455 = vmatprep.subr.bf16.mxu1 %v17043_v63  ;;  %v12965_v15 = vpop.f32.mrf.mxu1  ;;  %v13008_v33 = vpop.f32.mrf.mxu0 }
 0xa16   :  { %v12966_v21 = vadd.f32 %v12965_v15, %v11635_v55 }
 0xa17   :  { %15434 = vmatpush3.bf16.msra.mxu0 %v17044_v25  ;;  %v12967_v30 = vpop.f32.mrf.mxu1  ;;  %v13010_v35 = vpop.f32.mrf.mxu0 }
 0xa18   :  { %15456 = vmatpush3.bf16.msra.mxu1 %v17045_v4  ;;  %15435 = vmatprep.subr.bf16.mxu0 %v17046_v37  ;;  %v12968_v2 = vadd.f32 %v12967_v30, %v11639_v59  ;;  %v13009_v1 = vadd.f32 %v13008_v33, %v12966_v21 }
 0xa19   :  { %15457 = vmatprep.subr.bf16.mxu1 %v17047_v50 }
 0xa1a   :  { %v13011_v46 = vadd.f32 %v13010_v35, %v12968_v2 }
 0xa1b   :  { %15436 = vmatpush3.bf16.msra.mxu0 %v17048_v48 }
 0xa1c   :  { %15458 = vmatpush3.bf16.msra.mxu1 %v17049_v41  ;;  %15437 = vmatprep.subr.bf16.mxu0 %v17050_v11 }
 0xa1d   :  { %15459 = vmatprep.subr.bf16.mxu1 %v17051_v60  ;;  %v11643_v60 = vrot.slane %v11630_v51, %v18763_v7 }
 0xa1f   :  { %15438 = vmatpush3.bf16.msra.mxu0 %v17052_v58 }
 0xa20   :  { %15460 = vmatpush3.bf16.msra.mxu1 %v17053_v39 }
 0xa22   :  { %13298 = vmatmul.mubr.bf16.vlgmr.msra.gmra.mxu0 %v18662_v23  ;;  %v12964_v23 = vadd.f32 %v12963_v14, %v11639_v59 }
 0xa23   :  { %13339 = vmatmul.mubr.bf16.vlgmr.msra.gmra.mxu1 %v18669_v29 }
 0xa24   :  { %v13007_v34 = vadd.f32 %v13006_v12, %v12964_v23 }
 0xa51   :  { %v13047_v53 = vpop.f32.mrf.mxu1 }
 0xa52   :  { %v13048_v16 = vadd.f32 %v13047_v53, %v13005_v3 }
 0xa53   :  { %v13049_v42 = vpop.f32.mrf.mxu1 }
 0xa54   :  { %v13050_v32 = vadd.f32 %v13049_v42, %v13007_v34 }
 0xa55   :  { %v13051_v29 = vpop.f32.mrf.mxu1 }
 0xa56   :  { %v13052_v40 = vadd.f32 %v13051_v29, %v13009_v1 }
 0xa57   :  { %v13053_v22 = vpop.f32.mrf.mxu1 }
 0xa58   :  { %v13054_v45 = vadd.f32 %v13053_v22, %v13011_v46 }
 0xa82   :  { %v13090_v54 = vpop.f32.mrf.mxu0 }
 0xa83   :  { %v13091_v27 = vadd.f32 %v13090_v54, %v13048_v16 }
 0xa84   :  { %v13092_v62 = vpop.f32.mrf.mxu0 }
 0xa85   :  { %v13093_v10 = vadd.f32 %v13092_v62, %v13050_v32 }
 0xa86   :  { %v13094_v20 = vpop.f32.mrf.mxu0 }
 0xa87   :  { %v13095_v43 = vadd.f32 %v13094_v20, %v13052_v40 }
 0xa88   :  { %v13096_v44 = vpop.f32.mrf.mxu0 }
 0xa89   :  { %v13097_v56 = vadd.f32 %v13096_v44, %v13054_v45 }
 0xaa2   :  { %v13133_v19 = vpop.f32.mrf.mxu1  ;;  %v15373_v38 = vpop.f32.mrf.mxu0 }
 0xaa3   :  { %v13134_v26 = vadd.f32 %v13133_v19, %v13091_v27 }
 0xaa4   :  { %v13135_v49 = vpop.f32.mrf.mxu1  ;;  %v15374_v63 = vpop.f32.mrf.mxu0 }
 0xaa5   :  { %vm13347_vm2 = vcmp.ge.f32.partialorder %v13134_v26, 0.0  ;;  %v13353_v18 = vmul.f32 0.1, %v13134_v26  ;;  %v13136_v47 = vadd.f32 %v13135_v49, %v13093_v10  ;;  %v15375_v58 = vadd.f32 %v15374_v63, %v15373_v38 }
 0xaa6   :  { %v13137_v6 = vpop.f32.mrf.mxu1  ;;  %v15376_v25 = vpop.f32.mrf.mxu0 }
 0xaa7   :  { %v13359_v28 = vsel %vm13347_vm2, %v13134_v26, %v13353_v18  ;;  %vm13348_vm7 = vcmp.ge.f32.partialorder %v13136_v47, 0.0  ;;  %v13354_v17 = vmul.f32 0.1, %v13136_v47  ;;  %v13138_v24 = vadd.f32 %v13137_v6, %v13095_v43 }
 0xaa8   :  { %13365 = vst [vmem:[%s18723_s18] sm:$0xff] %v13359_v28  ;;  %v13139_v57 = vpop.f32.mrf.mxu1  ;;  %v15377_v4 = vpop.f32.mrf.mxu0  ;;  %v13177_v14 = vadd.f32 %v15375_v58, %v11643_v60 }
 0xaa9   :  { %v13360_v31 = vsel %vm13348_vm7, %v13136_v47, %v13354_v17  ;;  %vm13350_vm8 = vcmp.ge.f32.partialorder %v13138_v24, 0.0  ;;  %v13356_v61 = vmul.f32 0.1, %v13138_v24  ;;  %v13140_v52 = vadd.f32 %v13139_v57, %v13097_v56 }
 0xaaa   :  { %13366 = vst [vmem:[%s18723_s18 + $0x8] sm:$0xff] %v13360_v31  ;;  %v15378_v12 = vadd.f32 %v15377_v4, %v15376_v25 }
 0xaab   :  { %v13362_v8 = vsel %vm13350_vm8, %v13138_v24, %v13356_v61  ;;  %vm13351_vm9 = vcmp.ge.f32.partialorder %v13140_v52, 0.0  ;;  %v13357_v13 = vmul.f32 0.1, %v13140_v52 }
 0xaac   :  { %13368 = vst [vmem:[%s18723_s18 + $0x18] sm:$0xff] %v13362_v8  ;;  %v13180_v55 = vadd.f32 %v15378_v12, %v11643_v60 }
 0xaad   :  { %v13363_v5 = vsel %vm13351_vm9, %v13140_v52, %v13357_v13 }
 0xaae   :  { %13369 = vst [vmem:[%s18723_s18 + $0x20] sm:$0xff] %v13363_v5 }
 0xac2   :  { %v15395_v37 = vpop.f32.mrf.mxu0 }
 0xac3   :  { %v15417_v50 = vpop.f32.mrf.mxu1 }
 0xac4   :  { %v15396_v48 = vpop.f32.mrf.mxu0 }
 0xac5   :  { %v15418_v41 = vpop.f32.mrf.mxu1  ;;  %v15397_v39 = vadd.f32 %v15396_v48, %v15395_v37 }
 0xac6   :  { %v15398_v11 = vpop.f32.mrf.mxu0  ;;  %v15419_v35 = vadd.f32 %v15418_v41, %v15417_v50 }
 0xac7   :  { %v15420_v36 = vpop.f32.mrf.mxu1  ;;  %v13218_v15 = vadd.f32 %v15397_v39, %v13177_v14 }
 0xac8   :  { %v15399_v9 = vpop.f32.mrf.mxu0 }
 0xac9   :  { %v15400_v33 = vadd.f32 %v15399_v9, %v15398_v11  ;;  %v15421_v30 = vpop.f32.mrf.mxu1  ;;  %v13259_v42 = vadd.f32 %v15419_v35, %v13218_v15 }
 0xaca   :  { %v15422_v7 = vadd.f32 %v15421_v30, %v15420_v36 }
 0xacb   :  { %v13221_v0 = vadd.f32 %v15400_v33, %v13180_v55 }
 0xacd   :  { %v13262_v34 = vadd.f32 %v15422_v7, %v13221_v0 }
 0xae2   :  { %v15439_v53 = vpop.f32.mrf.mxu0 }
 0xae3   :  { %v15461_v59 = vpop.f32.mrf.mxu1 }
 0xae4   :  { %v15440_v54 = vpop.f32.mrf.mxu0 }
 0xae5   :  { %v15441_v23 = vadd.f32 %v15440_v54, %v15439_v53  ;;  %v15462_v62 = vpop.f32.mrf.mxu1 }
 0xae6   :  { %v15442_v29 = vpop.f32.mrf.mxu0  ;;  %v15463_v3 = vadd.f32 %v15462_v62, %v15461_v59 }
 0xae7   :  { %v13300_v51 = vadd.f32 %v15441_v23, %v13259_v42  ;;  %v15464_v21 = vpop.f32.mrf.mxu1 }
 0xae8   :  { %v15443_v2 = vpop.f32.mrf.mxu0 }
 0xae9   :  { %v13341_v16 = vadd.f32 %v15463_v3, %v13300_v51  ;;  %v15444_v20 = vadd.f32 %v15443_v2, %v15442_v29  ;;  %v15465_v22 = vpop.f32.mrf.mxu1 }
 0xaea   :  { %v15466_v27 = vadd.f32 %v15465_v22, %v15464_v21 }
 0xaeb   :  { %vm13349_vm10 = vcmp.ge.f32.partialorder %v13341_v16, 0.0  ;;  %v13355_v1 = vmul.f32 0.1, %v13341_v16  ;;  %v13303_v32 = vadd.f32 %v15444_v20, %v13262_v34 }
 0xaed   :  { %v13361_v46 = vsel %vm13349_vm10, %v13341_v16, %v13355_v1  ;;  %v13344_v19 = vadd.f32 %v15466_v27, %v13303_v32 }
 0xaee   :  { %13367 = vst [vmem:[%s18723_s18 + $0x10] sm:$0xff] %v13361_v46 }
 0xaef   :  { %vm13352_vm11 = vcmp.ge.f32.partialorder %v13344_v19, 0.0  ;;  %v13358_v40 = vmul.f32 0.1, %v13344_v19 }
 0xaf1   :  { %v13364_v10 = vsel %vm13352_vm11, %v13344_v19, %v13358_v40 }
 0xaf2   :  { %13370 = vst [vmem:[%s18723_s18 + $0x28] sm:$0xff] %v13364_v10 }
 0xaf3   :  { %13379 = vsyncpa [#allocation3], 1 }
 0xaf4   :  { %13380 = vsyncpa [#allocation5], 1 }
 0xaf5   :  { %13381 = vsyncpa [#allocation8], 1 }
 0xaf6   :  { %13382 = vsyncpa [#allocation11], 1 }
 0xaf7   :  { %13383 = vsyncpa [#allocation14], 1 }
 0xaf8   :  { %13384 = vsyncpa [#allocation17], 1 }
 0xaf9   :  { %13385 = vsyncpa [#allocation20], 1 }
 0xafa   :  { %13386 = vsyncpa [#allocation23], 1 }
 0xafb   :  { %13387 = vsyncpa [#allocation26], 1 }

</bundles_post_ra>
